<compile_context>
chip_gen: v7x
topology: tpu7x:2x2x1
jax: 0.10.0
libtpu: 0.0.40
codegen_flags: <defaults>
</compile_context>

<pallas_src>
import functools

import jax
import jax.numpy as jnp
from jax.experimental import pallas as pl
from jax.experimental.pallas import tpu as pltpu


# --------------------------------------------------------------------------
# Pallas kernel (one batch element per grid step)
# --------------------------------------------------------------------------
def pcw_attention_kernel(starts, pad_rows,
                         x_ref, wqkv_ref, bqkv_ref, wp_ref, bp_ref,
                         s2_ref, sb_ref, vone_ref, sbd_ref, stbd_ref,
                         bias_ref, mask_ref, o_ref,
                         kpad_ref, vpad_ref, prod_ref):
    inv_eps = 1e12                      # 1 / F.normalize eps (eps = 1e-12)
    L = x_ref.shape[1]
    C = x_ref.shape[2]
    P = len(starts)

    x = x_ref[0]                        # (L, C) — f32 or bf16

    # ---- fused q/k/v projection: one MXU pass (L, C) @ (C, 3C), f32 accum ----
    qkv = jnp.dot(x, wqkv_ref[...],
                  preferred_element_type=jnp.float32) + bqkv_ref[...]

    # ---- per-head L2 normalisation of q and k, batched into two matmuls ----
    # sumsq: (L, 3C) @ (3C, 2nh) -> per-head ||q||^2 and ||k||^2.
    sumsq = jnp.dot(qkv * qkv, s2_ref[...], preferred_element_type=jnp.float32)
    inv = jnp.minimum(jax.lax.rsqrt(sumsq), inv_eps)     # 1/max(||.||, eps), EUP
    # broadcast back to channels; q block carries the attention scale, v block
    # passes through unchanged via the `v_one` row of ones.
    mult = jnp.dot(inv, sb_ref[...],
                   preferred_element_type=jnp.float32) + vone_ref[...]
    qkvn = qkv * mult                   # [ scale*q/||q|| | k/||k|| | v ]

    q_n = qkvn[:, :C]
    k_n = qkvn[:, C:2 * C]
    v_n = qkvn[:, 2 * C:]

    # pooled query (AdaptiveAvgPool2d over spatial of the RAW input x)
    x_mean = jnp.mean(x.astype(jnp.float32), axis=0, keepdims=True)   # (1, C)
    qsum = q_n + x_mean                 # both hit the same local k

    # ---- stage k / v into zero-padded scratches ----
    # Only the small pad bands are zeroed (never overwritten by the center
    # store); done every step so each TensorCore's private scratch is safe.
    top = pad_rows
    zpad = jnp.zeros((pad_rows, C), jnp.float32)
    kpad_ref[0:top, :] = zpad
    kpad_ref[top + L:, :] = zpad
    vpad_ref[0:top, :] = zpad
    vpad_ref[top + L:, :] = zpad
    kpad_ref[top:top + L, :] = k_n
    vpad_ref[top:top + L, :] = v_n

    masks = mask_ref[...]               # (L, P) {0,1} edge-validity masks

    # ---- 3x3 "unfold": P static sublane-shifted slices, masked; products go
    # straight into the prod scratch at static lane offsets (no lane concat).
    for p, st in enumerate(starts):     # unrolled, static starts
        k_s = kpad_ref[st:st + L, :] * masks[:, p:p + 1]      # (L, C)
        prod_ref[:, p * C:(p + 1) * C] = qsum * k_s

    # ---- all P*num_heads logits in ONE block-diag matmul, softmax over L ----
    logits = jnp.dot(prod_ref[...], sbd_ref[...],
                     preferred_element_type=jnp.float32)      # (L, P*nh)
    logits = logits + bias_ref[...]                           # relative bias
    m = jnp.max(logits, axis=0, keepdims=True)
    e = jnp.exp(logits - m)
    denom = jnp.sum(e, axis=0, keepdims=True)                 # (1, P*nh) — tiny
    attn = e * pl.reciprocal(denom, approx=False)             # softmax(dim=-2)

    # broadcast head weights back to channels (one matmul, K = P*nh)
    attn_c = jnp.dot(attn, stbd_ref[...],
                     preferred_element_type=jnp.float32)      # (L, P*C)

    # ---- position reduction on the VPU: out = sum_p attn_c_p * v_p ----
    out = attn_c[:, 0:C] * (vpad_ref[starts[0]:starts[0] + L, :] * masks[:, 0:1])
    for p in range(1, P):
        st = starts[p]
        v_s = vpad_ref[st:st + L, :] * masks[:, p:p + 1]
        out = out + attn_c[:, p * C:(p + 1) * C] * v_s

    # ---- output projection ----
    y = jnp.dot(out.astype(wp_ref.dtype), wp_ref[...],
                preferred_element_type=jnp.float32) + bp_ref[...]
    o_ref[0] = y.astype(o_ref.dtype)


# --------------------------------------------------------------------------
# Wrapper
# --------------------------------------------------------------------------
def pcw_attention(x, wq, bq, wkv, bkv, wp, bp, rel_bias, *,
                  H, W, num_heads, window_size,
                  use_bf16=True, single_buffer_consts=True):
    B, L, C = x.shape
    assert L == H * W, 'input feature has wrong size'
    hd = C // num_heads
    scale = hd ** -0.5
    P = window_size ** 2
    pad = window_size // 2
    f32 = jnp.float32

    # fused q/k/v projection parameters (torch: q Linear + kv Linear)
    wqkv = jnp.concatenate([wq, wkv], axis=1)                     # (C, 3C)
    bqkv = jnp.concatenate([bq, bkv]).reshape(1, 3 * C).astype(f32)

    # one-hot head membership (C, nh) and its block-diagonal expansions
    S = (jnp.arange(C)[:, None] // hd ==
         jnp.arange(num_heads)[None, :]).astype(f32)
    eyeP = jnp.eye(P, dtype=f32)
    S_bd = jnp.kron(eyeP, S)                                      # (P*C, P*nh)
    ST_bd = jnp.kron(eyeP, S.T)                                   # (P*nh, P*C)

    # q/k L2-norm helpers: reduce (3C -> 2nh) and broadcast back (2nh -> 3C),
    # attention scale folded into the q block, v passed through via `v_one`.
    S2 = jnp.concatenate([jnp.kron(jnp.eye(2, dtype=f32), S),
                          jnp.zeros((C, 2 * num_heads), f32)], axis=0)
    row_scale = jnp.concatenate([jnp.full((num_heads,), scale, f32),
                                 jnp.ones((num_heads,), f32)])[:, None]
    SB = jnp.concatenate([jnp.kron(jnp.eye(2, dtype=f32), S.T) * row_scale,
                          jnp.zeros((2 * num_heads, C), f32)], axis=1)
    v_one = jnp.concatenate([jnp.zeros((2 * C,), f32),
                             jnp.ones((C,), f32)]).reshape(1, 3 * C)

    # relative position bias laid out to match the (L, P*nh) logits columns
    bias_wide = jnp.transpose(rel_bias).reshape(1, P * num_heads).astype(f32)

    # static window geometry: row offsets into the padded scratch + masks
    pad_rows = -(-(pad * (W + 1)) // 8) * 8          # sublane-aligned pad band
    rows = jnp.arange(L) // W
    cols = jnp.arange(L) % W
    starts, mask_cols = [], []
    for dy in range(window_size):                    # nn.Unfold (kh, kw) order
        for dx in range(window_size):
            oy, ox = dy - pad, dx - pad
            starts.append(pad_rows + oy * W + ox)
            valid = ((rows + oy >= 0) & (rows + oy < H) &
                     (cols + ox >= 0) & (cols + ox < W))
            mask_cols.append(valid.astype(f32))
    masks = jnp.stack(mask_cols, axis=1)             # (L, P)
    starts = tuple(int(s) for s in starts)

    mxu_dtype = jnp.bfloat16 if use_bf16 else f32
    x_in = x.astype(mxu_dtype)
    wqkv_in = wqkv.astype(mxu_dtype)
    wp_in = wp.astype(mxu_dtype)
    bp_in = bp.reshape(1, C).astype(f32)

    kernel = functools.partial(pcw_attention_kernel, starts, pad_rows)

    def const_spec(shape):
        nd = len(shape)
        idx = lambda b, _nd=nd: (0,) * _nd
        if single_buffer_consts:
            # grid-invariant weights: single buffer (halves their VMEM use)
            return pl.BlockSpec(shape, idx, pipeline_mode=pl.Buffered(1))
        return pl.BlockSpec(shape, idx)

    Lp = L + 2 * pad_rows
    grid_spec = pltpu.PrefetchScalarGridSpec(
        num_scalar_prefetch=0,
        grid=(B,),
        in_specs=[
            pl.BlockSpec((1, L, C), lambda b: (b, 0, 0)),   # x
            const_spec((C, 3 * C)),                         # wqkv (fused)
            const_spec((1, 3 * C)),                         # bqkv
            const_spec((C, C)),                             # wp
            const_spec((1, C)),                             # bp
            const_spec((3 * C, 2 * num_heads)),             # S2  (norm reduce)
            const_spec((2 * num_heads, 3 * C)),             # SB  (norm broadcast)
            const_spec((1, 3 * C)),                         # v_one
            const_spec((P * C, P * num_heads)),             # S block-diag
            const_spec((P * num_heads, P * C)),             # S^T block-diag
            const_spec((1, P * num_heads)),                 # relative pos bias
            const_spec((L, P)),                             # validity masks
        ],
        out_specs=pl.BlockSpec((1, L, C), lambda b: (b, 0, 0)),
        scratch_shapes=[pltpu.VMEM((Lp, C), jnp.float32),        # k padded
                        pltpu.VMEM((Lp, C), jnp.float32),        # v padded
                        pltpu.VMEM((L, P * C), jnp.float32)],    # prod staging
    )

    # advisory cost estimate + explicit scoped-VMEM limit
    itemsize = 2 if use_bf16 else 4
    flops_per_b = 2 * L * (C * 3 * C + 3 * C * 2 * num_heads
                           + 2 * num_heads * 3 * C
                           + P * C * P * num_heads + P * num_heads * P * C
                           + C * C) + 24 * L * P * C
    transc_per_b = L * (P * num_heads) + L * 2 * num_heads
    const_bytes = (wqkv.size * itemsize + wp.size * itemsize
                   + (bqkv.size + bp_in.size + S2.size + SB.size + v_one.size
                      + S_bd.size + ST_bd.size + bias_wide.size + masks.size) * 4)
    io_bytes = B * L * C * (itemsize + 4)
    cost = pl.CostEstimate(flops=int(B * flops_per_b),
                           transcendentals=int(B * transc_per_b),
                           bytes_accessed=int(const_bytes + io_bytes))

    inter_bytes = 4 * (2 * Lp * C + L * P * C            # scratches
                       + 2 * L * 3 * C                   # qkv, qkvn
                       + 2 * L * P * C                   # prod read + attn_c
                       + 2 * L * P * num_heads           # logits, attn
                       + 3 * L * C)                      # qsum / out / y
    block_bytes = 2 * (L * C * itemsize + L * C * 4) + const_bytes
    vmem_limit = int(min(max(32 * 1024 * 1024, 2 * (inter_bytes + block_bytes)),
                         64 * 1024 * 1024))

    return pl.pallas_call(
        kernel,
        out_shape=jax.ShapeDtypeStruct((B, L, C), jnp.float32),
        grid_spec=grid_spec,
        compiler_params=pltpu.CompilerParams(
            dimension_semantics=("parallel",),
            vmem_limit_bytes=vmem_limit),
        cost_estimate=cost,
    )(x_in, wqkv_in, bqkv, wp_in, bp_in, S2, SB, v_one,
      S_bd, ST_bd, bias_wide, masks)


# --------------------------------------------------------------------------
# Pure-JAX reference of the PyTorch forward (for validation)
# --------------------------------------------------------------------------
def reference_forward(x, wq, bq, wkv, bkv, wp, bp, rel_bias, *,
                      H, W, num_heads, window_size):
    B, L, C = x.shape
    hd = C // num_heads
    scale = hd ** -0.5
    pad = window_size // 2
    eps = 1e-12
    P = window_size ** 2

    wk, wv = wkv[:, :C], wkv[:, C:]
    bk, bv = bkv[:C], bkv[C:]

    q = x @ wq + bq
    q = q.reshape(B, L, num_heads, hd)
    q = q / jnp.maximum(jnp.linalg.norm(q, axis=-1, keepdims=True), eps)
    q_pixel = q.reshape(B, L, C) * scale

    k = x @ wk + bk
    v = x @ wv + bv
    kh = k.reshape(B, L, num_heads, hd)
    kh = kh / jnp.maximum(jnp.linalg.norm(kh, axis=-1, keepdims=True), eps)
    k = kh.reshape(B, L, C)

    kmap = k.reshape(B, H, W, C)
    vmap = v.reshape(B, H, W, C)
    kpad = jnp.pad(kmap, ((0, 0), (pad, pad), (pad, pad), (0, 0)))
    vpad = jnp.pad(vmap, ((0, 0), (pad, pad), (pad, pad), (0, 0)))
    k_unf = jnp.stack([kpad[:, dy:dy + H, dx:dx + W, :].reshape(B, L, C)
                       for dy in range(window_size) for dx in range(window_size)],
                      axis=1)                                        # (B, P, L, C)
    v_unf = jnp.stack([vpad[:, dy:dy + H, dx:dx + W, :].reshape(B, L, C)
                       for dy in range(window_size) for dx in range(window_size)],
                      axis=1)

    x_mean = jnp.mean(x, axis=1, keepdims=True)                      # pool_c
    qsum = q_pixel + x_mean

    prod = qsum[:, None, :, :] * k_unf                               # (B, P, L, C)
    attn_h = prod.reshape(B, P, L, num_heads, hd).sum(-1)            # (B, P, L, nh)
    attn_h = attn_h + jnp.transpose(rel_bias)[None, :, None, :]
    attn_h = jax.nn.softmax(attn_h, axis=2)                          # softmax over L
    attn_c = jnp.repeat(attn_h, hd, axis=-1)                         # (B, P, L, C)
    out = (attn_c * v_unf).sum(axis=1)                               # (B, L, C)
    return out @ wp + bp


# --------------------------------------------------------------------------
if __name__ == "__main__":
    B, H, W = 2, 8, 8
    num_heads, window_size = 8, 3
    C = 32                              # dim; head_dim = 4
    L = H * W

    key = jax.random.PRNGKey(0)
    ks = jax.random.split(key, 8)
    x = jax.random.normal(ks[0], (B, L, C), jnp.float32)
    wq = jax.random.normal(ks[1], (C, C), jnp.float32) * 0.1
    bq = jax.random.normal(ks[2], (C,), jnp.float32) * 0.1
    wkv = jax.random.normal(ks[3], (C, 2 * C), jnp.float32) * 0.1
    bkv = jax.random.normal(ks[4], (2 * C,), jnp.float32) * 0.1
    wp = jax.random.normal(ks[5], (C, C), jnp.float32) * 0.1
    bp = jax.random.normal(ks[6], (C,), jnp.float32) * 0.1
    rel_bias = jax.random.normal(ks[7], (num_heads, window_size ** 2),
                                 jnp.float32) * 0.0004   # trunc_normal(std=4e-4)

    ref = reference_forward(x, wq, bq, wkv, bkv, wp, bp, rel_bias,
                            H=H, W=W, num_heads=num_heads,
                            window_size=window_size)

    def run(use_bf16, single_buffer_consts):
        out = pcw_attention(x, wq, bq, wkv, bkv, wp, bp, rel_bias,
                            H=H, W=W, num_heads=num_heads,
                            window_size=window_size,
                            use_bf16=use_bf16,
                            single_buffer_consts=single_buffer_consts)
        return jax.block_until_ready(out)

    # f32 MXU path: tight check against the pure-JAX reference.  If this jax
    # build rejects single-buffered constants, fall back to default buffering.
    try:
        sbc = True
        out_f32 = run(use_bf16=False, single_buffer_consts=sbc)
    except Exception:
        sbc = False
        out_f32 = run(use_bf16=False, single_buffer_consts=sbc)
    assert out_f32.shape == (B, L, C)
    assert jnp.allclose(out_f32, ref, atol=2e-3, rtol=2e-3), \
        f"f32 max abs diff {jnp.max(jnp.abs(out_f32 - ref))}"

    # bf16 MXU path (default): projections use bf16 operands, f32 accumulation;
    # looser tolerance since x / weights are rounded to bf16 before the MXU.
    out_bf16 = run(use_bf16=True, single_buffer_consts=sbc)
    assert out_bf16.shape == (B, L, C)
    assert jnp.allclose(out_bf16, ref, atol=8e-2, rtol=5e-2), \
        f"bf16 max abs diff {jnp.max(jnp.abs(out_bf16 - ref))}"

    print("KERNEL_OK")
</pallas_src>

<mosaic_0001>
module attributes {stable_mosaic.version = 11 : i64} {
  func.func @pcw_attention_kernel(%arg0: i32, %arg1: memref<1x64x32xf32, #tpu.memory_space<vmem>>, %arg2: memref<32x96xf32, #tpu.memory_space<vmem>>, %arg3: memref<1x96xf32, #tpu.memory_space<vmem>>, %arg4: memref<32x32xf32, #tpu.memory_space<vmem>>, %arg5: memref<1x32xf32, #tpu.memory_space<vmem>>, %arg6: memref<96x16xf32, #tpu.memory_space<vmem>>, %arg7: memref<16x96xf32, #tpu.memory_space<vmem>>, %arg8: memref<1x96xf32, #tpu.memory_space<vmem>>, %arg9: memref<288x72xf32, #tpu.memory_space<vmem>>, %arg10: memref<72x288xf32, #tpu.memory_space<vmem>>, %arg11: memref<1x72xf32, #tpu.memory_space<vmem>>, %arg12: memref<64x9xf32, #tpu.memory_space<vmem>>, %arg13: memref<1x64x32xf32, #tpu.memory_space<vmem>>, %arg14: memref<96x32xf32, #tpu.memory_space<vmem>>, %arg15: memref<96x32xf32, #tpu.memory_space<vmem>>, %arg16: memref<64x288xf32, #tpu.memory_space<vmem>>) attributes {dimension_semantics = [#tpu.dimension_semantics<parallel>], iteration_bounds = array<i64: 2>, scalar_prefetch = 0 : i64, scratch_operands = 3 : i64, tpu.core_type = #tpu.core_type<tc>, window_params = [{transform_indices = @transform_0, window_bounds = array<i64: 1, 64, 32>}, {pipeline_mode = #tpu.pipeline_mode<synchronous>, transform_indices = @transform_1, window_bounds = array<i64: 32, 96>}, {pipeline_mode = #tpu.pipeline_mode<synchronous>, transform_indices = @transform_2, window_bounds = array<i64: 1, 96>}, {pipeline_mode = #tpu.pipeline_mode<synchronous>, transform_indices = @transform_3, window_bounds = array<i64: 32, 32>}, {pipeline_mode = #tpu.pipeline_mode<synchronous>, transform_indices = @transform_4, window_bounds = array<i64: 1, 32>}, {pipeline_mode = #tpu.pipeline_mode<synchronous>, transform_indices = @transform_5, window_bounds = array<i64: 96, 16>}, {pipeline_mode = #tpu.pipeline_mode<synchronous>, transform_indices = @transform_6, window_bounds = array<i64: 16, 96>}, {pipeline_mode = #tpu.pipeline_mode<synchronous>, transform_indices = @transform_7, window_bounds = array<i64: 1, 96>}, {pipeline_mode = #tpu.pipeline_mode<synchronous>, transform_indices = @transform_8, window_bounds = array<i64: 288, 72>}, {pipeline_mode = #tpu.pipeline_mode<synchronous>, transform_indices = @transform_9, window_bounds = array<i64: 72, 288>}, {pipeline_mode = #tpu.pipeline_mode<synchronous>, transform_indices = @transform_10, window_bounds = array<i64: 1, 72>}, {pipeline_mode = #tpu.pipeline_mode<synchronous>, transform_indices = @transform_11, window_bounds = array<i64: 64, 9>}, {transform_indices = @transform_12, window_bounds = array<i64: 1, 64, 32>}]} {
    %c0 = arith.constant 0 : index
    %c0_0 = arith.constant 0 : index
    %c0_1 = arith.constant 0 : index
    %0 = vector.load %arg1[%c0, %c0_0, %c0_1] : memref<1x64x32xf32, #tpu.memory_space<vmem>>, vector<1x64x32xf32>
    %1 = vector.shape_cast %0 : vector<1x64x32xf32> to vector<64x32xf32>
    %c0_2 = arith.constant 0 : index
    %c0_3 = arith.constant 0 : index
    %2 = vector.load %arg2[%c0_2, %c0_3] : memref<32x96xf32, #tpu.memory_space<vmem>>, vector<32x96xf32>
    %cst = arith.constant dense<0.000000e+00> : vector<64x96xf32>
    %3 = tpu.matmul %1, %2, %cst {dimension_numbers = #tpu.dot_dimension_numbers<[1], [0], [0], [1], [0, 0, 1, 1], [], []>} : vector<64x32xf32>, vector<32x96xf32>, vector<64x96xf32> -> vector<64x96xf32>
    %c0_4 = arith.constant 0 : index
    %c0_5 = arith.constant 0 : index
    %4 = vector.load %arg3[%c0_4, %c0_5] : memref<1x96xf32, #tpu.memory_space<vmem>>, vector<1x96xf32>
    %5 = vector.broadcast %4 : vector<1x96xf32> to vector<64x96xf32>
    %6 = arith.addf %3, %5 : vector<64x96xf32>
    %7 = arith.mulf %6, %6 : vector<64x96xf32>
    %c0_6 = arith.constant 0 : index
    %c0_7 = arith.constant 0 : index
    %8 = vector.load %arg6[%c0_6, %c0_7] : memref<96x16xf32, #tpu.memory_space<vmem>>, vector<96x16xf32>
    %cst_8 = arith.constant dense<0.000000e+00> : vector<64x16xf32>
    %9 = tpu.matmul %7, %8, %cst_8 {dimension_numbers = #tpu.dot_dimension_numbers<[1], [0], [0], [1], [0, 0, 1, 1], [], []>} : vector<64x96xf32>, vector<96x16xf32>, vector<64x16xf32> -> vector<64x16xf32>
    %10 = math.rsqrt %9 : vector<64x16xf32>
    %cst_9 = arith.constant 9.99999995E+11 : f32
    %11 = vector.broadcast %cst_9 : f32 to vector<64x16xf32>
    %12 = arith.minimumf %10, %11 : vector<64x16xf32>
    %c0_10 = arith.constant 0 : index
    %c0_11 = arith.constant 0 : index
    %13 = vector.load %arg7[%c0_10, %c0_11] : memref<16x96xf32, #tpu.memory_space<vmem>>, vector<16x96xf32>
    %cst_12 = arith.constant dense<0.000000e+00> : vector<64x96xf32>
    %14 = tpu.matmul %12, %13, %cst_12 {dimension_numbers = #tpu.dot_dimension_numbers<[1], [0], [0], [1], [0, 0, 1, 1], [], []>} : vector<64x16xf32>, vector<16x96xf32>, vector<64x96xf32> -> vector<64x96xf32>
    %c0_13 = arith.constant 0 : index
    %c0_14 = arith.constant 0 : index
    %15 = vector.load %arg8[%c0_13, %c0_14] : memref<1x96xf32, #tpu.memory_space<vmem>>, vector<1x96xf32>
    %16 = vector.broadcast %15 : vector<1x96xf32> to vector<64x96xf32>
    %17 = arith.addf %14, %16 : vector<64x96xf32>
    %18 = arith.mulf %6, %17 : vector<64x96xf32>
    %19 = vector.extract_strided_slice %18 {offsets = [0, 0], sizes = [64, 32], strides = [1, 1]} : vector<64x96xf32> to vector<64x32xf32>
    %20 = vector.extract_strided_slice %18 {offsets = [0, 32], sizes = [64, 32], strides = [1, 1]} : vector<64x96xf32> to vector<64x32xf32>
    %21 = vector.extract_strided_slice %18 {offsets = [0, 64], sizes = [64, 32], strides = [1, 1]} : vector<64x96xf32> to vector<64x32xf32>
    %cst_15 = arith.constant dense<0.000000e+00> : vector<32xf32>
    %22 = vector.multi_reduction <add>, %1, %cst_15 [0] : vector<64x32xf32> to vector<32xf32>
    %23 = vector.shape_cast %22 : vector<32xf32> to vector<1x32xf32>
    %cst_16 = arith.constant 6.400000e+01 : f32
    %24 = vector.broadcast %cst_16 : f32 to vector<1x32xf32>
    %25 = arith.divf %23, %24 : vector<1x32xf32>
    %26 = vector.broadcast %25 : vector<1x32xf32> to vector<64x32xf32>
    %27 = arith.addf %19, %26 : vector<64x32xf32>
    %cst_17 = arith.constant 0.000000e+00 : f32
    %28 = vector.broadcast %cst_17 : f32 to vector<16x32xf32>
    %c0_18 = arith.constant 0 : index
    %c0_19 = arith.constant 0 : index
    %29 = vector.load %arg14[%c0_18, %c0_19] : memref<96x32xf32, #tpu.memory_space<vmem>>, vector<16x32xf32>
    tpu.vector_store %arg14[%c0_18, %c0_19], %28 {strides = array<i32>} : memref<96x32xf32, #tpu.memory_space<vmem>>, vector<16x32xf32>,
    %c80 = arith.constant 80 : index
    %c0_20 = arith.constant 0 : index
    %30 = vector.load %arg14[%c80, %c0_20] : memref<96x32xf32, #tpu.memory_space<vmem>>, vector<16x32xf32>
    tpu.vector_store %arg14[%c80, %c0_20], %28 {strides = array<i32>} : memref<96x32xf32, #tpu.memory_space<vmem>>, vector<16x32xf32>,
    %c0_21 = arith.constant 0 : index
    %c0_22 = arith.constant 0 : index
    %31 = vector.load %arg15[%c0_21, %c0_22] : memref<96x32xf32, #tpu.memory_space<vmem>>, vector<16x32xf32>
    tpu.vector_store %arg15[%c0_21, %c0_22], %28 {strides = array<i32>} : memref<96x32xf32, #tpu.memory_space<vmem>>, vector<16x32xf32>,
    %c80_23 = arith.constant 80 : index
    %c0_24 = arith.constant 0 : index
    %32 = vector.load %arg15[%c80_23, %c0_24] : memref<96x32xf32, #tpu.memory_space<vmem>>, vector<16x32xf32>
    tpu.vector_store %arg15[%c80_23, %c0_24], %28 {strides = array<i32>} : memref<96x32xf32, #tpu.memory_space<vmem>>, vector<16x32xf32>,
    %c16 = arith.constant 16 : index
    %c0_25 = arith.constant 0 : index
    %33 = vector.load %arg14[%c16, %c0_25] : memref<96x32xf32, #tpu.memory_space<vmem>>, vector<64x32xf32>
    tpu.vector_store %arg14[%c16, %c0_25], %20 {strides = array<i32>} : memref<96x32xf32, #tpu.memory_space<vmem>>, vector<64x32xf32>,
    %c16_26 = arith.constant 16 : index
    %c0_27 = arith.constant 0 : index
    %34 = vector.load %arg15[%c16_26, %c0_27] : memref<96x32xf32, #tpu.memory_space<vmem>>, vector<64x32xf32>
    tpu.vector_store %arg15[%c16_26, %c0_27], %21 {strides = array<i32>} : memref<96x32xf32, #tpu.memory_space<vmem>>, vector<64x32xf32>,
    %c0_28 = arith.constant 0 : index
    %c0_29 = arith.constant 0 : index
    %35 = vector.load %arg12[%c0_28, %c0_29] : memref<64x9xf32, #tpu.memory_space<vmem>>, vector<64x9xf32>
    %c7 = arith.constant 7 : index
    %c0_30 = arith.constant 0 : index
    %36 = vector.load %arg14[%c7, %c0_30] : memref<96x32xf32, #tpu.memory_space<vmem>>, vector<64x32xf32>
    %37 = vector.extract_strided_slice %35 {offsets = [0, 0], sizes = [64, 1], strides = [1, 1]} : vector<64x9xf32> to vector<64x1xf32>
    %38 = vector.broadcast %37 : vector<64x1xf32> to vector<64x32xf32>
    %39 = arith.mulf %36, %38 : vector<64x32xf32>
    %40 = arith.mulf %27, %39 : vector<64x32xf32>
    %c0_31 = arith.constant 0 : index
    %c0_32 = arith.constant 0 : index
    %41 = vector.load %arg16[%c0_31, %c0_32] : memref<64x288xf32, #tpu.memory_space<vmem>>, vector<64x32xf32>
    tpu.vector_store %arg16[%c0_31, %c0_32], %40 {strides = array<i32>} : memref<64x288xf32, #tpu.memory_space<vmem>>, vector<64x32xf32>,
    %c8 = arith.constant 8 : index
    %c0_33 = arith.constant 0 : index
    %42 = vector.load %arg14[%c8, %c0_33] : memref<96x32xf32, #tpu.memory_space<vmem>>, vector<64x32xf32>
    %43 = vector.extract_strided_slice %35 {offsets = [0, 1], sizes = [64, 1], strides = [1, 1]} : vector<64x9xf32> to vector<64x1xf32>
    %44 = vector.broadcast %43 : vector<64x1xf32> to vector<64x32xf32>
    %45 = arith.mulf %42, %44 : vector<64x32xf32>
    %46 = arith.mulf %27, %45 : vector<64x32xf32>
    %c0_34 = arith.constant 0 : index
    %c32 = arith.constant 32 : index
    %47 = vector.load %arg16[%c0_34, %c32] : memref<64x288xf32, #tpu.memory_space<vmem>>, vector<64x32xf32>
    tpu.vector_store %arg16[%c0_34, %c32], %46 {strides = array<i32>} : memref<64x288xf32, #tpu.memory_space<vmem>>, vector<64x32xf32>,
    %c9 = arith.constant 9 : index
    %c0_35 = arith.constant 0 : index
    %48 = vector.load %arg14[%c9, %c0_35] : memref<96x32xf32, #tpu.memory_space<vmem>>, vector<64x32xf32>
    %49 = vector.extract_strided_slice %35 {offsets = [0, 2], sizes = [64, 1], strides = [1, 1]} : vector<64x9xf32> to vector<64x1xf32>
    %50 = vector.broadcast %49 : vector<64x1xf32> to vector<64x32xf32>
    %51 = arith.mulf %48, %50 : vector<64x32xf32>
    %52 = arith.mulf %27, %51 : vector<64x32xf32>
    %c0_36 = arith.constant 0 : index
    %c64 = arith.constant 64 : index
    %53 = vector.load %arg16[%c0_36, %c64] : memref<64x288xf32, #tpu.memory_space<vmem>>, vector<64x32xf32>
    tpu.vector_store %arg16[%c0_36, %c64], %52 {strides = array<i32>} : memref<64x288xf32, #tpu.memory_space<vmem>>, vector<64x32xf32>,
    %c15 = arith.constant 15 : index
    %c0_37 = arith.constant 0 : index
    %54 = vector.load %arg14[%c15, %c0_37] : memref<96x32xf32, #tpu.memory_space<vmem>>, vector<64x32xf32>
    %55 = vector.extract_strided_slice %35 {offsets = [0, 3], sizes = [64, 1], strides = [1, 1]} : vector<64x9xf32> to vector<64x1xf32>
    %56 = vector.broadcast %55 : vector<64x1xf32> to vector<64x32xf32>
    %57 = arith.mulf %54, %56 : vector<64x32xf32>
    %58 = arith.mulf %27, %57 : vector<64x32xf32>
    %c0_38 = arith.constant 0 : index
    %c96 = arith.constant 96 : index
    %59 = vector.load %arg16[%c0_38, %c96] : memref<64x288xf32, #tpu.memory_space<vmem>>, vector<64x32xf32>
    tpu.vector_store %arg16[%c0_38, %c96], %58 {strides = array<i32>} : memref<64x288xf32, #tpu.memory_space<vmem>>, vector<64x32xf32>,
    %c16_39 = arith.constant 16 : index
    %c0_40 = arith.constant 0 : index
    %60 = vector.load %arg14[%c16_39, %c0_40] : memref<96x32xf32, #tpu.memory_space<vmem>>, vector<64x32xf32>
    %61 = vector.extract_strided_slice %35 {offsets = [0, 4], sizes = [64, 1], strides = [1, 1]} : vector<64x9xf32> to vector<64x1xf32>
    %62 = vector.broadcast %61 : vector<64x1xf32> to vector<64x32xf32>
    %63 = arith.mulf %60, %62 : vector<64x32xf32>
    %64 = arith.mulf %27, %63 : vector<64x32xf32>
    %c0_41 = arith.constant 0 : index
    %c128 = arith.constant 128 : index
    %65 = vector.load %arg16[%c0_41, %c128] : memref<64x288xf32, #tpu.memory_space<vmem>>, vector<64x32xf32>
    tpu.vector_store %arg16[%c0_41, %c128], %64 {strides = array<i32>} : memref<64x288xf32, #tpu.memory_space<vmem>>, vector<64x32xf32>,
    %c17 = arith.constant 17 : index
    %c0_42 = arith.constant 0 : index
    %66 = vector.load %arg14[%c17, %c0_42] : memref<96x32xf32, #tpu.memory_space<vmem>>, vector<64x32xf32>
    %67 = vector.extract_strided_slice %35 {offsets = [0, 5], sizes = [64, 1], strides = [1, 1]} : vector<64x9xf32> to vector<64x1xf32>
    %68 = vector.broadcast %67 : vector<64x1xf32> to vector<64x32xf32>
    %69 = arith.mulf %66, %68 : vector<64x32xf32>
    %70 = arith.mulf %27, %69 : vector<64x32xf32>
    %c0_43 = arith.constant 0 : index
    %c160 = arith.constant 160 : index
    %71 = vector.load %arg16[%c0_43, %c160] : memref<64x288xf32, #tpu.memory_space<vmem>>, vector<64x32xf32>
    tpu.vector_store %arg16[%c0_43, %c160], %70 {strides = array<i32>} : memref<64x288xf32, #tpu.memory_space<vmem>>, vector<64x32xf32>,
    %c23 = arith.constant 23 : index
    %c0_44 = arith.constant 0 : index
    %72 = vector.load %arg14[%c23, %c0_44] : memref<96x32xf32, #tpu.memory_space<vmem>>, vector<64x32xf32>
    %73 = vector.extract_strided_slice %35 {offsets = [0, 6], sizes = [64, 1], strides = [1, 1]} : vector<64x9xf32> to vector<64x1xf32>
    %74 = vector.broadcast %73 : vector<64x1xf32> to vector<64x32xf32>
    %75 = arith.mulf %72, %74 : vector<64x32xf32>
    %76 = arith.mulf %27, %75 : vector<64x32xf32>
    %c0_45 = arith.constant 0 : index
    %c192 = arith.constant 192 : index
    %77 = vector.load %arg16[%c0_45, %c192] : memref<64x288xf32, #tpu.memory_space<vmem>>, vector<64x32xf32>
    tpu.vector_store %arg16[%c0_45, %c192], %76 {strides = array<i32>} : memref<64x288xf32, #tpu.memory_space<vmem>>, vector<64x32xf32>,
    %c24 = arith.constant 24 : index
    %c0_46 = arith.constant 0 : index
    %78 = vector.load %arg14[%c24, %c0_46] : memref<96x32xf32, #tpu.memory_space<vmem>>, vector<64x32xf32>
    %79 = vector.extract_strided_slice %35 {offsets = [0, 7], sizes = [64, 1], strides = [1, 1]} : vector<64x9xf32> to vector<64x1xf32>
    %80 = vector.broadcast %79 : vector<64x1xf32> to vector<64x32xf32>
    %81 = arith.mulf %78, %80 : vector<64x32xf32>
    %82 = arith.mulf %27, %81 : vector<64x32xf32>
    %c0_47 = arith.constant 0 : index
    %c224 = arith.constant 224 : index
    %83 = vector.load %arg16[%c0_47, %c224] : memref<64x288xf32, #tpu.memory_space<vmem>>, vector<64x32xf32>
    tpu.vector_store %arg16[%c0_47, %c224], %82 {strides = array<i32>} : memref<64x288xf32, #tpu.memory_space<vmem>>, vector<64x32xf32>,
    %c25 = arith.constant 25 : index
    %c0_48 = arith.constant 0 : index
    %84 = vector.load %arg14[%c25, %c0_48] : memref<96x32xf32, #tpu.memory_space<vmem>>, vector<64x32xf32>
    %85 = vector.extract_strided_slice %35 {offsets = [0, 8], sizes = [64, 1], strides = [1, 1]} : vector<64x9xf32> to vector<64x1xf32>
    %86 = vector.broadcast %85 : vector<64x1xf32> to vector<64x32xf32>
    %87 = arith.mulf %84, %86 : vector<64x32xf32>
    %88 = arith.mulf %27, %87 : vector<64x32xf32>
    %c0_49 = arith.constant 0 : index
    %c256 = arith.constant 256 : index
    %89 = vector.load %arg16[%c0_49, %c256] : memref<64x288xf32, #tpu.memory_space<vmem>>, vector<64x32xf32>
    tpu.vector_store %arg16[%c0_49, %c256], %88 {strides = array<i32>} : memref<64x288xf32, #tpu.memory_space<vmem>>, vector<64x32xf32>,
    %c0_50 = arith.constant 0 : index
    %c0_51 = arith.constant 0 : index
    %90 = vector.load %arg16[%c0_50, %c0_51] : memref<64x288xf32, #tpu.memory_space<vmem>>, vector<64x288xf32>
    %c0_52 = arith.constant 0 : index
    %c0_53 = arith.constant 0 : index
    %91 = vector.load %arg9[%c0_52, %c0_53] : memref<288x72xf32, #tpu.memory_space<vmem>>, vector<288x72xf32>
    %cst_54 = arith.constant dense<0.000000e+00> : vector<64x72xf32>
    %92 = tpu.matmul %90, %91, %cst_54 {dimension_numbers = #tpu.dot_dimension_numbers<[1], [0], [0], [1], [0, 0, 1, 1], [], []>} : vector<64x288xf32>, vector<288x72xf32>, vector<64x72xf32> -> vector<64x72xf32>
    %c0_55 = arith.constant 0 : index
    %c0_56 = arith.constant 0 : index
    %93 = vector.load %arg11[%c0_55, %c0_56] : memref<1x72xf32, #tpu.memory_space<vmem>>, vector<1x72xf32>
    %94 = vector.broadcast %93 : vector<1x72xf32> to vector<64x72xf32>
    %95 = arith.addf %92, %94 : vector<64x72xf32>
    %cst_57 = arith.constant dense<0xFF800000> : vector<72xf32>
    %96 = vector.multi_reduction <maximumf>, %95, %cst_57 [0] : vector<64x72xf32> to vector<72xf32>
    %97 = vector.shape_cast %96 : vector<72xf32> to vector<1x72xf32>
    %98 = vector.broadcast %97 : vector<1x72xf32> to vector<64x72xf32>
    %99 = arith.subf %95, %98 : vector<64x72xf32>
    %100 = math.exp %99 : vector<64x72xf32>
    %cst_58 = arith.constant dense<0.000000e+00> : vector<72xf32>
    %101 = vector.multi_reduction <add>, %100, %cst_58 [0] : vector<64x72xf32> to vector<72xf32>
    %102 = vector.shape_cast %101 : vector<72xf32> to vector<1x72xf32>
    %103 = tpu.reciprocal %102 : vector<1x72xf32> -> vector<1x72xf32>
    %104 = vector.broadcast %103 : vector<1x72xf32> to vector<64x72xf32>
    %105 = arith.mulf %100, %104 : vector<64x72xf32>
    %c0_59 = arith.constant 0 : index
    %c0_60 = arith.constant 0 : index
    %106 = vector.load %arg10[%c0_59, %c0_60] : memref<72x288xf32, #tpu.memory_space<vmem>>, vector<72x288xf32>
    %cst_61 = arith.constant dense<0.000000e+00> : vector<64x288xf32>
    %107 = tpu.matmul %105, %106, %cst_61 {dimension_numbers = #tpu.dot_dimension_numbers<[1], [0], [0], [1], [0, 0, 1, 1], [], []>} : vector<64x72xf32>, vector<72x288xf32>, vector<64x288xf32> -> vector<64x288xf32>
    %108 = vector.extract_strided_slice %107 {offsets = [0, 0], sizes = [64, 32], strides = [1, 1]} : vector<64x288xf32> to vector<64x32xf32>
    %c7_62 = arith.constant 7 : index
    %c0_63 = arith.constant 0 : index
    %109 = vector.load %arg15[%c7_62, %c0_63] : memref<96x32xf32, #tpu.memory_space<vmem>>, vector<64x32xf32>
    %110 = vector.extract_strided_slice %35 {offsets = [0, 0], sizes = [64, 1], strides = [1, 1]} : vector<64x9xf32> to vector<64x1xf32>
    %111 = vector.broadcast %110 : vector<64x1xf32> to vector<64x32xf32>
    %112 = arith.mulf %109, %111 : vector<64x32xf32>
    %113 = arith.mulf %108, %112 : vector<64x32xf32>
    %c8_64 = arith.constant 8 : index
    %c0_65 = arith.constant 0 : index
    %114 = vector.load %arg15[%c8_64, %c0_65] : memref<96x32xf32, #tpu.memory_space<vmem>>, vector<64x32xf32>
    %115 = vector.extract_strided_slice %35 {offsets = [0, 1], sizes = [64, 1], strides = [1, 1]} : vector<64x9xf32> to vector<64x1xf32>
    %116 = vector.broadcast %115 : vector<64x1xf32> to vector<64x32xf32>
    %117 = arith.mulf %114, %116 : vector<64x32xf32>
    %118 = vector.extract_strided_slice %107 {offsets = [0, 32], sizes = [64, 32], strides = [1, 1]} : vector<64x288xf32> to vector<64x32xf32>
    %119 = arith.mulf %118, %117 : vector<64x32xf32>
    %120 = arith.addf %113, %119 : vector<64x32xf32>
    %c9_66 = arith.constant 9 : index
    %c0_67 = arith.constant 0 : index
    %121 = vector.load %arg15[%c9_66, %c0_67] : memref<96x32xf32, #tpu.memory_space<vmem>>, vector<64x32xf32>
    %122 = vector.extract_strided_slice %35 {offsets = [0, 2], sizes = [64, 1], strides = [1, 1]} : vector<64x9xf32> to vector<64x1xf32>
    %123 = vector.broadcast %122 : vector<64x1xf32> to vector<64x32xf32>
    %124 = arith.mulf %121, %123 : vector<64x32xf32>
    %125 = vector.extract_strided_slice %107 {offsets = [0, 64], sizes = [64, 32], strides = [1, 1]} : vector<64x288xf32> to vector<64x32xf32>
    %126 = arith.mulf %125, %124 : vector<64x32xf32>
    %127 = arith.addf %120, %126 : vector<64x32xf32>
    %c15_68 = arith.constant 15 : index
    %c0_69 = arith.constant 0 : index
    %128 = vector.load %arg15[%c15_68, %c0_69] : memref<96x32xf32, #tpu.memory_space<vmem>>, vector<64x32xf32>
    %129 = vector.extract_strided_slice %35 {offsets = [0, 3], sizes = [64, 1], strides = [1, 1]} : vector<64x9xf32> to vector<64x1xf32>
    %130 = vector.broadcast %129 : vector<64x1xf32> to vector<64x32xf32>
    %131 = arith.mulf %128, %130 : vector<64x32xf32>
    %132 = vector.extract_strided_slice %107 {offsets = [0, 96], sizes = [64, 32], strides = [1, 1]} : vector<64x288xf32> to vector<64x32xf32>
    %133 = arith.mulf %132, %131 : vector<64x32xf32>
    %134 = arith.addf %127, %133 : vector<64x32xf32>
    %c16_70 = arith.constant 16 : index
    %c0_71 = arith.constant 0 : index
    %135 = vector.load %arg15[%c16_70, %c0_71] : memref<96x32xf32, #tpu.memory_space<vmem>>, vector<64x32xf32>
    %136 = vector.extract_strided_slice %35 {offsets = [0, 4], sizes = [64, 1], strides = [1, 1]} : vector<64x9xf32> to vector<64x1xf32>
    %137 = vector.broadcast %136 : vector<64x1xf32> to vector<64x32xf32>
    %138 = arith.mulf %135, %137 : vector<64x32xf32>
    %139 = vector.extract_strided_slice %107 {offsets = [0, 128], sizes = [64, 32], strides = [1, 1]} : vector<64x288xf32> to vector<64x32xf32>
    %140 = arith.mulf %139, %138 : vector<64x32xf32>
    %141 = arith.addf %134, %140 : vector<64x32xf32>
    %c17_72 = arith.constant 17 : index
    %c0_73 = arith.constant 0 : index
    %142 = vector.load %arg15[%c17_72, %c0_73] : memref<96x32xf32, #tpu.memory_space<vmem>>, vector<64x32xf32>
    %143 = vector.extract_strided_slice %35 {offsets = [0, 5], sizes = [64, 1], strides = [1, 1]} : vector<64x9xf32> to vector<64x1xf32>
    %144 = vector.broadcast %143 : vector<64x1xf32> to vector<64x32xf32>
    %145 = arith.mulf %142, %144 : vector<64x32xf32>
    %146 = vector.extract_strided_slice %107 {offsets = [0, 160], sizes = [64, 32], strides = [1, 1]} : vector<64x288xf32> to vector<64x32xf32>
    %147 = arith.mulf %146, %145 : vector<64x32xf32>
    %148 = arith.addf %141, %147 : vector<64x32xf32>
    %c23_74 = arith.constant 23 : index
    %c0_75 = arith.constant 0 : index
    %149 = vector.load %arg15[%c23_74, %c0_75] : memref<96x32xf32, #tpu.memory_space<vmem>>, vector<64x32xf32>
    %150 = vector.extract_strided_slice %35 {offsets = [0, 6], sizes = [64, 1], strides = [1, 1]} : vector<64x9xf32> to vector<64x1xf32>
    %151 = vector.broadcast %150 : vector<64x1xf32> to vector<64x32xf32>
    %152 = arith.mulf %149, %151 : vector<64x32xf32>
    %153 = vector.extract_strided_slice %107 {offsets = [0, 192], sizes = [64, 32], strides = [1, 1]} : vector<64x288xf32> to vector<64x32xf32>
    %154 = arith.mulf %153, %152 : vector<64x32xf32>
    %155 = arith.addf %148, %154 : vector<64x32xf32>
    %c24_76 = arith.constant 24 : index
    %c0_77 = arith.constant 0 : index
    %156 = vector.load %arg15[%c24_76, %c0_77] : memref<96x32xf32, #tpu.memory_space<vmem>>, vector<64x32xf32>
    %157 = vector.extract_strided_slice %35 {offsets = [0, 7], sizes = [64, 1], strides = [1, 1]} : vector<64x9xf32> to vector<64x1xf32>
    %158 = vector.broadcast %157 : vector<64x1xf32> to vector<64x32xf32>
    %159 = arith.mulf %156, %158 : vector<64x32xf32>
    %160 = vector.extract_strided_slice %107 {offsets = [0, 224], sizes = [64, 32], strides = [1, 1]} : vector<64x288xf32> to vector<64x32xf32>
    %161 = arith.mulf %160, %159 : vector<64x32xf32>
    %162 = arith.addf %155, %161 : vector<64x32xf32>
    %c25_78 = arith.constant 25 : index
    %c0_79 = arith.constant 0 : index
    %163 = vector.load %arg15[%c25_78, %c0_79] : memref<96x32xf32, #tpu.memory_space<vmem>>, vector<64x32xf32>
    %164 = vector.extract_strided_slice %35 {offsets = [0, 8], sizes = [64, 1], strides = [1, 1]} : vector<64x9xf32> to vector<64x1xf32>
    %165 = vector.broadcast %164 : vector<64x1xf32> to vector<64x32xf32>
    %166 = arith.mulf %163, %165 : vector<64x32xf32>
    %167 = vector.extract_strided_slice %107 {offsets = [0, 256], sizes = [64, 32], strides = [1, 1]} : vector<64x288xf32> to vector<64x32xf32>
    %168 = arith.mulf %167, %166 : vector<64x32xf32>
    %169 = arith.addf %162, %168 : vector<64x32xf32>
    %c0_80 = arith.constant 0 : index
    %c0_81 = arith.constant 0 : index
    %170 = vector.load %arg4[%c0_80, %c0_81] : memref<32x32xf32, #tpu.memory_space<vmem>>, vector<32x32xf32>
    %cst_82 = arith.constant dense<0.000000e+00> : vector<64x32xf32>
    %171 = tpu.matmul %169, %170, %cst_82 {dimension_numbers = #tpu.dot_dimension_numbers<[1], [0], [0], [1], [0, 0, 1, 1], [], []>} : vector<64x32xf32>, vector<32x32xf32>, vector<64x32xf32> -> vector<64x32xf32>
    %c0_83 = arith.constant 0 : index
    %c0_84 = arith.constant 0 : index
    %172 = vector.load %arg5[%c0_83, %c0_84] : memref<1x32xf32, #tpu.memory_space<vmem>>, vector<1x32xf32>
    %173 = vector.broadcast %172 : vector<1x32xf32> to vector<64x32xf32>
    %174 = arith.addf %171, %173 : vector<64x32xf32>
    %c0_85 = arith.constant 0 : index
    %c0_86 = arith.constant 0 : index
    %c0_87 = arith.constant 0 : index
    %175 = vector.load %arg13[%c0_85, %c0_86, %c0_87] : memref<1x64x32xf32, #tpu.memory_space<vmem>>, vector<1x64x32xf32>
    %176 = vector.shape_cast %175 : vector<1x64x32xf32> to vector<64x32xf32>
    %177 = vector.shape_cast %174 : vector<64x32xf32> to vector<1x64x32xf32>
    tpu.vector_store %arg13[%c0_85, %c0_86, %c0_87], %177 {strides = array<i32>} : memref<1x64x32xf32, #tpu.memory_space<vmem>>, vector<1x64x32xf32>,
    return
  }
  func.func @transform_0(%arg0: i32) -> (i32, i32, i32) {
    %c0_i32 = arith.constant 0 : i32
    %c0_i32_0 = arith.constant 0 : i32
    %c0_i32_1 = arith.constant 0 : i32
    return %arg0, %c0_i32, %c0_i32_0 : i32, i32, i32
  }
  func.func @transform_1(%arg0: i32) -> (i32, i32) {
    %c0_i32 = arith.constant 0 : i32
    %c0_i32_0 = arith.constant 0 : i32
    %c0_i32_1 = arith.constant 0 : i32
    return %c0_i32, %c0_i32_0 : i32, i32
  }
  func.func @transform_2(%arg0: i32) -> (i32, i32) {
    %c0_i32 = arith.constant 0 : i32
    %c0_i32_0 = arith.constant 0 : i32
    %c0_i32_1 = arith.constant 0 : i32
    return %c0_i32, %c0_i32_0 : i32, i32
  }
  func.func @transform_3(%arg0: i32) -> (i32, i32) {
    %c0_i32 = arith.constant 0 : i32
    %c0_i32_0 = arith.constant 0 : i32
    %c0_i32_1 = arith.constant 0 : i32
    return %c0_i32, %c0_i32_0 : i32, i32
  }
  func.func @transform_4(%arg0: i32) -> (i32, i32) {
    %c0_i32 = arith.constant 0 : i32
    %c0_i32_0 = arith.constant 0 : i32
    %c0_i32_1 = arith.constant 0 : i32
    return %c0_i32, %c0_i32_0 : i32, i32
  }
  func.func @transform_5(%arg0: i32) -> (i32, i32) {
    %c0_i32 = arith.constant 0 : i32
    %c0_i32_0 = arith.constant 0 : i32
    %c0_i32_1 = arith.constant 0 : i32
    return %c0_i32, %c0_i32_0 : i32, i32
  }
  func.func @transform_6(%arg0: i32) -> (i32, i32) {
    %c0_i32 = arith.constant 0 : i32
    %c0_i32_0 = arith.constant 0 : i32
    %c0_i32_1 = arith.constant 0 : i32
    return %c0_i32, %c0_i32_0 : i32, i32
  }
  func.func @transform_7(%arg0: i32) -> (i32, i32) {
    %c0_i32 = arith.constant 0 : i32
    %c0_i32_0 = arith.constant 0 : i32
    %c0_i32_1 = arith.constant 0 : i32
    return %c0_i32, %c0_i32_0 : i32, i32
  }
  func.func @transform_8(%arg0: i32) -> (i32, i32) {
    %c0_i32 = arith.constant 0 : i32
    %c0_i32_0 = arith.constant 0 : i32
    %c0_i32_1 = arith.constant 0 : i32
    return %c0_i32, %c0_i32_0 : i32, i32
  }
  func.func @transform_9(%arg0: i32) -> (i32, i32) {
    %c0_i32 = arith.constant 0 : i32
    %c0_i32_0 = arith.constant 0 : i32
    %c0_i32_1 = arith.constant 0 : i32
    return %c0_i32, %c0_i32_0 : i32, i32
  }
  func.func @transform_10(%arg0: i32) -> (i32, i32) {
    %c0_i32 = arith.constant 0 : i32
    %c0_i32_0 = arith.constant 0 : i32
    %c0_i32_1 = arith.constant 0 : i32
    return %c0_i32, %c0_i32_0 : i32, i32
  }
  func.func @transform_11(%arg0: i32) -> (i32, i32) {
    %c0_i32 = arith.constant 0 : i32
    %c0_i32_0 = arith.constant 0 : i32
    %c0_i32_1 = arith.constant 0 : i32
    return %c0_i32, %c0_i32_0 : i32, i32
  }
  func.func @transform_12(%arg0: i32) -> (i32, i32, i32) {
    %c0_i32 = arith.constant 0 : i32
    %c0_i32_0 = arith.constant 0 : i32
    %c0_i32_1 = arith.constant 0 : i32
    return %arg0, %c0_i32, %c0_i32_0 : i32, i32, i32
  }
}

module attributes {stable_mosaic.version = 11 : i64} {
  func.func @pcw_attention_kernel(%arg0: i32, %arg1: memref<1x64x32xf32, #tpu.memory_space<vmem>>, %arg2: memref<32x96xf32, #tpu.memory_space<vmem>>, %arg3: memref<1x96xf32, #tpu.memory_space<vmem>>, %arg4: memref<32x32xf32, #tpu.memory_space<vmem>>, %arg5: memref<1x32xf32, #tpu.memory_space<vmem>>, %arg6: memref<96x16xf32, #tpu.memory_space<vmem>>, %arg7: memref<16x96xf32, #tpu.memory_space<vmem>>, %arg8: memref<1x96xf32, #tpu.memory_space<vmem>>, %arg9: memref<288x72xf32, #tpu.memory_space<vmem>>, %arg10: memref<72x288xf32, #tpu.memory_space<vmem>>, %arg11: memref<1x72xf32, #tpu.memory_space<vmem>>, %arg12: memref<64x9xf32, #tpu.memory_space<vmem>>, %arg13: memref<1x64x32xf32, #tpu.memory_space<vmem>>, %arg14: memref<96x32xf32, #tpu.memory_space<vmem>>, %arg15: memref<96x32xf32, #tpu.memory_space<vmem>>, %arg16: memref<64x288xf32, #tpu.memory_space<vmem>>) attributes {dimension_semantics = [#tpu.dimension_semantics<parallel>], iteration_bounds = array<i64: 2>, scalar_prefetch = 0 : i64, scratch_operands = 3 : i64, tpu.core_type = #tpu.core_type<tc>, window_params = [{transform_indices = @transform_0, window_bounds = array<i64: 1, 64, 32>}, {pipeline_mode = #tpu.pipeline_mode<synchronous>, transform_indices = @transform_1, window_bounds = array<i64: 32, 96>}, {pipeline_mode = #tpu.pipeline_mode<synchronous>, transform_indices = @transform_2, window_bounds = array<i64: 1, 96>}, {pipeline_mode = #tpu.pipeline_mode<synchronous>, transform_indices = @transform_3, window_bounds = array<i64: 32, 32>}, {pipeline_mode = #tpu.pipeline_mode<synchronous>, transform_indices = @transform_4, window_bounds = array<i64: 1, 32>}, {pipeline_mode = #tpu.pipeline_mode<synchronous>, transform_indices = @transform_5, window_bounds = array<i64: 96, 16>}, {pipeline_mode = #tpu.pipeline_mode<synchronous>, transform_indices = @transform_6, window_bounds = array<i64: 16, 96>}, {pipeline_mode = #tpu.pipeline_mode<synchronous>, transform_indices = @transform_7, window_bounds = array<i64: 1, 96>}, {pipeline_mode = #tpu.pipeline_mode<synchronous>, transform_indices = @transform_8, window_bounds = array<i64: 288, 72>}, {pipeline_mode = #tpu.pipeline_mode<synchronous>, transform_indices = @transform_9, window_bounds = array<i64: 72, 288>}, {pipeline_mode = #tpu.pipeline_mode<synchronous>, transform_indices = @transform_10, window_bounds = array<i64: 1, 72>}, {pipeline_mode = #tpu.pipeline_mode<synchronous>, transform_indices = @transform_11, window_bounds = array<i64: 64, 9>}, {transform_indices = @transform_12, window_bounds = array<i64: 1, 64, 32>}]} {
    %c0 = arith.constant 0 : index
    %c0_0 = arith.constant 0 : index
    %c0_1 = arith.constant 0 : index
    %0 = vector.load %arg1[%c0, %c0_0, %c0_1] : memref<1x64x32xf32, #tpu.memory_space<vmem>>, vector<1x64x32xf32>
    %1 = vector.shape_cast %0 : vector<1x64x32xf32> to vector<64x32xf32>
    %c0_2 = arith.constant 0 : index
    %c0_3 = arith.constant 0 : index
    %2 = vector.load %arg2[%c0_2, %c0_3] : memref<32x96xf32, #tpu.memory_space<vmem>>, vector<32x96xf32>
    %cst = arith.constant dense<0.000000e+00> : vector<64x96xf32>
    %3 = tpu.matmul %1, %2, %cst {dimension_numbers = #tpu.dot_dimension_numbers<[1], [0], [0], [1], [0, 0, 1, 1], [], []>} : vector<64x32xf32>, vector<32x96xf32>, vector<64x96xf32> -> vector<64x96xf32>
    %c0_4 = arith.constant 0 : index
    %c0_5 = arith.constant 0 : index
    %4 = vector.load %arg3[%c0_4, %c0_5] : memref<1x96xf32, #tpu.memory_space<vmem>>, vector<1x96xf32>
    %5 = vector.broadcast %4 : vector<1x96xf32> to vector<64x96xf32>
    %6 = arith.addf %3, %5 : vector<64x96xf32>
    %7 = arith.mulf %6, %6 : vector<64x96xf32>
    %c0_6 = arith.constant 0 : index
    %c0_7 = arith.constant 0 : index
    %8 = vector.load %arg6[%c0_6, %c0_7] : memref<96x16xf32, #tpu.memory_space<vmem>>, vector<96x16xf32>
    %cst_8 = arith.constant dense<0.000000e+00> : vector<64x16xf32>
    %9 = tpu.matmul %7, %8, %cst_8 {dimension_numbers = #tpu.dot_dimension_numbers<[1], [0], [0], [1], [0, 0, 1, 1], [], []>} : vector<64x96xf32>, vector<96x16xf32>, vector<64x16xf32> -> vector<64x16xf32>
    %10 = math.rsqrt %9 : vector<64x16xf32>
    %cst_9 = arith.constant 9.99999995E+11 : f32
    %11 = vector.broadcast %cst_9 : f32 to vector<64x16xf32>
    %12 = arith.minimumf %10, %11 : vector<64x16xf32>
    %c0_10 = arith.constant 0 : index
    %c0_11 = arith.constant 0 : index
    %13 = vector.load %arg7[%c0_10, %c0_11] : memref<16x96xf32, #tpu.memory_space<vmem>>, vector<16x96xf32>
    %cst_12 = arith.constant dense<0.000000e+00> : vector<64x96xf32>
    %14 = tpu.matmul %12, %13, %cst_12 {dimension_numbers = #tpu.dot_dimension_numbers<[1], [0], [0], [1], [0, 0, 1, 1], [], []>} : vector<64x16xf32>, vector<16x96xf32>, vector<64x96xf32> -> vector<64x96xf32>
    %c0_13 = arith.constant 0 : index
    %c0_14 = arith.constant 0 : index
    %15 = vector.load %arg8[%c0_13, %c0_14] : memref<1x96xf32, #tpu.memory_space<vmem>>, vector<1x96xf32>
    %16 = vector.broadcast %15 : vector<1x96xf32> to vector<64x96xf32>
    %17 = arith.addf %14, %16 : vector<64x96xf32>
    %18 = arith.mulf %6, %17 : vector<64x96xf32>
    %19 = vector.extract_strided_slice %18 {offsets = [0, 0], sizes = [64, 32], strides = [1, 1]} : vector<64x96xf32> to vector<64x32xf32>
    %20 = vector.extract_strided_slice %18 {offsets = [0, 32], sizes = [64, 32], strides = [1, 1]} : vector<64x96xf32> to vector<64x32xf32>
    %21 = vector.extract_strided_slice %18 {offsets = [0, 64], sizes = [64, 32], strides = [1, 1]} : vector<64x96xf32> to vector<64x32xf32>
    %cst_15 = arith.constant dense<0.000000e+00> : vector<32xf32>
    %22 = vector.multi_reduction <add>, %1, %cst_15 [0] : vector<64x32xf32> to vector<32xf32>
    %23 = vector.shape_cast %22 : vector<32xf32> to vector<1x32xf32>
    %cst_16 = arith.constant 6.400000e+01 : f32
    %24 = vector.broadcast %cst_16 : f32 to vector<1x32xf32>
    %25 = arith.divf %23, %24 : vector<1x32xf32>
    %26 = vector.broadcast %25 : vector<1x32xf32> to vector<64x32xf32>
    %27 = arith.addf %19, %26 : vector<64x32xf32>
    %cst_17 = arith.constant 0.000000e+00 : f32
    %28 = vector.broadcast %cst_17 : f32 to vector<16x32xf32>
    %c0_18 = arith.constant 0 : index
    %c0_19 = arith.constant 0 : index
    %29 = vector.load %arg14[%c0_18, %c0_19] : memref<96x32xf32, #tpu.memory_space<vmem>>, vector<16x32xf32>
    tpu.vector_store %arg14[%c0_18, %c0_19], %28 {strides = array<i32>} : memref<96x32xf32, #tpu.memory_space<vmem>>, vector<16x32xf32>,
    %c80 = arith.constant 80 : index
    %c0_20 = arith.constant 0 : index
    %30 = vector.load %arg14[%c80, %c0_20] : memref<96x32xf32, #tpu.memory_space<vmem>>, vector<16x32xf32>
    tpu.vector_store %arg14[%c80, %c0_20], %28 {strides = array<i32>} : memref<96x32xf32, #tpu.memory_space<vmem>>, vector<16x32xf32>,
    %c0_21 = arith.constant 0 : index
    %c0_22 = arith.constant 0 : index
    %31 = vector.load %arg15[%c0_21, %c0_22] : memref<96x32xf32, #tpu.memory_space<vmem>>, vector<16x32xf32>
    tpu.vector_store %arg15[%c0_21, %c0_22], %28 {strides = array<i32>} : memref<96x32xf32, #tpu.memory_space<vmem>>, vector<16x32xf32>,
    %c80_23 = arith.constant 80 : index
    %c0_24 = arith.constant 0 : index
    %32 = vector.load %arg15[%c80_23, %c0_24] : memref<96x32xf32, #tpu.memory_space<vmem>>, vector<16x32xf32>
    tpu.vector_store %arg15[%c80_23, %c0_24], %28 {strides = array<i32>} : memref<96x32xf32, #tpu.memory_space<vmem>>, vector<16x32xf32>,
    %c16 = arith.constant 16 : index
    %c0_25 = arith.constant 0 : index
    %33 = vector.load %arg14[%c16, %c0_25] : memref<96x32xf32, #tpu.memory_space<vmem>>, vector<64x32xf32>
    tpu.vector_store %arg14[%c16, %c0_25], %20 {strides = array<i32>} : memref<96x32xf32, #tpu.memory_space<vmem>>, vector<64x32xf32>,
    %c16_26 = arith.constant 16 : index
    %c0_27 = arith.constant 0 : index
    %34 = vector.load %arg15[%c16_26, %c0_27] : memref<96x32xf32, #tpu.memory_space<vmem>>, vector<64x32xf32>
    tpu.vector_store %arg15[%c16_26, %c0_27], %21 {strides = array<i32>} : memref<96x32xf32, #tpu.memory_space<vmem>>, vector<64x32xf32>,
    %c0_28 = arith.constant 0 : index
    %c0_29 = arith.constant 0 : index
    %35 = vector.load %arg12[%c0_28, %c0_29] : memref<64x9xf32, #tpu.memory_space<vmem>>, vector<64x9xf32>
    %c7 = arith.constant 7 : index
    %c0_30 = arith.constant 0 : index
    %36 = vector.load %arg14[%c7, %c0_30] : memref<96x32xf32, #tpu.memory_space<vmem>>, vector<64x32xf32>
    %37 = vector.extract_strided_slice %35 {offsets = [0, 0], sizes = [64, 1], strides = [1, 1]} : vector<64x9xf32> to vector<64x1xf32>
    %38 = vector.broadcast %37 : vector<64x1xf32> to vector<64x32xf32>
    %39 = arith.mulf %36, %38 : vector<64x32xf32>
    %40 = arith.mulf %27, %39 : vector<64x32xf32>
    %c0_31 = arith.constant 0 : index
    %c0_32 = arith.constant 0 : index
    %41 = vector.load %arg16[%c0_31, %c0_32] : memref<64x288xf32, #tpu.memory_space<vmem>>, vector<64x32xf32>
    tpu.vector_store %arg16[%c0_31, %c0_32], %40 {strides = array<i32>} : memref<64x288xf32, #tpu.memory_space<vmem>>, vector<64x32xf32>,
    %c8 = arith.constant 8 : index
    %c0_33 = arith.constant 0 : index
    %42 = vector.load %arg14[%c8, %c0_33] : memref<96x32xf32, #tpu.memory_space<vmem>>, vector<64x32xf32>
    %43 = vector.extract_strided_slice %35 {offsets = [0, 1], sizes = [64, 1], strides = [1, 1]} : vector<64x9xf32> to vector<64x1xf32>
    %44 = vector.broadcast %43 : vector<64x1xf32> to vector<64x32xf32>
    %45 = arith.mulf %42, %44 : vector<64x32xf32>
    %46 = arith.mulf %27, %45 : vector<64x32xf32>
    %c0_34 = arith.constant 0 : index
    %c32 = arith.constant 32 : index
    %47 = vector.load %arg16[%c0_34, %c32] : memref<64x288xf32, #tpu.memory_space<vmem>>, vector<64x32xf32>
    tpu.vector_store %arg16[%c0_34, %c32], %46 {strides = array<i32>} : memref<64x288xf32, #tpu.memory_space<vmem>>, vector<64x32xf32>,
    %c9 = arith.constant 9 : index
    %c0_35 = arith.constant 0 : index
    %48 = vector.load %arg14[%c9, %c0_35] : memref<96x32xf32, #tpu.memory_space<vmem>>, vector<64x32xf32>
    %49 = vector.extract_strided_slice %35 {offsets = [0, 2], sizes = [64, 1], strides = [1, 1]} : vector<64x9xf32> to vector<64x1xf32>
    %50 = vector.broadcast %49 : vector<64x1xf32> to vector<64x32xf32>
    %51 = arith.mulf %48, %50 : vector<64x32xf32>
    %52 = arith.mulf %27, %51 : vector<64x32xf32>
    %c0_36 = arith.constant 0 : index
    %c64 = arith.constant 64 : index
    %53 = vector.load %arg16[%c0_36, %c64] : memref<64x288xf32, #tpu.memory_space<vmem>>, vector<64x32xf32>
    tpu.vector_store %arg16[%c0_36, %c64], %52 {strides = array<i32>} : memref<64x288xf32, #tpu.memory_space<vmem>>, vector<64x32xf32>,
    %c15 = arith.constant 15 : index
    %c0_37 = arith.constant 0 : index
    %54 = vector.load %arg14[%c15, %c0_37] : memref<96x32xf32, #tpu.memory_space<vmem>>, vector<64x32xf32>
    %55 = vector.extract_strided_slice %35 {offsets = [0, 3], sizes = [64, 1], strides = [1, 1]} : vector<64x9xf32> to vector<64x1xf32>
    %56 = vector.broadcast %55 : vector<64x1xf32> to vector<64x32xf32>
    %57 = arith.mulf %54, %56 : vector<64x32xf32>
    %58 = arith.mulf %27, %57 : vector<64x32xf32>
    %c0_38 = arith.constant 0 : index
    %c96 = arith.constant 96 : index
    %59 = vector.load %arg16[%c0_38, %c96] : memref<64x288xf32, #tpu.memory_space<vmem>>, vector<64x32xf32>
    tpu.vector_store %arg16[%c0_38, %c96], %58 {strides = array<i32>} : memref<64x288xf32, #tpu.memory_space<vmem>>, vector<64x32xf32>,
    %c16_39 = arith.constant 16 : index
    %c0_40 = arith.constant 0 : index
    %60 = vector.load %arg14[%c16_39, %c0_40] : memref<96x32xf32, #tpu.memory_space<vmem>>, vector<64x32xf32>
    %61 = vector.extract_strided_slice %35 {offsets = [0, 4], sizes = [64, 1], strides = [1, 1]} : vector<64x9xf32> to vector<64x1xf32>
    %62 = vector.broadcast %61 : vector<64x1xf32> to vector<64x32xf32>
    %63 = arith.mulf %60, %62 : vector<64x32xf32>
    %64 = arith.mulf %27, %63 : vector<64x32xf32>
    %c0_41 = arith.constant 0 : index
    %c128 = arith.constant 128 : index
    %65 = vector.load %arg16[%c0_41, %c128] : memref<64x288xf32, #tpu.memory_space<vmem>>, vector<64x32xf32>
    tpu.vector_store %arg16[%c0_41, %c128], %64 {strides = array<i32>} : memref<64x288xf32, #tpu.memory_space<vmem>>, vector<64x32xf32>,
    %c17 = arith.constant 17 : index
    %c0_42 = arith.constant 0 : index
    %66 = vector.load %arg14[%c17, %c0_42] : memref<96x32xf32, #tpu.memory_space<vmem>>, vector<64x32xf32>
    %67 = vector.extract_strided_slice %35 {offsets = [0, 5], sizes = [64, 1], strides = [1, 1]} : vector<64x9xf32> to vector<64x1xf32>
    %68 = vector.broadcast %67 : vector<64x1xf32> to vector<64x32xf32>
    %69 = arith.mulf %66, %68 : vector<64x32xf32>
    %70 = arith.mulf %27, %69 : vector<64x32xf32>
    %c0_43 = arith.constant 0 : index
    %c160 = arith.constant 160 : index
    %71 = vector.load %arg16[%c0_43, %c160] : memref<64x288xf32, #tpu.memory_space<vmem>>, vector<64x32xf32>
    tpu.vector_store %arg16[%c0_43, %c160], %70 {strides = array<i32>} : memref<64x288xf32, #tpu.memory_space<vmem>>, vector<64x32xf32>,
    %c23 = arith.constant 23 : index
    %c0_44 = arith.constant 0 : index
    %72 = vector.load %arg14[%c23, %c0_44] : memref<96x32xf32, #tpu.memory_space<vmem>>, vector<64x32xf32>
    %73 = vector.extract_strided_slice %35 {offsets = [0, 6], sizes = [64, 1], strides = [1, 1]} : vector<64x9xf32> to vector<64x1xf32>
    %74 = vector.broadcast %73 : vector<64x1xf32> to vector<64x32xf32>
    %75 = arith.mulf %72, %74 : vector<64x32xf32>
    %76 = arith.mulf %27, %75 : vector<64x32xf32>
    %c0_45 = arith.constant 0 : index
    %c192 = arith.constant 192 : index
    %77 = vector.load %arg16[%c0_45, %c192] : memref<64x288xf32, #tpu.memory_space<vmem>>, vector<64x32xf32>
    tpu.vector_store %arg16[%c0_45, %c192], %76 {strides = array<i32>} : memref<64x288xf32, #tpu.memory_space<vmem>>, vector<64x32xf32>,
    %c24 = arith.constant 24 : index
    %c0_46 = arith.constant 0 : index
    %78 = vector.load %arg14[%c24, %c0_46] : memref<96x32xf32, #tpu.memory_space<vmem>>, vector<64x32xf32>
    %79 = vector.extract_strided_slice %35 {offsets = [0, 7], sizes = [64, 1], strides = [1, 1]} : vector<64x9xf32> to vector<64x1xf32>
    %80 = vector.broadcast %79 : vector<64x1xf32> to vector<64x32xf32>
    %81 = arith.mulf %78, %80 : vector<64x32xf32>
    %82 = arith.mulf %27, %81 : vector<64x32xf32>
    %c0_47 = arith.constant 0 : index
    %c224 = arith.constant 224 : index
    %83 = vector.load %arg16[%c0_47, %c224] : memref<64x288xf32, #tpu.memory_space<vmem>>, vector<64x32xf32>
    tpu.vector_store %arg16[%c0_47, %c224], %82 {strides = array<i32>} : memref<64x288xf32, #tpu.memory_space<vmem>>, vector<64x32xf32>,
    %c25 = arith.constant 25 : index
    %c0_48 = arith.constant 0 : index
    %84 = vector.load %arg14[%c25, %c0_48] : memref<96x32xf32, #tpu.memory_space<vmem>>, vector<64x32xf32>
    %85 = vector.extract_strided_slice %35 {offsets = [0, 8], sizes = [64, 1], strides = [1, 1]} : vector<64x9xf32> to vector<64x1xf32>
    %86 = vector.broadcast %85 : vector<64x1xf32> to vector<64x32xf32>
    %87 = arith.mulf %84, %86 : vector<64x32xf32>
    %88 = arith.mulf %27, %87 : vector<64x32xf32>
    %c0_49 = arith.constant 0 : index
    %c256 = arith.constant 256 : index
    %89 = vector.load %arg16[%c0_49, %c256] : memref<64x288xf32, #tpu.memory_space<vmem>>, vector<64x32xf32>
    tpu.vector_store %arg16[%c0_49, %c256], %88 {strides = array<i32>} : memref<64x288xf32, #tpu.memory_space<vmem>>, vector<64x32xf32>,
    %c0_50 = arith.constant 0 : index
    %c0_51 = arith.constant 0 : index
    %90 = vector.load %arg16[%c0_50, %c0_51] : memref<64x288xf32, #tpu.memory_space<vmem>>, vector<64x288xf32>
    %c0_52 = arith.constant 0 : index
    %c0_53 = arith.constant 0 : index
    %91 = vector.load %arg9[%c0_52, %c0_53] : memref<288x72xf32, #tpu.memory_space<vmem>>, vector<288x72xf32>
    %cst_54 = arith.constant dense<0.000000e+00> : vector<64x72xf32>
    %92 = tpu.matmul %90, %91, %cst_54 {dimension_numbers = #tpu.dot_dimension_numbers<[1], [0], [0], [1], [0, 0, 1, 1], [], []>} : vector<64x288xf32>, vector<288x72xf32>, vector<64x72xf32> -> vector<64x72xf32>
    %c0_55 = arith.constant 0 : index
    %c0_56 = arith.constant 0 : index
    %93 = vector.load %arg11[%c0_55, %c0_56] : memref<1x72xf32, #tpu.memory_space<vmem>>, vector<1x72xf32>
    %94 = vector.broadcast %93 : vector<1x72xf32> to vector<64x72xf32>
    %95 = arith.addf %92, %94 : vector<64x72xf32>
    %cst_57 = arith.constant dense<0xFF800000> : vector<72xf32>
    %96 = vector.multi_reduction <maximumf>, %95, %cst_57 [0] : vector<64x72xf32> to vector<72xf32>
    %97 = vector.shape_cast %96 : vector<72xf32> to vector<1x72xf32>
    %98 = vector.broadcast %97 : vector<1x72xf32> to vector<64x72xf32>
    %99 = arith.subf %95, %98 : vector<64x72xf32>
    %100 = math.exp %99 : vector<64x72xf32>
    %cst_58 = arith.constant dense<0.000000e+00> : vector<72xf32>
    %101 = vector.multi_reduction <add>, %100, %cst_58 [0] : vector<64x72xf32> to vector<72xf32>
    %102 = vector.shape_cast %101 : vector<72xf32> to vector<1x72xf32>
    %103 = tpu.reciprocal %102 : vector<1x72xf32> -> vector<1x72xf32>
    %104 = vector.broadcast %103 : vector<1x72xf32> to vector<64x72xf32>
    %105 = arith.mulf %100, %104 : vector<64x72xf32>
    %c0_59 = arith.constant 0 : index
    %c0_60 = arith.constant 0 : index
    %106 = vector.load %arg10[%c0_59, %c0_60] : memref<72x288xf32, #tpu.memory_space<vmem>>, vector<72x288xf32>
    %cst_61 = arith.constant dense<0.000000e+00> : vector<64x288xf32>
    %107 = tpu.matmul %105, %106, %cst_61 {dimension_numbers = #tpu.dot_dimension_numbers<[1], [0], [0], [1], [0, 0, 1, 1], [], []>} : vector<64x72xf32>, vector<72x288xf32>, vector<64x288xf32> -> vector<64x288xf32>
    %108 = vector.extract_strided_slice %107 {offsets = [0, 0], sizes = [64, 32], strides = [1, 1]} : vector<64x288xf32> to vector<64x32xf32>
    %c7_62 = arith.constant 7 : index
    %c0_63 = arith.constant 0 : index
    %109 = vector.load %arg15[%c7_62, %c0_63] : memref<96x32xf32, #tpu.memory_space<vmem>>, vector<64x32xf32>
    %110 = vector.extract_strided_slice %35 {offsets = [0, 0], sizes = [64, 1], strides = [1, 1]} : vector<64x9xf32> to vector<64x1xf32>
    %111 = vector.broadcast %110 : vector<64x1xf32> to vector<64x32xf32>
    %112 = arith.mulf %109, %111 : vector<64x32xf32>
    %113 = arith.mulf %108, %112 : vector<64x32xf32>
    %c8_64 = arith.constant 8 : index
    %c0_65 = arith.constant 0 : index
    %114 = vector.load %arg15[%c8_64, %c0_65] : memref<96x32xf32, #tpu.memory_space<vmem>>, vector<64x32xf32>
    %115 = vector.extract_strided_slice %35 {offsets = [0, 1], sizes = [64, 1], strides = [1, 1]} : vector<64x9xf32> to vector<64x1xf32>
    %116 = vector.broadcast %115 : vector<64x1xf32> to vector<64x32xf32>
    %117 = arith.mulf %114, %116 : vector<64x32xf32>
    %118 = vector.extract_strided_slice %107 {offsets = [0, 32], sizes = [64, 32], strides = [1, 1]} : vector<64x288xf32> to vector<64x32xf32>
    %119 = arith.mulf %118, %117 : vector<64x32xf32>
    %120 = arith.addf %113, %119 : vector<64x32xf32>
    %c9_66 = arith.constant 9 : index
    %c0_67 = arith.constant 0 : index
    %121 = vector.load %arg15[%c9_66, %c0_67] : memref<96x32xf32, #tpu.memory_space<vmem>>, vector<64x32xf32>
    %122 = vector.extract_strided_slice %35 {offsets = [0, 2], sizes = [64, 1], strides = [1, 1]} : vector<64x9xf32> to vector<64x1xf32>
    %123 = vector.broadcast %122 : vector<64x1xf32> to vector<64x32xf32>
    %124 = arith.mulf %121, %123 : vector<64x32xf32>
    %125 = vector.extract_strided_slice %107 {offsets = [0, 64], sizes = [64, 32], strides = [1, 1]} : vector<64x288xf32> to vector<64x32xf32>
    %126 = arith.mulf %125, %124 : vector<64x32xf32>
    %127 = arith.addf %120, %126 : vector<64x32xf32>
    %c15_68 = arith.constant 15 : index
    %c0_69 = arith.constant 0 : index
    %128 = vector.load %arg15[%c15_68, %c0_69] : memref<96x32xf32, #tpu.memory_space<vmem>>, vector<64x32xf32>
    %129 = vector.extract_strided_slice %35 {offsets = [0, 3], sizes = [64, 1], strides = [1, 1]} : vector<64x9xf32> to vector<64x1xf32>
    %130 = vector.broadcast %129 : vector<64x1xf32> to vector<64x32xf32>
    %131 = arith.mulf %128, %130 : vector<64x32xf32>
    %132 = vector.extract_strided_slice %107 {offsets = [0, 96], sizes = [64, 32], strides = [1, 1]} : vector<64x288xf32> to vector<64x32xf32>
    %133 = arith.mulf %132, %131 : vector<64x32xf32>
    %134 = arith.addf %127, %133 : vector<64x32xf32>
    %c16_70 = arith.constant 16 : index
    %c0_71 = arith.constant 0 : index
    %135 = vector.load %arg15[%c16_70, %c0_71] : memref<96x32xf32, #tpu.memory_space<vmem>>, vector<64x32xf32>
    %136 = vector.extract_strided_slice %35 {offsets = [0, 4], sizes = [64, 1], strides = [1, 1]} : vector<64x9xf32> to vector<64x1xf32>
    %137 = vector.broadcast %136 : vector<64x1xf32> to vector<64x32xf32>
    %138 = arith.mulf %135, %137 : vector<64x32xf32>
    %139 = vector.extract_strided_slice %107 {offsets = [0, 128], sizes = [64, 32], strides = [1, 1]} : vector<64x288xf32> to vector<64x32xf32>
    %140 = arith.mulf %139, %138 : vector<64x32xf32>
    %141 = arith.addf %134, %140 : vector<64x32xf32>
    %c17_72 = arith.constant 17 : index
    %c0_73 = arith.constant 0 : index
    %142 = vector.load %arg15[%c17_72, %c0_73] : memref<96x32xf32, #tpu.memory_space<vmem>>, vector<64x32xf32>
    %143 = vector.extract_strided_slice %35 {offsets = [0, 5], sizes = [64, 1], strides = [1, 1]} : vector<64x9xf32> to vector<64x1xf32>
    %144 = vector.broadcast %143 : vector<64x1xf32> to vector<64x32xf32>
    %145 = arith.mulf %142, %144 : vector<64x32xf32>
    %146 = vector.extract_strided_slice %107 {offsets = [0, 160], sizes = [64, 32], strides = [1, 1]} : vector<64x288xf32> to vector<64x32xf32>
    %147 = arith.mulf %146, %145 : vector<64x32xf32>
    %148 = arith.addf %141, %147 : vector<64x32xf32>
    %c23_74 = arith.constant 23 : index
    %c0_75 = arith.constant 0 : index
    %149 = vector.load %arg15[%c23_74, %c0_75] : memref<96x32xf32, #tpu.memory_space<vmem>>, vector<64x32xf32>
    %150 = vector.extract_strided_slice %35 {offsets = [0, 6], sizes = [64, 1], strides = [1, 1]} : vector<64x9xf32> to vector<64x1xf32>
    %151 = vector.broadcast %150 : vector<64x1xf32> to vector<64x32xf32>
    %152 = arith.mulf %149, %151 : vector<64x32xf32>
    %153 = vector.extract_strided_slice %107 {offsets = [0, 192], sizes = [64, 32], strides = [1, 1]} : vector<64x288xf32> to vector<64x32xf32>
    %154 = arith.mulf %153, %152 : vector<64x32xf32>
    %155 = arith.addf %148, %154 : vector<64x32xf32>
    %c24_76 = arith.constant 24 : index
    %c0_77 = arith.constant 0 : index
    %156 = vector.load %arg15[%c24_76, %c0_77] : memref<96x32xf32, #tpu.memory_space<vmem>>, vector<64x32xf32>
    %157 = vector.extract_strided_slice %35 {offsets = [0, 7], sizes = [64, 1], strides = [1, 1]} : vector<64x9xf32> to vector<64x1xf32>
    %158 = vector.broadcast %157 : vector<64x1xf32> to vector<64x32xf32>
    %159 = arith.mulf %156, %158 : vector<64x32xf32>
    %160 = vector.extract_strided_slice %107 {offsets = [0, 224], sizes = [64, 32], strides = [1, 1]} : vector<64x288xf32> to vector<64x32xf32>
    %161 = arith.mulf %160, %159 : vector<64x32xf32>
    %162 = arith.addf %155, %161 : vector<64x32xf32>
    %c25_78 = arith.constant 25 : index
    %c0_79 = arith.constant 0 : index
    %163 = vector.load %arg15[%c25_78, %c0_79] : memref<96x32xf32, #tpu.memory_space<vmem>>, vector<64x32xf32>
    %164 = vector.extract_strided_slice %35 {offsets = [0, 8], sizes = [64, 1], strides = [1, 1]} : vector<64x9xf32> to vector<64x1xf32>
    %165 = vector.broadcast %164 : vector<64x1xf32> to vector<64x32xf32>
    %166 = arith.mulf %163, %165 : vector<64x32xf32>
    %167 = vector.extract_strided_slice %107 {offsets = [0, 256], sizes = [64, 32], strides = [1, 1]} : vector<64x288xf32> to vector<64x32xf32>
    %168 = arith.mulf %167, %166 : vector<64x32xf32>
    %169 = arith.addf %162, %168 : vector<64x32xf32>
    %c0_80 = arith.constant 0 : index
    %c0_81 = arith.constant 0 : index
    %170 = vector.load %arg4[%c0_80, %c0_81] : memref<32x32xf32, #tpu.memory_space<vmem>>, vector<32x32xf32>
    %cst_82 = arith.constant dense<0.000000e+00> : vector<64x32xf32>
    %171 = tpu.matmul %169, %170, %cst_82 {dimension_numbers = #tpu.dot_dimension_numbers<[1], [0], [0], [1], [0, 0, 1, 1], [], []>} : vector<64x32xf32>, vector<32x32xf32>, vector<64x32xf32> -> vector<64x32xf32>
    %c0_83 = arith.constant 0 : index
    %c0_84 = arith.constant 0 : index
    %172 = vector.load %arg5[%c0_83, %c0_84] : memref<1x32xf32, #tpu.memory_space<vmem>>, vector<1x32xf32>
    %173 = vector.broadcast %172 : vector<1x32xf32> to vector<64x32xf32>
    %174 = arith.addf %171, %173 : vector<64x32xf32>
    %c0_85 = arith.constant 0 : index
    %c0_86 = arith.constant 0 : index
    %c0_87 = arith.constant 0 : index
    %175 = vector.load %arg13[%c0_85, %c0_86, %c0_87] : memref<1x64x32xf32, #tpu.memory_space<vmem>>, vector<1x64x32xf32>
    %176 = vector.shape_cast %175 : vector<1x64x32xf32> to vector<64x32xf32>
    %177 = vector.shape_cast %174 : vector<64x32xf32> to vector<1x64x32xf32>
    tpu.vector_store %arg13[%c0_85, %c0_86, %c0_87], %177 {strides = array<i32>} : memref<1x64x32xf32, #tpu.memory_space<vmem>>, vector<1x64x32xf32>,
    return
  }
  func.func @transform_0(%arg0: i32) -> (i32, i32, i32) {
    %c0_i32 = arith.constant 0 : i32
    %c0_i32_0 = arith.constant 0 : i32
    %c0_i32_1 = arith.constant 0 : i32
    return %arg0, %c0_i32, %c0_i32_0 : i32, i32, i32
  }
  func.func @transform_1(%arg0: i32) -> (i32, i32) {
    %c0_i32 = arith.constant 0 : i32
    %c0_i32_0 = arith.constant 0 : i32
    %c0_i32_1 = arith.constant 0 : i32
    return %c0_i32, %c0_i32_0 : i32, i32
  }
  func.func @transform_2(%arg0: i32) -> (i32, i32) {
    %c0_i32 = arith.constant 0 : i32
    %c0_i32_0 = arith.constant 0 : i32
    %c0_i32_1 = arith.constant 0 : i32
    return %c0_i32, %c0_i32_0 : i32, i32
  }
  func.func @transform_3(%arg0: i32) -> (i32, i32) {
    %c0_i32 = arith.constant 0 : i32
    %c0_i32_0 = arith.constant 0 : i32
    %c0_i32_1 = arith.constant 0 : i32
    return %c0_i32, %c0_i32_0 : i32, i32
  }
  func.func @transform_4(%arg0: i32) -> (i32, i32) {
    %c0_i32 = arith.constant 0 : i32
    %c0_i32_0 = arith.constant 0 : i32
    %c0_i32_1 = arith.constant 0 : i32
    return %c0_i32, %c0_i32_0 : i32, i32
  }
  func.func @transform_5(%arg0: i32) -> (i32, i32) {
    %c0_i32 = arith.constant 0 : i32
    %c0_i32_0 = arith.constant 0 : i32
    %c0_i32_1 = arith.constant 0 : i32
    return %c0_i32, %c0_i32_0 : i32, i32
  }
  func.func @transform_6(%arg0: i32) -> (i32, i32) {
    %c0_i32 = arith.constant 0 : i32
    %c0_i32_0 = arith.constant 0 : i32
    %c0_i32_1 = arith.constant 0 : i32
    return %c0_i32, %c0_i32_0 : i32, i32
  }
  func.func @transform_7(%arg0: i32) -> (i32, i32) {
    %c0_i32 = arith.constant 0 : i32
    %c0_i32_0 = arith.constant 0 : i32
    %c0_i32_1 = arith.constant 0 : i32
    return %c0_i32, %c0_i32_0 : i32, i32
  }
  func.func @transform_8(%arg0: i32) -> (i32, i32) {
    %c0_i32 = arith.constant 0 : i32
    %c0_i32_0 = arith.constant 0 : i32
    %c0_i32_1 = arith.constant 0 : i32
    return %c0_i32, %c0_i32_0 : i32, i32
  }
  func.func @transform_9(%arg0: i32) -> (i32, i32) {
    %c0_i32 = arith.constant 0 : i32
    %c0_i32_0 = arith.constant 0 : i32
    %c0_i32_1 = arith.constant 0 : i32
    return %c0_i32, %c0_i32_0 : i32, i32
  }
  func.func @transform_10(%arg0: i32) -> (i32, i32) {
    %c0_i32 = arith.constant 0 : i32
    %c0_i32_0 = arith.constant 0 : i32
    %c0_i32_1 = arith.constant 0 : i32
    return %c0_i32, %c0_i32_0 : i32, i32
  }
  func.func @transform_11(%arg0: i32) -> (i32, i32) {
    %c0_i32 = arith.constant 0 : i32
    %c0_i32_0 = arith.constant 0 : i32
    %c0_i32_1 = arith.constant 0 : i32
    return %c0_i32, %c0_i32_0 : i32, i32
  }
  func.func @transform_12(%arg0: i32) -> (i32, i32, i32) {
    %c0_i32 = arith.constant 0 : i32
    %c0_i32_0 = arith.constant 0 : i32
    %c0_i32_1 = arith.constant 0 : i32
    return %arg0, %c0_i32, %c0_i32_0 : i32, i32, i32
  }
}

</mosaic_0001>

<bundles_post_ra>
// kernel: tpu_custom_call.1
= control target key start
LH: loop header
LB: loop body
LE: loop exit
PB: predicated region body
PF: predicated region fallthrough
CT: control target
= control target key end

     0   :  { %s3906_s21 = smov 0   ;;  %s5672_s0 = inlined_call_operand.vmem [shape: f32[2,64,32], index: 0, kind: input, shape index: {}]   ;;  %s5673_s1 = inlined_call_operand.vmem [shape: f32[32,96], index: 1, kind: input, shape index: {}]   ;;  %s5674_s2 = inlined_call_operand.vmem [shape: f32[1,96], index: 2, kind: input, shape index: {}]   ;;  %s5675_s3 = inlined_call_operand.vmem [shape: f32[32,32], index: 3, kind: input, shape index: {}]   ;;  %s5676_s4 = inlined_call_operand.vmem [shape: f32[1,32], index: 4, kind: input, shape index: {}]   ;;  %s5677_s5 = inlined_call_operand.vmem [shape: f32[96,16], index: 5, kind: input, shape index: {}]   ;;  %s5678_s6 = inlined_call_operand.vmem [shape: f32[16,96], index: 6, kind: input, shape index: {}]   ;;  %s5679_s7 = inlined_call_operand.vmem [shape: f32[1,96], index: 7, kind: input, shape index: {}]   ;;  %s5680_s8 = inlined_call_operand.vmem [shape: f32[288,72], index: 8, kind: input, shape index: {}]   ;;  %s5681_s9 = inlined_call_operand.vmem [shape: f32[72,288], index: 9, kind: input, shape index: {}]   ;;  %s5682_s10 = inlined_call_operand.vmem [shape: f32[1,72], index: 10, kind: input, shape index: {}]   ;;  %s5683_s11 = inlined_call_operand.vmem [shape: f32[64,9], index: 11, kind: input, shape index: {}]   ;;  %s5684_s12 = inlined_call_operand.vmem [shape: f32[2,64,32], index: 12, kind: output, shape index: {}]  }
   0x1 LB: > { %s3245_s22 = sadd.s32 4294967295, %s3826_s21   ;;  %p3249_p0 = scmp.ge.s32.totalorder %s3826_s21, 1  ;;  %s3826_s21 = sphi %s3906_s21, %s22_s21  }
   0x2   : > { %p362_p1 = scmp.lt.s32.totalorder %s3826_s21, 3 }
   0x4   : > { %p363_p2 = pnand %p3249_p0, %p362_p1 }
   0x6   : > { %366 = sbr.rel (%p363_p2) target bundleno = 1968 (0x7b0), region = 68 }
   0xd   : > { %v422_v0 = vld [vmem:[%s5673_s1] sm:$0xff]  ;;  %v423_v1 = vld [vmem:[%s5673_s1 + $0x8] sm:$0xff]  ;;  %v424_v2 = vld [vmem:[%s5673_s1 + $0x10] sm:$0xff]  ;;  %p404_p3 = scmp.lt.s32.totalorder %s3245_s22, 1  ;;  %vm433_vm0 = vcmask 261120   ;;  %v3828_v48 = vmov 5  }
   0xe   : > { %v3599_v3 = vpack.c.bf16 %v423_v1, %v422_v0  ;;  %v425_v4 = vld [vmem:[%s5673_s1 + $0x18] sm:$0xff]  ;;  %v571_v5 = vld [vmem:[%s5677_s5] sm:$0xff]  ;;  %v572_v6 = vld [vmem:[%s5677_s5 + $0x8] sm:$0xff]  ;;  %3736 = vset.pattern.permute.xlu1 %v3828_v48  ;;  %3741 = vset.pattern.permute.xlu0 %v3828_v48  ;;  %v3829_v53 = vmov 1   ;;  %v3830_v56 = vmov 2   ;;  %v3831_v57 = vmov 7  }
   0xf   : > { %v3603_v7 = vpack.c.bf16 %v425_v4, %v424_v2  ;;  %s5900_s22 = smov (!%p404_p3, %s3245_s22), 1  ;;  %v3607_v8 = vpack.c.bf16 %v572_v6, %v571_v5  ;;  %v573_v9 = vld [vmem:[%s5677_s5 + $0x10] sm:$0xff]  ;;  %v574_v10 = vld [vmem:[%s5677_s5 + $0x18] sm:$0xff]  ;;  %v575_v12 = vld [vmem:[%s5677_s5 + $0x20] sm:$0xff]  ;;  %v3832_v58 = vmov 3   ;;  %v3833_v59 = vmov 6  }
  0x10   : > { %3600 = vmatprep.subr.bf16.mxu0 %v3599_v3  ;;  %v3611_v11 = vpack.c.bf16 %v574_v10, %v573_v9  ;;  %v576_v13 = vld [vmem:[%s5677_s5 + $0x28] sm:$0xff]  ;;  %s3316_s27 = sshll.u32 %s5900_s22, 6  ;;  %v577_v21 = vld [vmem:[%s5677_s5 + $0x30] sm:$0xff]  ;;  %v578_v22 = vld [vmem:[%s5677_s5 + $0x38] sm:$0xff]  ;;  %vm583_vm1 = vcmask 785408   ;;  %vm738_vm2 = vcmask 130048  }
  0x11   : > { %3602 = vmatpush3.bf16.msra.mxu0 %v3599_v3  ;;  %3608 = vmatprep.subr.bf16.mxu1 %v3607_v8  ;;  %s3952_s30 = scalar_lea.vmem %s5672_s0, %s3316_s27  ;;  %v3615_v17 = vpack.c.bf16 %v576_v13, %v575_v12  ;;  %v3619_v28 = vpack.c.bf16 %v578_v22, %v577_v21  ;;  %v579_v30 = vld [vmem:[%s5677_s5 + $0x40] sm:$0xff]  ;;  %v580_v31 = vld [vmem:[%s5677_s5 + $0x48] sm:$0xff]  ;;  %v581_v44 = vld [vmem:[%s5677_s5 + $0x50] sm:$0xff]  ;;  %s3838_s19 = smov 96   ;;  %vm1155_vm3 = vcmask 523520   ;;  %vm1252_vm4 = vcmask 785920  }
  0x12   : > { %3604 = vmatprep.subr.bf16.mxu0 %v3603_v7  ;;  %3610 = vmatpush3.bf16.msra.mxu1 %v3607_v8  ;;  %v414_v14 = vld [vmem:[%s3952_s30] sm:$0xff]  ;;  %v415_v15 = vld [vmem:[%s3952_s30 + $0x8] sm:$0xff]  ;;  %v416_v16 = vld [vmem:[%s3952_s30 + $0x10] sm:$0xff]  ;;  %v3623_v37 = vpack.c.bf16 %v580_v31, %v579_v30  ;;  %s3839_s26 = smov 32   ;;  %s3840_s28 = smov 64   ;;  %vm1349_vm5 = vcmask 1048320  }
  0x13   : > { %3612 = vmatprep.subr.bf16.mxu1 %v3611_v11  ;;  %3465 = vmatprep.mubr.msk.f32.mxu0 %vm433_vm0, %v414_v14  ;;  %v876_v18 = vsel %vm433_vm0, %v414_v14, 0.0  ;;  %v877_v19 = vsel %vm433_vm0, %v415_v15, 0.0  ;;  %v879_v20 = vsel %vm433_vm0, %v416_v16, 0.0  ;;  %v417_v24 = vld [vmem:[%s3952_s30 + $0x18] sm:$0xff]  ;;  %v418_v27 = vld [vmem:[%s3952_s30 + $0x20] sm:$0xff]  ;;  %v419_v33 = vld [vmem:[%s3952_s30 + $0x28] sm:$0xff]  ;;  %s413_s23 = scalar_lea.vmem %s5684_s12, %s3316_s27 }
  0x14   : > { %v878_v23 = vadd.f32 %v877_v19, %v876_v18  ;;  %v881_v25 = vsel %vm433_vm0, %v417_v24, 0.0  ;;  %v883_v29 = vsel %vm433_vm0, %v418_v27, 0.0  ;;  %v885_v34 = vsel %vm433_vm0, %v419_v33, 0.0  ;;  %v420_v36 = vld [vmem:[%s3952_s30 + $0x30] sm:$0xff]  ;;  %v421_v40 = vld [vmem:[%s3952_s30 + $0x38] sm:$0xff]  ;;  %v4001_v47 = vld [vmem:[%s5683_s11] sm:$0xff] }
  0x15   : > { %3606 = vmatpush3.bf16.msra.mxu0 %v3603_v7  ;;  %v887_v38 = vsel %vm433_vm0, %v420_v36, 0.0  ;;  %v889_v41 = vsel %vm433_vm0, %v421_v40, 0.0  ;;  %v582_v45 = vld [vmem:[%s5677_s5 + $0x58] sm:$0xff]  ;;  %v4007_v49 = vld [vmem:[%s5683_s11 + $0x8] sm:$0xff]  ;;  %1431 = vperm.xlu1 %3736, %v4001_v47   ;;  %v729_v50 = vld [vmem:[%s5678_s6] sm:$0xff]  ;;  %vm2075_vm6 = vcmask 588800  }
  0x16   : > { %3614 = vmatpush3.bf16.msra.mxu1 %v3611_v11  ;;  %v880_v26 = vadd.f32 %v879_v20, %v878_v23  ;;  %v3627_v46 = vpack.c.bf16 %v582_v45, %v581_v44  ;;  %v730_v51 = vld [vmem:[%s5678_s6 + $0x8] sm:$0xff]  ;;  %1435 = vperm.xlu0 %3741, %v4007_v49   ;;  %v4022_v54 = vld [vmem:[%s5683_s11 + $0x18] sm:$0xff]  ;;  %v4049_v60 = vld [vmem:[%s5683_s11 + $0x10] sm:$0xff] }
  0x17   : > { %3616 = vmatprep.subr.bf16.mxu1 %v3615_v17  ;;  %v3631_v52 = vpack.c.bf16 %v730_v51, %v729_v50  ;;  %v4029_v55 = vld [vmem:[%s5683_s11 + $0x28] sm:$0xff]  ;;  %v4056_v61 = vld [vmem:[%s5683_s11 + $0x20] sm:$0xff]  ;;  %v4137_v23 = vld [vmem:[%s5683_s11 + $0x30] sm:$0xff] }
  0x18   : > { %3466 = vmatmul.mubr.msk.f32.vlgmr.msra.gmra.mrb[0].mxu0 %vm433_vm0, %v415_v15  ;;  %v882_v32 = vadd.f32 %v881_v25, %v880_v26  ;;  %v3254_v62 = vld [vmem:[%s5674_s2] ss:$0 sm:$0xff]  ;;  %v5685_v25 = vmov 0.0   ;;  %v3835_v26 = vmov 4  }
  0x19   : > { %3468 = vmatprep.mubr.msk.f32.mxu0 %vm433_vm0, %v416_v16  ;;  %3632 = vmatprep.subr.bf16.mxu0 %v3631_v52  ;;  %908 = vst.msk [vmem:[#allocation2 + $0x8] sm:$0xff] %vm433_vm0, %v5685_v25  ;;  %912 = vst.msk [vmem:[#allocation3 + $0x8] sm:$0xff] %vm433_vm0, %v5685_v25 }
  0x1a   : > { %3618 = vmatpush3.bf16.msra.mxu1 %v3615_v17  ;;  %v884_v35 = vadd.f32 %v883_v29, %v882_v32  ;;  %3737 = vset.pattern.permute.xlu1 %v3829_v53  ;;  %907 = vst.msk [vmem:[#allocation2] sm:$0xff] %vm433_vm0, %v5685_v25  ;;  %909 = vst.msk [vmem:[#allocation2 + $0x50] sm:$0xff] %vm433_vm0, %v5685_v25 }
  0x1b   : > { %3620 = vmatprep.subr.bf16.mxu1 %v3619_v28  ;;  %3634 = vmatpush3.bf16.msra.mxu0 %v3631_v52  ;;  %910 = vst.msk [vmem:[#allocation2 + $0x58] sm:$0xff] %vm433_vm0, %v5685_v25  ;;  %911 = vst.msk [vmem:[#allocation3] sm:$0xff] %vm433_vm0, %v5685_v25 }
  0x1c   : > { %3469 = vmatmul.mubr.msk.f32.gmra.mrb[2].mxu0 %vm433_vm0, %v417_v24  ;;  %v886_v39 = vadd.f32 %v885_v34, %v884_v35  ;;  %1076 = vperm.xlu1 %3737, %v4001_v47   ;;  %v4150_v24 = vld [vmem:[%s5683_s11 + $0x38] sm:$0xff]  ;;  %913 = vst.msk [vmem:[#allocation3 + $0x50] sm:$0xff] %vm433_vm0, %v5685_v25  ;;  %914 = vst.msk [vmem:[#allocation3 + $0x58] sm:$0xff] %vm433_vm0, %v5685_v25  ;;  %v3271_v25 = vld [vmem:[%s5679_s7] ss:$0 sm:$0xff] }
  0x1d   : > { %3471 = vmatprep.mubr.msk.f32.mxu0 %vm433_vm0, %v418_v27  ;;  %1443 = vperm.xlu0 %3741, %v4022_v54   ;;  %v3836_v27 = vmov 0  }
  0x1e   : > { %3622 = vmatpush3.bf16.msra.mxu1 %v3619_v28  ;;  %v888_v42 = vadd.f32 %v887_v38, %v886_v39  ;;  %v3837_v28 = vmov 8  }
  0x1f   : > { %3624 = vmatprep.subr.bf16.mxu1 %v3623_v37 }
  0x20   : > { %3472 = vmatmul.mubr.msk.f32.gmra.mrb[4].mxu0 %vm433_vm0, %v419_v33  ;;  %v3989_v43 = vadd.f32 %v889_v41, %v888_v42  ;;  %3738 = vset.pattern.permute.xlu1 %v3830_v56 }
  0x21   : > { %3474 = vmatprep.mubr.msk.f32.mxu0 %vm433_vm0, %v420_v36  ;;  %1451 = vperm.xlu0 %3741, %v4029_v55  }
  0x22   : > { %3626 = vmatpush3.bf16.msra.mxu1 %v3623_v37  ;;  %1173 = vperm.xlu1 %3738, %v4001_v47  }
  0x23   : > { %3628 = vmatprep.subr.bf16.mxu1 %v3627_v46 }
  0x24   : > { %3475 = vmatmul.mubr.msk.f32.gmra.mrb[6].mxu0 %vm433_vm0, %v421_v40 }
  0x25   : > { %3758 = vset.pattern.permute.xlu0 %v3830_v56 }
  0x26   : > { %3630 = vmatpush3.bf16.msra.mxu1 %v3627_v46  ;;  %3739 = vset.pattern.permute.xlu1 %v3831_v57 }
  0x27   : > { %1177 = vperm.xlu0 %3758, %v4007_v49   ;;  %1623 = vperm.xlu1 %3739, %v4001_v47  }
  0x2b   : > { %1185 = vperm.xlu0 %3758, %v4022_v54   ;;  %3740 = vset.pattern.permute.xlu1 %v3832_v58 }
  0x2c   : > { %1270 = vperm.xlu1 %3740, %v4001_v47  }
  0x2f   : > { %1193 = vperm.xlu0 %3758, %v4029_v55  }
  0x30   : > { %3742 = vset.pattern.permute.xlu1 %v3829_v53 }
  0x31   : > { %1080 = vperm.xlu1 %3742, %v4007_v49  }
  0x33   : > { %3761 = vset.pattern.permute.xlu0 %v3833_v59 }
  0x34   : > { %1527 = vperm.xlu0 %3761, %v4001_v47  }
  0x35   : > { %3743 = vset.pattern.permute.xlu1 %v3833_v59 }
  0x36   : > { %1531 = vperm.xlu1 %3743, %v4007_v49  }
  0x38   : > { %1535 = vperm.xlu0 %3761, %v4049_v60  }
  0x3a   : > { %3744 = vset.pattern.permute.xlu1 %v3831_v57 }
  0x3b   : > { %1627 = vperm.xlu1 %3744, %v4007_v49  }
  0x3c   : > { %1543 = vperm.xlu0 %3761, %v4056_v61  }
  0x3f   : > { %3745 = vset.pattern.permute.xlu1 %v3828_v48 }
  0x40   : > { %1439 = vperm.xlu1 %3745, %v4049_v60   ;;  %1551 = vperm.xlu0 %3761, %v4137_v23  }
  0x44   : > { %3746 = vset.pattern.permute.xlu1 %v3829_v53  ;;  %1555 = vperm.xlu0 %3761, %v4150_v24  }
  0x45   : > { %1084 = vperm.xlu1 %3746, %v4049_v60  }
  0x48   : > { %3769 = vset.pattern.permute.xlu0 %v3832_v58 }
  0x49   : > { %3747 = vset.pattern.permute.xlu1 %v3830_v56  ;;  %1274 = vperm.xlu0 %3769, %v4007_v49  }
  0x4a   : > { %1181 = vperm.xlu1 %3747, %v4049_v60  }
  0x4d   : > { %1282 = vperm.xlu0 %3769, %v4022_v54  }
  0x4e   : > { %3748 = vset.pattern.permute.xlu1 %v3831_v57 }
  0x4f   : > { %1631 = vperm.xlu1 %3748, %v4049_v60  }
  0x51   : > { %1290 = vperm.xlu0 %3769, %v4029_v55  }
  0x53   : > { %3749 = vset.pattern.permute.xlu1 %v3832_v58 }
  0x54   : > { %1278 = vperm.xlu1 %3749, %v4049_v60  }
  0x55   : > { %1294 = vperm.xlu0 %3769, %v4137_v23  }
  0x58   : > { %3750 = vset.pattern.permute.xlu1 %v3829_v53 }
  0x59   : > { %1088 = vperm.xlu1 %3750, %v4022_v54   ;;  %1298 = vperm.xlu0 %3769, %v4150_v24  }
  0x5d   : > { %3751 = vset.pattern.permute.xlu1 %v3833_v59  ;;  %3774 = vset.pattern.permute.xlu0 %v3835_v26 }
  0x5e   : > { %1539 = vperm.xlu1 %3751, %v4022_v54   ;;  %1371 = vperm.xlu0 %3774, %v4007_v49  }
  0x62   : > { %3752 = vset.pattern.permute.xlu1 %v3831_v57  ;;  %1383 = vperm.xlu0 %3774, %v4056_v61  }
  0x63   : > { %1635 = vperm.xlu1 %3752, %v4022_v54  }
  0x66   : > { %1391 = vperm.xlu0 %3774, %v4137_v23  }
  0x67   : > { %3753 = vset.pattern.permute.xlu1 %v3828_v48 }
  0x68   : > { %1447 = vperm.xlu1 %3753, %v4056_v61  }
  0x6a   : > { %3780 = vset.pattern.permute.xlu0 %v3837_v28 }
  0x6b   : > { %1723 = vperm.xlu0 %3780, %v4007_v49  }
  0x6c   : > { %3754 = vset.pattern.permute.xlu1 %v3829_v53 }
  0x6d   : > { %1092 = vperm.xlu1 %3754, %v4056_v61  }
  0x6f   : > { %1727 = vperm.xlu0 %3780, %v4049_v60  }
  0x71   : > { %3755 = vset.pattern.permute.xlu1 %v3830_v56 }
  0x72   : > { %1189 = vperm.xlu1 %3755, %v4056_v61  }
  0x73   : > { %3782 = vset.pattern.permute.xlu0 %v3836_v27 }
  0x74   : > { %1015 = vperm.xlu0 %3782, %v4049_v60  }
  0x76   : > { %3756 = vset.pattern.permute.xlu1 %v3831_v57 }
  0x77   : > { %1639 = vperm.xlu1 %3756, %v4056_v61  }
  0x78   : > { %1020 = vperm.xlu0 %3782, %v4022_v54  }
  0x7b   : > { %3757 = vset.pattern.permute.xlu1 %v3832_v58 }
  0x7c   : > { %1286 = vperm.xlu1 %3757, %v4056_v61   ;;  %1040 = vperm.xlu0 %3782, %v4150_v24  }
  0x80   : > { %3759 = vset.pattern.permute.xlu1 %v3829_v53  ;;  %3785 = vset.pattern.permute.xlu0 %v3837_v28 }
  0x81   : > { %1096 = vperm.xlu1 %3759, %v4029_v55  }
  0x85   : > { %3760 = vset.pattern.permute.xlu1 %v3833_v59 }
  0x86   : > { %1547 = vperm.xlu1 %3760, %v4029_v55  }
  0x8a   : > { %3762 = vset.pattern.permute.xlu1 %v3831_v57 }
  0x8b   : > { %1643 = vperm.xlu1 %3762, %v4029_v55  }
  0x8f   : > { %3763 = vset.pattern.permute.xlu1 %v3828_v48 }
  0x90   : > { %1455 = vperm.xlu1 %3763, %v4137_v23  }
  0x94   : > { %3764 = vset.pattern.permute.xlu1 %v3829_v53  ;;  %v4199_v29 = vpop.permute.xlu1 %1431 }
  0x95   : > { %1100 = vperm.xlu1 %3764, %v4137_v23   ;;  %5752 = vst [vmem:[#allocation5_spill] sm:$0xff] %v4199_v29 }
  0x99   : > { %3765 = vset.pattern.permute.xlu1 %v3830_v56 }
  0x9a   : > { %1197 = vperm.xlu1 %3765, %v4137_v23  }
  0x9b   : > { %v4202_v30 = vpop.permute.xlu1 %1076 }
  0x9c   : > { %5753 = vst [vmem:[#allocation6_spill] sm:$0xff] %v4202_v30 }
  0x9e   : > { %3766 = vset.pattern.permute.xlu1 %v3831_v57 }
  0x9f   : > { %1647 = vperm.xlu1 %3766, %v4137_v23  }
  0xa1   : > { %v4205_v31 = vpop.permute.xlu1 %1173 }
  0xa3   : > { %3767 = vset.pattern.permute.xlu1 %v3828_v48 }
  0xa4   : > { %1459 = vperm.xlu1 %3767, %v4150_v24  }
  0xa6   : > { %v4209_v32 = vpop.permute.xlu1 %1623 }
  0xa7   : > { %5754 = vst [vmem:[#allocation7_spill] sm:$0xff] %v4209_v32 }
  0xa8   : > { %3768 = vset.pattern.permute.xlu1 %v3829_v53 }
  0xa9   : > { %1104 = vperm.xlu1 %3768, %v4150_v24  }
  0xab   : > { %v4212_v33 = vpop.permute.xlu1 %1270 }
  0xac   : > { %5755 = vst [vmem:[#allocation8_spill] sm:$0xff] %v4212_v33 }
  0xad   : > { %3770 = vset.pattern.permute.xlu1 %v3830_v56 }
  0xae   : > { %1201 = vperm.xlu1 %3770, %v4150_v24  }
  0xb0   : > { %v4216_v34 = vpop.permute.xlu1 %1080 }
  0xb2   : > { %3771 = vset.pattern.permute.xlu1 %v3831_v57 }
  0xb3   : > { %1651 = vperm.xlu1 %3771, %v4150_v24  }
  0xb5   : > { %v4219_v35 = vpop.permute.xlu1 %1531 }
  0xb6   : > { %5756 = vst [vmem:[#allocation9_spill] sm:$0xff] %v4219_v35 }
  0xb7   : > { %3772 = vset.pattern.permute.xlu1 %v3835_v26 }
  0xb8   : > { %1367 = vperm.xlu1 %3772, %v4001_v47  }
  0xba   : > { %v4221_v36 = vpop.permute.xlu1 %1627 }
  0xbb   : > { %5757 = vst [vmem:[#allocation10_spill] sm:$0xff] %v4221_v36 }
  0xbc   : > { %3773 = vset.pattern.permute.xlu1 %v3836_v27 }
  0xbd   : > { %1005 = vperm.xlu1 %3773, %v4001_v47  }
  0xbf   : > { %v4223_v39 = vpop.permute.xlu1 %1439 }
  0xc0   : > { %5758 = vst [vmem:[#allocation11_spill] sm:$0xff] %v4223_v39 }
  0xc1   : > { %1010 = vperm.xlu1 %3773, %v4007_v49  }
  0xc4   : > { %v4225_v45 = vpop.permute.xlu1 %1084 }
  0xc5   : > { %3775 = vset.pattern.permute.xlu1 %v3835_v26  ;;  %5759 = vst [vmem:[#allocation12_spill] sm:$0xff] %v4225_v45 }
  0xc6   : > { %1375 = vperm.xlu1 %3775, %v4049_v60  }
  0xc9   : > { %v4228_v53 = vpop.permute.xlu1 %1181 }
  0xca   : > { %1379 = vperm.xlu1 %3775, %v4022_v54  }
  0xce   : > { %3776 = vset.pattern.permute.xlu1 %v3836_v27 }
  0xcf   : > { %1025 = vperm.xlu1 %3776, %v4056_v61  }
  0xd3   : > { %3777 = vset.pattern.permute.xlu1 %v3835_v26 }
  0xd4   : > { %1387 = vperm.xlu1 %3777, %v4029_v55  }
  0xd8   : > { %3778 = vset.pattern.permute.xlu1 %v3836_v27 }
  0xd9   : > { %1030 = vperm.xlu1 %3778, %v4029_v55  }
  0xdd   : > { %3779 = vset.pattern.permute.xlu1 %v3837_v28 }
  0xde   : > { %1719 = vperm.xlu1 %3779, %v4001_v47  }
  0xe2   : > { %3781 = vset.pattern.permute.xlu1 %v3836_v27 }
  0xe3   : > { %1035 = vperm.xlu1 %3781, %v4137_v23  }
  0xe7   : > { %3783 = vset.pattern.permute.xlu1 %v3835_v26 }
  0xe8   : > { %1395 = vperm.xlu1 %3783, %v4150_v24  }
  0xeb   : > { %v3467_v63 = vpop.f32.mrb[0].mxu0 }
  0xec   : > { %v4090_v0 = vadd.f32 %v3467_v63, %v3254_v62  ;;  %v524_v1 = vpop.f32.mrb[1].mxu0  ;;  %3784 = vset.pattern.permute.xlu1 %v3837_v28 }
  0xed   : > { %v4092_v2 = vadd.f32 %v3254_v62, %v524_v1  ;;  %1731 = vperm.xlu1 %3784, %v4022_v54  }
  0xee   : > { %v564_v5 = vmul.f32 %v4090_v0, %v4090_v0 }
  0xef   : > { %v3470_v3 = vpop.f32.mrb[2].mxu0  ;;  %v563_v4 = vmul.f32 %v4092_v2, %v4092_v2 }
  0xf0   : > { %v4099_v6 = vadd.f32 %v3470_v3, %v3254_v62  ;;  %v534_v7 = vpop.f32.mrb[3].mxu0 }
  0xf1   : > { %v4101_v8 = vadd.f32 %v3254_v62, %v534_v7  ;;  %3501 = vmatprep.mubr.msk.f32.mxu1 %vm583_vm1, %v563_v4  ;;  %1735 = vperm.xlu1 %3784, %v4056_v61   ;;  %v4233_v61 = vpop.permute.xlu1 %1631 }
  0xf2   : > { %v566_v9 = vmul.f32 %v4099_v6, %v4099_v6  ;;  %3502 = vmatmul.mubr.msk.f32.vlgmr.msra.gmra.mrb[0].mxu1 %vm583_vm1, %v564_v5  ;;  %5760 = vst [vmem:[#allocation13_spill] sm:$0xff] %v4233_v61 }
  0xf3   : > { %v565_v10 = vmul.f32 %v4101_v8, %v4101_v8  ;;  %v3473_v11 = vpop.f32.mrb[4].mxu0 }
  0xf4   : > { %v4111_v12 = vadd.f32 %v3473_v11, %v3254_v62  ;;  %v544_v13 = vpop.f32.mrb[5].mxu0 }
  0xf5   : > { %v4113_v14 = vadd.f32 %v3254_v62, %v544_v13  ;;  %3504 = vmatprep.mubr.msk.f32.mxu1 %vm583_vm1, %v565_v10  ;;  %1739 = vperm.xlu1 %3784, %v4029_v55   ;;  %v4238_v4 = vpop.permute.xlu1 %1278 }
  0xf6   : > { %v568_v15 = vmul.f32 %v4111_v12, %v4111_v12  ;;  %3505 = vmatmul.mubr.msk.f32.gmra.mrb[2].mxu1 %vm583_vm1, %v566_v9  ;;  %5761 = vst [vmem:[#allocation14_spill] sm:$0xff] %v4238_v4 }
  0xf7   : > { %v567_v16 = vmul.f32 %v4113_v14, %v4113_v14  ;;  %v3476_v17 = vpop.f32.mrb[6].mxu0 }
  0xf8   : > { %v4122_v18 = vadd.f32 %v3476_v17, %v3254_v62  ;;  %v554_v19 = vpop.f32.mrb[7].mxu0 }
  0xf9   : > { %v4124_v20 = vadd.f32 %v3254_v62, %v554_v19  ;;  %3507 = vmatprep.mubr.msk.f32.mxu1 %vm583_vm1, %v567_v16  ;;  %1743 = vperm.xlu1 %3784, %v4137_v23   ;;  %v4241_v5 = vpop.permute.xlu1 %1088 }
  0xfa   : > { %v570_v21 = vmul.f32 %v4122_v18, %v4122_v18  ;;  %3508 = vmatmul.mubr.msk.f32.gmra.mrb[4].mxu1 %vm583_vm1, %v568_v15 }
  0xfb   : > { %v569_v22 = vmul.f32 %v4124_v20, %v4124_v20 }
  0xfd   : > { %3510 = vmatprep.mubr.msk.f32.mxu1 %vm583_vm1, %v569_v22  ;;  %1747 = vperm.xlu1 %3784, %v4150_v24   ;;  %v4243_v7 = vpop.permute.xlu1 %1539 }
  0xfe   : > { %3511 = vmatmul.mubr.msk.f32.gmra.mrb[6].mxu1 %vm583_vm1, %v570_v21  ;;  %5762 = vst [vmem:[#allocation15_spill] sm:$0xff] %v4243_v7 }
 0x101   : > { %v4245_v9 = vpop.permute.xlu1 %1635 }
 0x102   : > { %5763 = vst [vmem:[#allocation16_spill] sm:$0xff] %v4245_v9  ;;  %v1822_v9 = vld [vmem:[%s5680_s8 + $0xc0] sm:$0xff] }
 0x105   : > { %v4247_v10 = vpop.permute.xlu1 %1447 }
 0x106   : > { %5764 = vst [vmem:[#allocation17_spill] sm:$0xff] %v4247_v10  ;;  %v1802_v10 = vld [vmem:[%s5680_s8 + $0x20] sm:$0xff] }
 0x109   : > { %v4249_v11 = vpop.permute.xlu1 %1092 }
 0x10a   : > { %5765 = vst [vmem:[#allocation18_spill] sm:$0xff] %v4249_v11 }
 0x10d   : > { %v4251_v13 = vpop.permute.xlu1 %1189 }
 0x10e   : > { %5766 = vst [vmem:[#allocation19_spill] sm:$0xff] %v4251_v13  ;;  %v1816_v13 = vld [vmem:[%s5680_s8 + $0x90] sm:$0xff] }
 0x111   : > { %v4253_v15 = vpop.permute.xlu1 %1639 }
 0x112   : > { %5767 = vst [vmem:[#allocation20_spill] sm:$0xff] %v4253_v15  ;;  %v1817_v15 = vld [vmem:[%s5680_s8 + $0x98] sm:$0xff] }
 0x115   : > { %v4255_v16 = vpop.permute.xlu1 %1286 }
 0x116   : > { %5768 = vst [vmem:[#allocation21_spill] sm:$0xff] %v4255_v16 }
 0x119   : > { %v4257_v17 = vpop.permute.xlu1 %1096 }
 0x11a   : > { %5769 = vst [vmem:[#allocation22_spill] sm:$0xff] %v4257_v17 }
 0x11d   : > { %v4259_v19 = vpop.permute.xlu1 %1547 }
 0x11e   : > { %5770 = vst [vmem:[#allocation23_spill] sm:$0xff] %v4259_v19 }
 0x121   : > { %v4261_v21 = vpop.permute.xlu1 %1643 }
 0x122   : > { %5771 = vst [vmem:[#allocation24_spill] sm:$0xff] %v4261_v21 }
 0x125   : > { %v4263_v22 = vpop.permute.xlu1 %1455 }
 0x126   : > { %5772 = vst [vmem:[#allocation25_spill] sm:$0xff] %v4263_v22 }
 0x129   : > { %v4265_v23 = vpop.permute.xlu1 %1100 }
 0x12a   : > { %5773 = vst [vmem:[#allocation26_spill] sm:$0xff] %v4265_v23 }
 0x12d   : > { %v4267_v24 = vpop.permute.xlu1 %1197 }
 0x12e   : > { %5774 = vst [vmem:[#allocation27_spill] sm:$0xff] %v4267_v24 }
 0x131   : > { %v4269_v26 = vpop.permute.xlu1 %1647 }
 0x132   : > { %5775 = vst [vmem:[#allocation28_spill] sm:$0xff] %v4269_v26 }
 0x135   : > { %v4271_v27 = vpop.permute.xlu1 %1459 }
 0x136   : > { %5776 = vst [vmem:[#allocation29_spill] sm:$0xff] %v4271_v27 }
 0x139   : > { %v4273_v28 = vpop.permute.xlu1 %1104 }
 0x13a   : > { %5777 = vst [vmem:[#allocation30_spill] sm:$0xff] %v4273_v28 }
 0x1c5   : > { %v3503_v37 = vpop.f32.mrb[0].mxu1 }
 0x1c6   : > { %3786 = vrsqrt.f32 %v3503_v37  ;;  %v674_v38 = vpop.f32.mrb[1].mxu1  ;;  %v4275_v37 = vpop.permute.xlu1 %1201 }
 0x1c7   : > { %3788 = vrsqrt.f32 %v674_v38  ;;  %5778 = vst [vmem:[#allocation31_spill] sm:$0xff] %v4275_v37 }
 0x1c9   : > { %v3506_v40 = vpop.f32.mrb[2].mxu1 }
 0x1ca   : > { %3790 = vrsqrt.f32 %v3506_v40  ;;  %v684_v41 = vpop.f32.mrb[3].mxu1  ;;  %v4277_v38 = vpop.permute.xlu1 %1651 }
 0x1cb   : > { %3792 = vrsqrt.f32 %v684_v41  ;;  %5779 = vst [vmem:[#allocation32_spill] sm:$0xff] %v4277_v38 }
 0x1cd   : > { %v3509_v42 = vpop.f32.mrb[4].mxu1 }
 0x1ce   : > { %3794 = vrsqrt.f32 %v3509_v42  ;;  %v694_v44 = vpop.f32.mrb[5].mxu1  ;;  %v4279_v40 = vpop.permute.xlu1 %1367 }
 0x1cf   : > { %3796 = vrsqrt.f32 %v694_v44  ;;  %5780 = vst [vmem:[#allocation33_spill] sm:$0xff] %v4279_v40 }
 0x1d0   : > { %v3787_v46 = vpop.eup %3786 }
 0x1d1   : > { %v3789_v47 = vpop.eup %3788  ;;  %v3512_v48 = vpop.f32.mrb[6].mxu1  ;;  %v722_v51 = vmin.f32 %v3787_v46, 1e+12 }
 0x1d2   : > { %v721_v49 = vmin.f32 %v3789_v47, 1e+12  ;;  %3798 = vrsqrt.f32 %v3512_v48  ;;  %v704_v50 = vpop.f32.mrb[7].mxu1  ;;  %v4281_v41 = vpop.permute.xlu1 %1005 }
 0x1d3   : > { %3800 = vrsqrt.f32 %v704_v50  ;;  %5781 = vst [vmem:[#allocation34_spill] sm:$0xff] %v4281_v41 }
 0x1d4   : > { %v3791_v52 = vpop.eup %3790  ;;  %3517 = vmatprep.mubr.msk.f32.mxu0 %vm738_vm2, %v721_v49 }
 0x1d5   : > { %v3793_v54 = vpop.eup %3792  ;;  %v724_v55 = vmin.f32 %v3791_v52, 1e+12  ;;  %3518 = vmatmul.mubr.msk.f32.vlgmr.msra.gmra.mrb[8].mxu0 %vm738_vm2, %v722_v51  ;;  %v891_v52 = vrot.slane %v3989_v43, 4 }
 0x1d6   : > { %v723_v56 = vmin.f32 %v3793_v54, 1e+12  ;;  %v4283_v42 = vpop.permute.xlu1 %1010 }
 0x1d7   : > { %5782 = vst [vmem:[#allocation35_spill] sm:$0xff] %v4283_v42 }
 0x1d8   : > { %v3795_v57 = vpop.eup %3794  ;;  %3520 = vmatprep.mubr.msk.f32.mxu0 %vm738_vm2, %v723_v56  ;;  %v892_v56 = vadd.f32 %v891_v52, %v3989_v43  ;;  %v995_v52 = vld [vmem:[#allocation2 + $0x7] sm:$0xff] }
 0x1d9   : > { %v3797_v58 = vpop.eup %3796  ;;  %v726_v59 = vmin.f32 %v3795_v57, 1e+12  ;;  %3521 = vmatmul.mubr.msk.f32.gmra.mrb[10].mxu0 %vm738_vm2, %v724_v55  ;;  %v4302_v55 = vpop.permute.xlu0 %1435 }
 0x1da   : > { %v725_v60 = vmin.f32 %v3797_v58, 1e+12  ;;  %v4285_v44 = vpop.permute.xlu1 %1375  ;;  %5786 = vst [vmem:[#allocation39_spill] sm:$0xff] %v4302_v55  ;;  %v893_v57 = vrot.slane %v892_v56, 2 }
 0x1dc   : > { %v3799_v62 = vpop.eup %3798  ;;  %3523 = vmatprep.mubr.msk.f32.mxu0 %vm738_vm2, %v725_v60  ;;  %v894_v60 = vadd.f32 %v893_v57, %v892_v56 }
 0x1dd   : > { %v3801_v63 = vpop.eup %3800  ;;  %v728_v1 = vmin.f32 %v3799_v62, 1e+12  ;;  %3524 = vmatmul.mubr.msk.f32.gmra.mrb[12].mxu0 %vm738_vm2, %v726_v59  ;;  %v4307_v59 = vpop.permute.xlu0 %1443 }
 0x1de   : > { %v727_v3 = vmin.f32 %v3801_v63, 1e+12  ;;  %v4287_v46 = vpop.permute.xlu1 %1379  ;;  %5788 = vst [vmem:[#allocation41_spill] sm:$0xff] %v4307_v59 }
 0x1e0   : > { %3526 = vmatprep.mubr.msk.f32.mxu0 %vm738_vm2, %v727_v3 }
 0x1e1   : > { %3527 = vmatmul.mubr.msk.f32.gmra.mrb[14].mxu0 %vm738_vm2, %v728_v1  ;;  %v4311_v63 = vpop.permute.xlu0 %1451  ;;  %v895_v1 = vrot.slane %v894_v60, 1 }
 0x1e2   : > { %v4289_v47 = vpop.permute.xlu1 %1025  ;;  %5790 = vst [vmem:[#allocation43_spill] sm:$0xff] %v4311_v63 }
 0x1e3   : > { %v896_v3 = vadd.f32 %v895_v1, %v894_v60  ;;  %v1043_v60 = vmul.f32 %v4281_v41, %v995_v52 }
 0x1e5   : > { %v4318_v28 = vpop.permute.xlu0 %1177  ;;  %v4320_v21 = vmul.f32 0.015625, %v896_v3 }
 0x1e6   : > { %v4291_v48 = vpop.permute.xlu1 %1387  ;;  %5792 = vst [vmem:[#allocation45_spill] sm:$0xff] %v4318_v28 }
 0x1e7   : > { %5783 = vst [vmem:[#allocation36_spill] sm:$0xff] %v4291_v48 }
 0x1e9   : > { %v4333_v3 = vpop.permute.xlu0 %1185 }
 0x1ea   : > { %v4293_v49 = vpop.permute.xlu1 %1030  ;;  %5796 = vst [vmem:[#allocation49_spill] sm:$0xff] %v4333_v3  ;;  %v1823_v3 = vld [vmem:[%s5680_s8 + $0xc8] sm:$0xff] }
 0x1ed   : > { %v4361_v17 = vpop.permute.xlu0 %1193 }
 0x1ee   : > { %v4295_v50 = vpop.permute.xlu1 %1719  ;;  %5798 = vst [vmem:[#allocation51_spill] sm:$0xff] %v4361_v17  ;;  %v1799_v17 = vld [vmem:[%s5680_s8 + $0x8] sm:$0xff] }
 0x1ef   : > { %5784 = vst [vmem:[#allocation37_spill] sm:$0xff] %v4295_v50 }
 0x1f2   : > { %v4297_v51 = vpop.permute.xlu1 %1035 }
 0x1f6   : > { %v4300_v54 = vpop.permute.xlu1 %1395 }
 0x1f7   : > { %5785 = vst [vmem:[#allocation38_spill] sm:$0xff] %v4300_v54 }
 0x1fa   : > { %v4305_v58 = vpop.permute.xlu1 %1731 }
 0x1fb   : > { %5787 = vst [vmem:[#allocation40_spill] sm:$0xff] %v4305_v58 }
 0x1fe   : > { %v4309_v62 = vpop.permute.xlu1 %1735 }
 0x1ff   : > { %5789 = vst [vmem:[#allocation42_spill] sm:$0xff] %v4309_v62 }
 0x202   : > { %v4316_v37 = vpop.permute.xlu1 %1739 }
 0x203   : > { %5791 = vst [vmem:[#allocation44_spill] sm:$0xff] %v4316_v37 }
 0x206   : > { %v4329_v19 = vpop.permute.xlu1 %1743 }
 0x207   : > { %5795 = vst [vmem:[#allocation48_spill] sm:$0xff] %v4329_v19 }
 0x2a8   : > { %v3519_v43 = vpop.f32.mrb[8].mxu0 }
 0x2a9   : > { %v835_v38 = vadd.f32 %v3519_v43, %v3271_v25  ;;  %v829_v22 = vpop.f32.mrb[9].mxu0 }
 0x2aa   : > { %v830_v56 = vadd.f32 %v3271_v25, %v829_v22  ;;  %v1067_v22 = vld [vmem:[#allocation2 + $0x8] sm:$0xff] }
 0x2ab   : > { %v4323_v57 = vmul.f32 %v835_v38, %v4090_v0 }
 0x2ac   : > { %v4327_v1 = vmul.f32 %v830_v56, %v4092_v2  ;;  %v3522_v63 = vpop.f32.mrb[10].mxu0 }
 0x2ad   : > { %5793 = vst [vmem:[#allocation46_spill] sm:$0xff] %v4323_v57  ;;  %v845_v27 = vadd.f32 %v3522_v63, %v3271_v25  ;;  %925 = vrot.lane.b32.xlu0 %v4323_v57, %s3838_s19  ;;  %v839_v43 = vpop.f32.mrb[11].mxu0  ;;  %v1107_v63 = vmul.f32 %v4202_v30, %v1067_v22  ;;  %v4359_v30 = vpop.permute.xlu1 %1747 }
 0x2ae   : > { %5794 = vst [vmem:[#allocation47_spill] sm:$0xff] %v4327_v1  ;;  %v4337_v0 = vadd.f32 %v4320_v21, %v4327_v1  ;;  %v840_v38 = vadd.f32 %v3271_v25, %v839_v43  ;;  %5797 = vst [vmem:[#allocation50_spill] sm:$0xff] %v4359_v30 }
 0x2af   : > { %v4340_v2 = vmul.f32 %v845_v27, %v4099_v6  ;;  %v1830_v6 = vld [vmem:[%s5680_s8 + $0x100] sm:$0xff]  ;;  %v1831_v27 = vld [vmem:[%s5680_s8 + $0x108] sm:$0xff] }
 0x2b0   : > { %v3525_v52 = vpop.f32.mrb[12].mxu0  ;;  %v1051_v56 = vmul.f32 %v1043_v60, %v4337_v0  ;;  %v4349_v26 = vmul.f32 %v840_v38, %v4101_v8  ;;  %v1115_v22 = vmul.f32 %v1107_v63, %v4337_v0  ;;  %v3667_v8 = vpack.c.bf16 %v1831_v27, %v1830_v6 }
 0x2b1   : > { %923 = vrot.lane.b32.xlu0 %v4327_v1, %s3838_s19  ;;  %929 = vrot.lane.b32.xlu1 %v4340_v2, %s3838_s19  ;;  %v849_v41 = vpop.f32.mrb[13].mxu0  ;;  %v855_v60 = vadd.f32 %v3525_v52, %v3271_v25  ;;  %v1717_v1 = vld [vmem:[#allocation2 + $0x51] sm:$0xff] }
 0x2b2   : > { %1059 = vst.msk [vmem:[#allocation4] sm:$0xff] %vm433_vm0, %v1051_v56  ;;  %v850_v43 = vadd.f32 %v3271_v25, %v849_v41  ;;  %v1757_v52 = vmul.f32 %v4359_v30, %v1717_v1  ;;  %3668 = vmatprep.subr.bf16.mxu1 %v3667_v8  ;;  %v1833_v1 = vld [vmem:[%s5680_s8 + $0x118] sm:$0xff] }
 0x2b3   : > { %v4368_v41 = vmul.f32 %v855_v60, %v4111_v12  ;;  %3670 = vmatpush3.bf16.msra.mxu1 %v3667_v8 }
 0x2b4   : > { %v3528_v38 = vpop.f32.mrb[14].mxu0  ;;  %v4371_v63 = vmul.f32 %v850_v43, %v4113_v14  ;;  %v4390_v14 = vpop.permute.xlu0 %1527 }
 0x2b5   : > { %v865_v56 = vadd.f32 %v3528_v38, %v3271_v25  ;;  %1131 = vrot.lane.b32.xlu1 %v1115_v22, %s3839_s26  ;;  %927 = vrot.lane.b32.xlu0 %v4349_v26, %s3838_s19  ;;  %v859_v16 = vpop.f32.mrb[15].mxu0  ;;  %v1832_v22 = vld [vmem:[%s5680_s8 + $0x110] sm:$0xff]  ;;  %5801 = vst [vmem:[#allocation54_spill] sm:$0xff] %v4390_v14 }
 0x2b6   : > { %v860_v27 = vadd.f32 %v3271_v25, %v859_v16  ;;  %v3671_v38 = vpack.c.bf16 %v1833_v1, %v1832_v22 }
 0x2b7   : > { %v4374_v6 = vmul.f32 %v865_v56, %v4122_v18 }
 0x2b8   : > { %3672 = vmatprep.subr.bf16.mxu1 %v3671_v38  ;;  %v4393_v18 = vmul.f32 %v860_v27, %v4124_v20  ;;  %v4401_v16 = vpop.permute.xlu0 %1535 }
 0x2b9   : > { %5799 = vst [vmem:[#allocation52_spill] sm:$0xff] %v4374_v6  ;;  %v4384_v12 = vadd.f32 %v4320_v21, %v4374_v6  ;;  %933 = vrot.lane.b32.xlu1 %v4368_v41, %s3838_s19  ;;  %931 = vrot.lane.b32.xlu0 %v4371_v63, %s3838_s19  ;;  %5802 = vst [vmem:[#allocation55_spill] sm:$0xff] %v4401_v16 }
 0x2ba   : > { %3674 = vmatpush3.bf16.msra.mxu1 %v3671_v38 }
 0x2bb   : > { %5800 = vst [vmem:[#allocation53_spill] sm:$0xff] %v4384_v12  ;;  %v1765_v25 = vmul.f32 %v1757_v52, %v4384_v12  ;;  %v4500_v12 = vadd.f32 %v4320_v21, %v4323_v57 }
 0x2bc   : > { %v4403_v60 = vpop.permute.xlu0 %1543 }
 0x2bd   : > { %1773 = vst.msk [vmem:[#allocation4 + $0xb8] sm:$0xff] %vm433_vm0, %v1765_v25  ;;  %937 = vrot.lane.b32.xlu1 %v4374_v6, %s3838_s19  ;;  %935 = vrot.lane.b32.xlu0 %v4393_v18, %s3838_s19  ;;  %5803 = vst [vmem:[#allocation56_spill] sm:$0xff] %v4403_v60 }
 0x2c0   : > { %v4405_v43 = vpop.permute.xlu0 %1551 }
 0x2c1   : > { %5804 = vst [vmem:[#allocation57_spill] sm:$0xff] %v4405_v43  ;;  %v1814_v43 = vld [vmem:[%s5680_s8 + $0x80] sm:$0xff] }
 0x2c4   : > { %v4407_v8 = vpop.permute.xlu0 %1555 }
 0x2c5   : > { %5805 = vst [vmem:[#allocation58_spill] sm:$0xff] %v4407_v8 }
 0x2c8   : > { %v4409_v20 = vpop.permute.xlu0 %1274 }
 0x2cc   : > { %v4411_v56 = vpop.permute.xlu0 %1282 }
 0x2cd   : > { %5806 = vst [vmem:[#allocation59_spill] sm:$0xff] %v4411_v56 }
 0x2d0   : > { %v4413_v52 = vpop.permute.xlu0 %1290 }
 0x2d1   : > { %5807 = vst [vmem:[#allocation60_spill] sm:$0xff] %v4413_v52 }
 0x2d4   : > { %v4415_v27 = vpop.permute.xlu0 %1294 }
 0x2d5   : > { %5808 = vst [vmem:[#allocation61_spill] sm:$0xff] %v4415_v27  ;;  %v1798_v27 = vld [vmem:[%s5680_s8] sm:$0xff] }
 0x2d6   : > { %v3637_v60 = vpack.c.bf16 %v1799_v17, %v1798_v27  ;;  %v1801_v17 = vld [vmem:[%s5680_s8 + $0x18] sm:$0xff]  ;;  %v1819_v27 = vld [vmem:[%s5680_s8 + $0xa8] sm:$0xff] }
 0x2d8   : > { %v4417_v22 = vpop.permute.xlu0 %1298 }
 0x2d9   : > { %5809 = vst [vmem:[#allocation62_spill] sm:$0xff] %v4417_v22  ;;  %v1815_v22 = vld [vmem:[%s5680_s8 + $0x88] sm:$0xff] }
 0x2da   : > { %v3635_v52 = vpack.c.bf16 %v1815_v22, %v1814_v43  ;;  %v1800_v43 = vld [vmem:[%s5680_s8 + $0x10] sm:$0xff]  ;;  %v3639_v22 = vpack.c.bf16 %v1817_v15, %v1816_v13  ;;  %v1803_v15 = vld [vmem:[%s5680_s8 + $0x28] sm:$0xff] }
 0x2dc   : > { %v4419_v1 = vpop.permute.xlu0 %1371  ;;  %3636 = vmatprep.subr.bf16.mxu0 %v3635_v52  ;;  %v3641_v52 = vpack.c.bf16 %v1801_v17, %v1800_v43  ;;  %v1820_v17 = vld [vmem:[%s5680_s8 + $0xb0] sm:$0xff] }
 0x2dd   : > { %5810 = vst [vmem:[#allocation63_spill] sm:$0xff] %v4419_v1  ;;  %3638 = vmatpush3.bf16.msra.mxu0 %v3637_v60  ;;  %v1818_v60 = vld [vmem:[%s5680_s8 + $0xa0] sm:$0xff] }
 0x2de   : > { %3640 = vmatprep.subr.bf16.mxu0 %v3639_v22  ;;  %v3643_v13 = vpack.c.bf16 %v1819_v27, %v1818_v60  ;;  %v3645_v22 = vpack.c.bf16 %v1803_v15, %v1802_v10  ;;  %v1804_v60 = vld [vmem:[%s5680_s8 + $0x30] sm:$0xff]  ;;  %v1805_v10 = vld [vmem:[%s5680_s8 + $0x38] sm:$0xff] }
 0x2e0   : > { %v4421_v38 = vpop.permute.xlu0 %1383 }
 0x2e1   : > { %3642 = vmatpush3.bf16.msra.mxu0 %v3641_v52  ;;  %v1821_v52 = vld [vmem:[%s5680_s8 + $0xb8] sm:$0xff] }
 0x2e2   : > { %3644 = vmatprep.subr.bf16.mxu0 %v3643_v13  ;;  %v3647_v56 = vpack.c.bf16 %v1821_v52, %v1820_v17  ;;  %v3649_v13 = vpack.c.bf16 %v1805_v10, %v1804_v60  ;;  %v1806_v17 = vld [vmem:[%s5680_s8 + $0x40] sm:$0xff]  ;;  %v1807_v52 = vld [vmem:[%s5680_s8 + $0x48] sm:$0xff] }
 0x2e3   : > { %v3653_v60 = vpack.c.bf16 %v1807_v52, %v1806_v17  ;;  %v1809_v52 = vld [vmem:[%s5680_s8 + $0x58] sm:$0xff] }
 0x2e4   : > { %v4423_v25 = vpop.permute.xlu0 %1391 }
 0x2e5   : > { %5811 = vst [vmem:[#allocation64_spill] sm:$0xff] %v4423_v25  ;;  %3646 = vmatpush3.bf16.msra.mxu0 %v3645_v22 }
 0x2e6   : > { %3648 = vmatprep.subr.bf16.mxu0 %v3647_v56  ;;  %v3651_v56 = vpack.c.bf16 %v1823_v3, %v1822_v9  ;;  %v1824_v3 = vld [vmem:[%s5680_s8 + $0xd0] sm:$0xff] }
 0x2e8   : > { %v4425_v30 = vpop.permute.xlu0 %1723 }
 0x2e9   : > { %5812 = vst [vmem:[#allocation65_spill] sm:$0xff] %v4425_v30  ;;  %3650 = vmatpush3.bf16.msra.mxu0 %v3649_v13 }
 0x2ea   : > { %3652 = vmatprep.subr.bf16.mxu0 %v3651_v56 }
 0x2ec   : > { %v4427_v6 = vpop.permute.xlu0 %1727 }
 0x2ed   : > { %5813 = vst [vmem:[#allocation66_spill] sm:$0xff] %v4427_v6  ;;  %3654 = vmatpush3.bf16.msra.mxu0 %v3653_v60 }
 0x2f0   : > { %v4429_v8 = vpop.permute.xlu0 %1015 }
 0x2f1   : > { %5814 = vst [vmem:[#allocation67_spill] sm:$0xff] %v4429_v8 }
 0x2f4   : > { %v4443_v59 = vpop.permute.xlu0 %1020 }
 0x2f8   : > { %v4469_v43 = vpop.permute.xlu0 %1040 }
 0x2f9   : > { %5815 = vst [vmem:[#allocation68_spill] sm:$0xff] %v4469_v43 }
 0x31f   : > { %v926_v27 = vpop.permute.xlu0 %925 }
 0x320   : > { %948 = vst.msk [vmem:[#allocation2 + $0x18] sm:$0xff] %vm433_vm0, %v926_v27 }
 0x323   : > { %v924_v15 = vpop.permute.xlu0 %923  ;;  %v930_v22 = vpop.permute.xlu1 %929 }
 0x324   : > { %947 = vst.msk [vmem:[#allocation2 + $0x10] sm:$0xff] %vm433_vm0, %v924_v15  ;;  %950 = vst.msk [vmem:[#allocation2 + $0x28] sm:$0xff] %vm433_vm0, %v930_v22  ;;  %v1825_v15 = vld [vmem:[%s5680_s8 + $0xd8] sm:$0xff]  ;;  %v1808_v22 = vld [vmem:[%s5680_s8 + $0x50] sm:$0xff] }
 0x325   : > { %v3655_v56 = vpack.c.bf16 %v1825_v15, %v1824_v3  ;;  %v4525_v3 = vadd.f32 %v4320_v21, %v4349_v26 }
 0x327   : > { %v1132_v27 = vpop.permute.xlu1 %1131  ;;  %v928_v10 = vpop.permute.xlu0 %927  ;;  %v1614_v13 = vld [vmem:[#allocation2 + $0x18] sm:$0xff]  ;;  %3656 = vmatprep.subr.bf16.mxu0 %v3655_v56 }
 0x328   : > { %1156 = vst.msk [vmem:[#allocation4] sm:$0xff] %vm1155_vm3, %v1132_v27  ;;  %v1654_v9 = vmul.f32 %v4209_v32, %v1614_v13  ;;  %v1399_v17 = vmul.f32 %v1614_v13, %v4419_v1  ;;  %v1109_v27 = vmul.f32 %v1614_v13, %v4225_v45 }
 0x329   : > { %949 = vst.msk [vmem:[#allocation2 + $0x20] sm:$0xff] %vm433_vm0, %v928_v10  ;;  %v3657_v10 = vpack.c.bf16 %v1809_v52, %v1808_v22 }
 0x32a   : > { %v1662_v60 = vmul.f32 %v1654_v9, %v4337_v0  ;;  %v1407_v32 = vmul.f32 %v1399_v17, %v4500_v12  ;;  %v1117_v15 = vmul.f32 %v1109_v27, %v4525_v3 }
 0x32b   : > { %v934_v57 = vpop.permute.xlu1 %933  ;;  %v932_v43 = vpop.permute.xlu0 %931  ;;  %v1422_v7 = vld [vmem:[#allocation2 + $0x11] sm:$0xff]  ;;  %v1164_v25 = vld [vmem:[#allocation2 + $0x9] sm:$0xff]  ;;  %3658 = vmatpush3.bf16.msra.mxu0 %v3657_v10 }
 0x32c   : > { %v4521_v48 = vld [vmem:[#allocation2 + $0x17] sm:$0xff]  ;;  %952 = vst.msk [vmem:[#allocation2 + $0x38] sm:$0xff] %vm433_vm0, %v934_v57  ;;  %951 = vst.msk [vmem:[#allocation2 + $0x30] sm:$0xff] %vm433_vm0, %v932_v43  ;;  %1678 = vrot.lane.b32.xlu0 %v1662_v60, %s3838_s19  ;;  %v1462_v13 = vmul.f32 %v4199_v29, %v1422_v7  ;;  %v1204_v22 = vmul.f32 %v4205_v31, %v1164_v25  ;;  %v4537_v56 = vld [vmem:[#allocation2 + $0xf] sm:$0xff] }
 0x32d   : > { %1415 = vst.msk [vmem:[#allocation4 + $0x20] sm:$0xff] %vm433_vm0, %v1407_v32  ;;  %v1558_v17 = vmul.f32 %v4390_v14, %v4521_v48  ;;  %v4539_v57 = vld [vmem:[#allocation2 + $0x10] sm:$0xff]  ;;  %v1301_v25 = vmul.f32 %v4212_v33, %v4537_v56  ;;  %v4561_v14 = vld [vmem:[#allocation2 + $0x28] sm:$0xff] }
 0x32e   : > { %v1470_v9 = vmul.f32 %v1462_v13, %v4337_v0  ;;  %v1108_v13 = vmul.f32 %v4216_v34, %v4539_v57 }
 0x32f   : > { %v938_v60 = vpop.permute.xlu1 %937  ;;  %v936_v32 = vpop.permute.xlu0 %935 }
 0x330   : > { %v4541_v43 = vld [vmem:[#allocation2 + $0x19] sm:$0xff]  ;;  %v4543_v52 = vld [vmem:[#allocation2 + $0x21] sm:$0xff]  ;;  %954 = vst.msk [vmem:[#allocation2 + $0x48] sm:$0xff] %vm433_vm0, %v938_v60  ;;  %953 = vst.msk [vmem:[#allocation2 + $0x40] sm:$0xff] %vm433_vm0, %v936_v32  ;;  %1486 = vrot.lane.b32.xlu1 %v1470_v9, %s3839_s26  ;;  %1135 = vrot.lane.b32.xlu0 %v1117_v15, %s3839_s26  ;;  %v1566_v60 = vmul.f32 %v1558_v17, %v4337_v0  ;;  %v4569_v15 = vadd.f32 %v4320_v21, %v4340_v2 }
 0x331   : > { %v1750_v10 = vmul.f32 %v4295_v50, %v4541_v43  ;;  %v1751_v27 = vmul.f32 %v4425_v30, %v4543_v52  ;;  %v1212_v30 = vmul.f32 %v1204_v22, %v4337_v0  ;;  %v1656_v17 = vmul.f32 %v4233_v61, %v4561_v14 }
 0x332   : > { %v1116_v29 = vmul.f32 %v1108_v13, %v4500_v12 }
 0x333   : > { %v1758_v1 = vmul.f32 %v1750_v10, %v4337_v0  ;;  %v1759_v50 = vmul.f32 %v1751_v27, %v4500_v12  ;;  %v4563_v32 = vld [vmem:[#allocation2 + $0x29] sm:$0xff]  ;;  %v4565_v9 = vld [vmem:[#allocation2 + $0x31] sm:$0xff] }
 0x334   : > { %v1752_v10 = vmul.f32 %v4427_v6, %v4563_v32  ;;  %v1753_v22 = vmul.f32 %v4305_v58, %v4565_v9  ;;  %1228 = vrot.lane.b32.xlu1 %v1212_v30, %s3840_s28  ;;  %1582 = vrot.lane.b32.xlu0 %v1566_v60, %s3840_s28  ;;  %v4587_v6 = vadd.f32 %v4320_v21, %v4368_v41 }
 0x335   : > { %1767 = vst.msk [vmem:[#allocation4 + $0x28] sm:$0xff] %vm433_vm0, %v1759_v50  ;;  %1766 = vst.msk [vmem:[#allocation4 + $0x10] sm:$0xff] %vm433_vm0, %v1758_v1  ;;  %v1309_v1 = vmul.f32 %v1301_v25, %v4337_v0  ;;  %v4591_v30 = vadd.f32 %v4320_v21, %v4371_v63  ;;  %v4595_v60 = vadd.f32 %v4320_v21, %v4393_v18 }
 0x336   : > { %v1760_v27 = vmul.f32 %v1752_v10, %v4525_v3  ;;  %v1761_v50 = vmul.f32 %v1753_v22, %v4569_v15  ;;  %v1205_v25 = vmul.f32 %v1422_v7, %v4318_v28  ;;  %v1111_v7 = vmul.f32 %v4561_v14, %v4249_v11 }
 0x337   : > { %v4597_v58 = vld [vmem:[#allocation2 + $0x49] sm:$0xff]  ;;  %v4599_v10 = vld [vmem:[#allocation2 + $0x39] sm:$0xff]  ;;  %v4601_v22 = vld [vmem:[#allocation2 + $0x41] sm:$0xff] }
 0x338   : > { %1768 = vst.msk [vmem:[#allocation4 + $0x40] sm:$0xff] %vm433_vm0, %v1760_v27  ;;  %1769 = vst.msk [vmem:[#allocation4 + $0x58] sm:$0xff] %vm433_vm0, %v1761_v50  ;;  %v1756_v13 = vmul.f32 %v4329_v19, %v4597_v58  ;;  %v1754_v61 = vmul.f32 %v4309_v62, %v4599_v10  ;;  %v1755_v21 = vmul.f32 %v4316_v37, %v4601_v22  ;;  %1325 = vrot.lane.b32.xlu1 %v1309_v1, %s3838_s19  ;;  %v1810_v37 = vld [vmem:[%s5680_s8 + $0x60] sm:$0xff] }
 0x339   : > { %1133 = vrot.lane.b32.xlu0 %v1116_v29, %s3839_s26  ;;  %v1664_v19 = vmul.f32 %v1656_v17, %v4525_v3  ;;  %v1213_v62 = vmul.f32 %v1205_v25, %v4500_v12  ;;  %v1302_v1 = vmul.f32 %v4521_v48, %v4409_v20  ;;  %v1119_v29 = vmul.f32 %v1111_v7, %v4591_v30  ;;  %v4633_v17 = vld [vmem:[#allocation2 + $0x1f] sm:$0xff] }
 0x33a   : > { %v1764_v27 = vmul.f32 %v1756_v13, %v4595_v60  ;;  %v1762_v50 = vmul.f32 %v1754_v61, %v4591_v30  ;;  %v1763_v33 = vmul.f32 %v1755_v21, %v4587_v6  ;;  %v1463_v61 = vmul.f32 %v4541_v43, %v4302_v55 }
 0x33b   : > { %v1310_v13 = vmul.f32 %v1302_v1, %v4500_v12  ;;  %v1206_v7 = vmul.f32 %v4541_v43, %v4228_v53 }
 0x33c   : > { %v1776_v45 = vld [vmem:[#allocation4 + $0x10] sm:$0xff]  ;;  %v1779_v28 = vld [vmem:[#allocation4 + $0x28] sm:$0xff]  ;;  %1772 = vst.msk [vmem:[#allocation4 + $0xa0] sm:$0xff] %vm433_vm0, %v1764_v27  ;;  %1770 = vst.msk [vmem:[#allocation4 + $0x70] sm:$0xff] %vm433_vm0, %v1762_v50  ;;  %1682 = vrot.lane.b32.xlu1 %v1664_v19, %s3838_s19 }
 0x33d   : > { %1771 = vst.msk [vmem:[#allocation4 + $0x88] sm:$0xff] %vm433_vm0, %v1763_v33  ;;  %3537 = vmatprep.mubr.msk.f32.mxu1 %vm433_vm0, %v1776_v45  ;;  %1230 = vrot.lane.b32.xlu0 %v1213_v62, %s3840_s28  ;;  %v1464_v33 = vmul.f32 %v4543_v52, %v4223_v39  ;;  %v1615_v45 = vld [vmem:[#allocation2 + $0x20] sm:$0xff]  ;;  %v1559_v62 = vmul.f32 %v4219_v35, %v4633_v17 }
 0x33e   : > { %3538 = vmatmul.mubr.msk.f32.vlgmr.msra.gmra.mrb[8].mxu1 %vm433_vm0, %v1779_v28  ;;  %v4642_v19 = vld [vmem:[#allocation2 + $0x27] sm:$0xff]  ;;  %v1471_v28 = vmul.f32 %v1463_v61, %v4500_v12  ;;  %v1655_v27 = vmul.f32 %v4221_v36, %v1615_v45  ;;  %v1303_v61 = vmul.f32 %v4633_v17, %v4238_v4  ;;  %v1398_v39 = vmul.f32 %v4279_v40, %v4539_v57  ;;  %v1797_v57 = vld [vmem:[#allocation4 + $0xb8] sm:$0xff]  ;;  %v4712_v40 = vld [vmem:[#allocation2 + $0x2f] sm:$0xff] }
 0x33f   : > { %v1782_v25 = vld [vmem:[#allocation4 + $0x40] sm:$0xff]  ;;  %v1785_v21 = vld [vmem:[#allocation4 + $0x58] sm:$0xff]  ;;  %v1472_v50 = vmul.f32 %v1464_v33, %v4525_v3  ;;  %v1560_v43 = vmul.f32 %v4401_v16, %v4642_v19  ;;  %v1827_v33 = vld [vmem:[%s5680_s8 + $0xe8] sm:$0xff]  ;;  %v1567_v36 = vmul.f32 %v1559_v62, %v4500_v12  ;;  %v1045_v35 = vmul.f32 %v4521_v48, %v4429_v8 }
 0x340   : > { %3540 = vmatprep.mubr.msk.f32.mxu1 %vm433_vm0, %v1782_v25  ;;  %1139 = vrot.lane.b32.xlu1 %v1119_v29, %s3839_s26  ;;  %v4651_v25 = vld [vmem:[#allocation2 + $0x38] sm:$0xff]  ;;  %v1811_v16 = vld [vmem:[%s5680_s8 + $0x68] sm:$0xff]  ;;  %v1044_v62 = vmul.f32 %v4537_v56, %v4283_v42  ;;  %v1311_v48 = vmul.f32 %v1303_v61, %v4525_v3  ;;  %v1047_v11 = vmul.f32 %v4642_v19, %v4289_v47 }
 0x341   : > { %1327 = vrot.lane.b32.xlu0 %v1310_v13, %s3838_s19  ;;  %v1210_v13 = vmul.f32 %v4599_v10, %v4267_v24  ;;  %v1828_v24 = vld [vmem:[%s5680_s8 + $0xf0] sm:$0xff]  ;;  %v1568_v56 = vmul.f32 %v1560_v43, %v4525_v3  ;;  %v3661_v42 = vpack.c.bf16 %v1811_v16, %v1810_v37  ;;  %v1053_v55 = vmul.f32 %v1045_v35, %v4525_v3  ;;  %v4720_v16 = vld [vmem:[#allocation2 + $0x48] sm:$0xff] }
 0x342   : > { %3541 = vmatmul.mubr.msk.f32.gmra.mrb[10].mxu1 %vm433_vm0, %v1785_v21  ;;  %v1826_v21 = vld [vmem:[%s5680_s8 + $0xe0] sm:$0xff]  ;;  %v4708_v8 = vld [vmem:[#allocation2 + $0x37] sm:$0xff]  ;;  %v1052_v61 = vmul.f32 %v1044_v62, %v4500_v12  ;;  %v1400_v37 = vmul.f32 %v1615_v45, %v4285_v44 }
 0x343   : > { %v1788_v1 = vld [vmem:[#allocation4 + $0x70] sm:$0xff]  ;;  %1061 = vst.msk [vmem:[#allocation4 + $0x30] sm:$0xff] %vm433_vm0, %v1053_v55  ;;  %v1049_v35 = vmul.f32 %v4708_v8, %v4297_v51  ;;  %v1055_v55 = vmul.f32 %v1047_v11, %v4591_v30  ;;  %v5816_v62 = vld [vmem:[#allocation36_spill] sm:$0xff] }
 0x344   : > { %v1791_v29 = vld [vmem:[#allocation4 + $0x88] sm:$0xff]  ;;  %1488 = vrot.lane.b32.xlu1 %v1471_v28, %s3839_s26  ;;  %3543 = vmatprep.mubr.msk.f32.mxu1 %vm433_vm0, %v1788_v1  ;;  %v1794_v28 = vld [vmem:[#allocation4 + $0xa0] sm:$0xff]  ;;  %v4670_v1 = vmul.f32 %v1210_v13, %v4595_v60  ;;  %v1113_v13 = vmul.f32 %v4265_v23, %v4651_v25  ;;  %v1813_v23 = vld [vmem:[%s5680_s8 + $0x78] sm:$0xff]  ;;  %1060 = vst.msk [vmem:[#allocation4 + $0x18] sm:$0xff] %vm433_vm0, %v1052_v61 }
 0x345   : > { %1490 = vrot.lane.b32.xlu0 %v1472_v50, %s3839_s26  ;;  %v1214_v50 = vmul.f32 %v1206_v7, %v4525_v3  ;;  %v1829_v7 = vld [vmem:[%s5680_s8 + $0xf8] sm:$0xff]  ;;  %1063 = vst.msk [vmem:[#allocation4 + $0x60] sm:$0xff] %vm433_vm0, %v1055_v55  ;;  %v5822_v55 = vld [vmem:[#allocation49_spill] sm:$0xff] }
 0x346   : > { %3544 = vmatmul.mubr.msk.f32.gmra.mrb[12].mxu1 %vm433_vm0, %v1791_v29  ;;  %v1663_v29 = vmul.f32 %v1655_v27, %v4500_v12  ;;  %v1812_v27 = vld [vmem:[%s5680_s8 + $0x70] sm:$0xff]  ;;  %v3663_v43 = vpack.c.bf16 %v1829_v7, %v1828_v24  ;;  %v1401_v24 = vmul.f32 %v4561_v14, %v4287_v46  ;;  %v1048_v12 = vmul.f32 %v4712_v40, %v4293_v49  ;;  %v5817_v7 = vld [vmem:[#allocation64_spill] sm:$0xff] }
 0x347   : > { %3546 = vmatprep.mubr.msk.f32.mxu1 %vm433_vm0, %v1794_v28  ;;  %v3659_v28 = vpack.c.bf16 %v1827_v33, %v1826_v21  ;;  %v1110_v21 = vmul.f32 %v1615_v45, %v4241_v5  ;;  %v4706_v33 = vld [vmem:[#allocation2 + $0x30] sm:$0xff]  ;;  %v3665_v4 = vpack.c.bf16 %v1813_v23, %v1812_v27 }
 0x348   : > { %1584 = vrot.lane.b32.xlu1 %v1567_v36, %s3840_s28  ;;  %v1406_v36 = vmul.f32 %v1398_v39, %v4337_v0  ;;  %v1046_v39 = vmul.f32 %v4633_v17, %v4443_v59  ;;  %v1402_v23 = vmul.f32 %v4706_v33, %v4421_v38  ;;  %v4736_v0 = vld [vmem:[#allocation2 + $0x3f] sm:$0xff]  ;;  %v1057_v17 = vmul.f32 %v1049_v35, %v4595_v60 }
 0x349   : > { %1232 = vrot.lane.b32.xlu0 %v1214_v50, %s3840_s28  ;;  %3660 = vmatprep.subr.bf16.mxu0 %v3659_v28  ;;  %v4722_v50 = vld [vmem:[#allocation2 + $0x40] sm:$0xff]  ;;  %v1056_v11 = vmul.f32 %v1048_v12, %v4587_v6  ;;  %v1403_v28 = vmul.f32 %v5816_v62, %v4651_v25  ;;  %v5823_v12 = vld [vmem:[#allocation16_spill] sm:$0xff] }
 0x34a   : > { %3547 = vmatmul.mubr.msk.f32.gmra.mrb[14].mxu1 %vm433_vm0, %v1797_v57  ;;  %1414 = vst.msk [vmem:[#allocation4 + $0x8] sm:$0xff] %vm433_vm0, %v1406_v36  ;;  %3662 = vmatpush3.bf16.msra.mxu0 %v3661_v42  ;;  %v1408_v42 = vmul.f32 %v1400_v37, %v4525_v3  ;;  %v1054_v45 = vmul.f32 %v1046_v39, %v4569_v15  ;;  %v5818_v57 = vmov 0.0   ;;  %v5819_v36 = vld [vmem:[#allocation15_spill] sm:$0xff]  ;;  %1065 = vst.msk [vmem:[#allocation4 + $0x90] sm:$0xff] %vm433_vm0, %v1057_v17 }
 0x34b   : > { %3664 = vmatprep.subr.bf16.mxu0 %v3663_v43  ;;  %v1410_v14 = vmul.f32 %v1402_v23, %v4591_v30  ;;  %v1405_v3 = vmul.f32 %v4720_v16, %v4300_v54  ;;  %v1404_v27 = vmul.f32 %v4722_v50, %v5817_v7  ;;  %2266 = vmatprep.mubr.f32.mxu1 %v5818_v57  ;;  %v5820_v43 = vld [vmem:[#allocation68_spill] sm:$0xff] }
 0x34c   : > { %1680 = vrot.lane.b32.xlu1 %v1663_v29, %s3838_s19  ;;  %v1409_v29 = vmul.f32 %v1401_v24, %v4569_v15  ;;  %1416 = vst.msk [vmem:[#allocation4 + $0x38] sm:$0xff] %vm433_vm0, %v1408_v42  ;;  %v1561_v61 = vmul.f32 %v5819_v36, %v4712_v40  ;;  %1062 = vst.msk [vmem:[#allocation4 + $0x48] sm:$0xff] %vm433_vm0, %v1054_v45  ;;  %v1050_v37 = vmul.f32 %v4736_v0, %v5820_v43 }
 0x34d   : > { %1329 = vrot.lane.b32.xlu0 %v1311_v48, %s3838_s19  ;;  %v1121_v48 = vmul.f32 %v1113_v13, %v4595_v60  ;;  %1418 = vst.msk [vmem:[#allocation4 + $0x68] sm:$0xff] %vm433_vm0, %v1410_v14  ;;  %1064 = vst.msk [vmem:[#allocation4 + $0x78] sm:$0xff] %vm433_vm0, %v1056_v11  ;;  %v5821_v13 = vld [vmem:[#allocation53_spill] sm:$0xff]  ;;  %v1411_v39 = vmul.f32 %v1403_v28, %v4587_v6  ;;  %v1118_v24 = vmul.f32 %v1110_v21, %v4569_v15  ;;  %v5826_v28 = vld [vmem:[#allocation20_spill] sm:$0xff] }
 0x34e   : > { %3666 = vmatpush3.bf16.msra.mxu0 %v3665_v4  ;;  %1417 = vst.msk [vmem:[#allocation4 + $0x50] sm:$0xff] %vm433_vm0, %v1409_v29  ;;  %v1413_v35 = vmul.f32 %v1405_v3, %v5821_v13  ;;  %v1412_v4 = vmul.f32 %v1404_v27, %v4595_v60  ;;  %v1058_v23 = vmul.f32 %v1050_v37, %v5821_v13  ;;  %v5825_v29 = vld [vmem:[#allocation17_spill] sm:$0xff] }
 0x34f   : > { %v1207_v42 = vmul.f32 %v4543_v52, %v5822_v55  ;;  %1419 = vst.msk [vmem:[#allocation4 + $0x80] sm:$0xff] %vm433_vm0, %v1411_v39  ;;  %v1657_v17 = vmul.f32 %v5823_v12, %v4706_v33  ;;  %v5824_v52 = vld [vmem:[#allocation59_spill] sm:$0xff]  ;;  %v1466_v11 = vmul.f32 %v4565_v9, %v5825_v29  ;;  %v1658_v27 = vmul.f32 %v5826_v28, %v4651_v25 }
 0x350   : > { %1586 = vrot.lane.b32.xlu1 %v1568_v56, %s3840_s28  ;;  %1421 = vst.msk [vmem:[#allocation4 + $0xb0] sm:$0xff] %vm433_vm0, %v1413_v35  ;;  %1420 = vst.msk [vmem:[#allocation4 + $0x98] sm:$0xff] %vm433_vm0, %v1412_v4  ;;  %v1569_v56 = vmul.f32 %v1561_v61, %v4569_v15  ;;  %v1304_v45 = vmul.f32 %v4642_v19, %v5824_v52  ;;  %v5827_v61 = vld [vmem:[#allocation19_spill] sm:$0xff]  ;;  %v5828_v35 = vld [vmem:[#allocation41_spill] sm:$0xff] }
 0x351   : > { %1143 = vrot.lane.b32.xlu0 %v1121_v48, %s3839_s26  ;;  %1066 = vst.msk [vmem:[#allocation4 + $0xa8] sm:$0xff] %vm433_vm0, %v1058_v23  ;;  %v1215_v21 = vmul.f32 %v1207_v42, %v4569_v15  ;;  %v1665_v14 = vmul.f32 %v1657_v17, %v4569_v15  ;;  %v1474_v48 = vmul.f32 %v1466_v11, %v4591_v30  ;;  %v5829_v23 = vld [vmem:[#allocation21_spill] sm:$0xff]  ;;  %v5830_v42 = vld [vmem:[#allocation56_spill] sm:$0xff] }
 0x352   : > { %v1312_v3 = vmul.f32 %v1304_v45, %v4569_v15  ;;  %v1208_v37 = vmul.f32 %v4563_v32, %v5827_v61  ;;  %v1666_v19 = vmul.f32 %v1658_v27, %v4591_v30  ;;  %v1465_v39 = vmul.f32 %v4563_v32, %v5828_v35  ;;  %v5832_v32 = vld [vmem:[#allocation28_spill] sm:$0xff]  ;;  %v5834_v27 = vld [vmem:[#allocation29_spill] sm:$0xff] }
 0x354   : > { %1137 = vrot.lane.b32.xlu1 %v1118_v24, %s3839_s26  ;;  %v1216_v4 = vmul.f32 %v1208_v37, %v4591_v30  ;;  %v1305_v24 = vmul.f32 %v4712_v40, %v5829_v23  ;;  %v1473_v25 = vmul.f32 %v1465_v39, %v4569_v15  ;;  %v5833_v15 = vld [vmem:[#allocation51_spill] sm:$0xff] }
 0x355   : > { %1588 = vrot.lane.b32.xlu0 %v1569_v56, %s3840_s28  ;;  %v1562_v56 = vmul.f32 %v5830_v42, %v4708_v8 }
 0x356   : > { %v1313_v17 = vmul.f32 %v1305_v24, %v4591_v30  ;;  %v5837_v24 = vld [vmem:[#allocation43_spill] sm:$0xff] }
 0x357   : > { %v1570_v40 = vmul.f32 %v1562_v56, %v4591_v30  ;;  %v5835_v30 = vld [vmem:[#allocation60_spill] sm:$0xff] }
 0x358   : > { %1234 = vrot.lane.b32.xlu1 %v1215_v21, %s3840_s28  ;;  %v5831_v21 = vld [vmem:[#allocation22_spill] sm:$0xff] }
 0x359   : > { %1684 = vrot.lane.b32.xlu0 %v1665_v14, %s3838_s19  ;;  %v1112_v45 = vmul.f32 %v4706_v33, %v5831_v21  ;;  %v1660_v14 = vmul.f32 %v5832_v32, %v4720_v16  ;;  %v5836_v16 = vld [vmem:[#allocation23_spill] sm:$0xff] }
 0x35a   : > { %v1563_v39 = vmul.f32 %v5836_v16, %v4736_v0 }
 0x35b   : > { %v1120_v11 = vmul.f32 %v1112_v45, %v4587_v6  ;;  %v1668_v33 = vmul.f32 %v1660_v14, %v4595_v60  ;;  %v5839_v45 = vld [vmem:[#allocation25_spill] sm:$0xff] }
 0x35c   : > { %1331 = vrot.lane.b32.xlu1 %v1312_v3, %s3838_s19  ;;  %v1209_v3 = vmul.f32 %v4565_v9, %v5833_v15  ;;  %v1524_v14 = vld [vmem:[#allocation2 + $0x47] sm:$0xff] }
 0x35d   : > { %1494 = vrot.lane.b32.xlu0 %v1474_v48, %s3839_s26  ;;  %v1469_v48 = vmul.f32 %v4597_v58, %v5834_v27  ;;  %v1571_v58 = vmul.f32 %v1563_v39, %v4587_v6  ;;  %v1621_v39 = vld [vmem:[#allocation2 + $0x50] sm:$0xff] }
 0x35e   : > { %v1217_v37 = vmul.f32 %v1209_v3, %v4587_v6 }
 0x35f   : > { %v1477_v9 = vmul.f32 %v1469_v48, %v5821_v13  ;;  %v1525_v48 = vld [vmem:[#allocation2 + $0x4f] sm:$0xff] }
 0x360   : > { %1686 = vrot.lane.b32.xlu1 %v1666_v19, %s3838_s19  ;;  %v1306_v19 = vmul.f32 %v4708_v8, %v5835_v30  ;;  %v5838_v8 = vld [vmem:[#allocation24_spill] sm:$0xff] }
 0x361   : > { %1236 = vrot.lane.b32.xlu0 %v1216_v4, %s3840_s28  ;;  %v1659_v56 = vmul.f32 %v5838_v8, %v4722_v50 }
 0x362   : > { %v1314_v4 = vmul.f32 %v1306_v19, %v4587_v6  ;;  %v5841_v19 = vld [vmem:[#allocation58_spill] sm:$0xff] }
 0x364   : > { %1492 = vrot.lane.b32.xlu1 %v1473_v25, %s3839_s26  ;;  %v1467_v25 = vmul.f32 %v4599_v10, %v5837_v24  ;;  %v1667_v10 = vmul.f32 %v1659_v56, %v4587_v6 }
 0x365   : > { %1333 = vrot.lane.b32.xlu0 %v1313_v17, %s3838_s19 }
 0x366   : > { %v1475_v17 = vmul.f32 %v1467_v25, %v4587_v6  ;;  %v5843_v6 = vld [vmem:[#allocation32_spill] sm:$0xff] }
 0x368   : > { %1590 = vrot.lane.b32.xlu1 %v1570_v40, %s3840_s28  ;;  %v1468_v40 = vmul.f32 %v4601_v22, %v5839_v45 }
 0x369   : > { %1141 = vrot.lane.b32.xlu0 %v1120_v11, %s3839_s26  ;;  %v5840_v11 = vld [vmem:[#allocation57_spill] sm:$0xff] }
 0x36a   : > { %v1564_v3 = vmul.f32 %v5840_v11, %v1524_v14 }
 0x36c   : > { %1690 = vrot.lane.b32.xlu1 %v1668_v33, %s3838_s19  ;;  %v1476_v33 = vmul.f32 %v1468_v40, %v4595_v60  ;;  %v5844_v40 = vld [vmem:[#allocation30_spill] sm:$0xff] }
 0x36d   : > { %1238 = vrot.lane.b32.xlu0 %v1217_v37, %s3840_s28  ;;  %v1572_v37 = vmul.f32 %v1564_v3, %v4595_v60 }
 0x370   : > { %1500 = vrot.lane.b32.xlu1 %v1477_v9, %s3839_s26  ;;  %v1565_v9 = vmul.f32 %v5841_v19, %v1525_v48  ;;  %v5846_v48 = vld [vmem:[#allocation62_spill] sm:$0xff] }
 0x371   : > { %1335 = vrot.lane.b32.xlu0 %v1314_v4, %s3838_s19  ;;  %v5842_v4 = vld [vmem:[#allocation61_spill] sm:$0xff] }
 0x372   : > { %v1307_v25 = vmul.f32 %v4736_v0, %v5842_v4  ;;  %v1573_v56 = vmul.f32 %v1565_v9, %v5821_v13 }
 0x374   : > { %1592 = vrot.lane.b32.xlu1 %v1571_v58, %s3840_s28  ;;  %v1661_v58 = vmul.f32 %v5843_v6, %v1621_v39  ;;  %v2444_v39 = vld [vmem:[#allocation3 + $0x8] sm:$0xff] }
 0x375   : > { %1496 = vrot.lane.b32.xlu0 %v1475_v17, %s3839_s26  ;;  %v1315_v17 = vmul.f32 %v1307_v25, %v4595_v60 }
 0x376   : > { %v1669_v0 = vmul.f32 %v1661_v58, %v5821_v13 }
 0x378   : > { %1688 = vrot.lane.b32.xlu1 %v1667_v10, %s3838_s19  ;;  %v1114_v10 = vmul.f32 %v4722_v50, %v5844_v40  ;;  %v5847_v50 = vld [vmem:[#allocation47_spill] sm:$0xff] }
 0x379   : > { %1498 = vrot.lane.b32.xlu0 %v1476_v33, %s3839_s26  ;;  %v5845_v33 = vld [vmem:[#allocation31_spill] sm:$0xff] }
 0x37a   : > { %v1122_v3 = vmul.f32 %v1114_v10, %v5821_v13 }
 0x37c   : > { %1594 = vrot.lane.b32.xlu1 %v1572_v37, %s3840_s28  ;;  %v1308_v37 = vmul.f32 %v1524_v14, %v5846_v48  ;;  %v5849_v14 = vld [vmem:[#allocation6_spill] sm:$0xff] }
 0x37d   : > { %1240 = vrot.lane.b32.xlu0 %v4670_v1, %s3840_s28  ;;  %v1211_v1 = vmul.f32 %v4601_v22, %v5845_v33  ;;  %v5848_v22 = vld [vmem:[#allocation46_spill] sm:$0xff] }
 0x37e   : > { %v1316_v9 = vmul.f32 %v1308_v37, %v5821_v13 }
 0x37f   : > { %v1219_v60 = vmul.f32 %v1211_v1, %v5821_v13  ;;  %v2452_v13 = vmul.f32 %v2444_v39, %v5849_v14 }
 0x380   : > { %1596 = vrot.lane.b32.xlu1 %v1573_v56, %s3840_s28 }
 0x381   : > { %1337 = vrot.lane.b32.xlu0 %v1315_v17, %s3838_s19 }
 0x384   : > { %1692 = vrot.lane.b32.xlu1 %v1669_v0, %s3838_s19 }
 0x385   : > { %1145 = vrot.lane.b32.xlu0 %v1122_v3, %s3839_s26 }
 0x388   : > { %955 = vrot.lane.b32.xlu1 %v5847_v50, %s3840_s28 }
 0x389   : > { %1242 = vrot.lane.b32.xlu0 %v1219_v60, %s3840_s28 }
 0x38c   : > { %959 = vrot.lane.b32.xlu1 %v4349_v26, %s3840_s28  ;;  %v5850_v26 = vld [vmem:[#allocation52_spill] sm:$0xff] }
 0x38d   : > { %1339 = vrot.lane.b32.xlu0 %v1316_v9, %s3838_s19 }
 0x390   : > { %963 = vrot.lane.b32.xlu1 %v4371_v63, %s3840_s28 }
 0x391   : > { %957 = vrot.lane.b32.xlu0 %v5848_v22, %s3840_s28 }
 0x394   : > { %967 = vrot.lane.b32.xlu1 %v4393_v18, %s3840_s28 }
 0x395   : > { %961 = vrot.lane.b32.xlu0 %v4340_v2, %s3840_s28 }
 0x398   : > { %2468 = vrot.lane.b32.xlu1 %v2452_v13, %s3839_s26 }
 0x399   : > { %965 = vrot.lane.b32.xlu0 %v4368_v41, %s3840_s28 }
 0x39d   : > { %969 = vrot.lane.b32.xlu0 %v5850_v26, %s3840_s28 }
 0x39e   : > { %v1679_v63 = vpop.permute.xlu0 %1678 }
 0x3a2   : > { %v1487_v25 = vpop.permute.xlu1 %1486  ;;  %v1136_v58 = vpop.permute.xlu0 %1135 }
 0x3a3   : > { %1510 = vst.msk [vmem:[#allocation4 + $0x8] sm:$0xff] %vm1155_vm3, %v1487_v25  ;;  %1158 = vst.msk [vmem:[#allocation4 + $0x30] sm:$0xff] %vm1155_vm3, %v1136_v58 }
 0x3a6   : > { %v1229_v2 = vpop.permute.xlu1 %1228  ;;  %v1583_v18 = vpop.permute.xlu0 %1582 }
 0x3a7   : > { %1253 = vst.msk [vmem:[#allocation4] sm:$0xff] %vm1252_vm4, %v1229_v2  ;;  %1606 = vst.msk [vmem:[#allocation4 + $0x8] sm:$0xff] %vm1252_vm4, %v1583_v18 }
 0x3a8   : > { %1702 = vst.msk [vmem:[#allocation4 + $0x8] sm:$0xff] %vm1349_vm5, %v1679_v63 }
 0x3aa   : > { %v1326_v41 = vpop.permute.xlu1 %1325 }
 0x3ab   : > { %v1134_v56 = vpop.permute.xlu0 %1133  ;;  %1350 = vst.msk [vmem:[#allocation4] sm:$0xff] %vm1349_vm5, %v1326_v41 }
 0x3ac   : > { %1157 = vst.msk [vmem:[#allocation4 + $0x18] sm:$0xff] %vm1155_vm3, %v1134_v56 }
 0x3ae   : > { %v1683_v17 = vpop.permute.xlu1 %1682 }
 0x3af   : > { %v1231_v10 = vpop.permute.xlu0 %1230  ;;  %v1775_v0 = vld [vmem:[#allocation4 + $0x8] sm:$0xff] }
 0x3b0   : > { %1254 = vst.msk [vmem:[#allocation4 + $0x18] sm:$0xff] %vm1252_vm4, %v1231_v10  ;;  %1929 = vmatprep.mubr.f32.mxu0 %v1775_v0 }
 0x3b2   : > { %v1140_v3 = vpop.permute.xlu1 %1139  ;;  %v1774_v1 = vld [vmem:[#allocation4] sm:$0xff] }
 0x3b3   : > { %1160 = vst.msk [vmem:[#allocation4 + $0x60] sm:$0xff] %vm1155_vm3, %v1140_v3  ;;  %v1328_v60 = vpop.permute.xlu0 %1327  ;;  %1930 = vmatmul.mubr.f32.vlgmr.msra.gmra.mrb[16].mxu0 %v1774_v1 }
 0x3b4   : > { %1351 = vst.msk [vmem:[#allocation4 + $0x18] sm:$0xff] %vm1349_vm5, %v1328_v60 }
 0x3b6   : > { %v1489_v37 = vpop.permute.xlu1 %1488 }
 0x3b7   : > { %1511 = vst.msk [vmem:[#allocation4 + $0x20] sm:$0xff] %vm1155_vm3, %v1489_v37  ;;  %v1491_v50 = vpop.permute.xlu0 %1490 }
 0x3b8   : > { %1512 = vst.msk [vmem:[#allocation4 + $0x38] sm:$0xff] %vm1155_vm3, %v1491_v50 }
 0x3ba   : > { %v1585_v9 = vpop.permute.xlu1 %1584 }
 0x3bb   : > { %1607 = vst.msk [vmem:[#allocation4 + $0x20] sm:$0xff] %vm1252_vm4, %v1585_v9  ;;  %v1233_v22 = vpop.permute.xlu0 %1232  ;;  %v1777_v2 = vld [vmem:[#allocation4 + $0x18] sm:$0xff] }
 0x3bc   : > { %1255 = vst.msk [vmem:[#allocation4 + $0x30] sm:$0xff] %vm1252_vm4, %v1233_v22 }
 0x3be   : > { %v1681_v39 = vpop.permute.xlu1 %1680 }
 0x3bf   : > { %1703 = vst.msk [vmem:[#allocation4 + $0x20] sm:$0xff] %vm1349_vm5, %v1681_v39  ;;  %v1330_v14 = vpop.permute.xlu0 %1329 }
 0x3c0   : > { %1352 = vst.msk [vmem:[#allocation4 + $0x30] sm:$0xff] %vm1349_vm5, %v1330_v14 }
 0x3c2   : > { %v1587_v13 = vpop.permute.xlu1 %1586 }
 0x3c3   : > { %1608 = vst.msk [vmem:[#allocation4 + $0x38] sm:$0xff] %vm1252_vm4, %v1587_v13  ;;  %v1144_v26 = vpop.permute.xlu0 %1143 }
 0x3c4   : > { %1704 = vst.msk [vmem:[#allocation4 + $0x38] sm:$0xff] %vm1349_vm5, %v1683_v17 }
 0x3c5   : > { %1162 = vst.msk [vmem:[#allocation4 + $0x90] sm:$0xff] %vm1155_vm3, %v1144_v26 }
 0x3c6   : > { %v1138_v63 = vpop.permute.xlu1 %1137  ;;  %v1778_v25 = vld [vmem:[#allocation4 + $0x20] sm:$0xff] }
 0x3c7   : > { %1159 = vst.msk [vmem:[#allocation4 + $0x48] sm:$0xff] %vm1155_vm3, %v1138_v63  ;;  %v1589_v58 = vpop.permute.xlu0 %1588  ;;  %1934 = vmatprep.mubr.f32.mxu0 %v1778_v25  ;;  %v1780_v10 = vld [vmem:[#allocation4 + $0x30] sm:$0xff] }
 0x3c8   : > { %1935 = vmatmul.mubr.f32.gmra.mrb[18].mxu0 %v1777_v2 }
 0x3ca   : > { %v1235_v18 = vpop.permute.xlu1 %1234 }
 0x3cb   : > { %1256 = vst.msk [vmem:[#allocation4 + $0x48] sm:$0xff] %vm1252_vm4, %v1235_v18  ;;  %v1685_v41 = vpop.permute.xlu0 %1684  ;;  %v1781_v56 = vld [vmem:[#allocation4 + $0x38] sm:$0xff] }
 0x3cc   : > { %1939 = vmatprep.mubr.f32.mxu0 %v1781_v56 }
 0x3cd   : > { %1940 = vmatmul.mubr.f32.gmra.mrb[20].mxu0 %v1780_v10 }
 0x3ce   : > { %v1332_v0 = vpop.permute.xlu1 %1331 }
 0x3cf   : > { %1353 = vst.msk [vmem:[#allocation4 + $0x48] sm:$0xff] %vm1349_vm5, %v1332_v0  ;;  %v1495_v17 = vpop.permute.xlu0 %1494 }
 0x3d0   : > { %1514 = vst.msk [vmem:[#allocation4 + $0x68] sm:$0xff] %vm1155_vm3, %v1495_v17 }
 0x3d2   : > { %v1687_v3 = vpop.permute.xlu1 %1686 }
 0x3d3   : > { %v1237_v1 = vpop.permute.xlu0 %1236 }
 0x3d4   : > { %1257 = vst.msk [vmem:[#allocation4 + $0x60] sm:$0xff] %vm1252_vm4, %v1237_v1 }
 0x3d6   : > { %v1493_v60 = vpop.permute.xlu1 %1492  ;;  %v1783_v13 = vld [vmem:[#allocation4 + $0x48] sm:$0xff] }
 0x3d7   : > { %1513 = vst.msk [vmem:[#allocation4 + $0x50] sm:$0xff] %vm1155_vm3, %v1493_v60  ;;  %v1334_v37 = vpop.permute.xlu0 %1333 }
 0x3d8   : > { %1609 = vst.msk [vmem:[#allocation4 + $0x50] sm:$0xff] %vm1252_vm4, %v1589_v58 }
 0x3d9   : > { %1354 = vst.msk [vmem:[#allocation4 + $0x60] sm:$0xff] %vm1349_vm5, %v1334_v37  ;;  %1705 = vst.msk [vmem:[#allocation4 + $0x50] sm:$0xff] %vm1349_vm5, %v1685_v41 }
 0x3da   : > { %v1591_v50 = vpop.permute.xlu1 %1590 }
 0x3db   : > { %1610 = vst.msk [vmem:[#allocation4 + $0x68] sm:$0xff] %vm1252_vm4, %v1591_v50  ;;  %v1142_v9 = vpop.permute.xlu0 %1141 }
 0x3dc   : > { %1706 = vst.msk [vmem:[#allocation4 + $0x68] sm:$0xff] %vm1349_vm5, %v1687_v3 }
 0x3dd   : > { %1161 = vst.msk [vmem:[#allocation4 + $0x78] sm:$0xff] %vm1155_vm3, %v1142_v9 }
 0x3de   : > { %v1691_v22 = vpop.permute.xlu1 %1690 }
 0x3df   : > { %v1239_v39 = vpop.permute.xlu0 %1238 }
 0x3e0   : > { %1258 = vst.msk [vmem:[#allocation4 + $0x78] sm:$0xff] %vm1252_vm4, %v1239_v39  ;;  %v1784_v14 = vld [vmem:[#allocation4 + $0x50] sm:$0xff]  ;;  %v1786_v58 = vld [vmem:[#allocation4 + $0x60] sm:$0xff] }
 0x3e1   : > { %1944 = vmatprep.mubr.f32.mxu0 %v1784_v14 }
 0x3e2   : > { %v1501_v26 = vpop.permute.xlu1 %1500  ;;  %1945 = vmatmul.mubr.f32.gmra.mrb[22].mxu0 %v1783_v13 }
 0x3e3   : > { %1517 = vst.msk [vmem:[#allocation4 + $0xb0] sm:$0xff] %vm1155_vm3, %v1501_v26  ;;  %v1336_v63 = vpop.permute.xlu0 %1335  ;;  %v1787_v25 = vld [vmem:[#allocation4 + $0x68] sm:$0xff] }
 0x3e4   : > { %1355 = vst.msk [vmem:[#allocation4 + $0x78] sm:$0xff] %vm1349_vm5, %v1336_v63  ;;  %1949 = vmatprep.mubr.f32.mxu0 %v1787_v25 }
 0x3e6   : > { %v1593_v2 = vpop.permute.xlu1 %1592  ;;  %1950 = vmatmul.mubr.f32.gmra.mrb[24].mxu0 %v1786_v58 }
 0x3e7   : > { %v1497_v18 = vpop.permute.xlu0 %1496 }
 0x3e8   : > { %1515 = vst.msk [vmem:[#allocation4 + $0x80] sm:$0xff] %vm1155_vm3, %v1497_v18 }
 0x3e9   : > { %1611 = vst.msk [vmem:[#allocation4 + $0x80] sm:$0xff] %vm1252_vm4, %v1593_v2 }
 0x3ea   : > { %v1689_v41 = vpop.permute.xlu1 %1688 }
 0x3eb   : > { %1707 = vst.msk [vmem:[#allocation4 + $0x80] sm:$0xff] %vm1349_vm5, %v1689_v41  ;;  %v1499_v56 = vpop.permute.xlu0 %1498  ;;  %v1789_v60 = vld [vmem:[#allocation4 + $0x78] sm:$0xff] }
 0x3ec   : > { %1516 = vst.msk [vmem:[#allocation4 + $0x98] sm:$0xff] %vm1155_vm3, %v1499_v56 }
 0x3ee   : > { %v1595_v10 = vpop.permute.xlu1 %1594 }
 0x3ef   : > { %1612 = vst.msk [vmem:[#allocation4 + $0x98] sm:$0xff] %vm1252_vm4, %v1595_v10  ;;  %v1241_v0 = vpop.permute.xlu0 %1240 }
 0x3f0   : > { %1708 = vst.msk [vmem:[#allocation4 + $0x98] sm:$0xff] %vm1349_vm5, %v1691_v22 }
 0x3f1   : > { %1259 = vst.msk [vmem:[#allocation4 + $0x90] sm:$0xff] %vm1252_vm4, %v1241_v0 }
 0x3f2   : > { %v1597_v17 = vpop.permute.xlu1 %1596  ;;  %v1790_v3 = vld [vmem:[#allocation4 + $0x80] sm:$0xff] }
 0x3f3   : > { %1613 = vst.msk [vmem:[#allocation4 + $0xb0] sm:$0xff] %vm1252_vm4, %v1597_v17  ;;  %v1338_v1 = vpop.permute.xlu0 %1337  ;;  %1954 = vmatprep.mubr.f32.mxu0 %v1790_v3 }
 0x3f4   : > { %1356 = vst.msk [vmem:[#allocation4 + $0x90] sm:$0xff] %vm1349_vm5, %v1338_v1  ;;  %1955 = vmatmul.mubr.f32.gmra.mrb[26].mxu0 %v1789_v60 }
 0x3f6   : > { %v1693_v37 = vpop.permute.xlu1 %1692 }
 0x3f7   : > { %1709 = vst.msk [vmem:[#allocation4 + $0xb0] sm:$0xff] %vm1349_vm5, %v1693_v37  ;;  %v1146_v50 = vpop.permute.xlu0 %1145  ;;  %v1793_v9 = vld [vmem:[#allocation4 + $0x98] sm:$0xff] }
 0x3f8   : > { %1163 = vst.msk [vmem:[#allocation4 + $0xa8] sm:$0xff] %vm1155_vm3, %v1146_v50  ;;  %1959 = vmatprep.mubr.f32.mxu0 %v1793_v9  ;;  %v5852_v37 = vld [vmem:[#allocation12_spill] sm:$0xff] }
 0x3fa   : > { %v956_v22 = vpop.permute.xlu1 %955 }
 0x3fb   : > { %979 = vst.msk [vmem:[#allocation3 + $0x10] sm:$0xff] %vm433_vm0, %v956_v22  ;;  %v1243_v39 = vpop.permute.xlu0 %1242  ;;  %v1792_v14 = vld [vmem:[#allocation4 + $0x90] sm:$0xff] }
 0x3fc   : > { %1260 = vst.msk [vmem:[#allocation4 + $0xa8] sm:$0xff] %vm1252_vm4, %v1243_v39  ;;  %1960 = vmatmul.mubr.f32.gmra.mrb[28].mxu0 %v1792_v14 }
 0x3fe   : > { %v960_v13 = vpop.permute.xlu1 %959  ;;  %v1796_v26 = vld [vmem:[#allocation4 + $0xb0] sm:$0xff] }
 0x3ff   : > { %981 = vst.msk [vmem:[#allocation3 + $0x20] sm:$0xff] %vm433_vm0, %v960_v13  ;;  %v1340_v63 = vpop.permute.xlu0 %1339  ;;  %1964 = vmatprep.mubr.f32.mxu0 %v1796_v26  ;;  %v5853_v13 = vld [vmem:[#allocation8_spill] sm:$0xff] }
 0x400   : > { %1357 = vst.msk [vmem:[#allocation4 + $0xa8] sm:$0xff] %vm1349_vm5, %v1340_v63 }
 0x402   : > { %v964_v25 = vpop.permute.xlu1 %963  ;;  %v2540_v58 = vld [vmem:[#allocation3 + $0x9] sm:$0xff] }
 0x403   : > { %v4946_v2 = vld [vmem:[#allocation3 + $0x10] sm:$0xff]  ;;  %983 = vst.msk [vmem:[#allocation3 + $0x30] sm:$0xff] %vm433_vm0, %v964_v25  ;;  %v958_v18 = vpop.permute.xlu0 %957  ;;  %v2548_v41 = vmul.f32 %v2540_v58, %v4205_v31 }
 0x404   : > { %v2453_v56 = vmul.f32 %v4946_v2, %v4216_v34  ;;  %980 = vst.msk [vmem:[#allocation3 + $0x18] sm:$0xff] %vm433_vm0, %v958_v18  ;;  %v5851_v34 = vld [vmem:[#allocation45_spill] sm:$0xff]  ;;  %v4963_v9 = vld [vmem:[#allocation3 + $0xf] sm:$0xff] }
 0x405   : > { %2564 = vrot.lane.b32.xlu1 %v2548_v41, %s3840_s28  ;;  %v2637_v26 = vmul.f32 %v4963_v9, %v5853_v13 }
 0x406   : > { %2470 = vrot.lane.b32.xlu0 %v2453_v56, %s3839_s26  ;;  %v968_v10 = vpop.permute.xlu1 %967  ;;  %v4965_v22 = vld [vmem:[#allocation3 + $0x20] sm:$0xff] }
 0x407   : > { %985 = vst.msk [vmem:[#allocation3 + $0x40] sm:$0xff] %vm433_vm0, %v968_v10  ;;  %v962_v0 = vpop.permute.xlu0 %961  ;;  %v1795_v17 = vld [vmem:[#allocation4 + $0xa8] sm:$0xff]  ;;  %v2455_v63 = vmul.f32 %v4965_v22, %v4241_v5 }
 0x408   : > { %982 = vst.msk [vmem:[#allocation3 + $0x28] sm:$0xff] %vm433_vm0, %v962_v0  ;;  %1965 = vmatmul.mubr.f32.gmra.mrb[30].mxu0 %v1795_v17 }
 0x40b   : > { %v966_v3 = vpop.permute.xlu0 %965  ;;  %v2541_v1 = vld [vmem:[#allocation3 + $0x11] sm:$0xff]  ;;  %v4978_v58 = vld [vmem:[#allocation3 + $0x19] sm:$0xff] }
 0x40c   : > { %v4957_v31 = vld [vmem:[#allocation3 + $0x18] sm:$0xff]  ;;  %984 = vst.msk [vmem:[#allocation3 + $0x38] sm:$0xff] %vm433_vm0, %v966_v3  ;;  %v2549_v60 = vmul.f32 %v2541_v1, %v5851_v34  ;;  %v2550_v56 = vmul.f32 %v4978_v58, %v4228_v53 }
 0x40d   : > { %v2454_v50 = vmul.f32 %v4957_v31, %v5852_v37  ;;  %v4980_v18 = vld [vmem:[#allocation3 + $0x17] sm:$0xff] }
 0x40e   : > { %2566 = vrot.lane.b32.xlu0 %v2549_v60, %s3840_s28  ;;  %v2638_v10 = vmul.f32 %v4980_v18, %v4409_v20  ;;  %v5854_v60 = vld [vmem:[#allocation18_spill] sm:$0xff]  ;;  %v5006_v20 = vld [vmem:[#allocation3 + $0x1f] sm:$0xff] }
 0x40f   : > { %2472 = vrot.lane.b32.xlu1 %v2454_v50, %s3839_s26  ;;  %v970_v39 = vpop.permute.xlu0 %969  ;;  %v4992_v5 = vld [vmem:[#allocation3 + $0x21] sm:$0xff]  ;;  %v5051_v54 = vld [vmem:[#allocation3 + $0x2f] sm:$0xff] }
 0x410   : > { %986 = vst.msk [vmem:[#allocation3 + $0x48] sm:$0xff] %vm433_vm0, %v970_v39  ;;  %v4994_v17 = vld [vmem:[#allocation3 + $0x28] sm:$0xff]  ;;  %v2551_v34 = vmul.f32 %v4992_v5, %v5822_v55  ;;  %v5017_v55 = vld [vmem:[#allocation3 + $0x30] sm:$0xff] }
 0x411   : > { %v4970_v14 = vpop.f32.mrb[8].mxu1  ;;  %v2456_v53 = vmul.f32 %v4994_v17, %v5854_v60  ;;  %v5855_v39 = vld [vmem:[#allocation14_spill] sm:$0xff] }
 0x412   : > { %v4976_v25 = vpop.f32.mrb[9].mxu1  ;;  %2653 = vrot.lane.b32.xlu0 %v2637_v26, %s3838_s19  ;;  %v2639_v13 = vmul.f32 %v5006_v20, %v5855_v39  ;;  %v5856_v26 = vld [vmem:[#allocation5_spill] sm:$0xff] }
 0x413   : > { %2474 = vrot.lane.b32.xlu1 %v2455_v63, %s3839_s26  ;;  %v2751_v63 = vmul.f32 %v2541_v1, %v5856_v26  ;;  %v5857_v1 = vld [vmem:[#allocation39_spill] sm:$0xff] }
 0x414   : > { %v2752_v39 = vmul.f32 %v4978_v58, %v5857_v1  ;;  %v5035_v26 = vld [vmem:[#allocation3 + $0x31] sm:$0xff]  ;;  %v5860_v1 = vld [vmem:[#allocation26_spill] sm:$0xff] }
 0x415   : > { %v4984_v41 = vpop.f32.mrb[10].mxu1 }
 0x416   : > { %v4990_v0 = vpop.f32.mrb[11].mxu1  ;;  %2655 = vrot.lane.b32.xlu0 %v2638_v10, %s3838_s19  ;;  %v5019_v10 = vld [vmem:[#allocation3 + $0x27] sm:$0xff] }
 0x417   : > { %2568 = vrot.lane.b32.xlu1 %v2550_v56, %s3840_s28  ;;  %v2640_v60 = vmul.f32 %v5019_v10, %v5824_v52 }
 0x419   : > { %v4998_v3 = vpop.f32.mrb[12].mxu1 }
 0x41a   : > { %v5004_v37 = vpop.f32.mrb[13].mxu1  ;;  %2570 = vrot.lane.b32.xlu0 %v2551_v34, %s3840_s28  ;;  %v2457_v34 = vmul.f32 %v5017_v55, %v5831_v21  ;;  %v5858_v21 = vld [vmem:[#allocation54_spill] sm:$0xff] }
 0x41b   : > { %2476 = vrot.lane.b32.xlu1 %v2456_v53, %s3839_s26  ;;  %v5027_v53 = vld [vmem:[#allocation3 + $0x29] sm:$0xff]  ;;  %v2840_v52 = vmul.f32 %v4980_v18, %v5858_v21 }
 0x41d   : > { %v5010_v50 = vpop.f32.mrb[14].mxu1 }
 0x41e   : > { %v5015_v56 = vpop.f32.mrb[15].mxu1  ;;  %2657 = vrot.lane.b32.xlu0 %v2639_v13, %s3838_s19  ;;  %v2552_v13 = vmul.f32 %v5027_v53, %v5827_v61 }
 0x41f   : > { %2767 = vrot.lane.b32.xlu1 %v2751_v63, %s3839_s26  ;;  %v2553_v63 = vmul.f32 %v5035_v26, %v5833_v15  ;;  %v2641_v15 = vmul.f32 %v5051_v54, %v5829_v23  ;;  %v2754_v23 = vmul.f32 %v5027_v53, %v5828_v35  ;;  %v5865_v35 = vld [vmem:[#allocation55_spill] sm:$0xff] }
 0x422   : > { %2478 = vrot.lane.b32.xlu0 %v2457_v34, %s3839_s26  ;;  %v5043_v34 = vld [vmem:[#allocation3 + $0x38] sm:$0xff] }
 0x423   : > { %2659 = vrot.lane.b32.xlu1 %v2640_v60, %s3838_s19  ;;  %v5859_v60 = vld [vmem:[#allocation9_spill] sm:$0xff] }
 0x424   : > { %v2841_v61 = vmul.f32 %v5006_v20, %v5859_v60 }
 0x426   : > { %2769 = vrot.lane.b32.xlu0 %v2752_v39, %s3839_s26  ;;  %v2458_v39 = vmul.f32 %v5043_v34, %v5860_v1  ;;  %v5067_v1 = vld [vmem:[#allocation3 + $0x37] sm:$0xff] }
 0x427   : > { %2572 = vrot.lane.b32.xlu1 %v2552_v13, %s3840_s28  ;;  %v5861_v13 = vld [vmem:[#allocation11_spill] sm:$0xff] }
 0x428   : > { %v2753_v21 = vmul.f32 %v4992_v5, %v5861_v13  ;;  %v5863_v13 = vld [vmem:[#allocation27_spill] sm:$0xff] }
 0x42a   : > { %2856 = vrot.lane.b32.xlu0 %v2840_v52, %s3840_s28  ;;  %v5059_v52 = vld [vmem:[#allocation3 + $0x40] sm:$0xff] }
 0x42b   : > { %2574 = vrot.lane.b32.xlu1 %v2553_v63, %s3840_s28  ;;  %v5862_v63 = vld [vmem:[#allocation7_spill] sm:$0xff] }
 0x42c   : > { %v2929_v60 = vmul.f32 %v4957_v31, %v5862_v63 }
 0x42e   : > { %2858 = vrot.lane.b32.xlu0 %v2841_v61, %s3840_s28  ;;  %v2459_v61 = vmul.f32 %v5059_v52, %v5844_v40 }
 0x42f   : > { %2480 = vrot.lane.b32.xlu1 %v2458_v39, %s3839_s26  ;;  %v2642_v39 = vmul.f32 %v5067_v1, %v5835_v30  ;;  %v2842_v30 = vmul.f32 %v5019_v10, %v5865_v35  ;;  %v2844_v35 = vmul.f32 %v5067_v1, %v5830_v42 }
 0x432   : > { %2661 = vrot.lane.b32.xlu0 %v2641_v15, %s3838_s19  ;;  %v5075_v15 = vld [vmem:[#allocation3 + $0x39] sm:$0xff] }
 0x433   : > { %2771 = vrot.lane.b32.xlu1 %v2753_v21, %s3839_s26  ;;  %v2554_v40 = vmul.f32 %v5075_v15, %v5863_v13  ;;  %v5864_v21 = vld [vmem:[#allocation10_spill] sm:$0xff] }
 0x434   : > { %v2930_v63 = vmul.f32 %v4965_v22, %v5864_v21 }
 0x436   : > { %2945 = vrot.lane.b32.xlu0 %v2929_v60, %s3838_s19  ;;  %v5083_v60 = vld [vmem:[#allocation3 + $0x41] sm:$0xff] }
 0x437   : > { %2482 = vrot.lane.b32.xlu1 %v2459_v61, %s3839_s26  ;;  %v2555_v61 = vmul.f32 %v5083_v60, %v5845_v33  ;;  %v5866_v33 = vld [vmem:[#allocation13_spill] sm:$0xff] }
 0x438   : > { %v2931_v21 = vmul.f32 %v4994_v17, %v5866_v33 }
 0x43a   : > { %2663 = vrot.lane.b32.xlu0 %v2642_v39, %s3838_s19  ;;  %v2843_v39 = vmul.f32 %v5051_v54, %v5819_v36 }
 0x43b   : > { %2773 = vrot.lane.b32.xlu1 %v2754_v23, %s3839_s26  ;;  %v5091_v23 = vld [vmem:[#allocation3 + $0x3f] sm:$0xff] }
 0x43c   : > { %v2643_v13 = vmul.f32 %v5091_v23, %v5842_v4  ;;  %v2756_v4 = vmul.f32 %v5075_v15, %v5837_v24  ;;  %v2757_v24 = vmul.f32 %v5083_v60, %v5839_v45 }
 0x43e   : > { %2947 = vrot.lane.b32.xlu0 %v2930_v63, %s3838_s19  ;;  %v2636_v63 = vld [vmem:[#allocation3 + $0x47] sm:$0xff] }
 0x43f   : > { %2576 = vrot.lane.b32.xlu1 %v2554_v40, %s3840_s28  ;;  %v2755_v40 = vmul.f32 %v5035_v26, %v5825_v29  ;;  %v2644_v36 = vmul.f32 %v2636_v63, %v5846_v48  ;;  %v2932_v29 = vmul.f32 %v5017_v55, %v5823_v12  ;;  %v2845_v48 = vmul.f32 %v5091_v23, %v5836_v16 }
 0x440   : > { %v2933_v12 = vmul.f32 %v5043_v34, %v5826_v28  ;;  %v2934_v16 = vmul.f32 %v5059_v52, %v5838_v8  ;;  %v2846_v45 = vmul.f32 %v2636_v63, %v5840_v11 }
 0x442   : > { %2860 = vrot.lane.b32.xlu0 %v2842_v30, %s3840_s28  ;;  %v5122_v30 = vld [vmem:[#allocation3 + $0x49] sm:$0xff] }
 0x443   : > { %2578 = vrot.lane.b32.xlu1 %v2555_v61, %s3840_s28  ;;  %v2758_v42 = vmul.f32 %v5122_v30, %v5834_v27  ;;  %v2839_v61 = vld [vmem:[#allocation3 + $0x4f] sm:$0xff] }
 0x444   : > { %v2847_v28 = vmul.f32 %v2839_v61, %v5841_v19  ;;  %v2156_v61 = vld [vmem:[%s5681_s9 + $0x28] sm:$0xff] }
 0x446   : > { %2862 = vrot.lane.b32.xlu0 %v2843_v39, %s3840_s28  ;;  %v5135_v39 = vld [vmem:[#allocation3 + $0x48] sm:$0xff] }
 0x447   : > { %2665 = vrot.lane.b32.xlu1 %v2643_v13, %s3838_s19  ;;  %v2935_v27 = vmul.f32 %v5135_v39, %v5832_v32  ;;  %v2928_v13 = vld [vmem:[#allocation3 + $0x50] sm:$0xff] }
 0x448   : > { %v2936_v8 = vmul.f32 %v2928_v13, %v5843_v6 }
 0x44a   : > { %2775 = vrot.lane.b32.xlu0 %v2755_v40, %s3839_s26  ;;  %v5149_v40 = vld [vmem:[%s5682_s10] ss:$0 sm:$0xff] }
 0x44b   : > { %2949 = vrot.lane.b32.xlu1 %v2931_v21, %s3838_s19 }
 0x44e   : > { %2667 = vrot.lane.b32.xlu0 %v2644_v36, %s3838_s19 }
 0x44f   : > { %2777 = vrot.lane.b32.xlu1 %v2756_v4, %s3839_s26 }
 0x452   : > { %2951 = vrot.lane.b32.xlu0 %v2932_v29, %s3838_s19 }
 0x453   : > { %2864 = vrot.lane.b32.xlu1 %v2844_v35, %s3840_s28  ;;  %v2152_v35 = vld [vmem:[%s5681_s9 + $0x8] sm:$0xff] }
 0x456   : > { %2866 = vrot.lane.b32.xlu0 %v2845_v48, %s3840_s28  ;;  %v2155_v48 = vld [vmem:[%s5681_s9 + $0x20] sm:$0xff] }
 0x457   : > { %2779 = vrot.lane.b32.xlu1 %v2757_v24, %s3839_s26  ;;  %v2151_v24 = vld [vmem:[%s5681_s9] sm:$0xff] }
 0x45a   : > { %2953 = vrot.lane.b32.xlu0 %v2933_v12, %s3838_s19 }
 0x45b   : > { %2781 = vrot.lane.b32.xlu1 %v2758_v42, %s3839_s26  ;;  %v3675_v42 = vpack.c.bf16 %v2155_v48, %v2152_v35  ;;  %v2167_v35 = vld [vmem:[%s5681_s9 + $0x80] sm:$0xff] }
 0x45c   : > { %v2163_v48 = vld [vmem:[%s5681_s9 + $0x60] sm:$0xff] }
 0x45d   : > { %3676 = vmatprep.subr.bf16.mxu1 %v3675_v42  ;;  %v2165_v42 = vld [vmem:[%s5681_s9 + $0x70] sm:$0xff] }
 0x45e   : > { %2955 = vrot.lane.b32.xlu0 %v2934_v16, %s3838_s19  ;;  %v2154_v16 = vld [vmem:[%s5681_s9 + $0x18] sm:$0xff] }
 0x45f   : > { %2868 = vrot.lane.b32.xlu1 %v2846_v45, %s3840_s28  ;;  %v2153_v45 = vld [vmem:[%s5681_s9 + $0x10] sm:$0xff] }
 0x460   : > { %v3691_v13 = vpack.c.bf16 %v2156_v61, %v2153_v45 }
 0x462   : > { %2870 = vrot.lane.b32.xlu0 %v2847_v28, %s3840_s28  ;;  %3692 = vmatprep.subr.bf16.mxu0 %v3691_v13 }
 0x463   : > { %2957 = vrot.lane.b32.xlu1 %v2935_v27, %s3838_s19  ;;  %v3677_v27 = vpack.c.bf16 %v2154_v16, %v2151_v24  ;;  %3694 = vmatpush3.bf16.msra.mxu0 %v3691_v13  ;;  %v2168_v16 = vld [vmem:[%s5681_s9 + $0x88] sm:$0xff]  ;;  %v2171_v13 = vld [vmem:[%s5681_s9 + $0xa0] sm:$0xff] }
 0x464   : > { %v3699_v61 = vpack.c.bf16 %v2168_v16, %v2165_v42 }
 0x465   : > { %3678 = vmatpush1.bf16.msra.mxu1 %v3677_v27  ;;  %v2173_v27 = vld [vmem:[%s5681_s9 + $0xb0] sm:$0xff] }
 0x466   : > { %2959 = vrot.lane.b32.xlu0 %v2936_v8, %s3838_s19  ;;  %v2161_v8 = vld [vmem:[%s5681_s9 + $0x50] sm:$0xff] }
 0x486   : > { %v3392_v11 = vpop.f32.mrb[16].mxu0 }
 0x487   : > { %v3393_v33 = vpop.f32.mrb[17].mxu0 }
 0x488   : > { %v3394_v19 = vadd.f32 %v3393_v33, %v3392_v11  ;;  %v2157_v11 = vld [vmem:[%s5681_s9 + $0x30] sm:$0xff] }
 0x48a   : > { %v1932_v21 = vadd.f32 %v3394_v19, %v5149_v40  ;;  %v2160_v19 = vld [vmem:[%s5681_s9 + $0x48] sm:$0xff] }
 0x48c   : > { %v5153_v32 = vadd.f32 %v4976_v25, %v1932_v21  ;;  %v2159_v21 = vld [vmem:[%s5681_s9 + $0x40] sm:$0xff] }
 0x49b   : > { %v3395_v63 = vpop.f32.mrb[18].mxu0 }
 0x49c   : > { %v3396_v36 = vpop.f32.mrb[19].mxu0 }
 0x49d   : > { %v3397_v4 = vadd.f32 %v3396_v36, %v3395_v63  ;;  %v2162_v63 = vld [vmem:[%s5681_s9 + $0x58] sm:$0xff] }
 0x49f   : > { %v1937_v6 = vadd.f32 %v3397_v4, %v5149_v40  ;;  %v3681_v4 = vpack.c.bf16 %v2160_v19, %v2157_v11  ;;  %v2169_v11 = vld [vmem:[%s5681_s9 + $0x90] sm:$0xff] }
 0x4a0   : > { %v3398_v29 = vpop.f32.mrb[20].mxu0 }
 0x4a1   : > { %v5166_v25 = vadd.f32 %v4970_v14, %v1937_v6  ;;  %v3399_v12 = vpop.f32.mrb[21].mxu0  ;;  %v2158_v14 = vld [vmem:[%s5681_s9 + $0x38] sm:$0xff]  ;;  %v3695_v6 = vpack.c.bf16 %v2162_v63, %v2159_v21  ;;  %v2176_v63 = vld [vmem:[%s5681_s9 + $0xc8] sm:$0xff] }
 0x4a2   : > { %v3400_v28 = vadd.f32 %v3399_v12, %v3398_v29  ;;  %v3679_v33 = vpack.c.bf16 %v2161_v8, %v2158_v14  ;;  %v2164_v29 = vld [vmem:[%s5681_s9 + $0x68] sm:$0xff]  ;;  %v2166_v12 = vld [vmem:[%s5681_s9 + $0x78] sm:$0xff] }
 0x4a3   : > { %v3683_v24 = vpack.c.bf16 %v2167_v35, %v2164_v29  ;;  %3696 = vmatprep.subr.bf16.mxu0 %v3695_v6  ;;  %v2174_v14 = vld [vmem:[%s5681_s9 + $0xb8] sm:$0xff] }
 0x4a4   : > { %v1942_v36 = vadd.f32 %v3400_v28, %v5149_v40  ;;  %3680 = vmatprep.subr.bf16.mxu1 %v3679_v33  ;;  %v2170_v28 = vld [vmem:[%s5681_s9 + $0x98] sm:$0xff]  ;;  %3698 = vmatpush3.bf16.msra.mxu0 %v3695_v6  ;;  %v2172_v33 = vld [vmem:[%s5681_s9 + $0xa8] sm:$0xff]  ;;  %v3703_v19 = vpack.c.bf16 %v2174_v14, %v2171_v13 }
 0x4a5   : > { %3682 = vmatpush1.bf16.msra.mxu1 %v3681_v4  ;;  %v3687_v8 = vpack.c.bf16 %v2173_v27, %v2170_v28  ;;  %3700 = vmatprep.subr.bf16.mxu0 %v3699_v61  ;;  %v3689_v21 = vpack.c.bf16 %v2172_v33, %v2169_v11  ;;  %v2175_v4 = vld [vmem:[%s5681_s9 + $0xc0] sm:$0xff]  ;;  %v2076_v27 = vsel %vm2075_vm6, %v5153_v32, -inf }
 0x4a6   : > { %v5215_v45 = vadd.f32 %v4990_v0, %v1942_v36  ;;  %v3685_v0 = vpack.c.bf16 %v2166_v12, %v2163_v48  ;;  %3684 = vmatprep.subr.bf16.mxu1 %v3683_v24  ;;  %v2177_v36 = vld [vmem:[%s5681_s9 + $0xd0] sm:$0xff] }
 0x4a8   : > { %3702 = vmatpush3.bf16.msra.mxu0 %v3699_v61 }
 0x4a9   : > { %3686 = vmatpush1.bf16.msra.mxu1 %v3685_v0  ;;  %3704 = vmatprep.subr.bf16.mxu0 %v3703_v19 }
 0x4aa   : > { %3688 = vmatprep.subr.bf16.mxu1 %v3687_v8 }
 0x4ac   : > { %3706 = vmatpush3.bf16.msra.mxu0 %v3703_v19 }
 0x4ad   : > { %3690 = vmatpush1.bf16.msra.mxu1 %v3689_v21  ;;  %3565 = vmatprep.subr.mxu0 %v2177_v36  ;;  %v2077_v21 = vsel %vm2075_vm6, %v5166_v25, -inf }
 0x4ae   : > { %2218 = vmatprep.subr.mxu1 %v2176_v63 }
 0x4b0   : > { %3566 = vmatpush3.msra.mxu0 %v2177_v36 }
 0x4b1   : > { %2219 = vmatpush1.msra.mxu1 %v2175_v4 }
 0x4b5   : > { %v3401_v6 = vpop.f32.mrb[22].mxu0 }
 0x4b6   : > { %v3402_v29 = vpop.f32.mrb[23].mxu0 }
 0x4b7   : > { %v3403_v35 = vadd.f32 %v3402_v29, %v3401_v6 }
 0x4b9   : > { %v1947_v48 = vadd.f32 %v3403_v35, %v5149_v40  ;;  %v3404_v24 = vpop.f32.mrb[24].mxu0 }
 0x4ba   : > { %v3405_v12 = vpop.f32.mrb[25].mxu0 }
 0x4bb   : > { %v2052_v42 = vadd.f32 %v4984_v41, %v1947_v48  ;;  %v3406_v16 = vadd.f32 %v3405_v12, %v3404_v24  ;;  %v2078_v48 = vsel %vm2075_vm6, %v5215_v45, -inf }
 0x4bd   : > { %v1952_v61 = vadd.f32 %v3406_v16, %v5149_v40 }
 0x4bf   : > { %v2057_v28 = vadd.f32 %v5004_v37, %v1952_v61 }
 0x4c1   : > { %v2080_v13 = vsel %vm2075_vm6, %v2057_v28, -inf }
 0x4c2   : > { %v2081_v14 = vmax.f32 %v2076_v27, %v2080_v13 }
 0x4c7   : > { %v3407_v0 = vpop.f32.mrb[26].mxu0 }
 0x4c8   : > { %v3408_v8 = vpop.f32.mrb[27].mxu0 }
 0x4c9   : > { %v3409_v11 = vadd.f32 %v3408_v8, %v3407_v0  ;;  %v2079_v0 = vsel %vm2075_vm6, %v2052_v42, -inf }
 0x4cb   : > { %v1957_v33 = vadd.f32 %v3409_v11, %v5149_v40 }
 0x4cd   : > { %v2062_v19 = vadd.f32 %v4998_v3, %v1957_v33 }
 0x4cf   : > { %v3410_v41 = vpop.f32.mrb[28].mxu0  ;;  %v2082_v63 = vsel %vm2075_vm6, %v2062_v19, -inf }
 0x4d0   : > { %v2083_v37 = vmax.f32 %v2077_v21, %v2082_v63  ;;  %v3411_v36 = vpop.f32.mrb[29].mxu0 }
 0x4d1   : > { %v3412_v4 = vadd.f32 %v3411_v36, %v3410_v41 }
 0x4d2   : > { %v2088_v6 = vmax.f32 %v2081_v14, %v2083_v37 }
 0x4d3   : > { %v1962_v29 = vadd.f32 %v3412_v4, %v5149_v40 }
 0x4d5   : > { %v2067_v35 = vadd.f32 %v5015_v56, %v1962_v29 }
 0x4d7   : > { %v2084_v24 = vsel %vm2075_vm6, %v2067_v35, -inf }
 0x4d8   : > { %v2085_v3 = vmax.f32 %v2078_v48, %v2084_v24 }
 0x4db   : > { %v3413_v12 = vpop.f32.mrb[30].mxu0 }
 0x4dc   : > { %v3414_v16 = vpop.f32.mrb[31].mxu0 }
 0x4dd   : > { %v3415_v61 = vadd.f32 %v3414_v16, %v3413_v12 }
 0x4df   : > { %v1967_v27 = vadd.f32 %v3415_v61, %v5149_v40 }
 0x4e1   : > { %v2072_v13 = vadd.f32 %v5010_v50, %v1967_v27 }
 0x4e3   : > { %v2086_v14 = vsel %vm2075_vm6, %v2072_v13, -inf }
 0x4e4   : > { %v2087_v8 = vmax.f32 %v2079_v0, %v2086_v14 }
 0x4e6   : > { %v2089_v11 = vmax.f32 %v2085_v3, %v2087_v8 }
 0x4e8   : > { %v2090_v56 = vmax.f32 %v2088_v6, %v2089_v11 }
 0x4ea   : > { %v2091_v33 = vrot.slane %v2090_v56, 4 }
 0x4ec   : > { %v2092_v41 = vmax.f32 %v2090_v56, %v2091_v33 }
 0x4ee   : > { %v2093_v21 = vrot.slane %v2092_v41, 2 }
 0x4f0   : > { %v2094_v63 = vmax.f32 %v2092_v41, %v2093_v21 }
 0x4f2   : > { %v2095_v37 = vrot.slane %v2094_v63, 1 }
 0x4f4   : > { %v2096_v36 = vmax.f32 %v2094_v63, %v2095_v37 }
 0x4f6   : > { %v2097_v4 = vsub.f32 %v5153_v32, %v2096_v36  ;;  %v2098_v29 = vsub.f32 %v5166_v25, %v2096_v36  ;;  %v2099_v40 = vsub.f32 %v5215_v45, %v2096_v36  ;;  %v2100_v50 = vsub.f32 %v2052_v42, %v2096_v36 }
 0x4f7   : > { %v2101_v48 = vsub.f32 %v2057_v28, %v2096_v36  ;;  %v2102_v24 = vsub.f32 %v2062_v19, %v2096_v36  ;;  %v2103_v12 = vsub.f32 %v2067_v35, %v2096_v36  ;;  %v2104_v16 = vsub.f32 %v2072_v13, %v2096_v36 }
 0x4f8   : > { %v2105_v61 = vmul.f32 1.442695, %v2097_v4  ;;  %v2107_v3 = vmul.f32 1.442695, %v2098_v29  ;;  %v2109_v6 = vmul.f32 1.442695, %v2099_v40 }
 0x4f9   : > { %v2111_v27 = vmul.f32 1.442695, %v2100_v50  ;;  %v2113_v0 = vmul.f32 1.442695, %v2101_v48  ;;  %v2115_v14 = vmul.f32 1.442695, %v2102_v24 }
 0x4fa   : > { %3802 = vpow2.f32 %v2105_v61  ;;  %v2117_v32 = vmul.f32 1.442695, %v2103_v12  ;;  %v2119_v25 = vmul.f32 1.442695, %v2104_v16 }
 0x4fb   : > { %3804 = vpow2.f32 %v2107_v3 }
 0x4fc   : > { %3806 = vpow2.f32 %v2109_v6 }
 0x4fd   : > { %3808 = vpow2.f32 %v2111_v27 }
 0x4fe   : > { %3810 = vpow2.f32 %v2113_v0 }
 0x4ff   : > { %3812 = vpow2.f32 %v2115_v14 }
 0x500   : > { %3814 = vpow2.f32 %v2117_v32 }
 0x501   : > { %3816 = vpow2.f32 %v2119_v25 }
 0x504   : > { %v3803_v45 = vpop.eup %3802 }
 0x505   : > { %v3805_v42 = vpop.eup %3804  ;;  %v2121_v28 = vsel %vm2075_vm6, %v3803_v45, 0.0 }
 0x506   : > { %v3807_v19 = vpop.eup %3806  ;;  %v2122_v35 = vsel %vm2075_vm6, %v3805_v42, 0.0 }
 0x507   : > { %v3809_v13 = vpop.eup %3808  ;;  %v2123_v8 = vadd.f32 %v2122_v35, %v2121_v28  ;;  %v2124_v11 = vsel %vm2075_vm6, %v3807_v19, 0.0 }
 0x508   : > { %v3811_v56 = vpop.eup %3810  ;;  %v2126_v41 = vsel %vm2075_vm6, %v3809_v13, 0.0 }
 0x509   : > { %v2125_v33 = vadd.f32 %v2124_v11, %v2123_v8  ;;  %v3813_v21 = vpop.eup %3812  ;;  %v2128_v37 = vsel %vm2075_vm6, %v3811_v56, 0.0 }
 0x50a   : > { %v3815_v36 = vpop.eup %3814  ;;  %v2130_v29 = vsel %vm2075_vm6, %v3813_v21, 0.0 }
 0x50b   : > { %v2127_v63 = vadd.f32 %v2126_v41, %v2125_v33  ;;  %v3817_v40 = vpop.eup %3816  ;;  %v2132_v48 = vsel %vm2075_vm6, %v3815_v36, 0.0 }
 0x50c   : > { %v2134_v12 = vsel %vm2075_vm6, %v3817_v40, 0.0 }
 0x50d   : > { %v2129_v4 = vadd.f32 %v2128_v37, %v2127_v63 }
 0x50f   : > { %v2131_v50 = vadd.f32 %v2130_v29, %v2129_v4 }
 0x511   : > { %v2133_v24 = vadd.f32 %v2132_v48, %v2131_v50 }
 0x513   : > { %v2135_v16 = vadd.f32 %v2134_v12, %v2133_v24 }
 0x515   : > { %v2136_v61 = vrot.slane %v2135_v16, 4 }
 0x517   : > { %v2137_v3 = vadd.f32 %v2136_v61, %v2135_v16 }
 0x519   : > { %v2138_v6 = vrot.slane %v2137_v3, 2 }
 0x51b   : > { %v2139_v27 = vadd.f32 %v2138_v6, %v2137_v3 }
 0x51d   : > { %v2140_v0 = vrot.slane %v2139_v27, 1 }
 0x51f   : > { %v2141_v14 = vadd.f32 %v2140_v0, %v2139_v27 }
 0x521   : > { %3818 = vrcp.f32 %v2141_v14 }
 0x52b   : > { %v3819_v32 = vpop.eup %3818 }
 0x52c   : > { %v2143_v25 = vmul.f32 %v3819_v32, %v3803_v45  ;;  %v2144_v28 = vmul.f32 %v3819_v32, %v3805_v42  ;;  %v2145_v35 = vmul.f32 %v3819_v32, %v3807_v19  ;;  %v2146_v8 = vmul.f32 %v3819_v32, %v3809_v13  ;;  %v2469_v45 = vpop.permute.xlu1 %2468 }
 0x52d   : > { %v2147_v11 = vmul.f32 %v3819_v32, %v3811_v56  ;;  %v2148_v33 = vmul.f32 %v3819_v32, %v3813_v21  ;;  %v2149_v41 = vmul.f32 %v3819_v32, %v3815_v36  ;;  %v2150_v63 = vmul.f32 %v3819_v32, %v3817_v40  ;;  %v5303_v56 = vpop.permute.xlu0 %2470 }
 0x52e   : > { %3289 = vmatmul.mubr.msk.f32.vlgmr.msra.gmra.mrb[16].mxu1 %vm2075_vm6, %v2143_v25  ;;  %3567 = vmatprep.mubr.msk.f32.mxu0 %vm2075_vm6, %v2143_v25 }
 0x52f   : > { %3568 = vmatmul.mubr.msk.f32.vlgmr.msra.gmra.mrb[32].mxu0 %vm2075_vm6, %v2144_v28  ;;  %2272 = vmatprep.mubr.f32.mxu1 %v5818_v57 }
 0x530   : > { %3570 = vmatprep.mubr.msk.f32.mxu0 %vm2075_vm6, %v2145_v35  ;;  %v2565_v42 = vpop.permute.xlu1 %2564 }
 0x531   : > { %v5307_v37 = vpop.permute.xlu0 %2566 }
 0x532   : > { %3290 = vmatmul.mubr.msk.f32.gmra.mrb[18].mxu1 %vm2075_vm6, %v2144_v28  ;;  %v5874_v28 = vld [vmem:[#allocation65_spill] sm:$0xff] }
 0x533   : > { %3571 = vmatmul.mubr.msk.f32.gmra.mrb[34].mxu0 %vm2075_vm6, %v2146_v8  ;;  %2278 = vmatprep.mubr.f32.mxu1 %v5818_v57 }
 0x534   : > { %3573 = vmatprep.mubr.msk.f32.mxu0 %vm2075_vm6, %v2147_v11  ;;  %v5299_v19 = vpop.permute.xlu1 %2472 }
 0x535   : > { %v2654_v4 = vpop.permute.xlu0 %2653 }
 0x536   : > { %3291 = vmatmul.mubr.msk.f32.gmra.mrb[20].mxu1 %vm2075_vm6, %v2145_v35  ;;  %v3019_v35 = vmul.f32 %v4992_v5, %v5874_v28  ;;  %v5878_v28 = vld [vmem:[#allocation40_spill] sm:$0xff] }
 0x537   : > { %3574 = vmatmul.mubr.msk.f32.gmra.mrb[36].mxu0 %vm2075_vm6, %v2148_v33  ;;  %2284 = vmatprep.mubr.f32.mxu1 %v5818_v57 }
 0x538   : > { %3576 = vmatprep.mubr.msk.f32.mxu0 %vm2075_vm6, %v2149_v41  ;;  %v5301_v13 = vpop.permute.xlu1 %2474 }
 0x539   : > { %v5311_v40 = vpop.permute.xlu0 %2655 }
 0x53a   : > { %3292 = vmatmul.mubr.msk.f32.gmra.mrb[22].mxu1 %vm2075_vm6, %v2146_v8 }
 0x53b   : > { %3577 = vmatmul.mubr.msk.f32.gmra.mrb[38].mxu0 %vm2075_vm6, %v2150_v63  ;;  %2290 = vmatprep.mubr.f32.mxu1 %v5818_v57 }
 0x53c   : > { %v5305_v21 = vpop.permute.xlu1 %2568 }
 0x53d   : > { %v5315_v50 = vpop.permute.xlu0 %2570 }
 0x53e   : > { %3293 = vmatmul.mubr.msk.f32.gmra.mrb[24].mxu1 %vm2075_vm6, %v2147_v11 }
 0x53f   : > { %2296 = vmatprep.mubr.f32.mxu1 %v5818_v57 }
 0x540   : > { %v5309_v36 = vpop.permute.xlu1 %2476 }
 0x541   : > { %v5319_v24 = vpop.permute.xlu0 %2657 }
 0x542   : > { %3294 = vmatmul.mubr.msk.f32.gmra.mrb[26].mxu1 %vm2075_vm6, %v2148_v33  ;;  %5869 = vst [vmem:[#allocation15_spill] sm:$0xff] %v5319_v24 }
 0x543   : > { %2302 = vmatprep.mubr.f32.mxu1 %v5818_v57 }
 0x544   : > { %v2768_v29 = vpop.permute.xlu1 %2767 }
 0x545   : > { %v5323_v16 = vpop.permute.xlu0 %2478 }
 0x546   : > { %3295 = vmatmul.mubr.msk.f32.gmra.mrb[28].mxu1 %vm2075_vm6, %v2149_v41  ;;  %5871 = vst [vmem:[#allocation53_spill] sm:$0xff] %v5323_v16 }
 0x547   : > { %2308 = vmatprep.mubr.f32.mxu1 %v5818_v57 }
 0x548   : > { %v5313_v57 = vpop.permute.xlu1 %2659 }
 0x549   : > { %5867 = vst [vmem:[#allocation36_spill] sm:$0xff] %v5313_v57  ;;  %v5327_v3 = vpop.permute.xlu0 %2769 }
 0x54a   : > { %3296 = vmatmul.mubr.msk.f32.gmra.mrb[30].mxu1 %vm2075_vm6, %v2150_v63  ;;  %v5875_v63 = vld [vmem:[#allocation37_spill] sm:$0xff] }
 0x54b   : > { %v3018_v16 = vmul.f32 %v4978_v58, %v5875_v63 }
 0x54c   : > { %v5317_v48 = vpop.permute.xlu1 %2572 }
 0x54d   : > { %5868 = vst [vmem:[#allocation64_spill] sm:$0xff] %v5317_v48  ;;  %v2857_v27 = vpop.permute.xlu0 %2856 }
 0x550   : > { %v5321_v12 = vpop.permute.xlu1 %2574 }
 0x551   : > { %5870 = vst [vmem:[#allocation68_spill] sm:$0xff] %v5321_v12  ;;  %v5333_v14 = vpop.permute.xlu0 %2858  ;;  %v5876_v12 = vld [vmem:[#allocation33_spill] sm:$0xff] }
 0x554   : > { %v5325_v61 = vpop.permute.xlu1 %2480 }
 0x555   : > { %v5347_v48 = vpop.permute.xlu0 %2661 }
 0x558   : > { %v5329_v6 = vpop.permute.xlu1 %2771 }
 0x55c   : > { %v5331_v0 = vpop.permute.xlu1 %2482 }
 0x55d   : > { %5872 = vst [vmem:[#allocation49_spill] sm:$0xff] %v5331_v0  ;;  %v2726_v0 = vmul.f32 %v4946_v2, %v5876_v12  ;;  %v3021_v2 = vmul.f32 %v5035_v26, %v5878_v28  ;;  %v5879_v12 = vld [vmem:[#allocation63_spill] sm:$0xff] }
 0x560   : > { %v5335_v32 = vpop.permute.xlu1 %2773 }
 0x561   : > { %5873 = vst [vmem:[#allocation16_spill] sm:$0xff] %v5335_v32 }
 0x601   : > { %v5337_v25 = vpop.f32.mrb[16].mxu1 }
 0x602   : > { %v2492_v8 = vmul.f32 %v2469_v45, %v5337_v25  ;;  %v2677_v11 = vmul.f32 %v2654_v4, %v5337_v25  ;;  %v2270_v33 = vpop.f32.mrb[17].mxu1  ;;  %v3569_v41 = vpop.f32.mrb[32].mxu0  ;;  %v5877_v45 = vld [vmem:[#allocation35_spill] sm:$0xff] }
 0x603   : > { %v5349_v32 = vmul.f32 %v3569_v41, %v3019_v35  ;;  %v2381_v24 = vpop.f32.mrb[33].mxu0  ;;  %v5355_v5 = vmul.f32 %v2726_v0, %v2270_v33  ;;  %v2429_v4 = vmul.f32 %v4963_v9, %v5877_v45  ;;  %v2727_v35 = vmul.f32 %v4957_v31, %v5879_v12  ;;  %v5373_v9 = vpop.permute.xlu1 %2576  ;;  %v5883_v31 = vld [vmem:[#allocation67_spill] sm:$0xff]  ;;  %v5884_v12 = vld [vmem:[#allocation44_spill] sm:$0xff] }
 0x604   : > { %v5351_v57 = vmul.f32 %v3018_v16, %v2381_v24  ;;  %2693 = vrot.lane.b32.xlu0 %v2677_v11, %s3839_s26  ;;  %2508 = vrot.lane.b32.xlu1 %v2492_v8, %s3838_s19  ;;  %v2588_v24 = vmul.f32 %v2565_v42, %v5337_v25  ;;  %v2880_v16 = vmul.f32 %v2857_v27, %v2270_v33  ;;  %v5880_v8 = vld [vmem:[#allocation66_spill] sm:$0xff] }
 0x605   : > { %v5359_v58 = vpop.f32.mrb[18].mxu1  ;;  %v3020_v0 = vmul.f32 %v5027_v53, %v5880_v8  ;;  %v2430_v42 = vmul.f32 %v4980_v18, %v5883_v31  ;;  %v2946_v53 = vpop.permute.xlu0 %2945  ;;  %v2791_v8 = vmul.f32 %v2768_v29, %v2270_v33  ;;  %v2729_v29 = vmul.f32 %v4994_v17, %v4287_v46 }
 0x606   : > { %v5366_v41 = vpop.f32.mrb[19].mxu1  ;;  %v3572_v11 = vpop.f32.mrb[34].mxu0  ;;  %v5371_v63 = vmul.f32 %v2429_v4, %v5359_v58 }
 0x607   : > { %v5375_v45 = vmul.f32 %v3572_v11, %v3021_v2  ;;  %v2391_v26 = vpop.f32.mrb[35].mxu0  ;;  %v5384_v27 = vmul.f32 %v2727_v35, %v5366_v41  ;;  %v3023_v2 = vmul.f32 %v5083_v60, %v5884_v12  ;;  %v2728_v11 = vmul.f32 %v4965_v22, %v4285_v44  ;;  %v5410_v60 = vpop.permute.xlu1 %2578 }
 0x608   : > { %v5377_v28 = vmul.f32 %v3020_v0, %v2391_v26  ;;  %2604 = vrot.lane.b32.xlu1 %v2588_v24, %s3840_s28  ;;  %2896 = vrot.lane.b32.xlu0 %v2880_v16, %s3840_s28  ;;  %v2969_v0 = vmul.f32 %v2946_v53, %v2270_v33  ;;  %v5885_v26 = vld [vmem:[#allocation42_spill] sm:$0xff]  ;;  %v2431_v44 = vmul.f32 %v5006_v20, %v4443_v59  ;;  %v5886_v33 = vld [vmem:[#allocation48_spill] sm:$0xff] }
 0x609   : > { %5881 = vst [vmem:[#allocation59_spill] sm:$0xff] %v5375_v45  ;;  %v5386_v4 = vpop.f32.mrb[20].mxu1  ;;  %v3022_v18 = vmul.f32 %v5075_v15, %v5885_v26 }
 0x60a   : > { %5882 = vst [vmem:[#allocation17_spill] sm:$0xff] %v5377_v28  ;;  %v5392_v24 = vpop.f32.mrb[21].mxu1  ;;  %v3575_v16 = vpop.f32.mrb[36].mxu0  ;;  %v5397_v35 = vmul.f32 %v2430_v42, %v5386_v4  ;;  %v2493_v42 = vmul.f32 %v5303_v56, %v5359_v58  ;;  %v2494_v53 = vmul.f32 %v5299_v19, %v5386_v4  ;;  %v2432_v19 = vmul.f32 %v5019_v10, %v4289_v47 }
 0x60b   : > { %v5399_v31 = vmul.f32 %v3575_v16, %v3023_v2  ;;  %v2401_v45 = vpop.f32.mrb[37].mxu0  ;;  %v5408_v22 = vmul.f32 %v2728_v11, %v5392_v24  ;;  %v5442_v56 = vpop.permute.xlu0 %2663  ;;  %v2730_v11 = vmul.f32 %v5017_v55, %v4421_v38  ;;  %v3042_v38 = vld [vmem:[%s5675_s3] sm:$0xff]  ;;  %v3043_v55 = vld [vmem:[%s5675_s3 + $0x8] sm:$0xff] }
 0x60c   : > { %v5401_v28 = vmul.f32 %v3022_v18, %v2401_v45  ;;  %2985 = vrot.lane.b32.xlu0 %v2969_v0, %s3839_s26  ;;  %2807 = vrot.lane.b32.xlu1 %v2791_v8, %s3838_s19  ;;  %v3024_v45 = vmul.f32 %v5122_v30, %v5886_v33  ;;  %v2589_v8 = vmul.f32 %v5307_v37, %v5359_v58  ;;  %v5461_v10 = vpop.permute.xlu1 %2665 }
 0x60d   : > { %v5412_v15 = vpop.f32.mrb[22].mxu1  ;;  %v2590_v0 = vmul.f32 %v5305_v21, %v5386_v4  ;;  %v3707_v37 = vpack.c.bf16 %v3043_v55, %v3042_v38  ;;  %v2793_v33 = vmul.f32 %v5329_v6, %v5392_v24  ;;  %v2434_v6 = vmul.f32 %v5067_v1, %v4297_v51 }
 0x60e   : > { %v5424_v59 = vmul.f32 %v5315_v50, %v5412_v15  ;;  %v5426_v20 = vpop.f32.mrb[23].mxu1  ;;  %v5428_v12 = vpop.f32.mrb[38].mxu0  ;;  %v5431_v2 = vmul.f32 %v2431_v44, %v5412_v15  ;;  %v2731_v44 = vmul.f32 %v5043_v34, %v5816_v62  ;;  %v3044_v34 = vld [vmem:[%s5675_s3 + $0x10] sm:$0xff]  ;;  %v2881_v55 = vmul.f32 %v5333_v14, %v5366_v41 }
 0x60f   : > { %v5434_v46 = vmul.f32 %v2729_v29, %v5426_v20  ;;  %v2411_v17 = vpop.f32.mrb[39].mxu0  ;;  %v2678_v29 = vmul.f32 %v5311_v40, %v5359_v58  ;;  %3708 = vmatprep.subr.bf16.mxu1 %v3707_v37  ;;  %v3045_v40 = vld [vmem:[%s5675_s3 + $0x18] sm:$0xff]  ;;  %v2732_v58 = vmul.f32 %v5059_v52, %v5817_v7  ;;  %v2435_v7 = vmul.f32 %v5091_v23, %v5820_v43 }
 0x610   : > { %v5436_v30 = vmul.f32 %v3024_v45, %v2411_v17  ;;  %2510 = vrot.lane.b32.xlu0 %v2493_v42, %s3838_s19  ;;  %2512 = vrot.lane.b32.xlu1 %v2494_v53, %s3838_s19  ;;  %v2948_v53 = vpop.permute.xlu0 %2947  ;;  %v2792_v17 = vmul.f32 %v5327_v3, %v5366_v41 }
 0x611   : > { %v5444_v50 = vpop.f32.mrb[24].mxu1  ;;  %3710 = vmatpush3.bf16.msra.mxu1 %v3707_v37  ;;  %v2495_v37 = vmul.f32 %v5301_v13, %v5412_v15  ;;  %v5888_v13 = vld [vmem:[#allocation36_spill] sm:$0xff] }
 0x612   : > { %v5454_v16 = vmul.f32 %v5309_v36, %v5444_v50  ;;  %v5456_v26 = vpop.f32.mrb[25].mxu1  ;;  %v5459_v47 = vmul.f32 %v2432_v19, %v5444_v50  ;;  %v2433_v36 = vmul.f32 %v5051_v54, %v4293_v49  ;;  %v2950_v54 = vpop.permute.xlu1 %2949  ;;  %v2680_v14 = vmul.f32 %v5888_v13, %v5412_v15  ;;  %v5891_v15 = vld [vmem:[#allocation64_spill] sm:$0xff] }
 0x613   : > { %v5470_v21 = vmul.f32 %v2730_v11, %v5456_v26  ;;  %v2971_v19 = vmul.f32 %v2950_v54, %v5392_v24  ;;  %v5890_v54 = vld [vmem:[#allocation16_spill] sm:$0xff] }
 0x614   : > { %2606 = vrot.lane.b32.xlu0 %v2589_v8, %s3840_s28  ;;  %2608 = vrot.lane.b32.xlu1 %v2590_v0, %s3840_s28  ;;  %v3711_v0 = vpack.c.bf16 %v3045_v40, %v3044_v34  ;;  %v2861_v52 = vpop.permute.xlu0 %2860  ;;  %v2794_v34 = vmul.f32 %v5890_v54, %v5426_v20 }
 0x615   : > { %v5476_v18 = vpop.f32.mrb[26].mxu1 }
 0x616   : > { %v5484_v45 = vpop.f32.mrb[27].mxu1  ;;  %v5487_v42 = vmul.f32 %v2433_v36, %v5476_v18  ;;  %3712 = vmatprep.subr.bf16.mxu1 %v3711_v0 }
 0x617   : > { %v5490_v49 = vmul.f32 %v2731_v44, %v5484_v45  ;;  %3714 = vmatpush3.bf16.msra.mxu1 %v3711_v0  ;;  %v5892_v0 = vld [vmem:[#allocation68_spill] sm:$0xff] }
 0x618   : > { %2695 = vrot.lane.b32.xlu0 %v2678_v29, %s3839_s26  ;;  %2811 = vrot.lane.b32.xlu1 %v2793_v33, %s3838_s19  ;;  %v5889_v29 = vld [vmem:[#allocation15_spill] sm:$0xff] }
 0x619   : > { %v5494_v62 = vpop.f32.mrb[28].mxu1  ;;  %v2679_v33 = vmul.f32 %v5889_v29, %v5386_v4 }
 0x61a   : > { %v2498_v11 = vmul.f32 %v5325_v61, %v5494_v62  ;;  %v5511_v8 = vpop.f32.mrb[29].mxu1  ;;  %v5514_v38 = vmul.f32 %v2434_v6, %v5494_v62  ;;  %v5887_v61 = vld [vmem:[#allocation38_spill] sm:$0xff]  ;;  %v2592_v6 = vmul.f32 %v5891_v15, %v5444_v50 }
 0x61b   : > { %v5519_v51 = vmul.f32 %v2732_v58, %v5511_v8  ;;  %v2733_v3 = vmul.f32 %v5135_v39, %v5887_v61  ;;  %v2970_v39 = vmul.f32 %v2948_v53, %v5366_v41  ;;  %v2882_v41 = vmul.f32 %v2861_v52, %v5392_v24  ;;  %v2778_v53 = vpop.permute.xlu1 %2777  ;;  %v5895_v15 = vld [vmem:[#allocation34_spill] sm:$0xff] }
 0x61c   : > { %2809 = vrot.lane.b32.xlu0 %v2792_v17, %s3838_s19  ;;  %2989 = vrot.lane.b32.xlu1 %v2971_v19, %s3839_s26  ;;  %v2796_v52 = vmul.f32 %v2778_v53, %v5484_v45 }
 0x61d   : > { %v5523_v1 = vpop.f32.mrb[30].mxu1 }
 0x61e   : > { %v5533_v36 = vmul.f32 %v5410_v60, %v5523_v1  ;;  %v5535_v44 = vpop.f32.mrb[31].mxu1  ;;  %v5538_v43 = vmul.f32 %v2435_v7, %v5523_v1  ;;  %v2863_v60 = vpop.permute.xlu0 %2862  ;;  %v2593_v7 = vmul.f32 %v5892_v0, %v5476_v18 }
 0x61f   : > { %v5541_v23 = vmul.f32 %v2733_v3, %v5535_v44  ;;  %v2865_v58 = vpop.permute.xlu1 %2864  ;;  %v2883_v17 = vmul.f32 %v2863_v60, %v5426_v20 }
 0x620   : > { %2898 = vrot.lane.b32.xlu0 %v2881_v55, %s3840_s28  ;;  %2514 = vrot.lane.b32.xlu1 %v2495_v37, %s3838_s19  ;;  %v2884_v24 = vmul.f32 %v2865_v58, %v5456_v26  ;;  %v2594_v37 = vmul.f32 %v5373_v9, %v5494_v62 }
 0x622   : > { %v2776_v40 = vpop.permute.xlu0 %2775 }
 0x623   : > { %v2795_v3 = vmul.f32 %v2776_v40, %v5456_v26 }
 0x624   : > { %2987 = vrot.lane.b32.xlu0 %v2970_v39, %s3839_s26  ;;  %2699 = vrot.lane.b32.xlu1 %v2680_v14, %s3839_s26  ;;  %v2683_v39 = vmul.f32 %v5461_v10, %v5494_v62  ;;  %v5894_v14 = vld [vmem:[#allocation49_spill] sm:$0xff] }
 0x625   : > { %v2499_v60 = vmul.f32 %v5894_v14, %v5523_v1 }
 0x626   : > { %v2668_v4 = vpop.permute.xlu0 %2667 }
 0x628   : > { %2697 = vrot.lane.b32.xlu0 %v2679_v33, %s3839_s26  ;;  %2813 = vrot.lane.b32.xlu1 %v2794_v34, %s3838_s19  ;;  %v2684_v33 = vmul.f32 %v2668_v4, %v5523_v1  ;;  %v2420_v1 = vld [vmem:[#allocation3 + $0x7] sm:$0xff] }
 0x62a   : > { %v2952_v19 = vpop.permute.xlu0 %2951 }
 0x62c   : > { %2900 = vrot.lane.b32.xlu0 %v2882_v41, %s3840_s28  ;;  %2516 = vrot.lane.b32.xlu1 %v5454_v16, %s3838_s19  ;;  %v2972_v16 = vmul.f32 %v2952_v19, %v5426_v20 }
 0x62e   : > { %v2867_v61 = vpop.permute.xlu0 %2866 }
 0x62f   : > { %v2885_v13 = vmul.f32 %v2867_v61, %v5484_v45 }
 0x630   : > { %2610 = vrot.lane.b32.xlu0 %v5424_v59, %s3840_s28  ;;  %2612 = vrot.lane.b32.xlu1 %v2592_v6, %s3840_s28  ;;  %v2681_v59 = vmul.f32 %v5347_v48, %v5444_v50  ;;  %v5893_v48 = vld [vmem:[#allocation53_spill] sm:$0xff]  ;;  %v2428_v6 = vmul.f32 %v2420_v1, %v5895_v15 }
 0x631   : > { %v2497_v50 = vmul.f32 %v5893_v48, %v5476_v18 }
 0x632   : > { %v2954_v20 = vpop.permute.xlu0 %2953 }
 0x633   : > { %v2973_v55 = vmul.f32 %v2954_v20, %v5456_v26  ;;  %v2682_v26 = vmul.f32 %v5442_v56, %v5476_v18 }
 0x634   : > { %2902 = vrot.lane.b32.xlu0 %v2883_v17, %s3840_s28  ;;  %2904 = vrot.lane.b32.xlu1 %v2884_v24, %s3840_s28  ;;  %v2436_v17 = vmul.f32 %v2428_v6, %v5337_v25 }
 0x636   : > { %v2956_v62 = vpop.permute.xlu0 %2955 }
 0x637   : > { %v2974_v29 = vmul.f32 %v2956_v62, %v5484_v45 }
 0x638   : > { %2991 = vrot.lane.b32.xlu0 %v2972_v16, %s3839_s26  ;;  %2614 = vrot.lane.b32.xlu1 %v2593_v7, %s3840_s28 }
 0x63a   : > { %v2871_v54 = vpop.permute.xlu0 %2870 }
 0x63b   : > { %v2887_v40 = vmul.f32 %v2871_v54, %v5535_v44 }
 0x63c   : > { %2701 = vrot.lane.b32.xlu0 %v2681_v59, %s3839_s26  ;;  %2817 = vrot.lane.b32.xlu1 %v2796_v52, %s3838_s19 }
 0x640   : > { %2815 = vrot.lane.b32.xlu0 %v2795_v3, %s3838_s19  ;;  %2520 = vrot.lane.b32.xlu1 %v2498_v11, %s3838_s19  ;;  %v2780_v11 = vpop.permute.xlu1 %2779 }
 0x641   : > { %v2797_v9 = vmul.f32 %v2780_v11, %v5511_v8 }
 0x644   : > { %2993 = vrot.lane.b32.xlu0 %v2973_v55, %s3839_s26  ;;  %2616 = vrot.lane.b32.xlu1 %v2594_v37, %s3840_s28  ;;  %v2782_v10 = vpop.permute.xlu1 %2781 }
 0x645   : > { %v2798_v34 = vmul.f32 %v2782_v10, %v5535_v44 }
 0x648   : > { %2518 = vrot.lane.b32.xlu0 %v2497_v50, %s3838_s19  ;;  %2705 = vrot.lane.b32.xlu1 %v2683_v39, %s3839_s26  ;;  %v2869_v56 = vpop.permute.xlu1 %2868 }
 0x649   : > { %v2886_v18 = vmul.f32 %v2869_v56, %v5511_v8 }
 0x64c   : > { %2703 = vrot.lane.b32.xlu0 %v2682_v26, %s3839_s26  ;;  %2819 = vrot.lane.b32.xlu1 %v2797_v9, %s3838_s19  ;;  %v2958_v45 = vpop.permute.xlu1 %2957 }
 0x64d   : > { %v2975_v41 = vmul.f32 %v2958_v45, %v5511_v8 }
 0x650   : > { %2906 = vrot.lane.b32.xlu0 %v2885_v13, %s3840_s28  ;;  %2522 = vrot.lane.b32.xlu1 %v2499_v60, %s3838_s19 }
 0x654   : > { %2995 = vrot.lane.b32.xlu0 %v2974_v29, %s3839_s26  ;;  %2618 = vrot.lane.b32.xlu1 %v5533_v36, %s3840_s28  ;;  %v2960_v36 = vpop.permute.xlu0 %2959 }
 0x655   : > { %v2976_v53 = vmul.f32 %v2960_v36, %v5535_v44 }
 0x658   : > { %2707 = vrot.lane.b32.xlu0 %v2684_v33, %s3839_s26  ;;  %2908 = vrot.lane.b32.xlu1 %v2886_v18, %s3840_s28 }
 0x65c   : > { %2910 = vrot.lane.b32.xlu0 %v2887_v40, %s3840_s28  ;;  %2821 = vrot.lane.b32.xlu1 %v2798_v34, %s3838_s19 }
 0x660   : > { %2999 = vrot.lane.b32.xlu0 %v2976_v53, %s3839_s26  ;;  %2997 = vrot.lane.b32.xlu1 %v2975_v41, %s3839_s26 }
 0x676   : > { %v2694_v4 = vpop.permute.xlu0 %2693  ;;  %v2509_v58 = vpop.permute.xlu1 %2508 }
 0x677   : > { %v2532_v24 = vadd.f32 %v2509_v58, %v2436_v17  ;;  %v5896_v17 = vld [vmem:[#allocation17_spill] sm:$0xff] }
 0x67a   : > { %v2605_v19 = vpop.permute.xlu1 %2604  ;;  %v2897_v16 = vpop.permute.xlu0 %2896 }
 0x67b   : > { %v2628_v0 = vadd.f32 %v2605_v19, %v2532_v24 }
 0x67d   : > { %v2717_v7 = vadd.f32 %v2694_v4, %v2628_v0 }
 0x67e   : > { %v2986_v59 = vpop.permute.xlu0 %2985  ;;  %v2808_v8 = vpop.permute.xlu1 %2807 }
 0x67f   : > { %v2742_v44 = vadd.f32 %v5355_v5, %v2717_v7 }
 0x681   : > { %v2831_v52 = vadd.f32 %v2808_v8, %v2742_v44 }
 0x682   : > { %v2511_v61 = vpop.permute.xlu0 %2510  ;;  %v2513_v3 = vpop.permute.xlu1 %2512 }
 0x683   : > { %v2920_v20 = vadd.f32 %v2897_v16, %v2831_v52  ;;  %v2533_v25 = vadd.f32 %v2511_v61, %v5371_v63 }
 0x685   : > { %v3009_v55 = vadd.f32 %v2986_v59, %v2920_v20  ;;  %v5897_v20 = vld [vmem:[#allocation59_spill] sm:$0xff] }
 0x686   : > { %v2607_v37 = vpop.permute.xlu0 %2606  ;;  %v2609_v48 = vpop.permute.xlu1 %2608 }
 0x687   : > { %v3034_v50 = vadd.f32 %v5351_v57, %v3009_v55  ;;  %v2629_v39 = vadd.f32 %v2607_v37, %v2533_v25  ;;  %v2534_v57 = vadd.f32 %v2513_v3, %v5397_v35 }
 0x689   : > { %3587 = vmatprep.mubr.msk.f32.mxu1 %vm433_vm0, %v3034_v50  ;;  %v2630_v63 = vadd.f32 %v2609_v48, %v2534_v57 }
 0x68a   : > { %v2696_v11 = vpop.permute.xlu0 %2695  ;;  %v2812_v26 = vpop.permute.xlu1 %2811 }
 0x68b   : > { %v2718_v9 = vadd.f32 %v2696_v11, %v2629_v39 }
 0x68d   : > { %v2743_v13 = vadd.f32 %v5384_v27, %v2718_v9 }
 0x68e   : > { %v2810_v5 = vpop.permute.xlu0 %2809  ;;  %v2990_v14 = vpop.permute.xlu1 %2989 }
 0x68f   : > { %v2832_v62 = vadd.f32 %v2810_v5, %v2743_v13 }
 0x692   : > { %v2899_v60 = vpop.permute.xlu0 %2898  ;;  %v2515_v10 = vpop.permute.xlu1 %2514 }
 0x693   : > { %v2921_v29 = vadd.f32 %v2899_v60, %v2832_v62  ;;  %v2535_v1 = vadd.f32 %v2515_v10, %v5431_v2 }
 0x696   : > { %v2988_v56 = vpop.permute.xlu0 %2987  ;;  %v2700_v18 = vpop.permute.xlu1 %2699 }
 0x697   : > { %v3010_v33 = vadd.f32 %v2988_v56, %v2921_v29 }
 0x699   : > { %v3035_v54 = vadd.f32 %v5349_v32, %v3010_v33 }
 0x69a   : > { %v2698_v34 = vpop.permute.xlu0 %2697  ;;  %v2814_v40 = vpop.permute.xlu1 %2813 }
 0x69b   : > { %v2719_v45 = vadd.f32 %v2698_v34, %v2630_v63  ;;  %3588 = vmatmul.mubr.msk.f32.vlgmr.msra.gmra.mrb[32].mxu1 %vm433_vm0, %v3035_v54 }
 0x69d   : > { %v2744_v27 = vadd.f32 %v5408_v22, %v2719_v45 }
 0x69e   : > { %v2901_v36 = vpop.permute.xlu0 %2900  ;;  %v2517_v41 = vpop.permute.xlu1 %2516 }
 0x69f   : > { %v2833_v53 = vadd.f32 %v2812_v26, %v2744_v27  ;;  %v2536_v8 = vadd.f32 %v2517_v41, %v5459_v47 }
 0x6a1   : > { %v2922_v15 = vadd.f32 %v2901_v36, %v2833_v53 }
 0x6a2   : > { %v2611_v6 = vpop.permute.xlu0 %2610  ;;  %v2613_v4 = vpop.permute.xlu1 %2612 }
 0x6a3   : > { %v3011_v35 = vadd.f32 %v2990_v14, %v2922_v15  ;;  %v2631_v58 = vadd.f32 %v2611_v6, %v2535_v1  ;;  %v2632_v44 = vadd.f32 %v2613_v4, %v2536_v8 }
 0x6a5   : > { %v3036_v24 = vadd.f32 %v5896_v17, %v3011_v35  ;;  %v2720_v32 = vadd.f32 %v2700_v18, %v2631_v58  ;;  %v5898_v58 = vld [vmem:[#allocation50_spill] sm:$0xff] }
 0x6a6   : > { %v2903_v19 = vpop.permute.xlu0 %2902  ;;  %v2905_v16 = vpop.permute.xlu1 %2904 }
 0x6a7   : > { %v2745_v0 = vadd.f32 %v5434_v46, %v2720_v32  ;;  %3590 = vmatprep.mubr.msk.f32.mxu1 %vm433_vm0, %v3036_v24 }
 0x6a9   : > { %v2834_v22 = vadd.f32 %v2814_v40, %v2745_v0 }
 0x6aa   : > { %v2992_v7 = vpop.permute.xlu0 %2991  ;;  %v2615_v59 = vpop.permute.xlu1 %2614 }
 0x6ab   : > { %v2923_v2 = vadd.f32 %v2903_v19, %v2834_v22 }
 0x6ad   : > { %v3012_v52 = vadd.f32 %v2992_v7, %v2923_v2 }
 0x6ae   : > { %v2702_v61 = vpop.permute.xlu0 %2701  ;;  %v2818_v3 = vpop.permute.xlu1 %2817 }
 0x6af   : > { %v3037_v55 = vadd.f32 %v5897_v20, %v3012_v52  ;;  %v2721_v37 = vadd.f32 %v2702_v61, %v2632_v44 }
 0x6b1   : > { %3591 = vmatmul.mubr.msk.f32.gmra.mrb[34].mxu1 %vm433_vm0, %v3037_v55  ;;  %v2746_v48 = vadd.f32 %v5470_v21, %v2721_v37 }
 0x6b2   : > { %v2816_v46 = vpop.permute.xlu0 %2815  ;;  %v2521_v50 = vpop.permute.xlu1 %2520 }
 0x6b3   : > { %v2835_v25 = vadd.f32 %v2816_v46, %v2746_v48  ;;  %v2538_v47 = vadd.f32 %v2521_v50, %v5514_v38 }
 0x6b5   : > { %v2924_v39 = vadd.f32 %v2905_v16, %v2835_v25 }
 0x6b6   : > { %v2994_v11 = vpop.permute.xlu0 %2993  ;;  %v2617_v26 = vpop.permute.xlu1 %2616 }
 0x6b7   : > { %v3013_v9 = vadd.f32 %v2994_v11, %v2924_v39  ;;  %v2634_v5 = vadd.f32 %v2617_v26, %v2538_v47 }
 0x6b9   : > { %v3038_v13 = vadd.f32 %v5401_v28, %v3013_v9 }
 0x6ba   : > { %v2519_v14 = vpop.permute.xlu0 %2518  ;;  %v2706_v60 = vpop.permute.xlu1 %2705 }
 0x6bb   : > { %v2537_v10 = vadd.f32 %v2519_v14, %v5487_v42  ;;  %v2723_v62 = vadd.f32 %v2706_v60, %v2634_v5  ;;  %3593 = vmatprep.mubr.msk.f32.mxu1 %vm433_vm0, %v3038_v13 }
 0x6bd   : > { %v2633_v21 = vadd.f32 %v2615_v59, %v2537_v10  ;;  %v2748_v29 = vadd.f32 %v5519_v51, %v2723_v62 }
 0x6be   : > { %v2704_v56 = vpop.permute.xlu0 %2703  ;;  %v2820_v18 = vpop.permute.xlu1 %2819 }
 0x6bf   : > { %v2722_v57 = vadd.f32 %v2704_v56, %v2633_v21  ;;  %v2837_v4 = vadd.f32 %v2820_v18, %v2748_v29 }
 0x6c1   : > { %v2747_v33 = vadd.f32 %v5490_v49, %v2722_v57  ;;  %v3017_v49 = vld [vmem:[#allocation3 + $0x51] sm:$0xff] }
 0x6c2   : > { %v2907_v38 = vpop.permute.xlu0 %2906  ;;  %v2523_v63 = vpop.permute.xlu1 %2522  ;;  %v3025_v17 = vmul.f32 %v3017_v49, %v5898_v58 }
 0x6c3   : > { %v2836_v54 = vadd.f32 %v2818_v3, %v2747_v33  ;;  %v2539_v45 = vadd.f32 %v2523_v63, %v5538_v43 }
 0x6c4   : > { %v3033_v19 = vmul.f32 %v5428_v12, %v3025_v17 }
 0x6c5   : > { %v2925_v28 = vadd.f32 %v2907_v38, %v2836_v54 }
 0x6c6   : > { %v2996_v34 = vpop.permute.xlu0 %2995  ;;  %v2619_v40 = vpop.permute.xlu1 %2618 }
 0x6c7   : > { %v3014_v42 = vadd.f32 %v2996_v34, %v2925_v28  ;;  %v2635_v36 = vadd.f32 %v2619_v40, %v2539_v45 }
 0x6c9   : > { %v3039_v27 = vadd.f32 %v5399_v31, %v3014_v42 }
 0x6ca   : > { %v2708_v41 = vpop.permute.xlu0 %2707  ;;  %v2909_v53 = vpop.permute.xlu1 %2908 }
 0x6cb   : > { %v2724_v51 = vadd.f32 %v2708_v41, %v2635_v36  ;;  %3594 = vmatmul.mubr.msk.f32.gmra.mrb[36].mxu1 %vm433_vm0, %v3039_v27  ;;  %v2926_v43 = vadd.f32 %v2909_v53, %v2837_v4 }
 0x6cd   : > { %v2749_v1 = vadd.f32 %v5541_v23, %v2724_v51  ;;  %v3305_v23 = vld [vmem:[%s5676_s4] ss:$0 sm:$0xff] }
 0x6ce   : > { %v2911_v15 = vpop.permute.xlu0 %2910  ;;  %v2822_v6 = vpop.permute.xlu1 %2821 }
 0x6cf   : > { %v2838_v35 = vadd.f32 %v2822_v6, %v2749_v1 }
 0x6d1   : > { %v2927_v24 = vadd.f32 %v2911_v15, %v2838_v35 }
 0x6d2   : > { %v3000_v32 = vpop.permute.xlu0 %2999  ;;  %v2998_v31 = vpop.permute.xlu1 %2997 }
 0x6d3   : > { %v3016_v16 = vadd.f32 %v3000_v32, %v2927_v24  ;;  %v3015_v0 = vadd.f32 %v2998_v31, %v2926_v43 }
 0x6d5   : > { %v3041_v22 = vadd.f32 %v3033_v19, %v3016_v16  ;;  %v3040_v7 = vadd.f32 %v5436_v30, %v3015_v0 }
 0x6d7   : > { %3596 = vmatprep.mubr.msk.f32.mxu1 %vm433_vm0, %v3040_v7 }
 0x6d8   : > { %3597 = vmatmul.mubr.msk.f32.gmra.mrb[38].mxu1 %vm433_vm0, %v3041_v22 }
 0x76e   : > { %v3589_v59 = vpop.f32.mrb[32].mxu1 }
 0x76f   : > { %v3149_v12 = vadd.f32 %v3589_v59, %v3305_v23  ;;  %v3143_v8 = vpop.f32.mrb[33].mxu1 }
 0x770   : > { %v3144_v2 = vadd.f32 %v3305_v23, %v3143_v8 }
 0x771   : > { %3183 = vst.msk [vmem:[%s413_s23 + $0x8] sm:$0xff] %vm433_vm0, %v3149_v12 }
 0x772   : > { %3182 = vst.msk [vmem:[%s413_s23] sm:$0xff] %vm433_vm0, %v3144_v2 }
 0x784   : > { %v3592_v30 = vpop.f32.mrb[34].mxu1 }
 0x785   : > { %v3159_v44 = vadd.f32 %v3592_v30, %v3305_v23  ;;  %v3153_v52 = vpop.f32.mrb[35].mxu1 }
 0x786   : > { %v3154_v61 = vadd.f32 %v3305_v23, %v3153_v52 }
 0x787   : > { %3185 = vst.msk [vmem:[%s413_s23 + $0x18] sm:$0xff] %vm433_vm0, %v3159_v44 }
 0x788   : > { %3184 = vst.msk [vmem:[%s413_s23 + $0x10] sm:$0xff] %vm433_vm0, %v3154_v61 }
 0x79e   : > { %v3595_v3 = vpop.f32.mrb[36].mxu1 }
 0x79f   : > { %v3169_v20 = vadd.f32 %v3595_v3, %v3305_v23  ;;  %v3163_v55 = vpop.f32.mrb[37].mxu1 }
 0x7a0   : > { %v3164_v37 = vadd.f32 %v3305_v23, %v3163_v55 }
 0x7a1   : > { %3187 = vst.msk [vmem:[%s413_s23 + $0x28] sm:$0xff] %vm433_vm0, %v3169_v20 }
 0x7a2   : > { %3186 = vst.msk [vmem:[%s413_s23 + $0x20] sm:$0xff] %vm433_vm0, %v3164_v37 }
 0x7ab   : > { %v3598_v48 = vpop.f32.mrb[38].mxu1 }
 0x7ac   : > { %v3179_v46 = vadd.f32 %v3598_v48, %v3305_v23  ;;  %v3173_v50 = vpop.f32.mrb[39].mxu1 }
 0x7ad   : > { %v3174_v25 = vadd.f32 %v3305_v23, %v3173_v50 }
 0x7ae   : > { %3189 = vst.msk [vmem:[%s413_s23 + $0x38] sm:$0xff] %vm433_vm0, %v3179_v46 }
 0x7af   : > { %3188 = vst.msk [vmem:[%s413_s23 + $0x30] sm:$0xff] %vm433_vm0, %v3174_v25 }
 0x7b0 PF: > { %s22_s21 = sadd.s32 1, %s3826_s21  }
 0x7b1   : > { %p19_p4 = scmp.ge.s32.totalorder %s22_s21, 4  }
 0x7b3   :  { %21 = sbr.rel (!%p19_p4) target bundleno = 1 (0x1), region = 98 }

// kernel: tpu_custom_call.1
= control target key start
LH: loop header
LB: loop body
LE: loop exit
PB: predicated region body
PF: predicated region fallthrough
CT: control target
= control target key end

     0   :  { %s3906_s21 = smov 0   ;;  %s5672_s0 = inlined_call_operand.vmem [shape: f32[2,64,32], index: 0, kind: input, shape index: {}]   ;;  %s5673_s1 = inlined_call_operand.vmem [shape: f32[32,96], index: 1, kind: input, shape index: {}]   ;;  %s5674_s2 = inlined_call_operand.vmem [shape: f32[1,96], index: 2, kind: input, shape index: {}]   ;;  %s5675_s3 = inlined_call_operand.vmem [shape: f32[32,32], index: 3, kind: input, shape index: {}]   ;;  %s5676_s4 = inlined_call_operand.vmem [shape: f32[1,32], index: 4, kind: input, shape index: {}]   ;;  %s5677_s5 = inlined_call_operand.vmem [shape: f32[96,16], index: 5, kind: input, shape index: {}]   ;;  %s5678_s6 = inlined_call_operand.vmem [shape: f32[16,96], index: 6, kind: input, shape index: {}]   ;;  %s5679_s7 = inlined_call_operand.vmem [shape: f32[1,96], index: 7, kind: input, shape index: {}]   ;;  %s5680_s8 = inlined_call_operand.vmem [shape: f32[288,72], index: 8, kind: input, shape index: {}]   ;;  %s5681_s9 = inlined_call_operand.vmem [shape: f32[72,288], index: 9, kind: input, shape index: {}]   ;;  %s5682_s10 = inlined_call_operand.vmem [shape: f32[1,72], index: 10, kind: input, shape index: {}]   ;;  %s5683_s11 = inlined_call_operand.vmem [shape: f32[64,9], index: 11, kind: input, shape index: {}]   ;;  %s5684_s12 = inlined_call_operand.vmem [shape: f32[2,64,32], index: 12, kind: output, shape index: {}]  }
   0x1 LB: > { %s3245_s22 = sadd.s32 4294967295, %s3826_s21   ;;  %p3249_p0 = scmp.ge.s32.totalorder %s3826_s21, 1  ;;  %s3826_s21 = sphi %s3906_s21, %s22_s21  }
   0x2   : > { %p362_p1 = scmp.lt.s32.totalorder %s3826_s21, 3 }
   0x4   : > { %p363_p2 = pnand %p3249_p0, %p362_p1 }
   0x6   : > { %366 = sbr.rel (%p363_p2) target bundleno = 1968 (0x7b0), region = 68 }
   0xd   : > { %v422_v0 = vld [vmem:[%s5673_s1] sm:$0xff]  ;;  %v423_v1 = vld [vmem:[%s5673_s1 + $0x8] sm:$0xff]  ;;  %v424_v2 = vld [vmem:[%s5673_s1 + $0x10] sm:$0xff]  ;;  %p404_p3 = scmp.lt.s32.totalorder %s3245_s22, 1  ;;  %vm433_vm0 = vcmask 261120   ;;  %v3828_v48 = vmov 5  }
   0xe   : > { %v3599_v3 = vpack.c.bf16 %v423_v1, %v422_v0  ;;  %v425_v4 = vld [vmem:[%s5673_s1 + $0x18] sm:$0xff]  ;;  %v571_v5 = vld [vmem:[%s5677_s5] sm:$0xff]  ;;  %v572_v6 = vld [vmem:[%s5677_s5 + $0x8] sm:$0xff]  ;;  %3736 = vset.pattern.permute.xlu1 %v3828_v48  ;;  %3741 = vset.pattern.permute.xlu0 %v3828_v48  ;;  %v3829_v53 = vmov 1   ;;  %v3830_v56 = vmov 2   ;;  %v3831_v57 = vmov 7  }
   0xf   : > { %v3603_v7 = vpack.c.bf16 %v425_v4, %v424_v2  ;;  %s5900_s22 = smov (!%p404_p3, %s3245_s22), 1  ;;  %v3607_v8 = vpack.c.bf16 %v572_v6, %v571_v5  ;;  %v573_v9 = vld [vmem:[%s5677_s5 + $0x10] sm:$0xff]  ;;  %v574_v10 = vld [vmem:[%s5677_s5 + $0x18] sm:$0xff]  ;;  %v575_v12 = vld [vmem:[%s5677_s5 + $0x20] sm:$0xff]  ;;  %v3832_v58 = vmov 3   ;;  %v3833_v59 = vmov 6  }
  0x10   : > { %3600 = vmatprep.subr.bf16.mxu0 %v3599_v3  ;;  %v3611_v11 = vpack.c.bf16 %v574_v10, %v573_v9  ;;  %v576_v13 = vld [vmem:[%s5677_s5 + $0x28] sm:$0xff]  ;;  %s3316_s27 = sshll.u32 %s5900_s22, 6  ;;  %v577_v21 = vld [vmem:[%s5677_s5 + $0x30] sm:$0xff]  ;;  %v578_v22 = vld [vmem:[%s5677_s5 + $0x38] sm:$0xff]  ;;  %vm583_vm1 = vcmask 785408   ;;  %vm738_vm2 = vcmask 130048  }
  0x11   : > { %3602 = vmatpush3.bf16.msra.mxu0 %v3599_v3  ;;  %3608 = vmatprep.subr.bf16.mxu1 %v3607_v8  ;;  %s3952_s30 = scalar_lea.vmem %s5672_s0, %s3316_s27  ;;  %v3615_v17 = vpack.c.bf16 %v576_v13, %v575_v12  ;;  %v3619_v28 = vpack.c.bf16 %v578_v22, %v577_v21  ;;  %v579_v30 = vld [vmem:[%s5677_s5 + $0x40] sm:$0xff]  ;;  %v580_v31 = vld [vmem:[%s5677_s5 + $0x48] sm:$0xff]  ;;  %v581_v44 = vld [vmem:[%s5677_s5 + $0x50] sm:$0xff]  ;;  %s3838_s19 = smov 96   ;;  %vm1155_vm3 = vcmask 523520   ;;  %vm1252_vm4 = vcmask 785920  }
  0x12   : > { %3604 = vmatprep.subr.bf16.mxu0 %v3603_v7  ;;  %3610 = vmatpush3.bf16.msra.mxu1 %v3607_v8  ;;  %v414_v14 = vld [vmem:[%s3952_s30] sm:$0xff]  ;;  %v415_v15 = vld [vmem:[%s3952_s30 + $0x8] sm:$0xff]  ;;  %v416_v16 = vld [vmem:[%s3952_s30 + $0x10] sm:$0xff]  ;;  %v3623_v37 = vpack.c.bf16 %v580_v31, %v579_v30  ;;  %s3839_s26 = smov 32   ;;  %s3840_s28 = smov 64   ;;  %vm1349_vm5 = vcmask 1048320  }
  0x13   : > { %3612 = vmatprep.subr.bf16.mxu1 %v3611_v11  ;;  %3465 = vmatprep.mubr.msk.f32.mxu0 %vm433_vm0, %v414_v14  ;;  %v876_v18 = vsel %vm433_vm0, %v414_v14, 0.0  ;;  %v877_v19 = vsel %vm433_vm0, %v415_v15, 0.0  ;;  %v879_v20 = vsel %vm433_vm0, %v416_v16, 0.0  ;;  %v417_v24 = vld [vmem:[%s3952_s30 + $0x18] sm:$0xff]  ;;  %v418_v27 = vld [vmem:[%s3952_s30 + $0x20] sm:$0xff]  ;;  %v419_v33 = vld [vmem:[%s3952_s30 + $0x28] sm:$0xff]  ;;  %s413_s23 = scalar_lea.vmem %s5684_s12, %s3316_s27 }
  0x14   : > { %v878_v23 = vadd.f32 %v877_v19, %v876_v18  ;;  %v881_v25 = vsel %vm433_vm0, %v417_v24, 0.0  ;;  %v883_v29 = vsel %vm433_vm0, %v418_v27, 0.0  ;;  %v885_v34 = vsel %vm433_vm0, %v419_v33, 0.0  ;;  %v420_v36 = vld [vmem:[%s3952_s30 + $0x30] sm:$0xff]  ;;  %v421_v40 = vld [vmem:[%s3952_s30 + $0x38] sm:$0xff]  ;;  %v4001_v47 = vld [vmem:[%s5683_s11] sm:$0xff] }
  0x15   : > { %3606 = vmatpush3.bf16.msra.mxu0 %v3603_v7  ;;  %v887_v38 = vsel %vm433_vm0, %v420_v36, 0.0  ;;  %v889_v41 = vsel %vm433_vm0, %v421_v40, 0.0  ;;  %v582_v45 = vld [vmem:[%s5677_s5 + $0x58] sm:$0xff]  ;;  %v4007_v49 = vld [vmem:[%s5683_s11 + $0x8] sm:$0xff]  ;;  %1431 = vperm.xlu1 %3736, %v4001_v47   ;;  %v729_v50 = vld [vmem:[%s5678_s6] sm:$0xff]  ;;  %vm2075_vm6 = vcmask 588800  }
  0x16   : > { %3614 = vmatpush3.bf16.msra.mxu1 %v3611_v11  ;;  %v880_v26 = vadd.f32 %v879_v20, %v878_v23  ;;  %v3627_v46 = vpack.c.bf16 %v582_v45, %v581_v44  ;;  %v730_v51 = vld [vmem:[%s5678_s6 + $0x8] sm:$0xff]  ;;  %1435 = vperm.xlu0 %3741, %v4007_v49   ;;  %v4022_v54 = vld [vmem:[%s5683_s11 + $0x18] sm:$0xff]  ;;  %v4049_v60 = vld [vmem:[%s5683_s11 + $0x10] sm:$0xff] }
  0x17   : > { %3616 = vmatprep.subr.bf16.mxu1 %v3615_v17  ;;  %v3631_v52 = vpack.c.bf16 %v730_v51, %v729_v50  ;;  %v4029_v55 = vld [vmem:[%s5683_s11 + $0x28] sm:$0xff]  ;;  %v4056_v61 = vld [vmem:[%s5683_s11 + $0x20] sm:$0xff]  ;;  %v4137_v23 = vld [vmem:[%s5683_s11 + $0x30] sm:$0xff] }
  0x18   : > { %3466 = vmatmul.mubr.msk.f32.vlgmr.msra.gmra.mrb[0].mxu0 %vm433_vm0, %v415_v15  ;;  %v882_v32 = vadd.f32 %v881_v25, %v880_v26  ;;  %v3254_v62 = vld [vmem:[%s5674_s2] ss:$0 sm:$0xff]  ;;  %v5685_v25 = vmov 0.0   ;;  %v3835_v26 = vmov 4  }
  0x19   : > { %3468 = vmatprep.mubr.msk.f32.mxu0 %vm433_vm0, %v416_v16  ;;  %3632 = vmatprep.subr.bf16.mxu0 %v3631_v52  ;;  %908 = vst.msk [vmem:[#allocation2 + $0x8] sm:$0xff] %vm433_vm0, %v5685_v25  ;;  %912 = vst.msk [vmem:[#allocation3 + $0x8] sm:$0xff] %vm433_vm0, %v5685_v25 }
  0x1a   : > { %3618 = vmatpush3.bf16.msra.mxu1 %v3615_v17  ;;  %v884_v35 = vadd.f32 %v883_v29, %v882_v32  ;;  %3737 = vset.pattern.permute.xlu1 %v3829_v53  ;;  %907 = vst.msk [vmem:[#allocation2] sm:$0xff] %vm433_vm0, %v5685_v25  ;;  %909 = vst.msk [vmem:[#allocation2 + $0x50] sm:$0xff] %vm433_vm0, %v5685_v25 }
  0x1b   : > { %3620 = vmatprep.subr.bf16.mxu1 %v3619_v28  ;;  %3634 = vmatpush3.bf16.msra.mxu0 %v3631_v52  ;;  %910 = vst.msk [vmem:[#allocation2 + $0x58] sm:$0xff] %vm433_vm0, %v5685_v25  ;;  %911 = vst.msk [vmem:[#allocation3] sm:$0xff] %vm433_vm0, %v5685_v25 }
  0x1c   : > { %3469 = vmatmul.mubr.msk.f32.gmra.mrb[2].mxu0 %vm433_vm0, %v417_v24  ;;  %v886_v39 = vadd.f32 %v885_v34, %v884_v35  ;;  %1076 = vperm.xlu1 %3737, %v4001_v47   ;;  %v4150_v24 = vld [vmem:[%s5683_s11 + $0x38] sm:$0xff]  ;;  %913 = vst.msk [vmem:[#allocation3 + $0x50] sm:$0xff] %vm433_vm0, %v5685_v25  ;;  %914 = vst.msk [vmem:[#allocation3 + $0x58] sm:$0xff] %vm433_vm0, %v5685_v25  ;;  %v3271_v25 = vld [vmem:[%s5679_s7] ss:$0 sm:$0xff] }
  0x1d   : > { %3471 = vmatprep.mubr.msk.f32.mxu0 %vm433_vm0, %v418_v27  ;;  %1443 = vperm.xlu0 %3741, %v4022_v54   ;;  %v3836_v27 = vmov 0  }
  0x1e   : > { %3622 = vmatpush3.bf16.msra.mxu1 %v3619_v28  ;;  %v888_v42 = vadd.f32 %v887_v38, %v886_v39  ;;  %v3837_v28 = vmov 8  }
  0x1f   : > { %3624 = vmatprep.subr.bf16.mxu1 %v3623_v37 }
  0x20   : > { %3472 = vmatmul.mubr.msk.f32.gmra.mrb[4].mxu0 %vm433_vm0, %v419_v33  ;;  %v3989_v43 = vadd.f32 %v889_v41, %v888_v42  ;;  %3738 = vset.pattern.permute.xlu1 %v3830_v56 }
  0x21   : > { %3474 = vmatprep.mubr.msk.f32.mxu0 %vm433_vm0, %v420_v36  ;;  %1451 = vperm.xlu0 %3741, %v4029_v55  }
  0x22   : > { %3626 = vmatpush3.bf16.msra.mxu1 %v3623_v37  ;;  %1173 = vperm.xlu1 %3738, %v4001_v47  }
  0x23   : > { %3628 = vmatprep.subr.bf16.mxu1 %v3627_v46 }
  0x24   : > { %3475 = vmatmul.mubr.msk.f32.gmra.mrb[6].mxu0 %vm433_vm0, %v421_v40 }
  0x25   : > { %3758 = vset.pattern.permute.xlu0 %v3830_v56 }
  0x26   : > { %3630 = vmatpush3.bf16.msra.mxu1 %v3627_v46  ;;  %3739 = vset.pattern.permute.xlu1 %v3831_v57 }
  0x27   : > { %1177 = vperm.xlu0 %3758, %v4007_v49   ;;  %1623 = vperm.xlu1 %3739, %v4001_v47  }
  0x2b   : > { %1185 = vperm.xlu0 %3758, %v4022_v54   ;;  %3740 = vset.pattern.permute.xlu1 %v3832_v58 }
  0x2c   : > { %1270 = vperm.xlu1 %3740, %v4001_v47  }
  0x2f   : > { %1193 = vperm.xlu0 %3758, %v4029_v55  }
  0x30   : > { %3742 = vset.pattern.permute.xlu1 %v3829_v53 }
  0x31   : > { %1080 = vperm.xlu1 %3742, %v4007_v49  }
  0x33   : > { %3761 = vset.pattern.permute.xlu0 %v3833_v59 }
  0x34   : > { %1527 = vperm.xlu0 %3761, %v4001_v47  }
  0x35   : > { %3743 = vset.pattern.permute.xlu1 %v3833_v59 }
  0x36   : > { %1531 = vperm.xlu1 %3743, %v4007_v49  }
  0x38   : > { %1535 = vperm.xlu0 %3761, %v4049_v60  }
  0x3a   : > { %3744 = vset.pattern.permute.xlu1 %v3831_v57 }
  0x3b   : > { %1627 = vperm.xlu1 %3744, %v4007_v49  }
  0x3c   : > { %1543 = vperm.xlu0 %3761, %v4056_v61  }
  0x3f   : > { %3745 = vset.pattern.permute.xlu1 %v3828_v48 }
  0x40   : > { %1439 = vperm.xlu1 %3745, %v4049_v60   ;;  %1551 = vperm.xlu0 %3761, %v4137_v23  }
  0x44   : > { %3746 = vset.pattern.permute.xlu1 %v3829_v53  ;;  %1555 = vperm.xlu0 %3761, %v4150_v24  }
  0x45   : > { %1084 = vperm.xlu1 %3746, %v4049_v60  }
  0x48   : > { %3769 = vset.pattern.permute.xlu0 %v3832_v58 }
  0x49   : > { %3747 = vset.pattern.permute.xlu1 %v3830_v56  ;;  %1274 = vperm.xlu0 %3769, %v4007_v49  }
  0x4a   : > { %1181 = vperm.xlu1 %3747, %v4049_v60  }
  0x4d   : > { %1282 = vperm.xlu0 %3769, %v4022_v54  }
  0x4e   : > { %3748 = vset.pattern.permute.xlu1 %v3831_v57 }
  0x4f   : > { %1631 = vperm.xlu1 %3748, %v4049_v60  }
  0x51   : > { %1290 = vperm.xlu0 %3769, %v4029_v55  }
  0x53   : > { %3749 = vset.pattern.permute.xlu1 %v3832_v58 }
  0x54   : > { %1278 = vperm.xlu1 %3749, %v4049_v60  }
  0x55   : > { %1294 = vperm.xlu0 %3769, %v4137_v23  }
  0x58   : > { %3750 = vset.pattern.permute.xlu1 %v3829_v53 }
  0x59   : > { %1088 = vperm.xlu1 %3750, %v4022_v54   ;;  %1298 = vperm.xlu0 %3769, %v4150_v24  }
  0x5d   : > { %3751 = vset.pattern.permute.xlu1 %v3833_v59  ;;  %3774 = vset.pattern.permute.xlu0 %v3835_v26 }
  0x5e   : > { %1539 = vperm.xlu1 %3751, %v4022_v54   ;;  %1371 = vperm.xlu0 %3774, %v4007_v49  }
  0x62   : > { %3752 = vset.pattern.permute.xlu1 %v3831_v57  ;;  %1383 = vperm.xlu0 %3774, %v4056_v61  }
  0x63   : > { %1635 = vperm.xlu1 %3752, %v4022_v54  }
  0x66   : > { %1391 = vperm.xlu0 %3774, %v4137_v23  }
  0x67   : > { %3753 = vset.pattern.permute.xlu1 %v3828_v48 }
  0x68   : > { %1447 = vperm.xlu1 %3753, %v4056_v61  }
  0x6a   : > { %3780 = vset.pattern.permute.xlu0 %v3837_v28 }
  0x6b   : > { %1723 = vperm.xlu0 %3780, %v4007_v49  }
  0x6c   : > { %3754 = vset.pattern.permute.xlu1 %v3829_v53 }
  0x6d   : > { %1092 = vperm.xlu1 %3754, %v4056_v61  }
  0x6f   : > { %1727 = vperm.xlu0 %3780, %v4049_v60  }
  0x71   : > { %3755 = vset.pattern.permute.xlu1 %v3830_v56 }
  0x72   : > { %1189 = vperm.xlu1 %3755, %v4056_v61  }
  0x73   : > { %3782 = vset.pattern.permute.xlu0 %v3836_v27 }
  0x74   : > { %1015 = vperm.xlu0 %3782, %v4049_v60  }
  0x76   : > { %3756 = vset.pattern.permute.xlu1 %v3831_v57 }
  0x77   : > { %1639 = vperm.xlu1 %3756, %v4056_v61  }
  0x78   : > { %1020 = vperm.xlu0 %3782, %v4022_v54  }
  0x7b   : > { %3757 = vset.pattern.permute.xlu1 %v3832_v58 }
  0x7c   : > { %1286 = vperm.xlu1 %3757, %v4056_v61   ;;  %1040 = vperm.xlu0 %3782, %v4150_v24  }
  0x80   : > { %3759 = vset.pattern.permute.xlu1 %v3829_v53  ;;  %3785 = vset.pattern.permute.xlu0 %v3837_v28 }
  0x81   : > { %1096 = vperm.xlu1 %3759, %v4029_v55  }
  0x85   : > { %3760 = vset.pattern.permute.xlu1 %v3833_v59 }
  0x86   : > { %1547 = vperm.xlu1 %3760, %v4029_v55  }
  0x8a   : > { %3762 = vset.pattern.permute.xlu1 %v3831_v57 }
  0x8b   : > { %1643 = vperm.xlu1 %3762, %v4029_v55  }
  0x8f   : > { %3763 = vset.pattern.permute.xlu1 %v3828_v48 }
  0x90   : > { %1455 = vperm.xlu1 %3763, %v4137_v23  }
  0x94   : > { %3764 = vset.pattern.permute.xlu1 %v3829_v53  ;;  %v4199_v29 = vpop.permute.xlu1 %1431 }
  0x95   : > { %1100 = vperm.xlu1 %3764, %v4137_v23   ;;  %5752 = vst [vmem:[#allocation5_spill] sm:$0xff] %v4199_v29 }
  0x99   : > { %3765 = vset.pattern.permute.xlu1 %v3830_v56 }
  0x9a   : > { %1197 = vperm.xlu1 %3765, %v4137_v23  }
  0x9b   : > { %v4202_v30 = vpop.permute.xlu1 %1076 }
  0x9c   : > { %5753 = vst [vmem:[#allocation6_spill] sm:$0xff] %v4202_v30 }
  0x9e   : > { %3766 = vset.pattern.permute.xlu1 %v3831_v57 }
  0x9f   : > { %1647 = vperm.xlu1 %3766, %v4137_v23  }
  0xa1   : > { %v4205_v31 = vpop.permute.xlu1 %1173 }
  0xa3   : > { %3767 = vset.pattern.permute.xlu1 %v3828_v48 }
  0xa4   : > { %1459 = vperm.xlu1 %3767, %v4150_v24  }
  0xa6   : > { %v4209_v32 = vpop.permute.xlu1 %1623 }
  0xa7   : > { %5754 = vst [vmem:[#allocation7_spill] sm:$0xff] %v4209_v32 }
  0xa8   : > { %3768 = vset.pattern.permute.xlu1 %v3829_v53 }
  0xa9   : > { %1104 = vperm.xlu1 %3768, %v4150_v24  }
  0xab   : > { %v4212_v33 = vpop.permute.xlu1 %1270 }
  0xac   : > { %5755 = vst [vmem:[#allocation8_spill] sm:$0xff] %v4212_v33 }
  0xad   : > { %3770 = vset.pattern.permute.xlu1 %v3830_v56 }
  0xae   : > { %1201 = vperm.xlu1 %3770, %v4150_v24  }
  0xb0   : > { %v4216_v34 = vpop.permute.xlu1 %1080 }
  0xb2   : > { %3771 = vset.pattern.permute.xlu1 %v3831_v57 }
  0xb3   : > { %1651 = vperm.xlu1 %3771, %v4150_v24  }
  0xb5   : > { %v4219_v35 = vpop.permute.xlu1 %1531 }
  0xb6   : > { %5756 = vst [vmem:[#allocation9_spill] sm:$0xff] %v4219_v35 }
  0xb7   : > { %3772 = vset.pattern.permute.xlu1 %v3835_v26 }
  0xb8   : > { %1367 = vperm.xlu1 %3772, %v4001_v47  }
  0xba   : > { %v4221_v36 = vpop.permute.xlu1 %1627 }
  0xbb   : > { %5757 = vst [vmem:[#allocation10_spill] sm:$0xff] %v4221_v36 }
  0xbc   : > { %3773 = vset.pattern.permute.xlu1 %v3836_v27 }
  0xbd   : > { %1005 = vperm.xlu1 %3773, %v4001_v47  }
  0xbf   : > { %v4223_v39 = vpop.permute.xlu1 %1439 }
  0xc0   : > { %5758 = vst [vmem:[#allocation11_spill] sm:$0xff] %v4223_v39 }
  0xc1   : > { %1010 = vperm.xlu1 %3773, %v4007_v49  }
  0xc4   : > { %v4225_v45 = vpop.permute.xlu1 %1084 }
  0xc5   : > { %3775 = vset.pattern.permute.xlu1 %v3835_v26  ;;  %5759 = vst [vmem:[#allocation12_spill] sm:$0xff] %v4225_v45 }
  0xc6   : > { %1375 = vperm.xlu1 %3775, %v4049_v60  }
  0xc9   : > { %v4228_v53 = vpop.permute.xlu1 %1181 }
  0xca   : > { %1379 = vperm.xlu1 %3775, %v4022_v54  }
  0xce   : > { %3776 = vset.pattern.permute.xlu1 %v3836_v27 }
  0xcf   : > { %1025 = vperm.xlu1 %3776, %v4056_v61  }
  0xd3   : > { %3777 = vset.pattern.permute.xlu1 %v3835_v26 }
  0xd4   : > { %1387 = vperm.xlu1 %3777, %v4029_v55  }
  0xd8   : > { %3778 = vset.pattern.permute.xlu1 %v3836_v27 }
  0xd9   : > { %1030 = vperm.xlu1 %3778, %v4029_v55  }
  0xdd   : > { %3779 = vset.pattern.permute.xlu1 %v3837_v28 }
  0xde   : > { %1719 = vperm.xlu1 %3779, %v4001_v47  }
  0xe2   : > { %3781 = vset.pattern.permute.xlu1 %v3836_v27 }
  0xe3   : > { %1035 = vperm.xlu1 %3781, %v4137_v23  }
  0xe7   : > { %3783 = vset.pattern.permute.xlu1 %v3835_v26 }
  0xe8   : > { %1395 = vperm.xlu1 %3783, %v4150_v24  }
  0xeb   : > { %v3467_v63 = vpop.f32.mrb[0].mxu0 }
  0xec   : > { %v4090_v0 = vadd.f32 %v3467_v63, %v3254_v62  ;;  %v524_v1 = vpop.f32.mrb[1].mxu0  ;;  %3784 = vset.pattern.permute.xlu1 %v3837_v28 }
  0xed   : > { %v4092_v2 = vadd.f32 %v3254_v62, %v524_v1  ;;  %1731 = vperm.xlu1 %3784, %v4022_v54  }
  0xee   : > { %v564_v5 = vmul.f32 %v4090_v0, %v4090_v0 }
  0xef   : > { %v3470_v3 = vpop.f32.mrb[2].mxu0  ;;  %v563_v4 = vmul.f32 %v4092_v2, %v4092_v2 }
  0xf0   : > { %v4099_v6 = vadd.f32 %v3470_v3, %v3254_v62  ;;  %v534_v7 = vpop.f32.mrb[3].mxu0 }
  0xf1   : > { %v4101_v8 = vadd.f32 %v3254_v62, %v534_v7  ;;  %3501 = vmatprep.mubr.msk.f32.mxu1 %vm583_vm1, %v563_v4  ;;  %1735 = vperm.xlu1 %3784, %v4056_v61   ;;  %v4233_v61 = vpop.permute.xlu1 %1631 }
  0xf2   : > { %v566_v9 = vmul.f32 %v4099_v6, %v4099_v6  ;;  %3502 = vmatmul.mubr.msk.f32.vlgmr.msra.gmra.mrb[0].mxu1 %vm583_vm1, %v564_v5  ;;  %5760 = vst [vmem:[#allocation13_spill] sm:$0xff] %v4233_v61 }
  0xf3   : > { %v565_v10 = vmul.f32 %v4101_v8, %v4101_v8  ;;  %v3473_v11 = vpop.f32.mrb[4].mxu0 }
  0xf4   : > { %v4111_v12 = vadd.f32 %v3473_v11, %v3254_v62  ;;  %v544_v13 = vpop.f32.mrb[5].mxu0 }
  0xf5   : > { %v4113_v14 = vadd.f32 %v3254_v62, %v544_v13  ;;  %3504 = vmatprep.mubr.msk.f32.mxu1 %vm583_vm1, %v565_v10  ;;  %1739 = vperm.xlu1 %3784, %v4029_v55   ;;  %v4238_v4 = vpop.permute.xlu1 %1278 }
  0xf6   : > { %v568_v15 = vmul.f32 %v4111_v12, %v4111_v12  ;;  %3505 = vmatmul.mubr.msk.f32.gmra.mrb[2].mxu1 %vm583_vm1, %v566_v9  ;;  %5761 = vst [vmem:[#allocation14_spill] sm:$0xff] %v4238_v4 }
  0xf7   : > { %v567_v16 = vmul.f32 %v4113_v14, %v4113_v14  ;;  %v3476_v17 = vpop.f32.mrb[6].mxu0 }
  0xf8   : > { %v4122_v18 = vadd.f32 %v3476_v17, %v3254_v62  ;;  %v554_v19 = vpop.f32.mrb[7].mxu0 }
  0xf9   : > { %v4124_v20 = vadd.f32 %v3254_v62, %v554_v19  ;;  %3507 = vmatprep.mubr.msk.f32.mxu1 %vm583_vm1, %v567_v16  ;;  %1743 = vperm.xlu1 %3784, %v4137_v23   ;;  %v4241_v5 = vpop.permute.xlu1 %1088 }
  0xfa   : > { %v570_v21 = vmul.f32 %v4122_v18, %v4122_v18  ;;  %3508 = vmatmul.mubr.msk.f32.gmra.mrb[4].mxu1 %vm583_vm1, %v568_v15 }
  0xfb   : > { %v569_v22 = vmul.f32 %v4124_v20, %v4124_v20 }
  0xfd   : > { %3510 = vmatprep.mubr.msk.f32.mxu1 %vm583_vm1, %v569_v22  ;;  %1747 = vperm.xlu1 %3784, %v4150_v24   ;;  %v4243_v7 = vpop.permute.xlu1 %1539 }
  0xfe   : > { %3511 = vmatmul.mubr.msk.f32.gmra.mrb[6].mxu1 %vm583_vm1, %v570_v21  ;;  %5762 = vst [vmem:[#allocation15_spill] sm:$0xff] %v4243_v7 }
 0x101   : > { %v4245_v9 = vpop.permute.xlu1 %1635 }
 0x102   : > { %5763 = vst [vmem:[#allocation16_spill] sm:$0xff] %v4245_v9  ;;  %v1822_v9 = vld [vmem:[%s5680_s8 + $0xc0] sm:$0xff] }
 0x105   : > { %v4247_v10 = vpop.permute.xlu1 %1447 }
 0x106   : > { %5764 = vst [vmem:[#allocation17_spill] sm:$0xff] %v4247_v10  ;;  %v1802_v10 = vld [vmem:[%s5680_s8 + $0x20] sm:$0xff] }
 0x109   : > { %v4249_v11 = vpop.permute.xlu1 %1092 }
 0x10a   : > { %5765 = vst [vmem:[#allocation18_spill] sm:$0xff] %v4249_v11 }
 0x10d   : > { %v4251_v13 = vpop.permute.xlu1 %1189 }
 0x10e   : > { %5766 = vst [vmem:[#allocation19_spill] sm:$0xff] %v4251_v13  ;;  %v1816_v13 = vld [vmem:[%s5680_s8 + $0x90] sm:$0xff] }
 0x111   : > { %v4253_v15 = vpop.permute.xlu1 %1639 }
 0x112   : > { %5767 = vst [vmem:[#allocation20_spill] sm:$0xff] %v4253_v15  ;;  %v1817_v15 = vld [vmem:[%s5680_s8 + $0x98] sm:$0xff] }
 0x115   : > { %v4255_v16 = vpop.permute.xlu1 %1286 }
 0x116   : > { %5768 = vst [vmem:[#allocation21_spill] sm:$0xff] %v4255_v16 }
 0x119   : > { %v4257_v17 = vpop.permute.xlu1 %1096 }
 0x11a   : > { %5769 = vst [vmem:[#allocation22_spill] sm:$0xff] %v4257_v17 }
 0x11d   : > { %v4259_v19 = vpop.permute.xlu1 %1547 }
 0x11e   : > { %5770 = vst [vmem:[#allocation23_spill] sm:$0xff] %v4259_v19 }
 0x121   : > { %v4261_v21 = vpop.permute.xlu1 %1643 }
 0x122   : > { %5771 = vst [vmem:[#allocation24_spill] sm:$0xff] %v4261_v21 }
 0x125   : > { %v4263_v22 = vpop.permute.xlu1 %1455 }
 0x126   : > { %5772 = vst [vmem:[#allocation25_spill] sm:$0xff] %v4263_v22 }
 0x129   : > { %v4265_v23 = vpop.permute.xlu1 %1100 }
 0x12a   : > { %5773 = vst [vmem:[#allocation26_spill] sm:$0xff] %v4265_v23 }
 0x12d   : > { %v4267_v24 = vpop.permute.xlu1 %1197 }
 0x12e   : > { %5774 = vst [vmem:[#allocation27_spill] sm:$0xff] %v4267_v24 }
 0x131   : > { %v4269_v26 = vpop.permute.xlu1 %1647 }
 0x132   : > { %5775 = vst [vmem:[#allocation28_spill] sm:$0xff] %v4269_v26 }
 0x135   : > { %v4271_v27 = vpop.permute.xlu1 %1459 }
 0x136   : > { %5776 = vst [vmem:[#allocation29_spill] sm:$0xff] %v4271_v27 }
 0x139   : > { %v4273_v28 = vpop.permute.xlu1 %1104 }
 0x13a   : > { %5777 = vst [vmem:[#allocation30_spill] sm:$0xff] %v4273_v28 }
 0x1c5   : > { %v3503_v37 = vpop.f32.mrb[0].mxu1 }
 0x1c6   : > { %3786 = vrsqrt.f32 %v3503_v37  ;;  %v674_v38 = vpop.f32.mrb[1].mxu1  ;;  %v4275_v37 = vpop.permute.xlu1 %1201 }
 0x1c7   : > { %3788 = vrsqrt.f32 %v674_v38  ;;  %5778 = vst [vmem:[#allocation31_spill] sm:$0xff] %v4275_v37 }
 0x1c9   : > { %v3506_v40 = vpop.f32.mrb[2].mxu1 }
 0x1ca   : > { %3790 = vrsqrt.f32 %v3506_v40  ;;  %v684_v41 = vpop.f32.mrb[3].mxu1  ;;  %v4277_v38 = vpop.permute.xlu1 %1651 }
 0x1cb   : > { %3792 = vrsqrt.f32 %v684_v41  ;;  %5779 = vst [vmem:[#allocation32_spill] sm:$0xff] %v4277_v38 }
 0x1cd   : > { %v3509_v42 = vpop.f32.mrb[4].mxu1 }
 0x1ce   : > { %3794 = vrsqrt.f32 %v3509_v42  ;;  %v694_v44 = vpop.f32.mrb[5].mxu1  ;;  %v4279_v40 = vpop.permute.xlu1 %1367 }
 0x1cf   : > { %3796 = vrsqrt.f32 %v694_v44  ;;  %5780 = vst [vmem:[#allocation33_spill] sm:$0xff] %v4279_v40 }
 0x1d0   : > { %v3787_v46 = vpop.eup %3786 }
 0x1d1   : > { %v3789_v47 = vpop.eup %3788  ;;  %v3512_v48 = vpop.f32.mrb[6].mxu1  ;;  %v722_v51 = vmin.f32 %v3787_v46, 1e+12 }
 0x1d2   : > { %v721_v49 = vmin.f32 %v3789_v47, 1e+12  ;;  %3798 = vrsqrt.f32 %v3512_v48  ;;  %v704_v50 = vpop.f32.mrb[7].mxu1  ;;  %v4281_v41 = vpop.permute.xlu1 %1005 }
 0x1d3   : > { %3800 = vrsqrt.f32 %v704_v50  ;;  %5781 = vst [vmem:[#allocation34_spill] sm:$0xff] %v4281_v41 }
 0x1d4   : > { %v3791_v52 = vpop.eup %3790  ;;  %3517 = vmatprep.mubr.msk.f32.mxu0 %vm738_vm2, %v721_v49 }
 0x1d5   : > { %v3793_v54 = vpop.eup %3792  ;;  %v724_v55 = vmin.f32 %v3791_v52, 1e+12  ;;  %3518 = vmatmul.mubr.msk.f32.vlgmr.msra.gmra.mrb[8].mxu0 %vm738_vm2, %v722_v51  ;;  %v891_v52 = vrot.slane %v3989_v43, 4 }
 0x1d6   : > { %v723_v56 = vmin.f32 %v3793_v54, 1e+12  ;;  %v4283_v42 = vpop.permute.xlu1 %1010 }
 0x1d7   : > { %5782 = vst [vmem:[#allocation35_spill] sm:$0xff] %v4283_v42 }
 0x1d8   : > { %v3795_v57 = vpop.eup %3794  ;;  %3520 = vmatprep.mubr.msk.f32.mxu0 %vm738_vm2, %v723_v56  ;;  %v892_v56 = vadd.f32 %v891_v52, %v3989_v43  ;;  %v995_v52 = vld [vmem:[#allocation2 + $0x7] sm:$0xff] }
 0x1d9   : > { %v3797_v58 = vpop.eup %3796  ;;  %v726_v59 = vmin.f32 %v3795_v57, 1e+12  ;;  %3521 = vmatmul.mubr.msk.f32.gmra.mrb[10].mxu0 %vm738_vm2, %v724_v55  ;;  %v4302_v55 = vpop.permute.xlu0 %1435 }
 0x1da   : > { %v725_v60 = vmin.f32 %v3797_v58, 1e+12  ;;  %v4285_v44 = vpop.permute.xlu1 %1375  ;;  %5786 = vst [vmem:[#allocation39_spill] sm:$0xff] %v4302_v55  ;;  %v893_v57 = vrot.slane %v892_v56, 2 }
 0x1dc   : > { %v3799_v62 = vpop.eup %3798  ;;  %3523 = vmatprep.mubr.msk.f32.mxu0 %vm738_vm2, %v725_v60  ;;  %v894_v60 = vadd.f32 %v893_v57, %v892_v56 }
 0x1dd   : > { %v3801_v63 = vpop.eup %3800  ;;  %v728_v1 = vmin.f32 %v3799_v62, 1e+12  ;;  %3524 = vmatmul.mubr.msk.f32.gmra.mrb[12].mxu0 %vm738_vm2, %v726_v59  ;;  %v4307_v59 = vpop.permute.xlu0 %1443 }
 0x1de   : > { %v727_v3 = vmin.f32 %v3801_v63, 1e+12  ;;  %v4287_v46 = vpop.permute.xlu1 %1379  ;;  %5788 = vst [vmem:[#allocation41_spill] sm:$0xff] %v4307_v59 }
 0x1e0   : > { %3526 = vmatprep.mubr.msk.f32.mxu0 %vm738_vm2, %v727_v3 }
 0x1e1   : > { %3527 = vmatmul.mubr.msk.f32.gmra.mrb[14].mxu0 %vm738_vm2, %v728_v1  ;;  %v4311_v63 = vpop.permute.xlu0 %1451  ;;  %v895_v1 = vrot.slane %v894_v60, 1 }
 0x1e2   : > { %v4289_v47 = vpop.permute.xlu1 %1025  ;;  %5790 = vst [vmem:[#allocation43_spill] sm:$0xff] %v4311_v63 }
 0x1e3   : > { %v896_v3 = vadd.f32 %v895_v1, %v894_v60  ;;  %v1043_v60 = vmul.f32 %v4281_v41, %v995_v52 }
 0x1e5   : > { %v4318_v28 = vpop.permute.xlu0 %1177  ;;  %v4320_v21 = vmul.f32 0.015625, %v896_v3 }
 0x1e6   : > { %v4291_v48 = vpop.permute.xlu1 %1387  ;;  %5792 = vst [vmem:[#allocation45_spill] sm:$0xff] %v4318_v28 }
 0x1e7   : > { %5783 = vst [vmem:[#allocation36_spill] sm:$0xff] %v4291_v48 }
 0x1e9   : > { %v4333_v3 = vpop.permute.xlu0 %1185 }
 0x1ea   : > { %v4293_v49 = vpop.permute.xlu1 %1030  ;;  %5796 = vst [vmem:[#allocation49_spill] sm:$0xff] %v4333_v3  ;;  %v1823_v3 = vld [vmem:[%s5680_s8 + $0xc8] sm:$0xff] }
 0x1ed   : > { %v4361_v17 = vpop.permute.xlu0 %1193 }
 0x1ee   : > { %v4295_v50 = vpop.permute.xlu1 %1719  ;;  %5798 = vst [vmem:[#allocation51_spill] sm:$0xff] %v4361_v17  ;;  %v1799_v17 = vld [vmem:[%s5680_s8 + $0x8] sm:$0xff] }
 0x1ef   : > { %5784 = vst [vmem:[#allocation37_spill] sm:$0xff] %v4295_v50 }
 0x1f2   : > { %v4297_v51 = vpop.permute.xlu1 %1035 }
 0x1f6   : > { %v4300_v54 = vpop.permute.xlu1 %1395 }
 0x1f7   : > { %5785 = vst [vmem:[#allocation38_spill] sm:$0xff] %v4300_v54 }
 0x1fa   : > { %v4305_v58 = vpop.permute.xlu1 %1731 }
 0x1fb   : > { %5787 = vst [vmem:[#allocation40_spill] sm:$0xff] %v4305_v58 }
 0x1fe   : > { %v4309_v62 = vpop.permute.xlu1 %1735 }
 0x1ff   : > { %5789 = vst [vmem:[#allocation42_spill] sm:$0xff] %v4309_v62 }
 0x202   : > { %v4316_v37 = vpop.permute.xlu1 %1739 }
 0x203   : > { %5791 = vst [vmem:[#allocation44_spill] sm:$0xff] %v4316_v37 }
 0x206   : > { %v4329_v19 = vpop.permute.xlu1 %1743 }
 0x207   : > { %5795 = vst [vmem:[#allocation48_spill] sm:$0xff] %v4329_v19 }
 0x2a8   : > { %v3519_v43 = vpop.f32.mrb[8].mxu0 }
 0x2a9   : > { %v835_v38 = vadd.f32 %v3519_v43, %v3271_v25  ;;  %v829_v22 = vpop.f32.mrb[9].mxu0 }
 0x2aa   : > { %v830_v56 = vadd.f32 %v3271_v25, %v829_v22  ;;  %v1067_v22 = vld [vmem:[#allocation2 + $0x8] sm:$0xff] }
 0x2ab   : > { %v4323_v57 = vmul.f32 %v835_v38, %v4090_v0 }
 0x2ac   : > { %v4327_v1 = vmul.f32 %v830_v56, %v4092_v2  ;;  %v3522_v63 = vpop.f32.mrb[10].mxu0 }
 0x2ad   : > { %5793 = vst [vmem:[#allocation46_spill] sm:$0xff] %v4323_v57  ;;  %v845_v27 = vadd.f32 %v3522_v63, %v3271_v25  ;;  %925 = vrot.lane.b32.xlu0 %v4323_v57, %s3838_s19  ;;  %v839_v43 = vpop.f32.mrb[11].mxu0  ;;  %v1107_v63 = vmul.f32 %v4202_v30, %v1067_v22  ;;  %v4359_v30 = vpop.permute.xlu1 %1747 }
 0x2ae   : > { %5794 = vst [vmem:[#allocation47_spill] sm:$0xff] %v4327_v1  ;;  %v4337_v0 = vadd.f32 %v4320_v21, %v4327_v1  ;;  %v840_v38 = vadd.f32 %v3271_v25, %v839_v43  ;;  %5797 = vst [vmem:[#allocation50_spill] sm:$0xff] %v4359_v30 }
 0x2af   : > { %v4340_v2 = vmul.f32 %v845_v27, %v4099_v6  ;;  %v1830_v6 = vld [vmem:[%s5680_s8 + $0x100] sm:$0xff]  ;;  %v1831_v27 = vld [vmem:[%s5680_s8 + $0x108] sm:$0xff] }
 0x2b0   : > { %v3525_v52 = vpop.f32.mrb[12].mxu0  ;;  %v1051_v56 = vmul.f32 %v1043_v60, %v4337_v0  ;;  %v4349_v26 = vmul.f32 %v840_v38, %v4101_v8  ;;  %v1115_v22 = vmul.f32 %v1107_v63, %v4337_v0  ;;  %v3667_v8 = vpack.c.bf16 %v1831_v27, %v1830_v6 }
 0x2b1   : > { %923 = vrot.lane.b32.xlu0 %v4327_v1, %s3838_s19  ;;  %929 = vrot.lane.b32.xlu1 %v4340_v2, %s3838_s19  ;;  %v849_v41 = vpop.f32.mrb[13].mxu0  ;;  %v855_v60 = vadd.f32 %v3525_v52, %v3271_v25  ;;  %v1717_v1 = vld [vmem:[#allocation2 + $0x51] sm:$0xff] }
 0x2b2   : > { %1059 = vst.msk [vmem:[#allocation4] sm:$0xff] %vm433_vm0, %v1051_v56  ;;  %v850_v43 = vadd.f32 %v3271_v25, %v849_v41  ;;  %v1757_v52 = vmul.f32 %v4359_v30, %v1717_v1  ;;  %3668 = vmatprep.subr.bf16.mxu1 %v3667_v8  ;;  %v1833_v1 = vld [vmem:[%s5680_s8 + $0x118] sm:$0xff] }
 0x2b3   : > { %v4368_v41 = vmul.f32 %v855_v60, %v4111_v12  ;;  %3670 = vmatpush3.bf16.msra.mxu1 %v3667_v8 }
 0x2b4   : > { %v3528_v38 = vpop.f32.mrb[14].mxu0  ;;  %v4371_v63 = vmul.f32 %v850_v43, %v4113_v14  ;;  %v4390_v14 = vpop.permute.xlu0 %1527 }
 0x2b5   : > { %v865_v56 = vadd.f32 %v3528_v38, %v3271_v25  ;;  %1131 = vrot.lane.b32.xlu1 %v1115_v22, %s3839_s26  ;;  %927 = vrot.lane.b32.xlu0 %v4349_v26, %s3838_s19  ;;  %v859_v16 = vpop.f32.mrb[15].mxu0  ;;  %v1832_v22 = vld [vmem:[%s5680_s8 + $0x110] sm:$0xff]  ;;  %5801 = vst [vmem:[#allocation54_spill] sm:$0xff] %v4390_v14 }
 0x2b6   : > { %v860_v27 = vadd.f32 %v3271_v25, %v859_v16  ;;  %v3671_v38 = vpack.c.bf16 %v1833_v1, %v1832_v22 }
 0x2b7   : > { %v4374_v6 = vmul.f32 %v865_v56, %v4122_v18 }
 0x2b8   : > { %3672 = vmatprep.subr.bf16.mxu1 %v3671_v38  ;;  %v4393_v18 = vmul.f32 %v860_v27, %v4124_v20  ;;  %v4401_v16 = vpop.permute.xlu0 %1535 }
 0x2b9   : > { %5799 = vst [vmem:[#allocation52_spill] sm:$0xff] %v4374_v6  ;;  %v4384_v12 = vadd.f32 %v4320_v21, %v4374_v6  ;;  %933 = vrot.lane.b32.xlu1 %v4368_v41, %s3838_s19  ;;  %931 = vrot.lane.b32.xlu0 %v4371_v63, %s3838_s19  ;;  %5802 = vst [vmem:[#allocation55_spill] sm:$0xff] %v4401_v16 }
 0x2ba   : > { %3674 = vmatpush3.bf16.msra.mxu1 %v3671_v38 }
 0x2bb   : > { %5800 = vst [vmem:[#allocation53_spill] sm:$0xff] %v4384_v12  ;;  %v1765_v25 = vmul.f32 %v1757_v52, %v4384_v12  ;;  %v4500_v12 = vadd.f32 %v4320_v21, %v4323_v57 }
 0x2bc   : > { %v4403_v60 = vpop.permute.xlu0 %1543 }
 0x2bd   : > { %1773 = vst.msk [vmem:[#allocation4 + $0xb8] sm:$0xff] %vm433_vm0, %v1765_v25  ;;  %937 = vrot.lane.b32.xlu1 %v4374_v6, %s3838_s19  ;;  %935 = vrot.lane.b32.xlu0 %v4393_v18, %s3838_s19  ;;  %5803 = vst [vmem:[#allocation56_spill] sm:$0xff] %v4403_v60 }
 0x2c0   : > { %v4405_v43 = vpop.permute.xlu0 %1551 }
 0x2c1   : > { %5804 = vst [vmem:[#allocation57_spill] sm:$0xff] %v4405_v43  ;;  %v1814_v43 = vld [vmem:[%s5680_s8 + $0x80] sm:$0xff] }
 0x2c4   : > { %v4407_v8 = vpop.permute.xlu0 %1555 }
 0x2c5   : > { %5805 = vst [vmem:[#allocation58_spill] sm:$0xff] %v4407_v8 }
 0x2c8   : > { %v4409_v20 = vpop.permute.xlu0 %1274 }
 0x2cc   : > { %v4411_v56 = vpop.permute.xlu0 %1282 }
 0x2cd   : > { %5806 = vst [vmem:[#allocation59_spill] sm:$0xff] %v4411_v56 }
 0x2d0   : > { %v4413_v52 = vpop.permute.xlu0 %1290 }
 0x2d1   : > { %5807 = vst [vmem:[#allocation60_spill] sm:$0xff] %v4413_v52 }
 0x2d4   : > { %v4415_v27 = vpop.permute.xlu0 %1294 }
 0x2d5   : > { %5808 = vst [vmem:[#allocation61_spill] sm:$0xff] %v4415_v27  ;;  %v1798_v27 = vld [vmem:[%s5680_s8] sm:$0xff] }
 0x2d6   : > { %v3637_v60 = vpack.c.bf16 %v1799_v17, %v1798_v27  ;;  %v1801_v17 = vld [vmem:[%s5680_s8 + $0x18] sm:$0xff]  ;;  %v1819_v27 = vld [vmem:[%s5680_s8 + $0xa8] sm:$0xff] }
 0x2d8   : > { %v4417_v22 = vpop.permute.xlu0 %1298 }
 0x2d9   : > { %5809 = vst [vmem:[#allocation62_spill] sm:$0xff] %v4417_v22  ;;  %v1815_v22 = vld [vmem:[%s5680_s8 + $0x88] sm:$0xff] }
 0x2da   : > { %v3635_v52 = vpack.c.bf16 %v1815_v22, %v1814_v43  ;;  %v1800_v43 = vld [vmem:[%s5680_s8 + $0x10] sm:$0xff]  ;;  %v3639_v22 = vpack.c.bf16 %v1817_v15, %v1816_v13  ;;  %v1803_v15 = vld [vmem:[%s5680_s8 + $0x28] sm:$0xff] }
 0x2dc   : > { %v4419_v1 = vpop.permute.xlu0 %1371  ;;  %3636 = vmatprep.subr.bf16.mxu0 %v3635_v52  ;;  %v3641_v52 = vpack.c.bf16 %v1801_v17, %v1800_v43  ;;  %v1820_v17 = vld [vmem:[%s5680_s8 + $0xb0] sm:$0xff] }
 0x2dd   : > { %5810 = vst [vmem:[#allocation63_spill] sm:$0xff] %v4419_v1  ;;  %3638 = vmatpush3.bf16.msra.mxu0 %v3637_v60  ;;  %v1818_v60 = vld [vmem:[%s5680_s8 + $0xa0] sm:$0xff] }
 0x2de   : > { %3640 = vmatprep.subr.bf16.mxu0 %v3639_v22  ;;  %v3643_v13 = vpack.c.bf16 %v1819_v27, %v1818_v60  ;;  %v3645_v22 = vpack.c.bf16 %v1803_v15, %v1802_v10  ;;  %v1804_v60 = vld [vmem:[%s5680_s8 + $0x30] sm:$0xff]  ;;  %v1805_v10 = vld [vmem:[%s5680_s8 + $0x38] sm:$0xff] }
 0x2e0   : > { %v4421_v38 = vpop.permute.xlu0 %1383 }
 0x2e1   : > { %3642 = vmatpush3.bf16.msra.mxu0 %v3641_v52  ;;  %v1821_v52 = vld [vmem:[%s5680_s8 + $0xb8] sm:$0xff] }
 0x2e2   : > { %3644 = vmatprep.subr.bf16.mxu0 %v3643_v13  ;;  %v3647_v56 = vpack.c.bf16 %v1821_v52, %v1820_v17  ;;  %v3649_v13 = vpack.c.bf16 %v1805_v10, %v1804_v60  ;;  %v1806_v17 = vld [vmem:[%s5680_s8 + $0x40] sm:$0xff]  ;;  %v1807_v52 = vld [vmem:[%s5680_s8 + $0x48] sm:$0xff] }
 0x2e3   : > { %v3653_v60 = vpack.c.bf16 %v1807_v52, %v1806_v17  ;;  %v1809_v52 = vld [vmem:[%s5680_s8 + $0x58] sm:$0xff] }
 0x2e4   : > { %v4423_v25 = vpop.permute.xlu0 %1391 }
 0x2e5   : > { %5811 = vst [vmem:[#allocation64_spill] sm:$0xff] %v4423_v25  ;;  %3646 = vmatpush3.bf16.msra.mxu0 %v3645_v22 }
 0x2e6   : > { %3648 = vmatprep.subr.bf16.mxu0 %v3647_v56  ;;  %v3651_v56 = vpack.c.bf16 %v1823_v3, %v1822_v9  ;;  %v1824_v3 = vld [vmem:[%s5680_s8 + $0xd0] sm:$0xff] }
 0x2e8   : > { %v4425_v30 = vpop.permute.xlu0 %1723 }
 0x2e9   : > { %5812 = vst [vmem:[#allocation65_spill] sm:$0xff] %v4425_v30  ;;  %3650 = vmatpush3.bf16.msra.mxu0 %v3649_v13 }
 0x2ea   : > { %3652 = vmatprep.subr.bf16.mxu0 %v3651_v56 }
 0x2ec   : > { %v4427_v6 = vpop.permute.xlu0 %1727 }
 0x2ed   : > { %5813 = vst [vmem:[#allocation66_spill] sm:$0xff] %v4427_v6  ;;  %3654 = vmatpush3.bf16.msra.mxu0 %v3653_v60 }
 0x2f0   : > { %v4429_v8 = vpop.permute.xlu0 %1015 }
 0x2f1   : > { %5814 = vst [vmem:[#allocation67_spill] sm:$0xff] %v4429_v8 }
 0x2f4   : > { %v4443_v59 = vpop.permute.xlu0 %1020 }
 0x2f8   : > { %v4469_v43 = vpop.permute.xlu0 %1040 }
 0x2f9   : > { %5815 = vst [vmem:[#allocation68_spill] sm:$0xff] %v4469_v43 }
 0x31f   : > { %v926_v27 = vpop.permute.xlu0 %925 }
 0x320   : > { %948 = vst.msk [vmem:[#allocation2 + $0x18] sm:$0xff] %vm433_vm0, %v926_v27 }
 0x323   : > { %v924_v15 = vpop.permute.xlu0 %923  ;;  %v930_v22 = vpop.permute.xlu1 %929 }
 0x324   : > { %947 = vst.msk [vmem:[#allocation2 + $0x10] sm:$0xff] %vm433_vm0, %v924_v15  ;;  %950 = vst.msk [vmem:[#allocation2 + $0x28] sm:$0xff] %vm433_vm0, %v930_v22  ;;  %v1825_v15 = vld [vmem:[%s5680_s8 + $0xd8] sm:$0xff]  ;;  %v1808_v22 = vld [vmem:[%s5680_s8 + $0x50] sm:$0xff] }
 0x325   : > { %v3655_v56 = vpack.c.bf16 %v1825_v15, %v1824_v3  ;;  %v4525_v3 = vadd.f32 %v4320_v21, %v4349_v26 }
 0x327   : > { %v1132_v27 = vpop.permute.xlu1 %1131  ;;  %v928_v10 = vpop.permute.xlu0 %927  ;;  %v1614_v13 = vld [vmem:[#allocation2 + $0x18] sm:$0xff]  ;;  %3656 = vmatprep.subr.bf16.mxu0 %v3655_v56 }
 0x328   : > { %1156 = vst.msk [vmem:[#allocation4] sm:$0xff] %vm1155_vm3, %v1132_v27  ;;  %v1654_v9 = vmul.f32 %v4209_v32, %v1614_v13  ;;  %v1399_v17 = vmul.f32 %v1614_v13, %v4419_v1  ;;  %v1109_v27 = vmul.f32 %v1614_v13, %v4225_v45 }
 0x329   : > { %949 = vst.msk [vmem:[#allocation2 + $0x20] sm:$0xff] %vm433_vm0, %v928_v10  ;;  %v3657_v10 = vpack.c.bf16 %v1809_v52, %v1808_v22 }
 0x32a   : > { %v1662_v60 = vmul.f32 %v1654_v9, %v4337_v0  ;;  %v1407_v32 = vmul.f32 %v1399_v17, %v4500_v12  ;;  %v1117_v15 = vmul.f32 %v1109_v27, %v4525_v3 }
 0x32b   : > { %v934_v57 = vpop.permute.xlu1 %933  ;;  %v932_v43 = vpop.permute.xlu0 %931  ;;  %v1422_v7 = vld [vmem:[#allocation2 + $0x11] sm:$0xff]  ;;  %v1164_v25 = vld [vmem:[#allocation2 + $0x9] sm:$0xff]  ;;  %3658 = vmatpush3.bf16.msra.mxu0 %v3657_v10 }
 0x32c   : > { %v4521_v48 = vld [vmem:[#allocation2 + $0x17] sm:$0xff]  ;;  %952 = vst.msk [vmem:[#allocation2 + $0x38] sm:$0xff] %vm433_vm0, %v934_v57  ;;  %951 = vst.msk [vmem:[#allocation2 + $0x30] sm:$0xff] %vm433_vm0, %v932_v43  ;;  %1678 = vrot.lane.b32.xlu0 %v1662_v60, %s3838_s19  ;;  %v1462_v13 = vmul.f32 %v4199_v29, %v1422_v7  ;;  %v1204_v22 = vmul.f32 %v4205_v31, %v1164_v25  ;;  %v4537_v56 = vld [vmem:[#allocation2 + $0xf] sm:$0xff] }
 0x32d   : > { %1415 = vst.msk [vmem:[#allocation4 + $0x20] sm:$0xff] %vm433_vm0, %v1407_v32  ;;  %v1558_v17 = vmul.f32 %v4390_v14, %v4521_v48  ;;  %v4539_v57 = vld [vmem:[#allocation2 + $0x10] sm:$0xff]  ;;  %v1301_v25 = vmul.f32 %v4212_v33, %v4537_v56  ;;  %v4561_v14 = vld [vmem:[#allocation2 + $0x28] sm:$0xff] }
 0x32e   : > { %v1470_v9 = vmul.f32 %v1462_v13, %v4337_v0  ;;  %v1108_v13 = vmul.f32 %v4216_v34, %v4539_v57 }
 0x32f   : > { %v938_v60 = vpop.permute.xlu1 %937  ;;  %v936_v32 = vpop.permute.xlu0 %935 }
 0x330   : > { %v4541_v43 = vld [vmem:[#allocation2 + $0x19] sm:$0xff]  ;;  %v4543_v52 = vld [vmem:[#allocation2 + $0x21] sm:$0xff]  ;;  %954 = vst.msk [vmem:[#allocation2 + $0x48] sm:$0xff] %vm433_vm0, %v938_v60  ;;  %953 = vst.msk [vmem:[#allocation2 + $0x40] sm:$0xff] %vm433_vm0, %v936_v32  ;;  %1486 = vrot.lane.b32.xlu1 %v1470_v9, %s3839_s26  ;;  %1135 = vrot.lane.b32.xlu0 %v1117_v15, %s3839_s26  ;;  %v1566_v60 = vmul.f32 %v1558_v17, %v4337_v0  ;;  %v4569_v15 = vadd.f32 %v4320_v21, %v4340_v2 }
 0x331   : > { %v1750_v10 = vmul.f32 %v4295_v50, %v4541_v43  ;;  %v1751_v27 = vmul.f32 %v4425_v30, %v4543_v52  ;;  %v1212_v30 = vmul.f32 %v1204_v22, %v4337_v0  ;;  %v1656_v17 = vmul.f32 %v4233_v61, %v4561_v14 }
 0x332   : > { %v1116_v29 = vmul.f32 %v1108_v13, %v4500_v12 }
 0x333   : > { %v1758_v1 = vmul.f32 %v1750_v10, %v4337_v0  ;;  %v1759_v50 = vmul.f32 %v1751_v27, %v4500_v12  ;;  %v4563_v32 = vld [vmem:[#allocation2 + $0x29] sm:$0xff]  ;;  %v4565_v9 = vld [vmem:[#allocation2 + $0x31] sm:$0xff] }
 0x334   : > { %v1752_v10 = vmul.f32 %v4427_v6, %v4563_v32  ;;  %v1753_v22 = vmul.f32 %v4305_v58, %v4565_v9  ;;  %1228 = vrot.lane.b32.xlu1 %v1212_v30, %s3840_s28  ;;  %1582 = vrot.lane.b32.xlu0 %v1566_v60, %s3840_s28  ;;  %v4587_v6 = vadd.f32 %v4320_v21, %v4368_v41 }
 0x335   : > { %1767 = vst.msk [vmem:[#allocation4 + $0x28] sm:$0xff] %vm433_vm0, %v1759_v50  ;;  %1766 = vst.msk [vmem:[#allocation4 + $0x10] sm:$0xff] %vm433_vm0, %v1758_v1  ;;  %v1309_v1 = vmul.f32 %v1301_v25, %v4337_v0  ;;  %v4591_v30 = vadd.f32 %v4320_v21, %v4371_v63  ;;  %v4595_v60 = vadd.f32 %v4320_v21, %v4393_v18 }
 0x336   : > { %v1760_v27 = vmul.f32 %v1752_v10, %v4525_v3  ;;  %v1761_v50 = vmul.f32 %v1753_v22, %v4569_v15  ;;  %v1205_v25 = vmul.f32 %v1422_v7, %v4318_v28  ;;  %v1111_v7 = vmul.f32 %v4561_v14, %v4249_v11 }
 0x337   : > { %v4597_v58 = vld [vmem:[#allocation2 + $0x49] sm:$0xff]  ;;  %v4599_v10 = vld [vmem:[#allocation2 + $0x39] sm:$0xff]  ;;  %v4601_v22 = vld [vmem:[#allocation2 + $0x41] sm:$0xff] }
 0x338   : > { %1768 = vst.msk [vmem:[#allocation4 + $0x40] sm:$0xff] %vm433_vm0, %v1760_v27  ;;  %1769 = vst.msk [vmem:[#allocation4 + $0x58] sm:$0xff] %vm433_vm0, %v1761_v50  ;;  %v1756_v13 = vmul.f32 %v4329_v19, %v4597_v58  ;;  %v1754_v61 = vmul.f32 %v4309_v62, %v4599_v10  ;;  %v1755_v21 = vmul.f32 %v4316_v37, %v4601_v22  ;;  %1325 = vrot.lane.b32.xlu1 %v1309_v1, %s3838_s19  ;;  %v1810_v37 = vld [vmem:[%s5680_s8 + $0x60] sm:$0xff] }
 0x339   : > { %1133 = vrot.lane.b32.xlu0 %v1116_v29, %s3839_s26  ;;  %v1664_v19 = vmul.f32 %v1656_v17, %v4525_v3  ;;  %v1213_v62 = vmul.f32 %v1205_v25, %v4500_v12  ;;  %v1302_v1 = vmul.f32 %v4521_v48, %v4409_v20  ;;  %v1119_v29 = vmul.f32 %v1111_v7, %v4591_v30  ;;  %v4633_v17 = vld [vmem:[#allocation2 + $0x1f] sm:$0xff] }
 0x33a   : > { %v1764_v27 = vmul.f32 %v1756_v13, %v4595_v60  ;;  %v1762_v50 = vmul.f32 %v1754_v61, %v4591_v30  ;;  %v1763_v33 = vmul.f32 %v1755_v21, %v4587_v6  ;;  %v1463_v61 = vmul.f32 %v4541_v43, %v4302_v55 }
 0x33b   : > { %v1310_v13 = vmul.f32 %v1302_v1, %v4500_v12  ;;  %v1206_v7 = vmul.f32 %v4541_v43, %v4228_v53 }
 0x33c   : > { %v1776_v45 = vld [vmem:[#allocation4 + $0x10] sm:$0xff]  ;;  %v1779_v28 = vld [vmem:[#allocation4 + $0x28] sm:$0xff]  ;;  %1772 = vst.msk [vmem:[#allocation4 + $0xa0] sm:$0xff] %vm433_vm0, %v1764_v27  ;;  %1770 = vst.msk [vmem:[#allocation4 + $0x70] sm:$0xff] %vm433_vm0, %v1762_v50  ;;  %1682 = vrot.lane.b32.xlu1 %v1664_v19, %s3838_s19 }
 0x33d   : > { %1771 = vst.msk [vmem:[#allocation4 + $0x88] sm:$0xff] %vm433_vm0, %v1763_v33  ;;  %3537 = vmatprep.mubr.msk.f32.mxu1 %vm433_vm0, %v1776_v45  ;;  %1230 = vrot.lane.b32.xlu0 %v1213_v62, %s3840_s28  ;;  %v1464_v33 = vmul.f32 %v4543_v52, %v4223_v39  ;;  %v1615_v45 = vld [vmem:[#allocation2 + $0x20] sm:$0xff]  ;;  %v1559_v62 = vmul.f32 %v4219_v35, %v4633_v17 }
 0x33e   : > { %3538 = vmatmul.mubr.msk.f32.vlgmr.msra.gmra.mrb[8].mxu1 %vm433_vm0, %v1779_v28  ;;  %v4642_v19 = vld [vmem:[#allocation2 + $0x27] sm:$0xff]  ;;  %v1471_v28 = vmul.f32 %v1463_v61, %v4500_v12  ;;  %v1655_v27 = vmul.f32 %v4221_v36, %v1615_v45  ;;  %v1303_v61 = vmul.f32 %v4633_v17, %v4238_v4  ;;  %v1398_v39 = vmul.f32 %v4279_v40, %v4539_v57  ;;  %v1797_v57 = vld [vmem:[#allocation4 + $0xb8] sm:$0xff]  ;;  %v4712_v40 = vld [vmem:[#allocation2 + $0x2f] sm:$0xff] }
 0x33f   : > { %v1782_v25 = vld [vmem:[#allocation4 + $0x40] sm:$0xff]  ;;  %v1785_v21 = vld [vmem:[#allocation4 + $0x58] sm:$0xff]  ;;  %v1472_v50 = vmul.f32 %v1464_v33, %v4525_v3  ;;  %v1560_v43 = vmul.f32 %v4401_v16, %v4642_v19  ;;  %v1827_v33 = vld [vmem:[%s5680_s8 + $0xe8] sm:$0xff]  ;;  %v1567_v36 = vmul.f32 %v1559_v62, %v4500_v12  ;;  %v1045_v35 = vmul.f32 %v4521_v48, %v4429_v8 }
 0x340   : > { %3540 = vmatprep.mubr.msk.f32.mxu1 %vm433_vm0, %v1782_v25  ;;  %1139 = vrot.lane.b32.xlu1 %v1119_v29, %s3839_s26  ;;  %v4651_v25 = vld [vmem:[#allocation2 + $0x38] sm:$0xff]  ;;  %v1811_v16 = vld [vmem:[%s5680_s8 + $0x68] sm:$0xff]  ;;  %v1044_v62 = vmul.f32 %v4537_v56, %v4283_v42  ;;  %v1311_v48 = vmul.f32 %v1303_v61, %v4525_v3  ;;  %v1047_v11 = vmul.f32 %v4642_v19, %v4289_v47 }
 0x341   : > { %1327 = vrot.lane.b32.xlu0 %v1310_v13, %s3838_s19  ;;  %v1210_v13 = vmul.f32 %v4599_v10, %v4267_v24  ;;  %v1828_v24 = vld [vmem:[%s5680_s8 + $0xf0] sm:$0xff]  ;;  %v1568_v56 = vmul.f32 %v1560_v43, %v4525_v3  ;;  %v3661_v42 = vpack.c.bf16 %v1811_v16, %v1810_v37  ;;  %v1053_v55 = vmul.f32 %v1045_v35, %v4525_v3  ;;  %v4720_v16 = vld [vmem:[#allocation2 + $0x48] sm:$0xff] }
 0x342   : > { %3541 = vmatmul.mubr.msk.f32.gmra.mrb[10].mxu1 %vm433_vm0, %v1785_v21  ;;  %v1826_v21 = vld [vmem:[%s5680_s8 + $0xe0] sm:$0xff]  ;;  %v4708_v8 = vld [vmem:[#allocation2 + $0x37] sm:$0xff]  ;;  %v1052_v61 = vmul.f32 %v1044_v62, %v4500_v12  ;;  %v1400_v37 = vmul.f32 %v1615_v45, %v4285_v44 }
 0x343   : > { %v1788_v1 = vld [vmem:[#allocation4 + $0x70] sm:$0xff]  ;;  %1061 = vst.msk [vmem:[#allocation4 + $0x30] sm:$0xff] %vm433_vm0, %v1053_v55  ;;  %v1049_v35 = vmul.f32 %v4708_v8, %v4297_v51  ;;  %v1055_v55 = vmul.f32 %v1047_v11, %v4591_v30  ;;  %v5816_v62 = vld [vmem:[#allocation36_spill] sm:$0xff] }
 0x344   : > { %v1791_v29 = vld [vmem:[#allocation4 + $0x88] sm:$0xff]  ;;  %1488 = vrot.lane.b32.xlu1 %v1471_v28, %s3839_s26  ;;  %3543 = vmatprep.mubr.msk.f32.mxu1 %vm433_vm0, %v1788_v1  ;;  %v1794_v28 = vld [vmem:[#allocation4 + $0xa0] sm:$0xff]  ;;  %v4670_v1 = vmul.f32 %v1210_v13, %v4595_v60  ;;  %v1113_v13 = vmul.f32 %v4265_v23, %v4651_v25  ;;  %v1813_v23 = vld [vmem:[%s5680_s8 + $0x78] sm:$0xff]  ;;  %1060 = vst.msk [vmem:[#allocation4 + $0x18] sm:$0xff] %vm433_vm0, %v1052_v61 }
 0x345   : > { %1490 = vrot.lane.b32.xlu0 %v1472_v50, %s3839_s26  ;;  %v1214_v50 = vmul.f32 %v1206_v7, %v4525_v3  ;;  %v1829_v7 = vld [vmem:[%s5680_s8 + $0xf8] sm:$0xff]  ;;  %1063 = vst.msk [vmem:[#allocation4 + $0x60] sm:$0xff] %vm433_vm0, %v1055_v55  ;;  %v5822_v55 = vld [vmem:[#allocation49_spill] sm:$0xff] }
 0x346   : > { %3544 = vmatmul.mubr.msk.f32.gmra.mrb[12].mxu1 %vm433_vm0, %v1791_v29  ;;  %v1663_v29 = vmul.f32 %v1655_v27, %v4500_v12  ;;  %v1812_v27 = vld [vmem:[%s5680_s8 + $0x70] sm:$0xff]  ;;  %v3663_v43 = vpack.c.bf16 %v1829_v7, %v1828_v24  ;;  %v1401_v24 = vmul.f32 %v4561_v14, %v4287_v46  ;;  %v1048_v12 = vmul.f32 %v4712_v40, %v4293_v49  ;;  %v5817_v7 = vld [vmem:[#allocation64_spill] sm:$0xff] }
 0x347   : > { %3546 = vmatprep.mubr.msk.f32.mxu1 %vm433_vm0, %v1794_v28  ;;  %v3659_v28 = vpack.c.bf16 %v1827_v33, %v1826_v21  ;;  %v1110_v21 = vmul.f32 %v1615_v45, %v4241_v5  ;;  %v4706_v33 = vld [vmem:[#allocation2 + $0x30] sm:$0xff]  ;;  %v3665_v4 = vpack.c.bf16 %v1813_v23, %v1812_v27 }
 0x348   : > { %1584 = vrot.lane.b32.xlu1 %v1567_v36, %s3840_s28  ;;  %v1406_v36 = vmul.f32 %v1398_v39, %v4337_v0  ;;  %v1046_v39 = vmul.f32 %v4633_v17, %v4443_v59  ;;  %v1402_v23 = vmul.f32 %v4706_v33, %v4421_v38  ;;  %v4736_v0 = vld [vmem:[#allocation2 + $0x3f] sm:$0xff]  ;;  %v1057_v17 = vmul.f32 %v1049_v35, %v4595_v60 }
 0x349   : > { %1232 = vrot.lane.b32.xlu0 %v1214_v50, %s3840_s28  ;;  %3660 = vmatprep.subr.bf16.mxu0 %v3659_v28  ;;  %v4722_v50 = vld [vmem:[#allocation2 + $0x40] sm:$0xff]  ;;  %v1056_v11 = vmul.f32 %v1048_v12, %v4587_v6  ;;  %v1403_v28 = vmul.f32 %v5816_v62, %v4651_v25  ;;  %v5823_v12 = vld [vmem:[#allocation16_spill] sm:$0xff] }
 0x34a   : > { %3547 = vmatmul.mubr.msk.f32.gmra.mrb[14].mxu1 %vm433_vm0, %v1797_v57  ;;  %1414 = vst.msk [vmem:[#allocation4 + $0x8] sm:$0xff] %vm433_vm0, %v1406_v36  ;;  %3662 = vmatpush3.bf16.msra.mxu0 %v3661_v42  ;;  %v1408_v42 = vmul.f32 %v1400_v37, %v4525_v3  ;;  %v1054_v45 = vmul.f32 %v1046_v39, %v4569_v15  ;;  %v5818_v57 = vmov 0.0   ;;  %v5819_v36 = vld [vmem:[#allocation15_spill] sm:$0xff]  ;;  %1065 = vst.msk [vmem:[#allocation4 + $0x90] sm:$0xff] %vm433_vm0, %v1057_v17 }
 0x34b   : > { %3664 = vmatprep.subr.bf16.mxu0 %v3663_v43  ;;  %v1410_v14 = vmul.f32 %v1402_v23, %v4591_v30  ;;  %v1405_v3 = vmul.f32 %v4720_v16, %v4300_v54  ;;  %v1404_v27 = vmul.f32 %v4722_v50, %v5817_v7  ;;  %2266 = vmatprep.mubr.f32.mxu1 %v5818_v57  ;;  %v5820_v43 = vld [vmem:[#allocation68_spill] sm:$0xff] }
 0x34c   : > { %1680 = vrot.lane.b32.xlu1 %v1663_v29, %s3838_s19  ;;  %v1409_v29 = vmul.f32 %v1401_v24, %v4569_v15  ;;  %1416 = vst.msk [vmem:[#allocation4 + $0x38] sm:$0xff] %vm433_vm0, %v1408_v42  ;;  %v1561_v61 = vmul.f32 %v5819_v36, %v4712_v40  ;;  %1062 = vst.msk [vmem:[#allocation4 + $0x48] sm:$0xff] %vm433_vm0, %v1054_v45  ;;  %v1050_v37 = vmul.f32 %v4736_v0, %v5820_v43 }
 0x34d   : > { %1329 = vrot.lane.b32.xlu0 %v1311_v48, %s3838_s19  ;;  %v1121_v48 = vmul.f32 %v1113_v13, %v4595_v60  ;;  %1418 = vst.msk [vmem:[#allocation4 + $0x68] sm:$0xff] %vm433_vm0, %v1410_v14  ;;  %1064 = vst.msk [vmem:[#allocation4 + $0x78] sm:$0xff] %vm433_vm0, %v1056_v11  ;;  %v5821_v13 = vld [vmem:[#allocation53_spill] sm:$0xff]  ;;  %v1411_v39 = vmul.f32 %v1403_v28, %v4587_v6  ;;  %v1118_v24 = vmul.f32 %v1110_v21, %v4569_v15  ;;  %v5826_v28 = vld [vmem:[#allocation20_spill] sm:$0xff] }
 0x34e   : > { %3666 = vmatpush3.bf16.msra.mxu0 %v3665_v4  ;;  %1417 = vst.msk [vmem:[#allocation4 + $0x50] sm:$0xff] %vm433_vm0, %v1409_v29  ;;  %v1413_v35 = vmul.f32 %v1405_v3, %v5821_v13  ;;  %v1412_v4 = vmul.f32 %v1404_v27, %v4595_v60  ;;  %v1058_v23 = vmul.f32 %v1050_v37, %v5821_v13  ;;  %v5825_v29 = vld [vmem:[#allocation17_spill] sm:$0xff] }
 0x34f   : > { %v1207_v42 = vmul.f32 %v4543_v52, %v5822_v55  ;;  %1419 = vst.msk [vmem:[#allocation4 + $0x80] sm:$0xff] %vm433_vm0, %v1411_v39  ;;  %v1657_v17 = vmul.f32 %v5823_v12, %v4706_v33  ;;  %v5824_v52 = vld [vmem:[#allocation59_spill] sm:$0xff]  ;;  %v1466_v11 = vmul.f32 %v4565_v9, %v5825_v29  ;;  %v1658_v27 = vmul.f32 %v5826_v28, %v4651_v25 }
 0x350   : > { %1586 = vrot.lane.b32.xlu1 %v1568_v56, %s3840_s28  ;;  %1421 = vst.msk [vmem:[#allocation4 + $0xb0] sm:$0xff] %vm433_vm0, %v1413_v35  ;;  %1420 = vst.msk [vmem:[#allocation4 + $0x98] sm:$0xff] %vm433_vm0, %v1412_v4  ;;  %v1569_v56 = vmul.f32 %v1561_v61, %v4569_v15  ;;  %v1304_v45 = vmul.f32 %v4642_v19, %v5824_v52  ;;  %v5827_v61 = vld [vmem:[#allocation19_spill] sm:$0xff]  ;;  %v5828_v35 = vld [vmem:[#allocation41_spill] sm:$0xff] }
 0x351   : > { %1143 = vrot.lane.b32.xlu0 %v1121_v48, %s3839_s26  ;;  %1066 = vst.msk [vmem:[#allocation4 + $0xa8] sm:$0xff] %vm433_vm0, %v1058_v23  ;;  %v1215_v21 = vmul.f32 %v1207_v42, %v4569_v15  ;;  %v1665_v14 = vmul.f32 %v1657_v17, %v4569_v15  ;;  %v1474_v48 = vmul.f32 %v1466_v11, %v4591_v30  ;;  %v5829_v23 = vld [vmem:[#allocation21_spill] sm:$0xff]  ;;  %v5830_v42 = vld [vmem:[#allocation56_spill] sm:$0xff] }
 0x352   : > { %v1312_v3 = vmul.f32 %v1304_v45, %v4569_v15  ;;  %v1208_v37 = vmul.f32 %v4563_v32, %v5827_v61  ;;  %v1666_v19 = vmul.f32 %v1658_v27, %v4591_v30  ;;  %v1465_v39 = vmul.f32 %v4563_v32, %v5828_v35  ;;  %v5832_v32 = vld [vmem:[#allocation28_spill] sm:$0xff]  ;;  %v5834_v27 = vld [vmem:[#allocation29_spill] sm:$0xff] }
 0x354   : > { %1137 = vrot.lane.b32.xlu1 %v1118_v24, %s3839_s26  ;;  %v1216_v4 = vmul.f32 %v1208_v37, %v4591_v30  ;;  %v1305_v24 = vmul.f32 %v4712_v40, %v5829_v23  ;;  %v1473_v25 = vmul.f32 %v1465_v39, %v4569_v15  ;;  %v5833_v15 = vld [vmem:[#allocation51_spill] sm:$0xff] }
 0x355   : > { %1588 = vrot.lane.b32.xlu0 %v1569_v56, %s3840_s28  ;;  %v1562_v56 = vmul.f32 %v5830_v42, %v4708_v8 }
 0x356   : > { %v1313_v17 = vmul.f32 %v1305_v24, %v4591_v30  ;;  %v5837_v24 = vld [vmem:[#allocation43_spill] sm:$0xff] }
 0x357   : > { %v1570_v40 = vmul.f32 %v1562_v56, %v4591_v30  ;;  %v5835_v30 = vld [vmem:[#allocation60_spill] sm:$0xff] }
 0x358   : > { %1234 = vrot.lane.b32.xlu1 %v1215_v21, %s3840_s28  ;;  %v5831_v21 = vld [vmem:[#allocation22_spill] sm:$0xff] }
 0x359   : > { %1684 = vrot.lane.b32.xlu0 %v1665_v14, %s3838_s19  ;;  %v1112_v45 = vmul.f32 %v4706_v33, %v5831_v21  ;;  %v1660_v14 = vmul.f32 %v5832_v32, %v4720_v16  ;;  %v5836_v16 = vld [vmem:[#allocation23_spill] sm:$0xff] }
 0x35a   : > { %v1563_v39 = vmul.f32 %v5836_v16, %v4736_v0 }
 0x35b   : > { %v1120_v11 = vmul.f32 %v1112_v45, %v4587_v6  ;;  %v1668_v33 = vmul.f32 %v1660_v14, %v4595_v60  ;;  %v5839_v45 = vld [vmem:[#allocation25_spill] sm:$0xff] }
 0x35c   : > { %1331 = vrot.lane.b32.xlu1 %v1312_v3, %s3838_s19  ;;  %v1209_v3 = vmul.f32 %v4565_v9, %v5833_v15  ;;  %v1524_v14 = vld [vmem:[#allocation2 + $0x47] sm:$0xff] }
 0x35d   : > { %1494 = vrot.lane.b32.xlu0 %v1474_v48, %s3839_s26  ;;  %v1469_v48 = vmul.f32 %v4597_v58, %v5834_v27  ;;  %v1571_v58 = vmul.f32 %v1563_v39, %v4587_v6  ;;  %v1621_v39 = vld [vmem:[#allocation2 + $0x50] sm:$0xff] }
 0x35e   : > { %v1217_v37 = vmul.f32 %v1209_v3, %v4587_v6 }
 0x35f   : > { %v1477_v9 = vmul.f32 %v1469_v48, %v5821_v13  ;;  %v1525_v48 = vld [vmem:[#allocation2 + $0x4f] sm:$0xff] }
 0x360   : > { %1686 = vrot.lane.b32.xlu1 %v1666_v19, %s3838_s19  ;;  %v1306_v19 = vmul.f32 %v4708_v8, %v5835_v30  ;;  %v5838_v8 = vld [vmem:[#allocation24_spill] sm:$0xff] }
 0x361   : > { %1236 = vrot.lane.b32.xlu0 %v1216_v4, %s3840_s28  ;;  %v1659_v56 = vmul.f32 %v5838_v8, %v4722_v50 }
 0x362   : > { %v1314_v4 = vmul.f32 %v1306_v19, %v4587_v6  ;;  %v5841_v19 = vld [vmem:[#allocation58_spill] sm:$0xff] }
 0x364   : > { %1492 = vrot.lane.b32.xlu1 %v1473_v25, %s3839_s26  ;;  %v1467_v25 = vmul.f32 %v4599_v10, %v5837_v24  ;;  %v1667_v10 = vmul.f32 %v1659_v56, %v4587_v6 }
 0x365   : > { %1333 = vrot.lane.b32.xlu0 %v1313_v17, %s3838_s19 }
 0x366   : > { %v1475_v17 = vmul.f32 %v1467_v25, %v4587_v6  ;;  %v5843_v6 = vld [vmem:[#allocation32_spill] sm:$0xff] }
 0x368   : > { %1590 = vrot.lane.b32.xlu1 %v1570_v40, %s3840_s28  ;;  %v1468_v40 = vmul.f32 %v4601_v22, %v5839_v45 }
 0x369   : > { %1141 = vrot.lane.b32.xlu0 %v1120_v11, %s3839_s26  ;;  %v5840_v11 = vld [vmem:[#allocation57_spill] sm:$0xff] }
 0x36a   : > { %v1564_v3 = vmul.f32 %v5840_v11, %v1524_v14 }
 0x36c   : > { %1690 = vrot.lane.b32.xlu1 %v1668_v33, %s3838_s19  ;;  %v1476_v33 = vmul.f32 %v1468_v40, %v4595_v60  ;;  %v5844_v40 = vld [vmem:[#allocation30_spill] sm:$0xff] }
 0x36d   : > { %1238 = vrot.lane.b32.xlu0 %v1217_v37, %s3840_s28  ;;  %v1572_v37 = vmul.f32 %v1564_v3, %v4595_v60 }
 0x370   : > { %1500 = vrot.lane.b32.xlu1 %v1477_v9, %s3839_s26  ;;  %v1565_v9 = vmul.f32 %v5841_v19, %v1525_v48  ;;  %v5846_v48 = vld [vmem:[#allocation62_spill] sm:$0xff] }
 0x371   : > { %1335 = vrot.lane.b32.xlu0 %v1314_v4, %s3838_s19  ;;  %v5842_v4 = vld [vmem:[#allocation61_spill] sm:$0xff] }
 0x372   : > { %v1307_v25 = vmul.f32 %v4736_v0, %v5842_v4  ;;  %v1573_v56 = vmul.f32 %v1565_v9, %v5821_v13 }
 0x374   : > { %1592 = vrot.lane.b32.xlu1 %v1571_v58, %s3840_s28  ;;  %v1661_v58 = vmul.f32 %v5843_v6, %v1621_v39  ;;  %v2444_v39 = vld [vmem:[#allocation3 + $0x8] sm:$0xff] }
 0x375   : > { %1496 = vrot.lane.b32.xlu0 %v1475_v17, %s3839_s26  ;;  %v1315_v17 = vmul.f32 %v1307_v25, %v4595_v60 }
 0x376   : > { %v1669_v0 = vmul.f32 %v1661_v58, %v5821_v13 }
 0x378   : > { %1688 = vrot.lane.b32.xlu1 %v1667_v10, %s3838_s19  ;;  %v1114_v10 = vmul.f32 %v4722_v50, %v5844_v40  ;;  %v5847_v50 = vld [vmem:[#allocation47_spill] sm:$0xff] }
 0x379   : > { %1498 = vrot.lane.b32.xlu0 %v1476_v33, %s3839_s26  ;;  %v5845_v33 = vld [vmem:[#allocation31_spill] sm:$0xff] }
 0x37a   : > { %v1122_v3 = vmul.f32 %v1114_v10, %v5821_v13 }
 0x37c   : > { %1594 = vrot.lane.b32.xlu1 %v1572_v37, %s3840_s28  ;;  %v1308_v37 = vmul.f32 %v1524_v14, %v5846_v48  ;;  %v5849_v14 = vld [vmem:[#allocation6_spill] sm:$0xff] }
 0x37d   : > { %1240 = vrot.lane.b32.xlu0 %v4670_v1, %s3840_s28  ;;  %v1211_v1 = vmul.f32 %v4601_v22, %v5845_v33  ;;  %v5848_v22 = vld [vmem:[#allocation46_spill] sm:$0xff] }
 0x37e   : > { %v1316_v9 = vmul.f32 %v1308_v37, %v5821_v13 }
 0x37f   : > { %v1219_v60 = vmul.f32 %v1211_v1, %v5821_v13  ;;  %v2452_v13 = vmul.f32 %v2444_v39, %v5849_v14 }
 0x380   : > { %1596 = vrot.lane.b32.xlu1 %v1573_v56, %s3840_s28 }
 0x381   : > { %1337 = vrot.lane.b32.xlu0 %v1315_v17, %s3838_s19 }
 0x384   : > { %1692 = vrot.lane.b32.xlu1 %v1669_v0, %s3838_s19 }
 0x385   : > { %1145 = vrot.lane.b32.xlu0 %v1122_v3, %s3839_s26 }
 0x388   : > { %955 = vrot.lane.b32.xlu1 %v5847_v50, %s3840_s28 }
 0x389   : > { %1242 = vrot.lane.b32.xlu0 %v1219_v60, %s3840_s28 }
 0x38c   : > { %959 = vrot.lane.b32.xlu1 %v4349_v26, %s3840_s28  ;;  %v5850_v26 = vld [vmem:[#allocation52_spill] sm:$0xff] }
 0x38d   : > { %1339 = vrot.lane.b32.xlu0 %v1316_v9, %s3838_s19 }
 0x390   : > { %963 = vrot.lane.b32.xlu1 %v4371_v63, %s3840_s28 }
 0x391   : > { %957 = vrot.lane.b32.xlu0 %v5848_v22, %s3840_s28 }
 0x394   : > { %967 = vrot.lane.b32.xlu1 %v4393_v18, %s3840_s28 }
 0x395   : > { %961 = vrot.lane.b32.xlu0 %v4340_v2, %s3840_s28 }
 0x398   : > { %2468 = vrot.lane.b32.xlu1 %v2452_v13, %s3839_s26 }
 0x399   : > { %965 = vrot.lane.b32.xlu0 %v4368_v41, %s3840_s28 }
 0x39d   : > { %969 = vrot.lane.b32.xlu0 %v5850_v26, %s3840_s28 }
 0x39e   : > { %v1679_v63 = vpop.permute.xlu0 %1678 }
 0x3a2   : > { %v1487_v25 = vpop.permute.xlu1 %1486  ;;  %v1136_v58 = vpop.permute.xlu0 %1135 }
 0x3a3   : > { %1510 = vst.msk [vmem:[#allocation4 + $0x8] sm:$0xff] %vm1155_vm3, %v1487_v25  ;;  %1158 = vst.msk [vmem:[#allocation4 + $0x30] sm:$0xff] %vm1155_vm3, %v1136_v58 }
 0x3a6   : > { %v1229_v2 = vpop.permute.xlu1 %1228  ;;  %v1583_v18 = vpop.permute.xlu0 %1582 }
 0x3a7   : > { %1253 = vst.msk [vmem:[#allocation4] sm:$0xff] %vm1252_vm4, %v1229_v2  ;;  %1606 = vst.msk [vmem:[#allocation4 + $0x8] sm:$0xff] %vm1252_vm4, %v1583_v18 }
 0x3a8   : > { %1702 = vst.msk [vmem:[#allocation4 + $0x8] sm:$0xff] %vm1349_vm5, %v1679_v63 }
 0x3aa   : > { %v1326_v41 = vpop.permute.xlu1 %1325 }
 0x3ab   : > { %v1134_v56 = vpop.permute.xlu0 %1133  ;;  %1350 = vst.msk [vmem:[#allocation4] sm:$0xff] %vm1349_vm5, %v1326_v41 }
 0x3ac   : > { %1157 = vst.msk [vmem:[#allocation4 + $0x18] sm:$0xff] %vm1155_vm3, %v1134_v56 }
 0x3ae   : > { %v1683_v17 = vpop.permute.xlu1 %1682 }
 0x3af   : > { %v1231_v10 = vpop.permute.xlu0 %1230  ;;  %v1775_v0 = vld [vmem:[#allocation4 + $0x8] sm:$0xff] }
 0x3b0   : > { %1254 = vst.msk [vmem:[#allocation4 + $0x18] sm:$0xff] %vm1252_vm4, %v1231_v10  ;;  %1929 = vmatprep.mubr.f32.mxu0 %v1775_v0 }
 0x3b2   : > { %v1140_v3 = vpop.permute.xlu1 %1139  ;;  %v1774_v1 = vld [vmem:[#allocation4] sm:$0xff] }
 0x3b3   : > { %1160 = vst.msk [vmem:[#allocation4 + $0x60] sm:$0xff] %vm1155_vm3, %v1140_v3  ;;  %v1328_v60 = vpop.permute.xlu0 %1327  ;;  %1930 = vmatmul.mubr.f32.vlgmr.msra.gmra.mrb[16].mxu0 %v1774_v1 }
 0x3b4   : > { %1351 = vst.msk [vmem:[#allocation4 + $0x18] sm:$0xff] %vm1349_vm5, %v1328_v60 }
 0x3b6   : > { %v1489_v37 = vpop.permute.xlu1 %1488 }
 0x3b7   : > { %1511 = vst.msk [vmem:[#allocation4 + $0x20] sm:$0xff] %vm1155_vm3, %v1489_v37  ;;  %v1491_v50 = vpop.permute.xlu0 %1490 }
 0x3b8   : > { %1512 = vst.msk [vmem:[#allocation4 + $0x38] sm:$0xff] %vm1155_vm3, %v1491_v50 }
 0x3ba   : > { %v1585_v9 = vpop.permute.xlu1 %1584 }
 0x3bb   : > { %1607 = vst.msk [vmem:[#allocation4 + $0x20] sm:$0xff] %vm1252_vm4, %v1585_v9  ;;  %v1233_v22 = vpop.permute.xlu0 %1232  ;;  %v1777_v2 = vld [vmem:[#allocation4 + $0x18] sm:$0xff] }
 0x3bc   : > { %1255 = vst.msk [vmem:[#allocation4 + $0x30] sm:$0xff] %vm1252_vm4, %v1233_v22 }
 0x3be   : > { %v1681_v39 = vpop.permute.xlu1 %1680 }
 0x3bf   : > { %1703 = vst.msk [vmem:[#allocation4 + $0x20] sm:$0xff] %vm1349_vm5, %v1681_v39  ;;  %v1330_v14 = vpop.permute.xlu0 %1329 }
 0x3c0   : > { %1352 = vst.msk [vmem:[#allocation4 + $0x30] sm:$0xff] %vm1349_vm5, %v1330_v14 }
 0x3c2   : > { %v1587_v13 = vpop.permute.xlu1 %1586 }
 0x3c3   : > { %1608 = vst.msk [vmem:[#allocation4 + $0x38] sm:$0xff] %vm1252_vm4, %v1587_v13  ;;  %v1144_v26 = vpop.permute.xlu0 %1143 }
 0x3c4   : > { %1704 = vst.msk [vmem:[#allocation4 + $0x38] sm:$0xff] %vm1349_vm5, %v1683_v17 }
 0x3c5   : > { %1162 = vst.msk [vmem:[#allocation4 + $0x90] sm:$0xff] %vm1155_vm3, %v1144_v26 }
 0x3c6   : > { %v1138_v63 = vpop.permute.xlu1 %1137  ;;  %v1778_v25 = vld [vmem:[#allocation4 + $0x20] sm:$0xff] }
 0x3c7   : > { %1159 = vst.msk [vmem:[#allocation4 + $0x48] sm:$0xff] %vm1155_vm3, %v1138_v63  ;;  %v1589_v58 = vpop.permute.xlu0 %1588  ;;  %1934 = vmatprep.mubr.f32.mxu0 %v1778_v25  ;;  %v1780_v10 = vld [vmem:[#allocation4 + $0x30] sm:$0xff] }
 0x3c8   : > { %1935 = vmatmul.mubr.f32.gmra.mrb[18].mxu0 %v1777_v2 }
 0x3ca   : > { %v1235_v18 = vpop.permute.xlu1 %1234 }
 0x3cb   : > { %1256 = vst.msk [vmem:[#allocation4 + $0x48] sm:$0xff] %vm1252_vm4, %v1235_v18  ;;  %v1685_v41 = vpop.permute.xlu0 %1684  ;;  %v1781_v56 = vld [vmem:[#allocation4 + $0x38] sm:$0xff] }
 0x3cc   : > { %1939 = vmatprep.mubr.f32.mxu0 %v1781_v56 }
 0x3cd   : > { %1940 = vmatmul.mubr.f32.gmra.mrb[20].mxu0 %v1780_v10 }
 0x3ce   : > { %v1332_v0 = vpop.permute.xlu1 %1331 }
 0x3cf   : > { %1353 = vst.msk [vmem:[#allocation4 + $0x48] sm:$0xff] %vm1349_vm5, %v1332_v0  ;;  %v1495_v17 = vpop.permute.xlu0 %1494 }
 0x3d0   : > { %1514 = vst.msk [vmem:[#allocation4 + $0x68] sm:$0xff] %vm1155_vm3, %v1495_v17 }
 0x3d2   : > { %v1687_v3 = vpop.permute.xlu1 %1686 }
 0x3d3   : > { %v1237_v1 = vpop.permute.xlu0 %1236 }
 0x3d4   : > { %1257 = vst.msk [vmem:[#allocation4 + $0x60] sm:$0xff] %vm1252_vm4, %v1237_v1 }
 0x3d6   : > { %v1493_v60 = vpop.permute.xlu1 %1492  ;;  %v1783_v13 = vld [vmem:[#allocation4 + $0x48] sm:$0xff] }
 0x3d7   : > { %1513 = vst.msk [vmem:[#allocation4 + $0x50] sm:$0xff] %vm1155_vm3, %v1493_v60  ;;  %v1334_v37 = vpop.permute.xlu0 %1333 }
 0x3d8   : > { %1609 = vst.msk [vmem:[#allocation4 + $0x50] sm:$0xff] %vm1252_vm4, %v1589_v58 }
 0x3d9   : > { %1354 = vst.msk [vmem:[#allocation4 + $0x60] sm:$0xff] %vm1349_vm5, %v1334_v37  ;;  %1705 = vst.msk [vmem:[#allocation4 + $0x50] sm:$0xff] %vm1349_vm5, %v1685_v41 }
 0x3da   : > { %v1591_v50 = vpop.permute.xlu1 %1590 }
 0x3db   : > { %1610 = vst.msk [vmem:[#allocation4 + $0x68] sm:$0xff] %vm1252_vm4, %v1591_v50  ;;  %v1142_v9 = vpop.permute.xlu0 %1141 }
 0x3dc   : > { %1706 = vst.msk [vmem:[#allocation4 + $0x68] sm:$0xff] %vm1349_vm5, %v1687_v3 }
 0x3dd   : > { %1161 = vst.msk [vmem:[#allocation4 + $0x78] sm:$0xff] %vm1155_vm3, %v1142_v9 }
 0x3de   : > { %v1691_v22 = vpop.permute.xlu1 %1690 }
 0x3df   : > { %v1239_v39 = vpop.permute.xlu0 %1238 }
 0x3e0   : > { %1258 = vst.msk [vmem:[#allocation4 + $0x78] sm:$0xff] %vm1252_vm4, %v1239_v39  ;;  %v1784_v14 = vld [vmem:[#allocation4 + $0x50] sm:$0xff]  ;;  %v1786_v58 = vld [vmem:[#allocation4 + $0x60] sm:$0xff] }
 0x3e1   : > { %1944 = vmatprep.mubr.f32.mxu0 %v1784_v14 }
 0x3e2   : > { %v1501_v26 = vpop.permute.xlu1 %1500  ;;  %1945 = vmatmul.mubr.f32.gmra.mrb[22].mxu0 %v1783_v13 }
 0x3e3   : > { %1517 = vst.msk [vmem:[#allocation4 + $0xb0] sm:$0xff] %vm1155_vm3, %v1501_v26  ;;  %v1336_v63 = vpop.permute.xlu0 %1335  ;;  %v1787_v25 = vld [vmem:[#allocation4 + $0x68] sm:$0xff] }
 0x3e4   : > { %1355 = vst.msk [vmem:[#allocation4 + $0x78] sm:$0xff] %vm1349_vm5, %v1336_v63  ;;  %1949 = vmatprep.mubr.f32.mxu0 %v1787_v25 }
 0x3e6   : > { %v1593_v2 = vpop.permute.xlu1 %1592  ;;  %1950 = vmatmul.mubr.f32.gmra.mrb[24].mxu0 %v1786_v58 }
 0x3e7   : > { %v1497_v18 = vpop.permute.xlu0 %1496 }
 0x3e8   : > { %1515 = vst.msk [vmem:[#allocation4 + $0x80] sm:$0xff] %vm1155_vm3, %v1497_v18 }
 0x3e9   : > { %1611 = vst.msk [vmem:[#allocation4 + $0x80] sm:$0xff] %vm1252_vm4, %v1593_v2 }
 0x3ea   : > { %v1689_v41 = vpop.permute.xlu1 %1688 }
 0x3eb   : > { %1707 = vst.msk [vmem:[#allocation4 + $0x80] sm:$0xff] %vm1349_vm5, %v1689_v41  ;;  %v1499_v56 = vpop.permute.xlu0 %1498  ;;  %v1789_v60 = vld [vmem:[#allocation4 + $0x78] sm:$0xff] }
 0x3ec   : > { %1516 = vst.msk [vmem:[#allocation4 + $0x98] sm:$0xff] %vm1155_vm3, %v1499_v56 }
 0x3ee   : > { %v1595_v10 = vpop.permute.xlu1 %1594 }
 0x3ef   : > { %1612 = vst.msk [vmem:[#allocation4 + $0x98] sm:$0xff] %vm1252_vm4, %v1595_v10  ;;  %v1241_v0 = vpop.permute.xlu0 %1240 }
 0x3f0   : > { %1708 = vst.msk [vmem:[#allocation4 + $0x98] sm:$0xff] %vm1349_vm5, %v1691_v22 }
 0x3f1   : > { %1259 = vst.msk [vmem:[#allocation4 + $0x90] sm:$0xff] %vm1252_vm4, %v1241_v0 }
 0x3f2   : > { %v1597_v17 = vpop.permute.xlu1 %1596  ;;  %v1790_v3 = vld [vmem:[#allocation4 + $0x80] sm:$0xff] }
 0x3f3   : > { %1613 = vst.msk [vmem:[#allocation4 + $0xb0] sm:$0xff] %vm1252_vm4, %v1597_v17  ;;  %v1338_v1 = vpop.permute.xlu0 %1337  ;;  %1954 = vmatprep.mubr.f32.mxu0 %v1790_v3 }
 0x3f4   : > { %1356 = vst.msk [vmem:[#allocation4 + $0x90] sm:$0xff] %vm1349_vm5, %v1338_v1  ;;  %1955 = vmatmul.mubr.f32.gmra.mrb[26].mxu0 %v1789_v60 }
 0x3f6   : > { %v1693_v37 = vpop.permute.xlu1 %1692 }
 0x3f7   : > { %1709 = vst.msk [vmem:[#allocation4 + $0xb0] sm:$0xff] %vm1349_vm5, %v1693_v37  ;;  %v1146_v50 = vpop.permute.xlu0 %1145  ;;  %v1793_v9 = vld [vmem:[#allocation4 + $0x98] sm:$0xff] }
 0x3f8   : > { %1163 = vst.msk [vmem:[#allocation4 + $0xa8] sm:$0xff] %vm1155_vm3, %v1146_v50  ;;  %1959 = vmatprep.mubr.f32.mxu0 %v1793_v9  ;;  %v5852_v37 = vld [vmem:[#allocation12_spill] sm:$0xff] }
 0x3fa   : > { %v956_v22 = vpop.permute.xlu1 %955 }
 0x3fb   : > { %979 = vst.msk [vmem:[#allocation3 + $0x10] sm:$0xff] %vm433_vm0, %v956_v22  ;;  %v1243_v39 = vpop.permute.xlu0 %1242  ;;  %v1792_v14 = vld [vmem:[#allocation4 + $0x90] sm:$0xff] }
 0x3fc   : > { %1260 = vst.msk [vmem:[#allocation4 + $0xa8] sm:$0xff] %vm1252_vm4, %v1243_v39  ;;  %1960 = vmatmul.mubr.f32.gmra.mrb[28].mxu0 %v1792_v14 }
 0x3fe   : > { %v960_v13 = vpop.permute.xlu1 %959  ;;  %v1796_v26 = vld [vmem:[#allocation4 + $0xb0] sm:$0xff] }
 0x3ff   : > { %981 = vst.msk [vmem:[#allocation3 + $0x20] sm:$0xff] %vm433_vm0, %v960_v13  ;;  %v1340_v63 = vpop.permute.xlu0 %1339  ;;  %1964 = vmatprep.mubr.f32.mxu0 %v1796_v26  ;;  %v5853_v13 = vld [vmem:[#allocation8_spill] sm:$0xff] }
 0x400   : > { %1357 = vst.msk [vmem:[#allocation4 + $0xa8] sm:$0xff] %vm1349_vm5, %v1340_v63 }
 0x402   : > { %v964_v25 = vpop.permute.xlu1 %963  ;;  %v2540_v58 = vld [vmem:[#allocation3 + $0x9] sm:$0xff] }
 0x403   : > { %v4946_v2 = vld [vmem:[#allocation3 + $0x10] sm:$0xff]  ;;  %983 = vst.msk [vmem:[#allocation3 + $0x30] sm:$0xff] %vm433_vm0, %v964_v25  ;;  %v958_v18 = vpop.permute.xlu0 %957  ;;  %v2548_v41 = vmul.f32 %v2540_v58, %v4205_v31 }
 0x404   : > { %v2453_v56 = vmul.f32 %v4946_v2, %v4216_v34  ;;  %980 = vst.msk [vmem:[#allocation3 + $0x18] sm:$0xff] %vm433_vm0, %v958_v18  ;;  %v5851_v34 = vld [vmem:[#allocation45_spill] sm:$0xff]  ;;  %v4963_v9 = vld [vmem:[#allocation3 + $0xf] sm:$0xff] }
 0x405   : > { %2564 = vrot.lane.b32.xlu1 %v2548_v41, %s3840_s28  ;;  %v2637_v26 = vmul.f32 %v4963_v9, %v5853_v13 }
 0x406   : > { %2470 = vrot.lane.b32.xlu0 %v2453_v56, %s3839_s26  ;;  %v968_v10 = vpop.permute.xlu1 %967  ;;  %v4965_v22 = vld [vmem:[#allocation3 + $0x20] sm:$0xff] }
 0x407   : > { %985 = vst.msk [vmem:[#allocation3 + $0x40] sm:$0xff] %vm433_vm0, %v968_v10  ;;  %v962_v0 = vpop.permute.xlu0 %961  ;;  %v1795_v17 = vld [vmem:[#allocation4 + $0xa8] sm:$0xff]  ;;  %v2455_v63 = vmul.f32 %v4965_v22, %v4241_v5 }
 0x408   : > { %982 = vst.msk [vmem:[#allocation3 + $0x28] sm:$0xff] %vm433_vm0, %v962_v0  ;;  %1965 = vmatmul.mubr.f32.gmra.mrb[30].mxu0 %v1795_v17 }
 0x40b   : > { %v966_v3 = vpop.permute.xlu0 %965  ;;  %v2541_v1 = vld [vmem:[#allocation3 + $0x11] sm:$0xff]  ;;  %v4978_v58 = vld [vmem:[#allocation3 + $0x19] sm:$0xff] }
 0x40c   : > { %v4957_v31 = vld [vmem:[#allocation3 + $0x18] sm:$0xff]  ;;  %984 = vst.msk [vmem:[#allocation3 + $0x38] sm:$0xff] %vm433_vm0, %v966_v3  ;;  %v2549_v60 = vmul.f32 %v2541_v1, %v5851_v34  ;;  %v2550_v56 = vmul.f32 %v4978_v58, %v4228_v53 }
 0x40d   : > { %v2454_v50 = vmul.f32 %v4957_v31, %v5852_v37  ;;  %v4980_v18 = vld [vmem:[#allocation3 + $0x17] sm:$0xff] }
 0x40e   : > { %2566 = vrot.lane.b32.xlu0 %v2549_v60, %s3840_s28  ;;  %v2638_v10 = vmul.f32 %v4980_v18, %v4409_v20  ;;  %v5854_v60 = vld [vmem:[#allocation18_spill] sm:$0xff]  ;;  %v5006_v20 = vld [vmem:[#allocation3 + $0x1f] sm:$0xff] }
 0x40f   : > { %2472 = vrot.lane.b32.xlu1 %v2454_v50, %s3839_s26  ;;  %v970_v39 = vpop.permute.xlu0 %969  ;;  %v4992_v5 = vld [vmem:[#allocation3 + $0x21] sm:$0xff]  ;;  %v5051_v54 = vld [vmem:[#allocation3 + $0x2f] sm:$0xff] }
 0x410   : > { %986 = vst.msk [vmem:[#allocation3 + $0x48] sm:$0xff] %vm433_vm0, %v970_v39  ;;  %v4994_v17 = vld [vmem:[#allocation3 + $0x28] sm:$0xff]  ;;  %v2551_v34 = vmul.f32 %v4992_v5, %v5822_v55  ;;  %v5017_v55 = vld [vmem:[#allocation3 + $0x30] sm:$0xff] }
 0x411   : > { %v4970_v14 = vpop.f32.mrb[8].mxu1  ;;  %v2456_v53 = vmul.f32 %v4994_v17, %v5854_v60  ;;  %v5855_v39 = vld [vmem:[#allocation14_spill] sm:$0xff] }
 0x412   : > { %v4976_v25 = vpop.f32.mrb[9].mxu1  ;;  %2653 = vrot.lane.b32.xlu0 %v2637_v26, %s3838_s19  ;;  %v2639_v13 = vmul.f32 %v5006_v20, %v5855_v39  ;;  %v5856_v26 = vld [vmem:[#allocation5_spill] sm:$0xff] }
 0x413   : > { %2474 = vrot.lane.b32.xlu1 %v2455_v63, %s3839_s26  ;;  %v2751_v63 = vmul.f32 %v2541_v1, %v5856_v26  ;;  %v5857_v1 = vld [vmem:[#allocation39_spill] sm:$0xff] }
 0x414   : > { %v2752_v39 = vmul.f32 %v4978_v58, %v5857_v1  ;;  %v5035_v26 = vld [vmem:[#allocation3 + $0x31] sm:$0xff]  ;;  %v5860_v1 = vld [vmem:[#allocation26_spill] sm:$0xff] }
 0x415   : > { %v4984_v41 = vpop.f32.mrb[10].mxu1 }
 0x416   : > { %v4990_v0 = vpop.f32.mrb[11].mxu1  ;;  %2655 = vrot.lane.b32.xlu0 %v2638_v10, %s3838_s19  ;;  %v5019_v10 = vld [vmem:[#allocation3 + $0x27] sm:$0xff] }
 0x417   : > { %2568 = vrot.lane.b32.xlu1 %v2550_v56, %s3840_s28  ;;  %v2640_v60 = vmul.f32 %v5019_v10, %v5824_v52 }
 0x419   : > { %v4998_v3 = vpop.f32.mrb[12].mxu1 }
 0x41a   : > { %v5004_v37 = vpop.f32.mrb[13].mxu1  ;;  %2570 = vrot.lane.b32.xlu0 %v2551_v34, %s3840_s28  ;;  %v2457_v34 = vmul.f32 %v5017_v55, %v5831_v21  ;;  %v5858_v21 = vld [vmem:[#allocation54_spill] sm:$0xff] }
 0x41b   : > { %2476 = vrot.lane.b32.xlu1 %v2456_v53, %s3839_s26  ;;  %v5027_v53 = vld [vmem:[#allocation3 + $0x29] sm:$0xff]  ;;  %v2840_v52 = vmul.f32 %v4980_v18, %v5858_v21 }
 0x41d   : > { %v5010_v50 = vpop.f32.mrb[14].mxu1 }
 0x41e   : > { %v5015_v56 = vpop.f32.mrb[15].mxu1  ;;  %2657 = vrot.lane.b32.xlu0 %v2639_v13, %s3838_s19  ;;  %v2552_v13 = vmul.f32 %v5027_v53, %v5827_v61 }
 0x41f   : > { %2767 = vrot.lane.b32.xlu1 %v2751_v63, %s3839_s26  ;;  %v2553_v63 = vmul.f32 %v5035_v26, %v5833_v15  ;;  %v2641_v15 = vmul.f32 %v5051_v54, %v5829_v23  ;;  %v2754_v23 = vmul.f32 %v5027_v53, %v5828_v35  ;;  %v5865_v35 = vld [vmem:[#allocation55_spill] sm:$0xff] }
 0x422   : > { %2478 = vrot.lane.b32.xlu0 %v2457_v34, %s3839_s26  ;;  %v5043_v34 = vld [vmem:[#allocation3 + $0x38] sm:$0xff] }
 0x423   : > { %2659 = vrot.lane.b32.xlu1 %v2640_v60, %s3838_s19  ;;  %v5859_v60 = vld [vmem:[#allocation9_spill] sm:$0xff] }
 0x424   : > { %v2841_v61 = vmul.f32 %v5006_v20, %v5859_v60 }
 0x426   : > { %2769 = vrot.lane.b32.xlu0 %v2752_v39, %s3839_s26  ;;  %v2458_v39 = vmul.f32 %v5043_v34, %v5860_v1  ;;  %v5067_v1 = vld [vmem:[#allocation3 + $0x37] sm:$0xff] }
 0x427   : > { %2572 = vrot.lane.b32.xlu1 %v2552_v13, %s3840_s28  ;;  %v5861_v13 = vld [vmem:[#allocation11_spill] sm:$0xff] }
 0x428   : > { %v2753_v21 = vmul.f32 %v4992_v5, %v5861_v13  ;;  %v5863_v13 = vld [vmem:[#allocation27_spill] sm:$0xff] }
 0x42a   : > { %2856 = vrot.lane.b32.xlu0 %v2840_v52, %s3840_s28  ;;  %v5059_v52 = vld [vmem:[#allocation3 + $0x40] sm:$0xff] }
 0x42b   : > { %2574 = vrot.lane.b32.xlu1 %v2553_v63, %s3840_s28  ;;  %v5862_v63 = vld [vmem:[#allocation7_spill] sm:$0xff] }
 0x42c   : > { %v2929_v60 = vmul.f32 %v4957_v31, %v5862_v63 }
 0x42e   : > { %2858 = vrot.lane.b32.xlu0 %v2841_v61, %s3840_s28  ;;  %v2459_v61 = vmul.f32 %v5059_v52, %v5844_v40 }
 0x42f   : > { %2480 = vrot.lane.b32.xlu1 %v2458_v39, %s3839_s26  ;;  %v2642_v39 = vmul.f32 %v5067_v1, %v5835_v30  ;;  %v2842_v30 = vmul.f32 %v5019_v10, %v5865_v35  ;;  %v2844_v35 = vmul.f32 %v5067_v1, %v5830_v42 }
 0x432   : > { %2661 = vrot.lane.b32.xlu0 %v2641_v15, %s3838_s19  ;;  %v5075_v15 = vld [vmem:[#allocation3 + $0x39] sm:$0xff] }
 0x433   : > { %2771 = vrot.lane.b32.xlu1 %v2753_v21, %s3839_s26  ;;  %v2554_v40 = vmul.f32 %v5075_v15, %v5863_v13  ;;  %v5864_v21 = vld [vmem:[#allocation10_spill] sm:$0xff] }
 0x434   : > { %v2930_v63 = vmul.f32 %v4965_v22, %v5864_v21 }
 0x436   : > { %2945 = vrot.lane.b32.xlu0 %v2929_v60, %s3838_s19  ;;  %v5083_v60 = vld [vmem:[#allocation3 + $0x41] sm:$0xff] }
 0x437   : > { %2482 = vrot.lane.b32.xlu1 %v2459_v61, %s3839_s26  ;;  %v2555_v61 = vmul.f32 %v5083_v60, %v5845_v33  ;;  %v5866_v33 = vld [vmem:[#allocation13_spill] sm:$0xff] }
 0x438   : > { %v2931_v21 = vmul.f32 %v4994_v17, %v5866_v33 }
 0x43a   : > { %2663 = vrot.lane.b32.xlu0 %v2642_v39, %s3838_s19  ;;  %v2843_v39 = vmul.f32 %v5051_v54, %v5819_v36 }
 0x43b   : > { %2773 = vrot.lane.b32.xlu1 %v2754_v23, %s3839_s26  ;;  %v5091_v23 = vld [vmem:[#allocation3 + $0x3f] sm:$0xff] }
 0x43c   : > { %v2643_v13 = vmul.f32 %v5091_v23, %v5842_v4  ;;  %v2756_v4 = vmul.f32 %v5075_v15, %v5837_v24  ;;  %v2757_v24 = vmul.f32 %v5083_v60, %v5839_v45 }
 0x43e   : > { %2947 = vrot.lane.b32.xlu0 %v2930_v63, %s3838_s19  ;;  %v2636_v63 = vld [vmem:[#allocation3 + $0x47] sm:$0xff] }
 0x43f   : > { %2576 = vrot.lane.b32.xlu1 %v2554_v40, %s3840_s28  ;;  %v2755_v40 = vmul.f32 %v5035_v26, %v5825_v29  ;;  %v2644_v36 = vmul.f32 %v2636_v63, %v5846_v48  ;;  %v2932_v29 = vmul.f32 %v5017_v55, %v5823_v12  ;;  %v2845_v48 = vmul.f32 %v5091_v23, %v5836_v16 }
 0x440   : > { %v2933_v12 = vmul.f32 %v5043_v34, %v5826_v28  ;;  %v2934_v16 = vmul.f32 %v5059_v52, %v5838_v8  ;;  %v2846_v45 = vmul.f32 %v2636_v63, %v5840_v11 }
 0x442   : > { %2860 = vrot.lane.b32.xlu0 %v2842_v30, %s3840_s28  ;;  %v5122_v30 = vld [vmem:[#allocation3 + $0x49] sm:$0xff] }
 0x443   : > { %2578 = vrot.lane.b32.xlu1 %v2555_v61, %s3840_s28  ;;  %v2758_v42 = vmul.f32 %v5122_v30, %v5834_v27  ;;  %v2839_v61 = vld [vmem:[#allocation3 + $0x4f] sm:$0xff] }
 0x444   : > { %v2847_v28 = vmul.f32 %v2839_v61, %v5841_v19  ;;  %v2156_v61 = vld [vmem:[%s5681_s9 + $0x28] sm:$0xff] }
 0x446   : > { %2862 = vrot.lane.b32.xlu0 %v2843_v39, %s3840_s28  ;;  %v5135_v39 = vld [vmem:[#allocation3 + $0x48] sm:$0xff] }
 0x447   : > { %2665 = vrot.lane.b32.xlu1 %v2643_v13, %s3838_s19  ;;  %v2935_v27 = vmul.f32 %v5135_v39, %v5832_v32  ;;  %v2928_v13 = vld [vmem:[#allocation3 + $0x50] sm:$0xff] }
 0x448   : > { %v2936_v8 = vmul.f32 %v2928_v13, %v5843_v6 }
 0x44a   : > { %2775 = vrot.lane.b32.xlu0 %v2755_v40, %s3839_s26  ;;  %v5149_v40 = vld [vmem:[%s5682_s10] ss:$0 sm:$0xff] }
 0x44b   : > { %2949 = vrot.lane.b32.xlu1 %v2931_v21, %s3838_s19 }
 0x44e   : > { %2667 = vrot.lane.b32.xlu0 %v2644_v36, %s3838_s19 }
 0x44f   : > { %2777 = vrot.lane.b32.xlu1 %v2756_v4, %s3839_s26 }
 0x452   : > { %2951 = vrot.lane.b32.xlu0 %v2932_v29, %s3838_s19 }
 0x453   : > { %2864 = vrot.lane.b32.xlu1 %v2844_v35, %s3840_s28  ;;  %v2152_v35 = vld [vmem:[%s5681_s9 + $0x8] sm:$0xff] }
 0x456   : > { %2866 = vrot.lane.b32.xlu0 %v2845_v48, %s3840_s28  ;;  %v2155_v48 = vld [vmem:[%s5681_s9 + $0x20] sm:$0xff] }
 0x457   : > { %2779 = vrot.lane.b32.xlu1 %v2757_v24, %s3839_s26  ;;  %v2151_v24 = vld [vmem:[%s5681_s9] sm:$0xff] }
 0x45a   : > { %2953 = vrot.lane.b32.xlu0 %v2933_v12, %s3838_s19 }
 0x45b   : > { %2781 = vrot.lane.b32.xlu1 %v2758_v42, %s3839_s26  ;;  %v3675_v42 = vpack.c.bf16 %v2155_v48, %v2152_v35  ;;  %v2167_v35 = vld [vmem:[%s5681_s9 + $0x80] sm:$0xff] }
 0x45c   : > { %v2163_v48 = vld [vmem:[%s5681_s9 + $0x60] sm:$0xff] }
 0x45d   : > { %3676 = vmatprep.subr.bf16.mxu1 %v3675_v42  ;;  %v2165_v42 = vld [vmem:[%s5681_s9 + $0x70] sm:$0xff] }
 0x45e   : > { %2955 = vrot.lane.b32.xlu0 %v2934_v16, %s3838_s19  ;;  %v2154_v16 = vld [vmem:[%s5681_s9 + $0x18] sm:$0xff] }
 0x45f   : > { %2868 = vrot.lane.b32.xlu1 %v2846_v45, %s3840_s28  ;;  %v2153_v45 = vld [vmem:[%s5681_s9 + $0x10] sm:$0xff] }
 0x460   : > { %v3691_v13 = vpack.c.bf16 %v2156_v61, %v2153_v45 }
 0x462   : > { %2870 = vrot.lane.b32.xlu0 %v2847_v28, %s3840_s28  ;;  %3692 = vmatprep.subr.bf16.mxu0 %v3691_v13 }
 0x463   : > { %2957 = vrot.lane.b32.xlu1 %v2935_v27, %s3838_s19  ;;  %v3677_v27 = vpack.c.bf16 %v2154_v16, %v2151_v24  ;;  %3694 = vmatpush3.bf16.msra.mxu0 %v3691_v13  ;;  %v2168_v16 = vld [vmem:[%s5681_s9 + $0x88] sm:$0xff]  ;;  %v2171_v13 = vld [vmem:[%s5681_s9 + $0xa0] sm:$0xff] }
 0x464   : > { %v3699_v61 = vpack.c.bf16 %v2168_v16, %v2165_v42 }
 0x465   : > { %3678 = vmatpush1.bf16.msra.mxu1 %v3677_v27  ;;  %v2173_v27 = vld [vmem:[%s5681_s9 + $0xb0] sm:$0xff] }
 0x466   : > { %2959 = vrot.lane.b32.xlu0 %v2936_v8, %s3838_s19  ;;  %v2161_v8 = vld [vmem:[%s5681_s9 + $0x50] sm:$0xff] }
 0x486   : > { %v3392_v11 = vpop.f32.mrb[16].mxu0 }
 0x487   : > { %v3393_v33 = vpop.f32.mrb[17].mxu0 }
 0x488   : > { %v3394_v19 = vadd.f32 %v3393_v33, %v3392_v11  ;;  %v2157_v11 = vld [vmem:[%s5681_s9 + $0x30] sm:$0xff] }
 0x48a   : > { %v1932_v21 = vadd.f32 %v3394_v19, %v5149_v40  ;;  %v2160_v19 = vld [vmem:[%s5681_s9 + $0x48] sm:$0xff] }
 0x48c   : > { %v5153_v32 = vadd.f32 %v4976_v25, %v1932_v21  ;;  %v2159_v21 = vld [vmem:[%s5681_s9 + $0x40] sm:$0xff] }
 0x49b   : > { %v3395_v63 = vpop.f32.mrb[18].mxu0 }
 0x49c   : > { %v3396_v36 = vpop.f32.mrb[19].mxu0 }
 0x49d   : > { %v3397_v4 = vadd.f32 %v3396_v36, %v3395_v63  ;;  %v2162_v63 = vld [vmem:[%s5681_s9 + $0x58] sm:$0xff] }
 0x49f   : > { %v1937_v6 = vadd.f32 %v3397_v4, %v5149_v40  ;;  %v3681_v4 = vpack.c.bf16 %v2160_v19, %v2157_v11  ;;  %v2169_v11 = vld [vmem:[%s5681_s9 + $0x90] sm:$0xff] }
 0x4a0   : > { %v3398_v29 = vpop.f32.mrb[20].mxu0 }
 0x4a1   : > { %v5166_v25 = vadd.f32 %v4970_v14, %v1937_v6  ;;  %v3399_v12 = vpop.f32.mrb[21].mxu0  ;;  %v2158_v14 = vld [vmem:[%s5681_s9 + $0x38] sm:$0xff]  ;;  %v3695_v6 = vpack.c.bf16 %v2162_v63, %v2159_v21  ;;  %v2176_v63 = vld [vmem:[%s5681_s9 + $0xc8] sm:$0xff] }
 0x4a2   : > { %v3400_v28 = vadd.f32 %v3399_v12, %v3398_v29  ;;  %v3679_v33 = vpack.c.bf16 %v2161_v8, %v2158_v14  ;;  %v2164_v29 = vld [vmem:[%s5681_s9 + $0x68] sm:$0xff]  ;;  %v2166_v12 = vld [vmem:[%s5681_s9 + $0x78] sm:$0xff] }
 0x4a3   : > { %v3683_v24 = vpack.c.bf16 %v2167_v35, %v2164_v29  ;;  %3696 = vmatprep.subr.bf16.mxu0 %v3695_v6  ;;  %v2174_v14 = vld [vmem:[%s5681_s9 + $0xb8] sm:$0xff] }
 0x4a4   : > { %v1942_v36 = vadd.f32 %v3400_v28, %v5149_v40  ;;  %3680 = vmatprep.subr.bf16.mxu1 %v3679_v33  ;;  %v2170_v28 = vld [vmem:[%s5681_s9 + $0x98] sm:$0xff]  ;;  %3698 = vmatpush3.bf16.msra.mxu0 %v3695_v6  ;;  %v2172_v33 = vld [vmem:[%s5681_s9 + $0xa8] sm:$0xff]  ;;  %v3703_v19 = vpack.c.bf16 %v2174_v14, %v2171_v13 }
 0x4a5   : > { %3682 = vmatpush1.bf16.msra.mxu1 %v3681_v4  ;;  %v3687_v8 = vpack.c.bf16 %v2173_v27, %v2170_v28  ;;  %3700 = vmatprep.subr.bf16.mxu0 %v3699_v61  ;;  %v3689_v21 = vpack.c.bf16 %v2172_v33, %v2169_v11  ;;  %v2175_v4 = vld [vmem:[%s5681_s9 + $0xc0] sm:$0xff]  ;;  %v2076_v27 = vsel %vm2075_vm6, %v5153_v32, -inf }
 0x4a6   : > { %v5215_v45 = vadd.f32 %v4990_v0, %v1942_v36  ;;  %v3685_v0 = vpack.c.bf16 %v2166_v12, %v2163_v48  ;;  %3684 = vmatprep.subr.bf16.mxu1 %v3683_v24  ;;  %v2177_v36 = vld [vmem:[%s5681_s9 + $0xd0] sm:$0xff] }
 0x4a8   : > { %3702 = vmatpush3.bf16.msra.mxu0 %v3699_v61 }
 0x4a9   : > { %3686 = vmatpush1.bf16.msra.mxu1 %v3685_v0  ;;  %3704 = vmatprep.subr.bf16.mxu0 %v3703_v19 }
 0x4aa   : > { %3688 = vmatprep.subr.bf16.mxu1 %v3687_v8 }
 0x4ac   : > { %3706 = vmatpush3.bf16.msra.mxu0 %v3703_v19 }
 0x4ad   : > { %3690 = vmatpush1.bf16.msra.mxu1 %v3689_v21  ;;  %3565 = vmatprep.subr.mxu0 %v2177_v36  ;;  %v2077_v21 = vsel %vm2075_vm6, %v5166_v25, -inf }
 0x4ae   : > { %2218 = vmatprep.subr.mxu1 %v2176_v63 }
 0x4b0   : > { %3566 = vmatpush3.msra.mxu0 %v2177_v36 }
 0x4b1   : > { %2219 = vmatpush1.msra.mxu1 %v2175_v4 }
 0x4b5   : > { %v3401_v6 = vpop.f32.mrb[22].mxu0 }
 0x4b6   : > { %v3402_v29 = vpop.f32.mrb[23].mxu0 }
 0x4b7   : > { %v3403_v35 = vadd.f32 %v3402_v29, %v3401_v6 }
 0x4b9   : > { %v1947_v48 = vadd.f32 %v3403_v35, %v5149_v40  ;;  %v3404_v24 = vpop.f32.mrb[24].mxu0 }
 0x4ba   : > { %v3405_v12 = vpop.f32.mrb[25].mxu0 }
 0x4bb   : > { %v2052_v42 = vadd.f32 %v4984_v41, %v1947_v48  ;;  %v3406_v16 = vadd.f32 %v3405_v12, %v3404_v24  ;;  %v2078_v48 = vsel %vm2075_vm6, %v5215_v45, -inf }
 0x4bd   : > { %v1952_v61 = vadd.f32 %v3406_v16, %v5149_v40 }
 0x4bf   : > { %v2057_v28 = vadd.f32 %v5004_v37, %v1952_v61 }
 0x4c1   : > { %v2080_v13 = vsel %vm2075_vm6, %v2057_v28, -inf }
 0x4c2   : > { %v2081_v14 = vmax.f32 %v2076_v27, %v2080_v13 }
 0x4c7   : > { %v3407_v0 = vpop.f32.mrb[26].mxu0 }
 0x4c8   : > { %v3408_v8 = vpop.f32.mrb[27].mxu0 }
 0x4c9   : > { %v3409_v11 = vadd.f32 %v3408_v8, %v3407_v0  ;;  %v2079_v0 = vsel %vm2075_vm6, %v2052_v42, -inf }
 0x4cb   : > { %v1957_v33 = vadd.f32 %v3409_v11, %v5149_v40 }
 0x4cd   : > { %v2062_v19 = vadd.f32 %v4998_v3, %v1957_v33 }
 0x4cf   : > { %v3410_v41 = vpop.f32.mrb[28].mxu0  ;;  %v2082_v63 = vsel %vm2075_vm6, %v2062_v19, -inf }
 0x4d0   : > { %v2083_v37 = vmax.f32 %v2077_v21, %v2082_v63  ;;  %v3411_v36 = vpop.f32.mrb[29].mxu0 }
 0x4d1   : > { %v3412_v4 = vadd.f32 %v3411_v36, %v3410_v41 }
 0x4d2   : > { %v2088_v6 = vmax.f32 %v2081_v14, %v2083_v37 }
 0x4d3   : > { %v1962_v29 = vadd.f32 %v3412_v4, %v5149_v40 }
 0x4d5   : > { %v2067_v35 = vadd.f32 %v5015_v56, %v1962_v29 }
 0x4d7   : > { %v2084_v24 = vsel %vm2075_vm6, %v2067_v35, -inf }
 0x4d8   : > { %v2085_v3 = vmax.f32 %v2078_v48, %v2084_v24 }
 0x4db   : > { %v3413_v12 = vpop.f32.mrb[30].mxu0 }
 0x4dc   : > { %v3414_v16 = vpop.f32.mrb[31].mxu0 }
 0x4dd   : > { %v3415_v61 = vadd.f32 %v3414_v16, %v3413_v12 }
 0x4df   : > { %v1967_v27 = vadd.f32 %v3415_v61, %v5149_v40 }
 0x4e1   : > { %v2072_v13 = vadd.f32 %v5010_v50, %v1967_v27 }
 0x4e3   : > { %v2086_v14 = vsel %vm2075_vm6, %v2072_v13, -inf }
 0x4e4   : > { %v2087_v8 = vmax.f32 %v2079_v0, %v2086_v14 }
 0x4e6   : > { %v2089_v11 = vmax.f32 %v2085_v3, %v2087_v8 }
 0x4e8   : > { %v2090_v56 = vmax.f32 %v2088_v6, %v2089_v11 }
 0x4ea   : > { %v2091_v33 = vrot.slane %v2090_v56, 4 }
 0x4ec   : > { %v2092_v41 = vmax.f32 %v2090_v56, %v2091_v33 }
 0x4ee   : > { %v2093_v21 = vrot.slane %v2092_v41, 2 }
 0x4f0   : > { %v2094_v63 = vmax.f32 %v2092_v41, %v2093_v21 }
 0x4f2   : > { %v2095_v37 = vrot.slane %v2094_v63, 1 }
 0x4f4   : > { %v2096_v36 = vmax.f32 %v2094_v63, %v2095_v37 }
 0x4f6   : > { %v2097_v4 = vsub.f32 %v5153_v32, %v2096_v36  ;;  %v2098_v29 = vsub.f32 %v5166_v25, %v2096_v36  ;;  %v2099_v40 = vsub.f32 %v5215_v45, %v2096_v36  ;;  %v2100_v50 = vsub.f32 %v2052_v42, %v2096_v36 }
 0x4f7   : > { %v2101_v48 = vsub.f32 %v2057_v28, %v2096_v36  ;;  %v2102_v24 = vsub.f32 %v2062_v19, %v2096_v36  ;;  %v2103_v12 = vsub.f32 %v2067_v35, %v2096_v36  ;;  %v2104_v16 = vsub.f32 %v2072_v13, %v2096_v36 }
 0x4f8   : > { %v2105_v61 = vmul.f32 1.442695, %v2097_v4  ;;  %v2107_v3 = vmul.f32 1.442695, %v2098_v29  ;;  %v2109_v6 = vmul.f32 1.442695, %v2099_v40 }
 0x4f9   : > { %v2111_v27 = vmul.f32 1.442695, %v2100_v50  ;;  %v2113_v0 = vmul.f32 1.442695, %v2101_v48  ;;  %v2115_v14 = vmul.f32 1.442695, %v2102_v24 }
 0x4fa   : > { %3802 = vpow2.f32 %v2105_v61  ;;  %v2117_v32 = vmul.f32 1.442695, %v2103_v12  ;;  %v2119_v25 = vmul.f32 1.442695, %v2104_v16 }
 0x4fb   : > { %3804 = vpow2.f32 %v2107_v3 }
 0x4fc   : > { %3806 = vpow2.f32 %v2109_v6 }
 0x4fd   : > { %3808 = vpow2.f32 %v2111_v27 }
 0x4fe   : > { %3810 = vpow2.f32 %v2113_v0 }
 0x4ff   : > { %3812 = vpow2.f32 %v2115_v14 }
 0x500   : > { %3814 = vpow2.f32 %v2117_v32 }
 0x501   : > { %3816 = vpow2.f32 %v2119_v25 }
 0x504   : > { %v3803_v45 = vpop.eup %3802 }
 0x505   : > { %v3805_v42 = vpop.eup %3804  ;;  %v2121_v28 = vsel %vm2075_vm6, %v3803_v45, 0.0 }
 0x506   : > { %v3807_v19 = vpop.eup %3806  ;;  %v2122_v35 = vsel %vm2075_vm6, %v3805_v42, 0.0 }
 0x507   : > { %v3809_v13 = vpop.eup %3808  ;;  %v2123_v8 = vadd.f32 %v2122_v35, %v2121_v28  ;;  %v2124_v11 = vsel %vm2075_vm6, %v3807_v19, 0.0 }
 0x508   : > { %v3811_v56 = vpop.eup %3810  ;;  %v2126_v41 = vsel %vm2075_vm6, %v3809_v13, 0.0 }
 0x509   : > { %v2125_v33 = vadd.f32 %v2124_v11, %v2123_v8  ;;  %v3813_v21 = vpop.eup %3812  ;;  %v2128_v37 = vsel %vm2075_vm6, %v3811_v56, 0.0 }
 0x50a   : > { %v3815_v36 = vpop.eup %3814  ;;  %v2130_v29 = vsel %vm2075_vm6, %v3813_v21, 0.0 }
 0x50b   : > { %v2127_v63 = vadd.f32 %v2126_v41, %v2125_v33  ;;  %v3817_v40 = vpop.eup %3816  ;;  %v2132_v48 = vsel %vm2075_vm6, %v3815_v36, 0.0 }
 0x50c   : > { %v2134_v12 = vsel %vm2075_vm6, %v3817_v40, 0.0 }
 0x50d   : > { %v2129_v4 = vadd.f32 %v2128_v37, %v2127_v63 }
 0x50f   : > { %v2131_v50 = vadd.f32 %v2130_v29, %v2129_v4 }
 0x511   : > { %v2133_v24 = vadd.f32 %v2132_v48, %v2131_v50 }
 0x513   : > { %v2135_v16 = vadd.f32 %v2134_v12, %v2133_v24 }
 0x515   : > { %v2136_v61 = vrot.slane %v2135_v16, 4 }
 0x517   : > { %v2137_v3 = vadd.f32 %v2136_v61, %v2135_v16 }
 0x519   : > { %v2138_v6 = vrot.slane %v2137_v3, 2 }
 0x51b   : > { %v2139_v27 = vadd.f32 %v2138_v6, %v2137_v3 }
 0x51d   : > { %v2140_v0 = vrot.slane %v2139_v27, 1 }
 0x51f   : > { %v2141_v14 = vadd.f32 %v2140_v0, %v2139_v27 }
 0x521   : > { %3818 = vrcp.f32 %v2141_v14 }
 0x52b   : > { %v3819_v32 = vpop.eup %3818 }
 0x52c   : > { %v2143_v25 = vmul.f32 %v3819_v32, %v3803_v45  ;;  %v2144_v28 = vmul.f32 %v3819_v32, %v3805_v42  ;;  %v2145_v35 = vmul.f32 %v3819_v32, %v3807_v19  ;;  %v2146_v8 = vmul.f32 %v3819_v32, %v3809_v13  ;;  %v2469_v45 = vpop.permute.xlu1 %2468 }
 0x52d   : > { %v2147_v11 = vmul.f32 %v3819_v32, %v3811_v56  ;;  %v2148_v33 = vmul.f32 %v3819_v32, %v3813_v21  ;;  %v2149_v41 = vmul.f32 %v3819_v32, %v3815_v36  ;;  %v2150_v63 = vmul.f32 %v3819_v32, %v3817_v40  ;;  %v5303_v56 = vpop.permute.xlu0 %2470 }
 0x52e   : > { %3289 = vmatmul.mubr.msk.f32.vlgmr.msra.gmra.mrb[16].mxu1 %vm2075_vm6, %v2143_v25  ;;  %3567 = vmatprep.mubr.msk.f32.mxu0 %vm2075_vm6, %v2143_v25 }
 0x52f   : > { %3568 = vmatmul.mubr.msk.f32.vlgmr.msra.gmra.mrb[32].mxu0 %vm2075_vm6, %v2144_v28  ;;  %2272 = vmatprep.mubr.f32.mxu1 %v5818_v57 }
 0x530   : > { %3570 = vmatprep.mubr.msk.f32.mxu0 %vm2075_vm6, %v2145_v35  ;;  %v2565_v42 = vpop.permute.xlu1 %2564 }
 0x531   : > { %v5307_v37 = vpop.permute.xlu0 %2566 }
 0x532   : > { %3290 = vmatmul.mubr.msk.f32.gmra.mrb[18].mxu1 %vm2075_vm6, %v2144_v28  ;;  %v5874_v28 = vld [vmem:[#allocation65_spill] sm:$0xff] }
 0x533   : > { %3571 = vmatmul.mubr.msk.f32.gmra.mrb[34].mxu0 %vm2075_vm6, %v2146_v8  ;;  %2278 = vmatprep.mubr.f32.mxu1 %v5818_v57 }
 0x534   : > { %3573 = vmatprep.mubr.msk.f32.mxu0 %vm2075_vm6, %v2147_v11  ;;  %v5299_v19 = vpop.permute.xlu1 %2472 }
 0x535   : > { %v2654_v4 = vpop.permute.xlu0 %2653 }
 0x536   : > { %3291 = vmatmul.mubr.msk.f32.gmra.mrb[20].mxu1 %vm2075_vm6, %v2145_v35  ;;  %v3019_v35 = vmul.f32 %v4992_v5, %v5874_v28  ;;  %v5878_v28 = vld [vmem:[#allocation40_spill] sm:$0xff] }
 0x537   : > { %3574 = vmatmul.mubr.msk.f32.gmra.mrb[36].mxu0 %vm2075_vm6, %v2148_v33  ;;  %2284 = vmatprep.mubr.f32.mxu1 %v5818_v57 }
 0x538   : > { %3576 = vmatprep.mubr.msk.f32.mxu0 %vm2075_vm6, %v2149_v41  ;;  %v5301_v13 = vpop.permute.xlu1 %2474 }
 0x539   : > { %v5311_v40 = vpop.permute.xlu0 %2655 }
 0x53a   : > { %3292 = vmatmul.mubr.msk.f32.gmra.mrb[22].mxu1 %vm2075_vm6, %v2146_v8 }
 0x53b   : > { %3577 = vmatmul.mubr.msk.f32.gmra.mrb[38].mxu0 %vm2075_vm6, %v2150_v63  ;;  %2290 = vmatprep.mubr.f32.mxu1 %v5818_v57 }
 0x53c   : > { %v5305_v21 = vpop.permute.xlu1 %2568 }
 0x53d   : > { %v5315_v50 = vpop.permute.xlu0 %2570 }
 0x53e   : > { %3293 = vmatmul.mubr.msk.f32.gmra.mrb[24].mxu1 %vm2075_vm6, %v2147_v11 }
 0x53f   : > { %2296 = vmatprep.mubr.f32.mxu1 %v5818_v57 }
 0x540   : > { %v5309_v36 = vpop.permute.xlu1 %2476 }
 0x541   : > { %v5319_v24 = vpop.permute.xlu0 %2657 }
 0x542   : > { %3294 = vmatmul.mubr.msk.f32.gmra.mrb[26].mxu1 %vm2075_vm6, %v2148_v33  ;;  %5869 = vst [vmem:[#allocation15_spill] sm:$0xff] %v5319_v24 }
 0x543   : > { %2302 = vmatprep.mubr.f32.mxu1 %v5818_v57 }
 0x544   : > { %v2768_v29 = vpop.permute.xlu1 %2767 }
 0x545   : > { %v5323_v16 = vpop.permute.xlu0 %2478 }
 0x546   : > { %3295 = vmatmul.mubr.msk.f32.gmra.mrb[28].mxu1 %vm2075_vm6, %v2149_v41  ;;  %5871 = vst [vmem:[#allocation53_spill] sm:$0xff] %v5323_v16 }
 0x547   : > { %2308 = vmatprep.mubr.f32.mxu1 %v5818_v57 }
 0x548   : > { %v5313_v57 = vpop.permute.xlu1 %2659 }
 0x549   : > { %5867 = vst [vmem:[#allocation36_spill] sm:$0xff] %v5313_v57  ;;  %v5327_v3 = vpop.permute.xlu0 %2769 }
 0x54a   : > { %3296 = vmatmul.mubr.msk.f32.gmra.mrb[30].mxu1 %vm2075_vm6, %v2150_v63  ;;  %v5875_v63 = vld [vmem:[#allocation37_spill] sm:$0xff] }
 0x54b   : > { %v3018_v16 = vmul.f32 %v4978_v58, %v5875_v63 }
 0x54c   : > { %v5317_v48 = vpop.permute.xlu1 %2572 }
 0x54d   : > { %5868 = vst [vmem:[#allocation64_spill] sm:$0xff] %v5317_v48  ;;  %v2857_v27 = vpop.permute.xlu0 %2856 }
 0x550   : > { %v5321_v12 = vpop.permute.xlu1 %2574 }
 0x551   : > { %5870 = vst [vmem:[#allocation68_spill] sm:$0xff] %v5321_v12  ;;  %v5333_v14 = vpop.permute.xlu0 %2858  ;;  %v5876_v12 = vld [vmem:[#allocation33_spill] sm:$0xff] }
 0x554   : > { %v5325_v61 = vpop.permute.xlu1 %2480 }
 0x555   : > { %v5347_v48 = vpop.permute.xlu0 %2661 }
 0x558   : > { %v5329_v6 = vpop.permute.xlu1 %2771 }
 0x55c   : > { %v5331_v0 = vpop.permute.xlu1 %2482 }
 0x55d   : > { %5872 = vst [vmem:[#allocation49_spill] sm:$0xff] %v5331_v0  ;;  %v2726_v0 = vmul.f32 %v4946_v2, %v5876_v12  ;;  %v3021_v2 = vmul.f32 %v5035_v26, %v5878_v28  ;;  %v5879_v12 = vld [vmem:[#allocation63_spill] sm:$0xff] }
 0x560   : > { %v5335_v32 = vpop.permute.xlu1 %2773 }
 0x561   : > { %5873 = vst [vmem:[#allocation16_spill] sm:$0xff] %v5335_v32 }
 0x601   : > { %v5337_v25 = vpop.f32.mrb[16].mxu1 }
 0x602   : > { %v2492_v8 = vmul.f32 %v2469_v45, %v5337_v25  ;;  %v2677_v11 = vmul.f32 %v2654_v4, %v5337_v25  ;;  %v2270_v33 = vpop.f32.mrb[17].mxu1  ;;  %v3569_v41 = vpop.f32.mrb[32].mxu0  ;;  %v5877_v45 = vld [vmem:[#allocation35_spill] sm:$0xff] }
 0x603   : > { %v5349_v32 = vmul.f32 %v3569_v41, %v3019_v35  ;;  %v2381_v24 = vpop.f32.mrb[33].mxu0  ;;  %v5355_v5 = vmul.f32 %v2726_v0, %v2270_v33  ;;  %v2429_v4 = vmul.f32 %v4963_v9, %v5877_v45  ;;  %v2727_v35 = vmul.f32 %v4957_v31, %v5879_v12  ;;  %v5373_v9 = vpop.permute.xlu1 %2576  ;;  %v5883_v31 = vld [vmem:[#allocation67_spill] sm:$0xff]  ;;  %v5884_v12 = vld [vmem:[#allocation44_spill] sm:$0xff] }
 0x604   : > { %v5351_v57 = vmul.f32 %v3018_v16, %v2381_v24  ;;  %2693 = vrot.lane.b32.xlu0 %v2677_v11, %s3839_s26  ;;  %2508 = vrot.lane.b32.xlu1 %v2492_v8, %s3838_s19  ;;  %v2588_v24 = vmul.f32 %v2565_v42, %v5337_v25  ;;  %v2880_v16 = vmul.f32 %v2857_v27, %v2270_v33  ;;  %v5880_v8 = vld [vmem:[#allocation66_spill] sm:$0xff] }
 0x605   : > { %v5359_v58 = vpop.f32.mrb[18].mxu1  ;;  %v3020_v0 = vmul.f32 %v5027_v53, %v5880_v8  ;;  %v2430_v42 = vmul.f32 %v4980_v18, %v5883_v31  ;;  %v2946_v53 = vpop.permute.xlu0 %2945  ;;  %v2791_v8 = vmul.f32 %v2768_v29, %v2270_v33  ;;  %v2729_v29 = vmul.f32 %v4994_v17, %v4287_v46 }
 0x606   : > { %v5366_v41 = vpop.f32.mrb[19].mxu1  ;;  %v3572_v11 = vpop.f32.mrb[34].mxu0  ;;  %v5371_v63 = vmul.f32 %v2429_v4, %v5359_v58 }
 0x607   : > { %v5375_v45 = vmul.f32 %v3572_v11, %v3021_v2  ;;  %v2391_v26 = vpop.f32.mrb[35].mxu0  ;;  %v5384_v27 = vmul.f32 %v2727_v35, %v5366_v41  ;;  %v3023_v2 = vmul.f32 %v5083_v60, %v5884_v12  ;;  %v2728_v11 = vmul.f32 %v4965_v22, %v4285_v44  ;;  %v5410_v60 = vpop.permute.xlu1 %2578 }
 0x608   : > { %v5377_v28 = vmul.f32 %v3020_v0, %v2391_v26  ;;  %2604 = vrot.lane.b32.xlu1 %v2588_v24, %s3840_s28  ;;  %2896 = vrot.lane.b32.xlu0 %v2880_v16, %s3840_s28  ;;  %v2969_v0 = vmul.f32 %v2946_v53, %v2270_v33  ;;  %v5885_v26 = vld [vmem:[#allocation42_spill] sm:$0xff]  ;;  %v2431_v44 = vmul.f32 %v5006_v20, %v4443_v59  ;;  %v5886_v33 = vld [vmem:[#allocation48_spill] sm:$0xff] }
 0x609   : > { %5881 = vst [vmem:[#allocation59_spill] sm:$0xff] %v5375_v45  ;;  %v5386_v4 = vpop.f32.mrb[20].mxu1  ;;  %v3022_v18 = vmul.f32 %v5075_v15, %v5885_v26 }
 0x60a   : > { %5882 = vst [vmem:[#allocation17_spill] sm:$0xff] %v5377_v28  ;;  %v5392_v24 = vpop.f32.mrb[21].mxu1  ;;  %v3575_v16 = vpop.f32.mrb[36].mxu0  ;;  %v5397_v35 = vmul.f32 %v2430_v42, %v5386_v4  ;;  %v2493_v42 = vmul.f32 %v5303_v56, %v5359_v58  ;;  %v2494_v53 = vmul.f32 %v5299_v19, %v5386_v4  ;;  %v2432_v19 = vmul.f32 %v5019_v10, %v4289_v47 }
 0x60b   : > { %v5399_v31 = vmul.f32 %v3575_v16, %v3023_v2  ;;  %v2401_v45 = vpop.f32.mrb[37].mxu0  ;;  %v5408_v22 = vmul.f32 %v2728_v11, %v5392_v24  ;;  %v5442_v56 = vpop.permute.xlu0 %2663  ;;  %v2730_v11 = vmul.f32 %v5017_v55, %v4421_v38  ;;  %v3042_v38 = vld [vmem:[%s5675_s3] sm:$0xff]  ;;  %v3043_v55 = vld [vmem:[%s5675_s3 + $0x8] sm:$0xff] }
 0x60c   : > { %v5401_v28 = vmul.f32 %v3022_v18, %v2401_v45  ;;  %2985 = vrot.lane.b32.xlu0 %v2969_v0, %s3839_s26  ;;  %2807 = vrot.lane.b32.xlu1 %v2791_v8, %s3838_s19  ;;  %v3024_v45 = vmul.f32 %v5122_v30, %v5886_v33  ;;  %v2589_v8 = vmul.f32 %v5307_v37, %v5359_v58  ;;  %v5461_v10 = vpop.permute.xlu1 %2665 }
 0x60d   : > { %v5412_v15 = vpop.f32.mrb[22].mxu1  ;;  %v2590_v0 = vmul.f32 %v5305_v21, %v5386_v4  ;;  %v3707_v37 = vpack.c.bf16 %v3043_v55, %v3042_v38  ;;  %v2793_v33 = vmul.f32 %v5329_v6, %v5392_v24  ;;  %v2434_v6 = vmul.f32 %v5067_v1, %v4297_v51 }
 0x60e   : > { %v5424_v59 = vmul.f32 %v5315_v50, %v5412_v15  ;;  %v5426_v20 = vpop.f32.mrb[23].mxu1  ;;  %v5428_v12 = vpop.f32.mrb[38].mxu0  ;;  %v5431_v2 = vmul.f32 %v2431_v44, %v5412_v15  ;;  %v2731_v44 = vmul.f32 %v5043_v34, %v5816_v62  ;;  %v3044_v34 = vld [vmem:[%s5675_s3 + $0x10] sm:$0xff]  ;;  %v2881_v55 = vmul.f32 %v5333_v14, %v5366_v41 }
 0x60f   : > { %v5434_v46 = vmul.f32 %v2729_v29, %v5426_v20  ;;  %v2411_v17 = vpop.f32.mrb[39].mxu0  ;;  %v2678_v29 = vmul.f32 %v5311_v40, %v5359_v58  ;;  %3708 = vmatprep.subr.bf16.mxu1 %v3707_v37  ;;  %v3045_v40 = vld [vmem:[%s5675_s3 + $0x18] sm:$0xff]  ;;  %v2732_v58 = vmul.f32 %v5059_v52, %v5817_v7  ;;  %v2435_v7 = vmul.f32 %v5091_v23, %v5820_v43 }
 0x610   : > { %v5436_v30 = vmul.f32 %v3024_v45, %v2411_v17  ;;  %2510 = vrot.lane.b32.xlu0 %v2493_v42, %s3838_s19  ;;  %2512 = vrot.lane.b32.xlu1 %v2494_v53, %s3838_s19  ;;  %v2948_v53 = vpop.permute.xlu0 %2947  ;;  %v2792_v17 = vmul.f32 %v5327_v3, %v5366_v41 }
 0x611   : > { %v5444_v50 = vpop.f32.mrb[24].mxu1  ;;  %3710 = vmatpush3.bf16.msra.mxu1 %v3707_v37  ;;  %v2495_v37 = vmul.f32 %v5301_v13, %v5412_v15  ;;  %v5888_v13 = vld [vmem:[#allocation36_spill] sm:$0xff] }
 0x612   : > { %v5454_v16 = vmul.f32 %v5309_v36, %v5444_v50  ;;  %v5456_v26 = vpop.f32.mrb[25].mxu1  ;;  %v5459_v47 = vmul.f32 %v2432_v19, %v5444_v50  ;;  %v2433_v36 = vmul.f32 %v5051_v54, %v4293_v49  ;;  %v2950_v54 = vpop.permute.xlu1 %2949  ;;  %v2680_v14 = vmul.f32 %v5888_v13, %v5412_v15  ;;  %v5891_v15 = vld [vmem:[#allocation64_spill] sm:$0xff] }
 0x613   : > { %v5470_v21 = vmul.f32 %v2730_v11, %v5456_v26  ;;  %v2971_v19 = vmul.f32 %v2950_v54, %v5392_v24  ;;  %v5890_v54 = vld [vmem:[#allocation16_spill] sm:$0xff] }
 0x614   : > { %2606 = vrot.lane.b32.xlu0 %v2589_v8, %s3840_s28  ;;  %2608 = vrot.lane.b32.xlu1 %v2590_v0, %s3840_s28  ;;  %v3711_v0 = vpack.c.bf16 %v3045_v40, %v3044_v34  ;;  %v2861_v52 = vpop.permute.xlu0 %2860  ;;  %v2794_v34 = vmul.f32 %v5890_v54, %v5426_v20 }
 0x615   : > { %v5476_v18 = vpop.f32.mrb[26].mxu1 }
 0x616   : > { %v5484_v45 = vpop.f32.mrb[27].mxu1  ;;  %v5487_v42 = vmul.f32 %v2433_v36, %v5476_v18  ;;  %3712 = vmatprep.subr.bf16.mxu1 %v3711_v0 }
 0x617   : > { %v5490_v49 = vmul.f32 %v2731_v44, %v5484_v45  ;;  %3714 = vmatpush3.bf16.msra.mxu1 %v3711_v0  ;;  %v5892_v0 = vld [vmem:[#allocation68_spill] sm:$0xff] }
 0x618   : > { %2695 = vrot.lane.b32.xlu0 %v2678_v29, %s3839_s26  ;;  %2811 = vrot.lane.b32.xlu1 %v2793_v33, %s3838_s19  ;;  %v5889_v29 = vld [vmem:[#allocation15_spill] sm:$0xff] }
 0x619   : > { %v5494_v62 = vpop.f32.mrb[28].mxu1  ;;  %v2679_v33 = vmul.f32 %v5889_v29, %v5386_v4 }
 0x61a   : > { %v2498_v11 = vmul.f32 %v5325_v61, %v5494_v62  ;;  %v5511_v8 = vpop.f32.mrb[29].mxu1  ;;  %v5514_v38 = vmul.f32 %v2434_v6, %v5494_v62  ;;  %v5887_v61 = vld [vmem:[#allocation38_spill] sm:$0xff]  ;;  %v2592_v6 = vmul.f32 %v5891_v15, %v5444_v50 }
 0x61b   : > { %v5519_v51 = vmul.f32 %v2732_v58, %v5511_v8  ;;  %v2733_v3 = vmul.f32 %v5135_v39, %v5887_v61  ;;  %v2970_v39 = vmul.f32 %v2948_v53, %v5366_v41  ;;  %v2882_v41 = vmul.f32 %v2861_v52, %v5392_v24  ;;  %v2778_v53 = vpop.permute.xlu1 %2777  ;;  %v5895_v15 = vld [vmem:[#allocation34_spill] sm:$0xff] }
 0x61c   : > { %2809 = vrot.lane.b32.xlu0 %v2792_v17, %s3838_s19  ;;  %2989 = vrot.lane.b32.xlu1 %v2971_v19, %s3839_s26  ;;  %v2796_v52 = vmul.f32 %v2778_v53, %v5484_v45 }
 0x61d   : > { %v5523_v1 = vpop.f32.mrb[30].mxu1 }
 0x61e   : > { %v5533_v36 = vmul.f32 %v5410_v60, %v5523_v1  ;;  %v5535_v44 = vpop.f32.mrb[31].mxu1  ;;  %v5538_v43 = vmul.f32 %v2435_v7, %v5523_v1  ;;  %v2863_v60 = vpop.permute.xlu0 %2862  ;;  %v2593_v7 = vmul.f32 %v5892_v0, %v5476_v18 }
 0x61f   : > { %v5541_v23 = vmul.f32 %v2733_v3, %v5535_v44  ;;  %v2865_v58 = vpop.permute.xlu1 %2864  ;;  %v2883_v17 = vmul.f32 %v2863_v60, %v5426_v20 }
 0x620   : > { %2898 = vrot.lane.b32.xlu0 %v2881_v55, %s3840_s28  ;;  %2514 = vrot.lane.b32.xlu1 %v2495_v37, %s3838_s19  ;;  %v2884_v24 = vmul.f32 %v2865_v58, %v5456_v26  ;;  %v2594_v37 = vmul.f32 %v5373_v9, %v5494_v62 }
 0x622   : > { %v2776_v40 = vpop.permute.xlu0 %2775 }
 0x623   : > { %v2795_v3 = vmul.f32 %v2776_v40, %v5456_v26 }
 0x624   : > { %2987 = vrot.lane.b32.xlu0 %v2970_v39, %s3839_s26  ;;  %2699 = vrot.lane.b32.xlu1 %v2680_v14, %s3839_s26  ;;  %v2683_v39 = vmul.f32 %v5461_v10, %v5494_v62  ;;  %v5894_v14 = vld [vmem:[#allocation49_spill] sm:$0xff] }
 0x625   : > { %v2499_v60 = vmul.f32 %v5894_v14, %v5523_v1 }
 0x626   : > { %v2668_v4 = vpop.permute.xlu0 %2667 }
 0x628   : > { %2697 = vrot.lane.b32.xlu0 %v2679_v33, %s3839_s26  ;;  %2813 = vrot.lane.b32.xlu1 %v2794_v34, %s3838_s19  ;;  %v2684_v33 = vmul.f32 %v2668_v4, %v5523_v1  ;;  %v2420_v1 = vld [vmem:[#allocation3 + $0x7] sm:$0xff] }
 0x62a   : > { %v2952_v19 = vpop.permute.xlu0 %2951 }
 0x62c   : > { %2900 = vrot.lane.b32.xlu0 %v2882_v41, %s3840_s28  ;;  %2516 = vrot.lane.b32.xlu1 %v5454_v16, %s3838_s19  ;;  %v2972_v16 = vmul.f32 %v2952_v19, %v5426_v20 }
 0x62e   : > { %v2867_v61 = vpop.permute.xlu0 %2866 }
 0x62f   : > { %v2885_v13 = vmul.f32 %v2867_v61, %v5484_v45 }
 0x630   : > { %2610 = vrot.lane.b32.xlu0 %v5424_v59, %s3840_s28  ;;  %2612 = vrot.lane.b32.xlu1 %v2592_v6, %s3840_s28  ;;  %v2681_v59 = vmul.f32 %v5347_v48, %v5444_v50  ;;  %v5893_v48 = vld [vmem:[#allocation53_spill] sm:$0xff]  ;;  %v2428_v6 = vmul.f32 %v2420_v1, %v5895_v15 }
 0x631   : > { %v2497_v50 = vmul.f32 %v5893_v48, %v5476_v18 }
 0x632   : > { %v2954_v20 = vpop.permute.xlu0 %2953 }
 0x633   : > { %v2973_v55 = vmul.f32 %v2954_v20, %v5456_v26  ;;  %v2682_v26 = vmul.f32 %v5442_v56, %v5476_v18 }
 0x634   : > { %2902 = vrot.lane.b32.xlu0 %v2883_v17, %s3840_s28  ;;  %2904 = vrot.lane.b32.xlu1 %v2884_v24, %s3840_s28  ;;  %v2436_v17 = vmul.f32 %v2428_v6, %v5337_v25 }
 0x636   : > { %v2956_v62 = vpop.permute.xlu0 %2955 }
 0x637   : > { %v2974_v29 = vmul.f32 %v2956_v62, %v5484_v45 }
 0x638   : > { %2991 = vrot.lane.b32.xlu0 %v2972_v16, %s3839_s26  ;;  %2614 = vrot.lane.b32.xlu1 %v2593_v7, %s3840_s28 }
 0x63a   : > { %v2871_v54 = vpop.permute.xlu0 %2870 }
 0x63b   : > { %v2887_v40 = vmul.f32 %v2871_v54, %v5535_v44 }
 0x63c   : > { %2701 = vrot.lane.b32.xlu0 %v2681_v59, %s3839_s26  ;;  %2817 = vrot.lane.b32.xlu1 %v2796_v52, %s3838_s19 }
 0x640   : > { %2815 = vrot.lane.b32.xlu0 %v2795_v3, %s3838_s19  ;;  %2520 = vrot.lane.b32.xlu1 %v2498_v11, %s3838_s19  ;;  %v2780_v11 = vpop.permute.xlu1 %2779 }
 0x641   : > { %v2797_v9 = vmul.f32 %v2780_v11, %v5511_v8 }
 0x644   : > { %2993 = vrot.lane.b32.xlu0 %v2973_v55, %s3839_s26  ;;  %2616 = vrot.lane.b32.xlu1 %v2594_v37, %s3840_s28  ;;  %v2782_v10 = vpop.permute.xlu1 %2781 }
 0x645   : > { %v2798_v34 = vmul.f32 %v2782_v10, %v5535_v44 }
 0x648   : > { %2518 = vrot.lane.b32.xlu0 %v2497_v50, %s3838_s19  ;;  %2705 = vrot.lane.b32.xlu1 %v2683_v39, %s3839_s26  ;;  %v2869_v56 = vpop.permute.xlu1 %2868 }
 0x649   : > { %v2886_v18 = vmul.f32 %v2869_v56, %v5511_v8 }
 0x64c   : > { %2703 = vrot.lane.b32.xlu0 %v2682_v26, %s3839_s26  ;;  %2819 = vrot.lane.b32.xlu1 %v2797_v9, %s3838_s19  ;;  %v2958_v45 = vpop.permute.xlu1 %2957 }
 0x64d   : > { %v2975_v41 = vmul.f32 %v2958_v45, %v5511_v8 }
 0x650   : > { %2906 = vrot.lane.b32.xlu0 %v2885_v13, %s3840_s28  ;;  %2522 = vrot.lane.b32.xlu1 %v2499_v60, %s3838_s19 }
 0x654   : > { %2995 = vrot.lane.b32.xlu0 %v2974_v29, %s3839_s26  ;;  %2618 = vrot.lane.b32.xlu1 %v5533_v36, %s3840_s28  ;;  %v2960_v36 = vpop.permute.xlu0 %2959 }
 0x655   : > { %v2976_v53 = vmul.f32 %v2960_v36, %v5535_v44 }
 0x658   : > { %2707 = vrot.lane.b32.xlu0 %v2684_v33, %s3839_s26  ;;  %2908 = vrot.lane.b32.xlu1 %v2886_v18, %s3840_s28 }
 0x65c   : > { %2910 = vrot.lane.b32.xlu0 %v2887_v40, %s3840_s28  ;;  %2821 = vrot.lane.b32.xlu1 %v2798_v34, %s3838_s19 }
 0x660   : > { %2999 = vrot.lane.b32.xlu0 %v2976_v53, %s3839_s26  ;;  %2997 = vrot.lane.b32.xlu1 %v2975_v41, %s3839_s26 }
 0x676   : > { %v2694_v4 = vpop.permute.xlu0 %2693  ;;  %v2509_v58 = vpop.permute.xlu1 %2508 }
 0x677   : > { %v2532_v24 = vadd.f32 %v2509_v58, %v2436_v17  ;;  %v5896_v17 = vld [vmem:[#allocation17_spill] sm:$0xff] }
 0x67a   : > { %v2605_v19 = vpop.permute.xlu1 %2604  ;;  %v2897_v16 = vpop.permute.xlu0 %2896 }
 0x67b   : > { %v2628_v0 = vadd.f32 %v2605_v19, %v2532_v24 }
 0x67d   : > { %v2717_v7 = vadd.f32 %v2694_v4, %v2628_v0 }
 0x67e   : > { %v2986_v59 = vpop.permute.xlu0 %2985  ;;  %v2808_v8 = vpop.permute.xlu1 %2807 }
 0x67f   : > { %v2742_v44 = vadd.f32 %v5355_v5, %v2717_v7 }
 0x681   : > { %v2831_v52 = vadd.f32 %v2808_v8, %v2742_v44 }
 0x682   : > { %v2511_v61 = vpop.permute.xlu0 %2510  ;;  %v2513_v3 = vpop.permute.xlu1 %2512 }
 0x683   : > { %v2920_v20 = vadd.f32 %v2897_v16, %v2831_v52  ;;  %v2533_v25 = vadd.f32 %v2511_v61, %v5371_v63 }
 0x685   : > { %v3009_v55 = vadd.f32 %v2986_v59, %v2920_v20  ;;  %v5897_v20 = vld [vmem:[#allocation59_spill] sm:$0xff] }
 0x686   : > { %v2607_v37 = vpop.permute.xlu0 %2606  ;;  %v2609_v48 = vpop.permute.xlu1 %2608 }
 0x687   : > { %v3034_v50 = vadd.f32 %v5351_v57, %v3009_v55  ;;  %v2629_v39 = vadd.f32 %v2607_v37, %v2533_v25  ;;  %v2534_v57 = vadd.f32 %v2513_v3, %v5397_v35 }
 0x689   : > { %3587 = vmatprep.mubr.msk.f32.mxu1 %vm433_vm0, %v3034_v50  ;;  %v2630_v63 = vadd.f32 %v2609_v48, %v2534_v57 }
 0x68a   : > { %v2696_v11 = vpop.permute.xlu0 %2695  ;;  %v2812_v26 = vpop.permute.xlu1 %2811 }
 0x68b   : > { %v2718_v9 = vadd.f32 %v2696_v11, %v2629_v39 }
 0x68d   : > { %v2743_v13 = vadd.f32 %v5384_v27, %v2718_v9 }
 0x68e   : > { %v2810_v5 = vpop.permute.xlu0 %2809  ;;  %v2990_v14 = vpop.permute.xlu1 %2989 }
 0x68f   : > { %v2832_v62 = vadd.f32 %v2810_v5, %v2743_v13 }
 0x692   : > { %v2899_v60 = vpop.permute.xlu0 %2898  ;;  %v2515_v10 = vpop.permute.xlu1 %2514 }
 0x693   : > { %v2921_v29 = vadd.f32 %v2899_v60, %v2832_v62  ;;  %v2535_v1 = vadd.f32 %v2515_v10, %v5431_v2 }
 0x696   : > { %v2988_v56 = vpop.permute.xlu0 %2987  ;;  %v2700_v18 = vpop.permute.xlu1 %2699 }
 0x697   : > { %v3010_v33 = vadd.f32 %v2988_v56, %v2921_v29 }
 0x699   : > { %v3035_v54 = vadd.f32 %v5349_v32, %v3010_v33 }
 0x69a   : > { %v2698_v34 = vpop.permute.xlu0 %2697  ;;  %v2814_v40 = vpop.permute.xlu1 %2813 }
 0x69b   : > { %v2719_v45 = vadd.f32 %v2698_v34, %v2630_v63  ;;  %3588 = vmatmul.mubr.msk.f32.vlgmr.msra.gmra.mrb[32].mxu1 %vm433_vm0, %v3035_v54 }
 0x69d   : > { %v2744_v27 = vadd.f32 %v5408_v22, %v2719_v45 }
 0x69e   : > { %v2901_v36 = vpop.permute.xlu0 %2900  ;;  %v2517_v41 = vpop.permute.xlu1 %2516 }
 0x69f   : > { %v2833_v53 = vadd.f32 %v2812_v26, %v2744_v27  ;;  %v2536_v8 = vadd.f32 %v2517_v41, %v5459_v47 }
 0x6a1   : > { %v2922_v15 = vadd.f32 %v2901_v36, %v2833_v53 }
 0x6a2   : > { %v2611_v6 = vpop.permute.xlu0 %2610  ;;  %v2613_v4 = vpop.permute.xlu1 %2612 }
 0x6a3   : > { %v3011_v35 = vadd.f32 %v2990_v14, %v2922_v15  ;;  %v2631_v58 = vadd.f32 %v2611_v6, %v2535_v1  ;;  %v2632_v44 = vadd.f32 %v2613_v4, %v2536_v8 }
 0x6a5   : > { %v3036_v24 = vadd.f32 %v5896_v17, %v3011_v35  ;;  %v2720_v32 = vadd.f32 %v2700_v18, %v2631_v58  ;;  %v5898_v58 = vld [vmem:[#allocation50_spill] sm:$0xff] }
 0x6a6   : > { %v2903_v19 = vpop.permute.xlu0 %2902  ;;  %v2905_v16 = vpop.permute.xlu1 %2904 }
 0x6a7   : > { %v2745_v0 = vadd.f32 %v5434_v46, %v2720_v32  ;;  %3590 = vmatprep.mubr.msk.f32.mxu1 %vm433_vm0, %v3036_v24 }
 0x6a9   : > { %v2834_v22 = vadd.f32 %v2814_v40, %v2745_v0 }
 0x6aa   : > { %v2992_v7 = vpop.permute.xlu0 %2991  ;;  %v2615_v59 = vpop.permute.xlu1 %2614 }
 0x6ab   : > { %v2923_v2 = vadd.f32 %v2903_v19, %v2834_v22 }
 0x6ad   : > { %v3012_v52 = vadd.f32 %v2992_v7, %v2923_v2 }
 0x6ae   : > { %v2702_v61 = vpop.permute.xlu0 %2701  ;;  %v2818_v3 = vpop.permute.xlu1 %2817 }
 0x6af   : > { %v3037_v55 = vadd.f32 %v5897_v20, %v3012_v52  ;;  %v2721_v37 = vadd.f32 %v2702_v61, %v2632_v44 }
 0x6b1   : > { %3591 = vmatmul.mubr.msk.f32.gmra.mrb[34].mxu1 %vm433_vm0, %v3037_v55  ;;  %v2746_v48 = vadd.f32 %v5470_v21, %v2721_v37 }
 0x6b2   : > { %v2816_v46 = vpop.permute.xlu0 %2815  ;;  %v2521_v50 = vpop.permute.xlu1 %2520 }
 0x6b3   : > { %v2835_v25 = vadd.f32 %v2816_v46, %v2746_v48  ;;  %v2538_v47 = vadd.f32 %v2521_v50, %v5514_v38 }
 0x6b5   : > { %v2924_v39 = vadd.f32 %v2905_v16, %v2835_v25 }
 0x6b6   : > { %v2994_v11 = vpop.permute.xlu0 %2993  ;;  %v2617_v26 = vpop.permute.xlu1 %2616 }
 0x6b7   : > { %v3013_v9 = vadd.f32 %v2994_v11, %v2924_v39  ;;  %v2634_v5 = vadd.f32 %v2617_v26, %v2538_v47 }
 0x6b9   : > { %v3038_v13 = vadd.f32 %v5401_v28, %v3013_v9 }
 0x6ba   : > { %v2519_v14 = vpop.permute.xlu0 %2518  ;;  %v2706_v60 = vpop.permute.xlu1 %2705 }
 0x6bb   : > { %v2537_v10 = vadd.f32 %v2519_v14, %v5487_v42  ;;  %v2723_v62 = vadd.f32 %v2706_v60, %v2634_v5  ;;  %3593 = vmatprep.mubr.msk.f32.mxu1 %vm433_vm0, %v3038_v13 }
 0x6bd   : > { %v2633_v21 = vadd.f32 %v2615_v59, %v2537_v10  ;;  %v2748_v29 = vadd.f32 %v5519_v51, %v2723_v62 }
 0x6be   : > { %v2704_v56 = vpop.permute.xlu0 %2703  ;;  %v2820_v18 = vpop.permute.xlu1 %2819 }
 0x6bf   : > { %v2722_v57 = vadd.f32 %v2704_v56, %v2633_v21  ;;  %v2837_v4 = vadd.f32 %v2820_v18, %v2748_v29 }
 0x6c1   : > { %v2747_v33 = vadd.f32 %v5490_v49, %v2722_v57  ;;  %v3017_v49 = vld [vmem:[#allocation3 + $0x51] sm:$0xff] }
 0x6c2   : > { %v2907_v38 = vpop.permute.xlu0 %2906  ;;  %v2523_v63 = vpop.permute.xlu1 %2522  ;;  %v3025_v17 = vmul.f32 %v3017_v49, %v5898_v58 }
 0x6c3   : > { %v2836_v54 = vadd.f32 %v2818_v3, %v2747_v33  ;;  %v2539_v45 = vadd.f32 %v2523_v63, %v5538_v43 }
 0x6c4   : > { %v3033_v19 = vmul.f32 %v5428_v12, %v3025_v17 }
 0x6c5   : > { %v2925_v28 = vadd.f32 %v2907_v38, %v2836_v54 }
 0x6c6   : > { %v2996_v34 = vpop.permute.xlu0 %2995  ;;  %v2619_v40 = vpop.permute.xlu1 %2618 }
 0x6c7   : > { %v3014_v42 = vadd.f32 %v2996_v34, %v2925_v28  ;;  %v2635_v36 = vadd.f32 %v2619_v40, %v2539_v45 }
 0x6c9   : > { %v3039_v27 = vadd.f32 %v5399_v31, %v3014_v42 }
 0x6ca   : > { %v2708_v41 = vpop.permute.xlu0 %2707  ;;  %v2909_v53 = vpop.permute.xlu1 %2908 }
 0x6cb   : > { %v2724_v51 = vadd.f32 %v2708_v41, %v2635_v36  ;;  %3594 = vmatmul.mubr.msk.f32.gmra.mrb[36].mxu1 %vm433_vm0, %v3039_v27  ;;  %v2926_v43 = vadd.f32 %v2909_v53, %v2837_v4 }
 0x6cd   : > { %v2749_v1 = vadd.f32 %v5541_v23, %v2724_v51  ;;  %v3305_v23 = vld [vmem:[%s5676_s4] ss:$0 sm:$0xff] }
 0x6ce   : > { %v2911_v15 = vpop.permute.xlu0 %2910  ;;  %v2822_v6 = vpop.permute.xlu1 %2821 }
 0x6cf   : > { %v2838_v35 = vadd.f32 %v2822_v6, %v2749_v1 }
 0x6d1   : > { %v2927_v24 = vadd.f32 %v2911_v15, %v2838_v35 }
 0x6d2   : > { %v3000_v32 = vpop.permute.xlu0 %2999  ;;  %v2998_v31 = vpop.permute.xlu1 %2997 }
 0x6d3   : > { %v3016_v16 = vadd.f32 %v3000_v32, %v2927_v24  ;;  %v3015_v0 = vadd.f32 %v2998_v31, %v2926_v43 }
 0x6d5   : > { %v3041_v22 = vadd.f32 %v3033_v19, %v3016_v16  ;;  %v3040_v7 = vadd.f32 %v5436_v30, %v3015_v0 }
 0x6d7   : > { %3596 = vmatprep.mubr.msk.f32.mxu1 %vm433_vm0, %v3040_v7 }
 0x6d8   : > { %3597 = vmatmul.mubr.msk.f32.gmra.mrb[38].mxu1 %vm433_vm0, %v3041_v22 }
 0x76e   : > { %v3589_v59 = vpop.f32.mrb[32].mxu1 }
 0x76f   : > { %v3149_v12 = vadd.f32 %v3589_v59, %v3305_v23  ;;  %v3143_v8 = vpop.f32.mrb[33].mxu1 }
 0x770   : > { %v3144_v2 = vadd.f32 %v3305_v23, %v3143_v8 }
 0x771   : > { %3183 = vst.msk [vmem:[%s413_s23 + $0x8] sm:$0xff] %vm433_vm0, %v3149_v12 }
 0x772   : > { %3182 = vst.msk [vmem:[%s413_s23] sm:$0xff] %vm433_vm0, %v3144_v2 }
 0x784   : > { %v3592_v30 = vpop.f32.mrb[34].mxu1 }
 0x785   : > { %v3159_v44 = vadd.f32 %v3592_v30, %v3305_v23  ;;  %v3153_v52 = vpop.f32.mrb[35].mxu1 }
 0x786   : > { %v3154_v61 = vadd.f32 %v3305_v23, %v3153_v52 }
 0x787   : > { %3185 = vst.msk [vmem:[%s413_s23 + $0x18] sm:$0xff] %vm433_vm0, %v3159_v44 }
 0x788   : > { %3184 = vst.msk [vmem:[%s413_s23 + $0x10] sm:$0xff] %vm433_vm0, %v3154_v61 }
 0x79e   : > { %v3595_v3 = vpop.f32.mrb[36].mxu1 }
 0x79f   : > { %v3169_v20 = vadd.f32 %v3595_v3, %v3305_v23  ;;  %v3163_v55 = vpop.f32.mrb[37].mxu1 }
 0x7a0   : > { %v3164_v37 = vadd.f32 %v3305_v23, %v3163_v55 }
 0x7a1   : > { %3187 = vst.msk [vmem:[%s413_s23 + $0x28] sm:$0xff] %vm433_vm0, %v3169_v20 }
 0x7a2   : > { %3186 = vst.msk [vmem:[%s413_s23 + $0x20] sm:$0xff] %vm433_vm0, %v3164_v37 }
 0x7ab   : > { %v3598_v48 = vpop.f32.mrb[38].mxu1 }
 0x7ac   : > { %v3179_v46 = vadd.f32 %v3598_v48, %v3305_v23  ;;  %v3173_v50 = vpop.f32.mrb[39].mxu1 }
 0x7ad   : > { %v3174_v25 = vadd.f32 %v3305_v23, %v3173_v50 }
 0x7ae   : > { %3189 = vst.msk [vmem:[%s413_s23 + $0x38] sm:$0xff] %vm433_vm0, %v3179_v46 }
 0x7af   : > { %3188 = vst.msk [vmem:[%s413_s23 + $0x30] sm:$0xff] %vm433_vm0, %v3174_v25 }
 0x7b0 PF: > { %s22_s21 = sadd.s32 1, %s3826_s21  }
 0x7b1   : > { %p19_p4 = scmp.ge.s32.totalorder %s22_s21, 4  }
 0x7b3   :  { %21 = sbr.rel (!%p19_p4) target bundleno = 1 (0x1), region = 98 }

</bundles_post_ra>
